<compile_context>
chip_gen: v5e
topology: v5e:2x2
jax: 0.10.0
libtpu: 0.0.40
codegen_flags: <defaults>
</compile_context>

<pallas_src>
import functools

import jax
import jax.numpy as jnp
import numpy as np
from jax import lax
from jax.experimental import pallas as pl
from jax.experimental.pallas import tpu as pltpu

jax.config.update("jax_default_matmul_precision", "highest")


# ----------------------------------------------------------------------------
# shared LSTM gate math (PyTorch gate order: i, f, g, o); gates already summed
# ----------------------------------------------------------------------------
def _apply_gates(gates, c, H):
    i = jax.nn.sigmoid(gates[:, 0:H])
    f = jax.nn.sigmoid(gates[:, H:2 * H])
    g = jnp.tanh(gates[:, 2 * H:3 * H])
    o = jax.nn.sigmoid(gates[:, 3 * H:4 * H])
    c_new = f * c + i * g
    h_new = o * jnp.tanh(c_new)
    return h_new, c_new


# ----------------------------------------------------------------------------
# Kernel 1: BidirectionalLSTM (bi-LSTM over T, then Linear(2H -> Out))
#   x is a flat [T*B, In] slab with row index = t*B + b (time-major).
# ----------------------------------------------------------------------------
def bilstm_kernel(x_ref, wih_ref, b_ref, whhf_ref, whhb_ref,
                  wfcf_ref, wfcb_ref, bfc_ref, y_ref,
                  xf_scr, xb_scr, hf_scr, hb_scr, *, B):
    TB = x_ref.shape[0]
    H = whhf_ref.shape[0]
    G = 4 * H
    T = TB // B

    # (1) fused fwd+bwd input projection, hoisted off the recurrent chain:
    #     one [T*B, In] @ [In, 8H] matmul replaces 2*T tiny per-step matmuls.
    xproj = (jnp.dot(x_ref[...], wih_ref[...],
                     preferred_element_type=jnp.float32) + b_ref[...])   # [T*B, 8H]
    xf_scr[...] = xproj[:, :G]
    xb_scr[...] = xproj[:, G:]

    whhf = whhf_ref[...]
    whhb = whhb_ref[...]
    zeros = jnp.zeros((B, H), jnp.float32)

    # (2) merged fwd/bwd recurrences: two independent (h, c) chains advance in
    #     the same iteration so their MXU / EUP / VPU work co-issues.
    def step(t, carry):
        hf, cf, hb, cb = carry
        rf = pl.ds(t * B, B)
        rb = pl.ds((T - 1 - t) * B, B)
        gf = xf_scr[rf, :] + jnp.dot(hf, whhf, preferred_element_type=jnp.float32)
        gb = xb_scr[rb, :] + jnp.dot(hb, whhb, preferred_element_type=jnp.float32)
        hf, cf = _apply_gates(gf, cf, H)
        hb, cb = _apply_gates(gb, cb, H)
        hf_scr[rf, :] = hf
        hb_scr[rb, :] = hb
        return hf, cf, hb, cb

    lax.fori_loop(0, T, step, (zeros, zeros, zeros, zeros), unroll=True)

    # (3) output Linear([h_fwd, h_bwd]) as two bulk matmuls over all T*B rows:
    #     no per-step lane concat, one lane-dense store.
    y_ref[...] = (jnp.dot(hf_scr[...], wfcf_ref[...], preferred_element_type=jnp.float32)
                  + jnp.dot(hb_scr[...], wfcb_ref[...], preferred_element_type=jnp.float32)
                  + bfc_ref[...])


def bilstm_layer(x2d, p, B):
    TB, _ = x2d.shape
    H = p["whh_f"].shape[0]
    Out = p["w_fc"].shape[1]
    # fuse fwd/bwd input-projection weights -> single [In, 8H] matrix (fills
    # the 256-wide MXU on v6e/v7x); split the output Linear weight by direction
    # so the kernel never concatenates / slices weights internally.
    wih_fb = jnp.concatenate([p["wih_f"], p["wih_b"]], axis=1)   # [In, 8H]
    b_fb = jnp.concatenate([p["b_f"], p["b_b"]], axis=1)         # [1, 8H]
    vmem = pl.BlockSpec(memory_space=pltpu.MemorySpace.VMEM)
    return pl.pallas_call(
        functools.partial(bilstm_kernel, B=B),
        out_shape=jax.ShapeDtypeStruct((TB, Out), jnp.float32),
        in_specs=[vmem] * 8,
        out_specs=vmem,
        scratch_shapes=[pltpu.VMEM((TB, 4 * H), jnp.float32),   # xf (input proj fwd)
                        pltpu.VMEM((TB, 4 * H), jnp.float32),   # xb (input proj bwd)
                        pltpu.VMEM((TB, H), jnp.float32),       # h fwd per step
                        pltpu.VMEM((TB, H), jnp.float32)],      # h bwd per step
    )(x2d, wih_fb, b_fb, p["whh_f"], p["whh_b"],
      p["w_fc"][:H, :], p["w_fc"][H:, :], p["b_fc"])


# ----------------------------------------------------------------------------
# Kernel 2: SelectiveDecoder (attention decoder, teacher forcing), batched over B
# ----------------------------------------------------------------------------
def attn_decoder_kernel(d_ref, oh_ref, i2h_ref, h2hw_ref, h2hb_ref, score_ref,
                        cwihc_ref, cwiho_ref, cwhh_ref, cb_ref, genw_ref, genb_ref,
                        probs_ref, ohp_scr, h_scr):
    B, T, I = d_ref.shape
    SB = oh_ref.shape[0]
    S = SB // B
    H = h2hw_ref.shape[0]
    G = 4 * H

    d = d_ref[...]                                                   # [B, T, I]

    # attention input projection for the whole sequence, hoisted out of the
    # step loop.  Batched dot with the weight broadcast over B keeps the
    # lowering on the supported batched-matmul pattern (no in-kernel reshape).
    dproj = jnp.einsum("bti,bih->bth", d,
                       jnp.broadcast_to(i2h_ref[...], (B, I, H)),
                       preferred_element_type=jnp.float32)           # [B, T, H]

    # one-hot -> LSTMCell gate pre-projection for all S steps (off the serial
    # chain); replaces the per-step [context, onehot] concat via weight split.
    ohp_scr[...] = jnp.dot(oh_ref[...], cwiho_ref[...],
                           preferred_element_type=jnp.float32)       # [S*B, 4H]

    h2hw = h2hw_ref[...]
    cwih_ctx = cwihc_ref[...]
    cwhh = cwhh_ref[...]
    # hoisted broadcasts (JAX does not CSE broadcast_in_dim inside the loop)
    h2hb = jnp.broadcast_to(h2hb_ref[...], (B, H))
    score_b = jnp.broadcast_to(score_ref[...], (B, T, H))
    cbias = jnp.broadcast_to(cb_ref[...], (B, G))

    zeros = jnp.zeros((B, H), jnp.float32)

    def step(i, carry):
        h, c = carry
        prev = jnp.dot(h, h2hw, preferred_element_type=jnp.float32) + h2hb   # [B, H]
        t2 = jnp.tanh(dproj + prev[:, None, :])                              # [B, T, H]
        e = jnp.sum(t2 * score_b, axis=-1, keepdims=True)                    # [B, T, 1]
        e_max = jnp.max(e, axis=1, keepdims=True)
        p_exp = jnp.exp(e - e_max)
        alpha = p_exp / jnp.sum(p_exp, axis=1, keepdims=True)                # [B, T, 1]
        context = jnp.sum(alpha * d, axis=1)                                 # [B, I]
        rows = pl.ds(i * B, B)
        gates = (jnp.dot(context, cwih_ctx, preferred_element_type=jnp.float32)
                 + jnp.dot(h, cwhh, preferred_element_type=jnp.float32)
                 + ohp_scr[rows, :] + cbias)
        h_new, c_new = _apply_gates(gates, c, H)
        h_scr[rows, :] = h_new
        return h_new, c_new

    lax.fori_loop(0, S, step, (zeros, zeros), unroll=True)

    # generator over all S*B hidden states at once: one MXU matmul + one store
    # instead of S tiny matmuls and S masked (C << 128 lanes) partial stores.
    probs_ref[...] = (jnp.dot(h_scr[...], genw_ref[...],
                              preferred_element_type=jnp.float32) + genb_ref[...])


def attn_decoder(D, onehots2d, p):
    B, _, I = D.shape
    SB, C = onehots2d.shape
    H = p["h2h_w"].shape[0]
    vmem = pl.BlockSpec(memory_space=pltpu.MemorySpace.VMEM)
    return pl.pallas_call(
        attn_decoder_kernel,
        out_shape=jax.ShapeDtypeStruct((SB, C), jnp.float32),
        in_specs=[vmem] * 12,
        out_specs=vmem,
        scratch_shapes=[pltpu.VMEM((SB, 4 * H), jnp.float32),   # onehot gate pre-proj
                        pltpu.VMEM((SB, H), jnp.float32)],      # decoder h per step
    )(D, onehots2d, p["i2h"], p["h2h_w"], p["h2h_b"], p["score"],
      p["cell_wih"][:I, :], p["cell_wih"][I:, :],
      p["cell_whh"], p["cell_b"], p["gen_w"], p["gen_b"])


# ----------------------------------------------------------------------------
# Wrapper = SelectiveContextualRefinementBlock.forward
# ----------------------------------------------------------------------------
@functools.partial(jax.jit, static_argnames=("is_train", "batch_max_length"))
def scrb_forward(visual_feature, contextual_feature, attn_text, is_train,
                 batch_max_length, params):
    # TODO(synk): greedy (is_train=False) decode branch (argmax feedback) not
    # implemented in-kernel; only the teacher-forced training path is provided.
    assert is_train, "only is_train=True (teacher forcing) is implemented"

    B, T, V = contextual_feature.shape
    # time-major rows (row = t*B + b), flattened so the kernels run pure 2-D
    # lane-dense matmuls; the transposes/reshapes are cheap XLA glue.
    x2d = jnp.transpose(contextual_feature, (1, 0, 2)).reshape(T * B, V)
    x2d = bilstm_layer(x2d, params["bilstm1"], B)
    x2d = bilstm_layer(x2d, params["bilstm2"], B)
    ctx = jnp.transpose(x2d.reshape(T, B, V), (1, 0, 2))          # [B, T, V]

    D = jnp.concatenate([ctx, visual_feature], axis=2)            # [B, T, 2V]

    S = batch_max_length + 1
    C = params["decoder"]["gen_w"].shape[1]
    onehots2d = jax.nn.one_hot(attn_text[:, :S].T, C,
                               dtype=jnp.float32).reshape(S * B, C)

    probs2d = attn_decoder(D, onehots2d, params["decoder"])       # [S*B, C]
    block_pred = jnp.transpose(probs2d.reshape(S, B, C), (1, 0, 2))  # [B, S, C]
    return ctx, block_pred


# ----------------------------------------------------------------------------
# deterministic synthetic parameter init (PyTorch shapes, pre-transposed)
# ----------------------------------------------------------------------------
def init_params(key, visual_size, hidden_size, num_class):
    V, H, C = visual_size, hidden_size, num_class
    keys = iter(jax.random.split(key, 64))

    def u(shape, scale):
        return jax.random.uniform(next(keys), shape, jnp.float32, -scale, scale)

    def bilstm(In, Hh, Out):
        s = 1.0 / np.sqrt(Hh)
        sf = 1.0 / np.sqrt(2 * Hh)
        return dict(
            wih_f=u((In, 4 * Hh), s), whh_f=u((Hh, 4 * Hh), s), b_f=u((1, 4 * Hh), s),
            wih_b=u((In, 4 * Hh), s), whh_b=u((Hh, 4 * Hh), s), b_b=u((1, 4 * Hh), s),
            w_fc=u((2 * Hh, Out), sf), b_fc=u((1, Out), sf))

    dec_in = 2 * V
    sh = 1.0 / np.sqrt(H)
    decoder = dict(
        i2h=u((dec_in, H), 1.0 / np.sqrt(dec_in)),
        h2h_w=u((H, H), sh), h2h_b=u((1, H), sh),
        score=u((1, H), sh),
        cell_wih=u((dec_in + C, 4 * H), sh), cell_whh=u((H, 4 * H), sh),
        cell_b=u((1, 4 * H), sh),
        gen_w=u((H, C), sh), gen_b=u((1, C), sh))

    return dict(bilstm1=bilstm(V, H, H), bilstm2=bilstm(H, H, V), decoder=decoder)


# ----------------------------------------------------------------------------
# pure-JAX reference for verification
# ----------------------------------------------------------------------------
def ref_bilstm(x_btf, p):
    B, T, _ = x_btf.shape
    H = p["whh_f"].shape[0]

    def run(wih, whh, b, reverse):
        h = jnp.zeros((B, H)); c = jnp.zeros((B, H))
        outs = [None] * T
        order = range(T - 1, -1, -1) if reverse else range(T)
        for t in order:
            g = x_btf[:, t, :] @ wih + h @ whh + b
            i = jax.nn.sigmoid(g[:, :H]); f = jax.nn.sigmoid(g[:, H:2 * H])
            gg = jnp.tanh(g[:, 2 * H:3 * H]); o = jax.nn.sigmoid(g[:, 3 * H:])
            c = f * c + i * gg
            h = o * jnp.tanh(c)
            outs[t] = h
        return jnp.stack(outs, axis=1)

    hf = run(p["wih_f"], p["whh_f"], p["b_f"], False)
    hb = run(p["wih_b"], p["whh_b"], p["b_b"], True)
    return jnp.concatenate([hf, hb], axis=-1) @ p["w_fc"] + p["b_fc"]


def ref_decoder(D, onehots, p):
    B, _, _ = D.shape
    S = onehots.shape[0]
    H = p["h2h_w"].shape[0]
    d_proj = D @ p["i2h"]
    h = jnp.zeros((B, H)); c = jnp.zeros((B, H))
    outs = []
    for i in range(S):
        prev = h @ p["h2h_w"] + p["h2h_b"]
        e = jnp.sum(jnp.tanh(d_proj + prev[:, None, :]) * p["score"][0][None, None, :], axis=-1)
        alpha = jax.nn.softmax(e, axis=1)
        context = jnp.sum(alpha[:, :, None] * D, axis=1)
        cc = jnp.concatenate([context, onehots[i]], axis=1)
        g = cc @ p["cell_wih"] + h @ p["cell_whh"] + p["cell_b"]
        ii = jax.nn.sigmoid(g[:, :H]); f = jax.nn.sigmoid(g[:, H:2 * H])
        gg = jnp.tanh(g[:, 2 * H:3 * H]); o = jax.nn.sigmoid(g[:, 3 * H:])
        c = f * c + ii * gg
        h = o * jnp.tanh(c)
        outs.append(h @ p["gen_w"] + p["gen_b"])
    return jnp.stack(outs, axis=1)


def ref_forward(visual_feature, contextual_feature, attn_text, batch_max_length, params):
    ctx = ref_bilstm(ref_bilstm(contextual_feature, params["bilstm1"]), params["bilstm2"])
    D = jnp.concatenate([ctx, visual_feature], axis=2)
    S = batch_max_length + 1
    C = params["decoder"]["gen_w"].shape[1]
    onehots = jax.nn.one_hot(attn_text[:, :S].T, C, dtype=jnp.float32)
    return ctx, ref_decoder(D, onehots, params["decoder"])


# ----------------------------------------------------------------------------
if __name__ == "__main__":
    visual_size, hidden_size, num_class = 32, 32, 12
    B, T = 2, 8
    batch_max_length = 8  # -> num_steps = 9

    key = jax.random.PRNGKey(0)
    k1, k2, k3, kp = jax.random.split(key, 4)
    visual_feature = jax.random.normal(k1, (B, T, visual_size), jnp.float32)
    contextual_feature = jax.random.normal(k2, (B, T, visual_size), jnp.float32)
    attn_text = jax.random.randint(k3, (B, batch_max_length + 1), 0, num_class, jnp.int32)
    params = init_params(kp, visual_size, hidden_size, num_class)

    ctx, block_pred = scrb_forward(visual_feature, contextual_feature, attn_text,
                                   is_train=True, batch_max_length=batch_max_length,
                                   params=params)
    jax.block_until_ready((ctx, block_pred))

    ctx_ref, pred_ref = ref_forward(visual_feature, contextual_feature, attn_text,
                                    batch_max_length, params)
    np.testing.assert_allclose(np.asarray(ctx), np.asarray(ctx_ref), rtol=2e-3, atol=2e-3)
    np.testing.assert_allclose(np.asarray(block_pred), np.asarray(pred_ref), rtol=2e-3, atol=2e-3)

    assert ctx.shape == (B, T, visual_size)
    assert block_pred.shape == (B, batch_max_length + 1, num_class)
    print("KERNEL_OK")
</pallas_src>

<mosaic_0001>
module attributes {stable_mosaic.version = 11 : i64} {
  func.func @bilstm_kernel(%arg0: memref<16x32xf32, #tpu.memory_space<vmem>>, %arg1: memref<32x256xf32, #tpu.memory_space<vmem>>, %arg2: memref<1x256xf32, #tpu.memory_space<vmem>>, %arg3: memref<32x128xf32, #tpu.memory_space<vmem>>, %arg4: memref<32x128xf32, #tpu.memory_space<vmem>>, %arg5: memref<32x32xf32, #tpu.memory_space<vmem>>, %arg6: memref<32x32xf32, #tpu.memory_space<vmem>>, %arg7: memref<1x32xf32, #tpu.memory_space<vmem>>, %arg8: memref<16x32xf32, #tpu.memory_space<vmem>>, %arg9: memref<16x128xf32, #tpu.memory_space<vmem>>, %arg10: memref<16x128xf32, #tpu.memory_space<vmem>>, %arg11: memref<16x32xf32, #tpu.memory_space<vmem>>, %arg12: memref<16x32xf32, #tpu.memory_space<vmem>>) attributes {dimension_semantics = [], scalar_prefetch = 0 : i64, scratch_operands = 4 : i64, tpu.core_type = #tpu.core_type<tc>} {
    %c0 = arith.constant 0 : index
    %c0_0 = arith.constant 0 : index
    %0 = vector.load %arg0[%c0, %c0_0] : memref<16x32xf32, #tpu.memory_space<vmem>>, vector<16x32xf32>
    %c0_1 = arith.constant 0 : index
    %c0_2 = arith.constant 0 : index
    %1 = vector.load %arg1[%c0_1, %c0_2] : memref<32x256xf32, #tpu.memory_space<vmem>>, vector<32x256xf32>
    %cst = arith.constant dense<0.000000e+00> : vector<16x256xf32>
    %2 = tpu.matmul %0, %1, %cst {dimension_numbers = #tpu.dot_dimension_numbers<[1], [0], [0], [1], [0, 0, 1, 1], [], []>, precision = #tpu.contract_precision<fp32>} : vector<16x32xf32>, vector<32x256xf32>, vector<16x256xf32> -> vector<16x256xf32>
    %c0_3 = arith.constant 0 : index
    %c0_4 = arith.constant 0 : index
    %3 = vector.load %arg2[%c0_3, %c0_4] : memref<1x256xf32, #tpu.memory_space<vmem>>, vector<1x256xf32>
    %4 = vector.broadcast %3 : vector<1x256xf32> to vector<16x256xf32>
    %5 = arith.addf %2, %4 : vector<16x256xf32>
    %6 = vector.extract_strided_slice %5 {offsets = [0, 0], sizes = [16, 128], strides = [1, 1]} : vector<16x256xf32> to vector<16x128xf32>
    %c0_5 = arith.constant 0 : index
    %c0_6 = arith.constant 0 : index
    %7 = vector.load %arg9[%c0_5, %c0_6] : memref<16x128xf32, #tpu.memory_space<vmem>>, vector<16x128xf32>
    tpu.vector_store %arg9[%c0_5, %c0_6], %6 {strides = array<i32>} : memref<16x128xf32, #tpu.memory_space<vmem>>, vector<16x128xf32>,
    %8 = vector.extract_strided_slice %5 {offsets = [0, 128], sizes = [16, 128], strides = [1, 1]} : vector<16x256xf32> to vector<16x128xf32>
    %c0_7 = arith.constant 0 : index
    %c0_8 = arith.constant 0 : index
    %9 = vector.load %arg10[%c0_7, %c0_8] : memref<16x128xf32, #tpu.memory_space<vmem>>, vector<16x128xf32>
    tpu.vector_store %arg10[%c0_7, %c0_8], %8 {strides = array<i32>} : memref<16x128xf32, #tpu.memory_space<vmem>>, vector<16x128xf32>,
    %c0_9 = arith.constant 0 : index
    %c0_10 = arith.constant 0 : index
    %10 = vector.load %arg3[%c0_9, %c0_10] : memref<32x128xf32, #tpu.memory_space<vmem>>, vector<32x128xf32>
    %c0_11 = arith.constant 0 : index
    %c0_12 = arith.constant 0 : index
    %11 = vector.load %arg4[%c0_11, %c0_12] : memref<32x128xf32, #tpu.memory_space<vmem>>, vector<32x128xf32>
    %cst_13 = arith.constant 0.000000e+00 : f32
    %12 = vector.broadcast %cst_13 : f32 to vector<2x32xf32>
    %c0_i32 = arith.constant 0 : i32
    %c2_i32 = arith.constant 2 : i32
    %13 = arith.muli %c0_i32, %c2_i32 : i32
    %c7_i32 = arith.constant 7 : i32
    %14 = arith.subi %c7_i32, %c0_i32 : i32
    %c2_i32_14 = arith.constant 2 : i32
    %15 = arith.muli %14, %c2_i32_14 : i32
    %16 = arith.index_cast %13 : i32 to index
    %c0_15 = arith.constant 0 : index
    %17 = vector.load %arg9[%16, %c0_15] : memref<16x128xf32, #tpu.memory_space<vmem>>, vector<2x128xf32>
    %cst_16 = arith.constant dense<0.000000e+00> : vector<2x128xf32>
    %18 = tpu.matmul %12, %10, %cst_16 {dimension_numbers = #tpu.dot_dimension_numbers<[1], [0], [0], [1], [0, 0, 1, 1], [], []>, precision = #tpu.contract_precision<fp32>} : vector<2x32xf32>, vector<32x128xf32>, vector<2x128xf32> -> vector<2x128xf32>
    %19 = arith.addf %17, %18 : vector<2x128xf32>
    %20 = arith.index_cast %15 : i32 to index
    %c0_17 = arith.constant 0 : index
    %21 = vector.load %arg10[%20, %c0_17] : memref<16x128xf32, #tpu.memory_space<vmem>>, vector<2x128xf32>
    %cst_18 = arith.constant dense<0.000000e+00> : vector<2x128xf32>
    %22 = tpu.matmul %12, %11, %cst_18 {dimension_numbers = #tpu.dot_dimension_numbers<[1], [0], [0], [1], [0, 0, 1, 1], [], []>, precision = #tpu.contract_precision<fp32>} : vector<2x32xf32>, vector<32x128xf32>, vector<2x128xf32> -> vector<2x128xf32>
    %23 = arith.addf %21, %22 : vector<2x128xf32>
    %24 = vector.extract_strided_slice %19 {offsets = [0, 0], sizes = [2, 32], strides = [1, 1]} : vector<2x128xf32> to vector<2x32xf32>
    %25 = arith.negf %24 : vector<2x32xf32>
    %26 = math.exp %25 : vector<2x32xf32>
    %cst_19 = arith.constant 1.000000e+00 : f32
    %27 = vector.broadcast %cst_19 : f32 to vector<2x32xf32>
    %28 = arith.addf %27, %26 : vector<2x32xf32>
    %29 = arith.divf %27, %28 : vector<2x32xf32>
    %30 = vector.extract_strided_slice %19 {offsets = [0, 32], sizes = [2, 32], strides = [1, 1]} : vector<2x128xf32> to vector<2x32xf32>
    %31 = arith.negf %30 : vector<2x32xf32>
    %32 = math.exp %31 : vector<2x32xf32>
    %cst_20 = arith.constant 1.000000e+00 : f32
    %33 = vector.broadcast %cst_20 : f32 to vector<2x32xf32>
    %34 = arith.addf %33, %32 : vector<2x32xf32>
    %35 = arith.divf %33, %34 : vector<2x32xf32>
    %36 = vector.extract_strided_slice %19 {offsets = [0, 64], sizes = [2, 32], strides = [1, 1]} : vector<2x128xf32> to vector<2x32xf32>
    %37 = math.tanh %36 : vector<2x32xf32>
    %38 = vector.extract_strided_slice %19 {offsets = [0, 96], sizes = [2, 32], strides = [1, 1]} : vector<2x128xf32> to vector<2x32xf32>
    %39 = arith.negf %38 : vector<2x32xf32>
    %40 = math.exp %39 : vector<2x32xf32>
    %cst_21 = arith.constant 1.000000e+00 : f32
    %41 = vector.broadcast %cst_21 : f32 to vector<2x32xf32>
    %42 = arith.addf %41, %40 : vector<2x32xf32>
    %43 = arith.divf %41, %42 : vector<2x32xf32>
    %44 = arith.mulf %35, %12 : vector<2x32xf32>
    %45 = arith.mulf %29, %37 : vector<2x32xf32>
    %46 = arith.addf %44, %45 : vector<2x32xf32>
    %47 = math.tanh %46 : vector<2x32xf32>
    %48 = arith.mulf %43, %47 : vector<2x32xf32>
    %49 = vector.extract_strided_slice %23 {offsets = [0, 0], sizes = [2, 32], strides = [1, 1]} : vector<2x128xf32> to vector<2x32xf32>
    %50 = arith.negf %49 : vector<2x32xf32>
    %51 = math.exp %50 : vector<2x32xf32>
    %cst_22 = arith.constant 1.000000e+00 : f32
    %52 = vector.broadcast %cst_22 : f32 to vector<2x32xf32>
    %53 = arith.addf %52, %51 : vector<2x32xf32>
    %54 = arith.divf %52, %53 : vector<2x32xf32>
    %55 = vector.extract_strided_slice %23 {offsets = [0, 32], sizes = [2, 32], strides = [1, 1]} : vector<2x128xf32> to vector<2x32xf32>
    %56 = arith.negf %55 : vector<2x32xf32>
    %57 = math.exp %56 : vector<2x32xf32>
    %cst_23 = arith.constant 1.000000e+00 : f32
    %58 = vector.broadcast %cst_23 : f32 to vector<2x32xf32>
    %59 = arith.addf %58, %57 : vector<2x32xf32>
    %60 = arith.divf %58, %59 : vector<2x32xf32>
    %61 = vector.extract_strided_slice %23 {offsets = [0, 64], sizes = [2, 32], strides = [1, 1]} : vector<2x128xf32> to vector<2x32xf32>
    %62 = math.tanh %61 : vector<2x32xf32>
    %63 = vector.extract_strided_slice %23 {offsets = [0, 96], sizes = [2, 32], strides = [1, 1]} : vector<2x128xf32> to vector<2x32xf32>
    %64 = arith.negf %63 : vector<2x32xf32>
    %65 = math.exp %64 : vector<2x32xf32>
    %cst_24 = arith.constant 1.000000e+00 : f32
    %66 = vector.broadcast %cst_24 : f32 to vector<2x32xf32>
    %67 = arith.addf %66, %65 : vector<2x32xf32>
    %68 = arith.divf %66, %67 : vector<2x32xf32>
    %69 = arith.mulf %60, %12 : vector<2x32xf32>
    %70 = arith.mulf %54, %62 : vector<2x32xf32>
    %71 = arith.addf %69, %70 : vector<2x32xf32>
    %72 = math.tanh %71 : vector<2x32xf32>
    %73 = arith.mulf %68, %72 : vector<2x32xf32>
    %74 = arith.index_cast %13 : i32 to index
    %c0_25 = arith.constant 0 : index
    %75 = vector.load %arg11[%74, %c0_25] : memref<16x32xf32, #tpu.memory_space<vmem>>, vector<2x32xf32>
    tpu.vector_store %arg11[%74, %c0_25], %48 {strides = array<i32>} : memref<16x32xf32, #tpu.memory_space<vmem>>, vector<2x32xf32>,
    %76 = arith.index_cast %15 : i32 to index
    %c0_26 = arith.constant 0 : index
    %77 = vector.load %arg12[%76, %c0_26] : memref<16x32xf32, #tpu.memory_space<vmem>>, vector<2x32xf32>
    tpu.vector_store %arg12[%76, %c0_26], %73 {strides = array<i32>} : memref<16x32xf32, #tpu.memory_space<vmem>>, vector<2x32xf32>,
    %c1_i32 = arith.constant 1 : i32
    %c2_i32_27 = arith.constant 2 : i32
    %78 = arith.muli %c1_i32, %c2_i32_27 : i32
    %c7_i32_28 = arith.constant 7 : i32
    %79 = arith.subi %c7_i32_28, %c1_i32 : i32
    %c2_i32_29 = arith.constant 2 : i32
    %80 = arith.muli %79, %c2_i32_29 : i32
    %81 = arith.index_cast %78 : i32 to index
    %c0_30 = arith.constant 0 : index
    %82 = vector.load %arg9[%81, %c0_30] : memref<16x128xf32, #tpu.memory_space<vmem>>, vector<2x128xf32>
    %cst_31 = arith.constant dense<0.000000e+00> : vector<2x128xf32>
    %83 = tpu.matmul %48, %10, %cst_31 {dimension_numbers = #tpu.dot_dimension_numbers<[1], [0], [0], [1], [0, 0, 1, 1], [], []>, precision = #tpu.contract_precision<fp32>} : vector<2x32xf32>, vector<32x128xf32>, vector<2x128xf32> -> vector<2x128xf32>
    %84 = arith.addf %82, %83 : vector<2x128xf32>
    %85 = arith.index_cast %80 : i32 to index
    %c0_32 = arith.constant 0 : index
    %86 = vector.load %arg10[%85, %c0_32] : memref<16x128xf32, #tpu.memory_space<vmem>>, vector<2x128xf32>
    %cst_33 = arith.constant dense<0.000000e+00> : vector<2x128xf32>
    %87 = tpu.matmul %73, %11, %cst_33 {dimension_numbers = #tpu.dot_dimension_numbers<[1], [0], [0], [1], [0, 0, 1, 1], [], []>, precision = #tpu.contract_precision<fp32>} : vector<2x32xf32>, vector<32x128xf32>, vector<2x128xf32> -> vector<2x128xf32>
    %88 = arith.addf %86, %87 : vector<2x128xf32>
    %89 = vector.extract_strided_slice %84 {offsets = [0, 0], sizes = [2, 32], strides = [1, 1]} : vector<2x128xf32> to vector<2x32xf32>
    %90 = arith.negf %89 : vector<2x32xf32>
    %91 = math.exp %90 : vector<2x32xf32>
    %cst_34 = arith.constant 1.000000e+00 : f32
    %92 = vector.broadcast %cst_34 : f32 to vector<2x32xf32>
    %93 = arith.addf %92, %91 : vector<2x32xf32>
    %94 = arith.divf %92, %93 : vector<2x32xf32>
    %95 = vector.extract_strided_slice %84 {offsets = [0, 32], sizes = [2, 32], strides = [1, 1]} : vector<2x128xf32> to vector<2x32xf32>
    %96 = arith.negf %95 : vector<2x32xf32>
    %97 = math.exp %96 : vector<2x32xf32>
    %cst_35 = arith.constant 1.000000e+00 : f32
    %98 = vector.broadcast %cst_35 : f32 to vector<2x32xf32>
    %99 = arith.addf %98, %97 : vector<2x32xf32>
    %100 = arith.divf %98, %99 : vector<2x32xf32>
    %101 = vector.extract_strided_slice %84 {offsets = [0, 64], sizes = [2, 32], strides = [1, 1]} : vector<2x128xf32> to vector<2x32xf32>
    %102 = math.tanh %101 : vector<2x32xf32>
    %103 = vector.extract_strided_slice %84 {offsets = [0, 96], sizes = [2, 32], strides = [1, 1]} : vector<2x128xf32> to vector<2x32xf32>
    %104 = arith.negf %103 : vector<2x32xf32>
    %105 = math.exp %104 : vector<2x32xf32>
    %cst_36 = arith.constant 1.000000e+00 : f32
    %106 = vector.broadcast %cst_36 : f32 to vector<2x32xf32>
    %107 = arith.addf %106, %105 : vector<2x32xf32>
    %108 = arith.divf %106, %107 : vector<2x32xf32>
    %109 = arith.mulf %100, %46 : vector<2x32xf32>
    %110 = arith.mulf %94, %102 : vector<2x32xf32>
    %111 = arith.addf %109, %110 : vector<2x32xf32>
    %112 = math.tanh %111 : vector<2x32xf32>
    %113 = arith.mulf %108, %112 : vector<2x32xf32>
    %114 = vector.extract_strided_slice %88 {offsets = [0, 0], sizes = [2, 32], strides = [1, 1]} : vector<2x128xf32> to vector<2x32xf32>
    %115 = arith.negf %114 : vector<2x32xf32>
    %116 = math.exp %115 : vector<2x32xf32>
    %cst_37 = arith.constant 1.000000e+00 : f32
    %117 = vector.broadcast %cst_37 : f32 to vector<2x32xf32>
    %118 = arith.addf %117, %116 : vector<2x32xf32>
    %119 = arith.divf %117, %118 : vector<2x32xf32>
    %120 = vector.extract_strided_slice %88 {offsets = [0, 32], sizes = [2, 32], strides = [1, 1]} : vector<2x128xf32> to vector<2x32xf32>
    %121 = arith.negf %120 : vector<2x32xf32>
    %122 = math.exp %121 : vector<2x32xf32>
    %cst_38 = arith.constant 1.000000e+00 : f32
    %123 = vector.broadcast %cst_38 : f32 to vector<2x32xf32>
    %124 = arith.addf %123, %122 : vector<2x32xf32>
    %125 = arith.divf %123, %124 : vector<2x32xf32>
    %126 = vector.extract_strided_slice %88 {offsets = [0, 64], sizes = [2, 32], strides = [1, 1]} : vector<2x128xf32> to vector<2x32xf32>
    %127 = math.tanh %126 : vector<2x32xf32>
    %128 = vector.extract_strided_slice %88 {offsets = [0, 96], sizes = [2, 32], strides = [1, 1]} : vector<2x128xf32> to vector<2x32xf32>
    %129 = arith.negf %128 : vector<2x32xf32>
    %130 = math.exp %129 : vector<2x32xf32>
    %cst_39 = arith.constant 1.000000e+00 : f32
    %131 = vector.broadcast %cst_39 : f32 to vector<2x32xf32>
    %132 = arith.addf %131, %130 : vector<2x32xf32>
    %133 = arith.divf %131, %132 : vector<2x32xf32>
    %134 = arith.mulf %125, %71 : vector<2x32xf32>
    %135 = arith.mulf %119, %127 : vector<2x32xf32>
    %136 = arith.addf %134, %135 : vector<2x32xf32>
    %137 = math.tanh %136 : vector<2x32xf32>
    %138 = arith.mulf %133, %137 : vector<2x32xf32>
    %139 = arith.index_cast %78 : i32 to index
    %c0_40 = arith.constant 0 : index
    %140 = vector.load %arg11[%139, %c0_40] : memref<16x32xf32, #tpu.memory_space<vmem>>, vector<2x32xf32>
    tpu.vector_store %arg11[%139, %c0_40], %113 {strides = array<i32>} : memref<16x32xf32, #tpu.memory_space<vmem>>, vector<2x32xf32>,
    %141 = arith.index_cast %80 : i32 to index
    %c0_41 = arith.constant 0 : index
    %142 = vector.load %arg12[%141, %c0_41] : memref<16x32xf32, #tpu.memory_space<vmem>>, vector<2x32xf32>
    tpu.vector_store %arg12[%141, %c0_41], %138 {strides = array<i32>} : memref<16x32xf32, #tpu.memory_space<vmem>>, vector<2x32xf32>,
    %c2_i32_42 = arith.constant 2 : i32
    %c2_i32_43 = arith.constant 2 : i32
    %143 = arith.muli %c2_i32_42, %c2_i32_43 : i32
    %c7_i32_44 = arith.constant 7 : i32
    %144 = arith.subi %c7_i32_44, %c2_i32_42 : i32
    %c2_i32_45 = arith.constant 2 : i32
    %145 = arith.muli %144, %c2_i32_45 : i32
    %146 = arith.index_cast %143 : i32 to index
    %c0_46 = arith.constant 0 : index
    %147 = vector.load %arg9[%146, %c0_46] : memref<16x128xf32, #tpu.memory_space<vmem>>, vector<2x128xf32>
    %cst_47 = arith.constant dense<0.000000e+00> : vector<2x128xf32>
    %148 = tpu.matmul %113, %10, %cst_47 {dimension_numbers = #tpu.dot_dimension_numbers<[1], [0], [0], [1], [0, 0, 1, 1], [], []>, precision = #tpu.contract_precision<fp32>} : vector<2x32xf32>, vector<32x128xf32>, vector<2x128xf32> -> vector<2x128xf32>
    %149 = arith.addf %147, %148 : vector<2x128xf32>
    %150 = arith.index_cast %145 : i32 to index
    %c0_48 = arith.constant 0 : index
    %151 = vector.load %arg10[%150, %c0_48] : memref<16x128xf32, #tpu.memory_space<vmem>>, vector<2x128xf32>
    %cst_49 = arith.constant dense<0.000000e+00> : vector<2x128xf32>
    %152 = tpu.matmul %138, %11, %cst_49 {dimension_numbers = #tpu.dot_dimension_numbers<[1], [0], [0], [1], [0, 0, 1, 1], [], []>, precision = #tpu.contract_precision<fp32>} : vector<2x32xf32>, vector<32x128xf32>, vector<2x128xf32> -> vector<2x128xf32>
    %153 = arith.addf %151, %152 : vector<2x128xf32>
    %154 = vector.extract_strided_slice %149 {offsets = [0, 0], sizes = [2, 32], strides = [1, 1]} : vector<2x128xf32> to vector<2x32xf32>
    %155 = arith.negf %154 : vector<2x32xf32>
    %156 = math.exp %155 : vector<2x32xf32>
    %cst_50 = arith.constant 1.000000e+00 : f32
    %157 = vector.broadcast %cst_50 : f32 to vector<2x32xf32>
    %158 = arith.addf %157, %156 : vector<2x32xf32>
    %159 = arith.divf %157, %158 : vector<2x32xf32>
    %160 = vector.extract_strided_slice %149 {offsets = [0, 32], sizes = [2, 32], strides = [1, 1]} : vector<2x128xf32> to vector<2x32xf32>
    %161 = arith.negf %160 : vector<2x32xf32>
    %162 = math.exp %161 : vector<2x32xf32>
    %cst_51 = arith.constant 1.000000e+00 : f32
    %163 = vector.broadcast %cst_51 : f32 to vector<2x32xf32>
    %164 = arith.addf %163, %162 : vector<2x32xf32>
    %165 = arith.divf %163, %164 : vector<2x32xf32>
    %166 = vector.extract_strided_slice %149 {offsets = [0, 64], sizes = [2, 32], strides = [1, 1]} : vector<2x128xf32> to vector<2x32xf32>
    %167 = math.tanh %166 : vector<2x32xf32>
    %168 = vector.extract_strided_slice %149 {offsets = [0, 96], sizes = [2, 32], strides = [1, 1]} : vector<2x128xf32> to vector<2x32xf32>
    %169 = arith.negf %168 : vector<2x32xf32>
    %170 = math.exp %169 : vector<2x32xf32>
    %cst_52 = arith.constant 1.000000e+00 : f32
    %171 = vector.broadcast %cst_52 : f32 to vector<2x32xf32>
    %172 = arith.addf %171, %170 : vector<2x32xf32>
    %173 = arith.divf %171, %172 : vector<2x32xf32>
    %174 = arith.mulf %165, %111 : vector<2x32xf32>
    %175 = arith.mulf %159, %167 : vector<2x32xf32>
    %176 = arith.addf %174, %175 : vector<2x32xf32>
    %177 = math.tanh %176 : vector<2x32xf32>
    %178 = arith.mulf %173, %177 : vector<2x32xf32>
    %179 = vector.extract_strided_slice %153 {offsets = [0, 0], sizes = [2, 32], strides = [1, 1]} : vector<2x128xf32> to vector<2x32xf32>
    %180 = arith.negf %179 : vector<2x32xf32>
    %181 = math.exp %180 : vector<2x32xf32>
    %cst_53 = arith.constant 1.000000e+00 : f32
    %182 = vector.broadcast %cst_53 : f32 to vector<2x32xf32>
    %183 = arith.addf %182, %181 : vector<2x32xf32>
    %184 = arith.divf %182, %183 : vector<2x32xf32>
    %185 = vector.extract_strided_slice %153 {offsets = [0, 32], sizes = [2, 32], strides = [1, 1]} : vector<2x128xf32> to vector<2x32xf32>
    %186 = arith.negf %185 : vector<2x32xf32>
    %187 = math.exp %186 : vector<2x32xf32>
    %cst_54 = arith.constant 1.000000e+00 : f32
    %188 = vector.broadcast %cst_54 : f32 to vector<2x32xf32>
    %189 = arith.addf %188, %187 : vector<2x32xf32>
    %190 = arith.divf %188, %189 : vector<2x32xf32>
    %191 = vector.extract_strided_slice %153 {offsets = [0, 64], sizes = [2, 32], strides = [1, 1]} : vector<2x128xf32> to vector<2x32xf32>
    %192 = math.tanh %191 : vector<2x32xf32>
    %193 = vector.extract_strided_slice %153 {offsets = [0, 96], sizes = [2, 32], strides = [1, 1]} : vector<2x128xf32> to vector<2x32xf32>
    %194 = arith.negf %193 : vector<2x32xf32>
    %195 = math.exp %194 : vector<2x32xf32>
    %cst_55 = arith.constant 1.000000e+00 : f32
    %196 = vector.broadcast %cst_55 : f32 to vector<2x32xf32>
    %197 = arith.addf %196, %195 : vector<2x32xf32>
    %198 = arith.divf %196, %197 : vector<2x32xf32>
    %199 = arith.mulf %190, %136 : vector<2x32xf32>
    %200 = arith.mulf %184, %192 : vector<2x32xf32>
    %201 = arith.addf %199, %200 : vector<2x32xf32>
    %202 = math.tanh %201 : vector<2x32xf32>
    %203 = arith.mulf %198, %202 : vector<2x32xf32>
    %204 = arith.index_cast %143 : i32 to index
    %c0_56 = arith.constant 0 : index
    %205 = vector.load %arg11[%204, %c0_56] : memref<16x32xf32, #tpu.memory_space<vmem>>, vector<2x32xf32>
    tpu.vector_store %arg11[%204, %c0_56], %178 {strides = array<i32>} : memref<16x32xf32, #tpu.memory_space<vmem>>, vector<2x32xf32>,
    %206 = arith.index_cast %145 : i32 to index
    %c0_57 = arith.constant 0 : index
    %207 = vector.load %arg12[%206, %c0_57] : memref<16x32xf32, #tpu.memory_space<vmem>>, vector<2x32xf32>
    tpu.vector_store %arg12[%206, %c0_57], %203 {strides = array<i32>} : memref<16x32xf32, #tpu.memory_space<vmem>>, vector<2x32xf32>,
    %c3_i32 = arith.constant 3 : i32
    %c2_i32_58 = arith.constant 2 : i32
    %208 = arith.muli %c3_i32, %c2_i32_58 : i32
    %c7_i32_59 = arith.constant 7 : i32
    %209 = arith.subi %c7_i32_59, %c3_i32 : i32
    %c2_i32_60 = arith.constant 2 : i32
    %210 = arith.muli %209, %c2_i32_60 : i32
    %211 = arith.index_cast %208 : i32 to index
    %c0_61 = arith.constant 0 : index
    %212 = vector.load %arg9[%211, %c0_61] : memref<16x128xf32, #tpu.memory_space<vmem>>, vector<2x128xf32>
    %cst_62 = arith.constant dense<0.000000e+00> : vector<2x128xf32>
    %213 = tpu.matmul %178, %10, %cst_62 {dimension_numbers = #tpu.dot_dimension_numbers<[1], [0], [0], [1], [0, 0, 1, 1], [], []>, precision = #tpu.contract_precision<fp32>} : vector<2x32xf32>, vector<32x128xf32>, vector<2x128xf32> -> vector<2x128xf32>
    %214 = arith.addf %212, %213 : vector<2x128xf32>
    %215 = arith.index_cast %210 : i32 to index
    %c0_63 = arith.constant 0 : index
    %216 = vector.load %arg10[%215, %c0_63] : memref<16x128xf32, #tpu.memory_space<vmem>>, vector<2x128xf32>
    %cst_64 = arith.constant dense<0.000000e+00> : vector<2x128xf32>
    %217 = tpu.matmul %203, %11, %cst_64 {dimension_numbers = #tpu.dot_dimension_numbers<[1], [0], [0], [1], [0, 0, 1, 1], [], []>, precision = #tpu.contract_precision<fp32>} : vector<2x32xf32>, vector<32x128xf32>, vector<2x128xf32> -> vector<2x128xf32>
    %218 = arith.addf %216, %217 : vector<2x128xf32>
    %219 = vector.extract_strided_slice %214 {offsets = [0, 0], sizes = [2, 32], strides = [1, 1]} : vector<2x128xf32> to vector<2x32xf32>
    %220 = arith.negf %219 : vector<2x32xf32>
    %221 = math.exp %220 : vector<2x32xf32>
    %cst_65 = arith.constant 1.000000e+00 : f32
    %222 = vector.broadcast %cst_65 : f32 to vector<2x32xf32>
    %223 = arith.addf %222, %221 : vector<2x32xf32>
    %224 = arith.divf %222, %223 : vector<2x32xf32>
    %225 = vector.extract_strided_slice %214 {offsets = [0, 32], sizes = [2, 32], strides = [1, 1]} : vector<2x128xf32> to vector<2x32xf32>
    %226 = arith.negf %225 : vector<2x32xf32>
    %227 = math.exp %226 : vector<2x32xf32>
    %cst_66 = arith.constant 1.000000e+00 : f32
    %228 = vector.broadcast %cst_66 : f32 to vector<2x32xf32>
    %229 = arith.addf %228, %227 : vector<2x32xf32>
    %230 = arith.divf %228, %229 : vector<2x32xf32>
    %231 = vector.extract_strided_slice %214 {offsets = [0, 64], sizes = [2, 32], strides = [1, 1]} : vector<2x128xf32> to vector<2x32xf32>
    %232 = math.tanh %231 : vector<2x32xf32>
    %233 = vector.extract_strided_slice %214 {offsets = [0, 96], sizes = [2, 32], strides = [1, 1]} : vector<2x128xf32> to vector<2x32xf32>
    %234 = arith.negf %233 : vector<2x32xf32>
    %235 = math.exp %234 : vector<2x32xf32>
    %cst_67 = arith.constant 1.000000e+00 : f32
    %236 = vector.broadcast %cst_67 : f32 to vector<2x32xf32>
    %237 = arith.addf %236, %235 : vector<2x32xf32>
    %238 = arith.divf %236, %237 : vector<2x32xf32>
    %239 = arith.mulf %230, %176 : vector<2x32xf32>
    %240 = arith.mulf %224, %232 : vector<2x32xf32>
    %241 = arith.addf %239, %240 : vector<2x32xf32>
    %242 = math.tanh %241 : vector<2x32xf32>
    %243 = arith.mulf %238, %242 : vector<2x32xf32>
    %244 = vector.extract_strided_slice %218 {offsets = [0, 0], sizes = [2, 32], strides = [1, 1]} : vector<2x128xf32> to vector<2x32xf32>
    %245 = arith.negf %244 : vector<2x32xf32>
    %246 = math.exp %245 : vector<2x32xf32>
    %cst_68 = arith.constant 1.000000e+00 : f32
    %247 = vector.broadcast %cst_68 : f32 to vector<2x32xf32>
    %248 = arith.addf %247, %246 : vector<2x32xf32>
    %249 = arith.divf %247, %248 : vector<2x32xf32>
    %250 = vector.extract_strided_slice %218 {offsets = [0, 32], sizes = [2, 32], strides = [1, 1]} : vector<2x128xf32> to vector<2x32xf32>
    %251 = arith.negf %250 : vector<2x32xf32>
    %252 = math.exp %251 : vector<2x32xf32>
    %cst_69 = arith.constant 1.000000e+00 : f32
    %253 = vector.broadcast %cst_69 : f32 to vector<2x32xf32>
    %254 = arith.addf %253, %252 : vector<2x32xf32>
    %255 = arith.divf %253, %254 : vector<2x32xf32>
    %256 = vector.extract_strided_slice %218 {offsets = [0, 64], sizes = [2, 32], strides = [1, 1]} : vector<2x128xf32> to vector<2x32xf32>
    %257 = math.tanh %256 : vector<2x32xf32>
    %258 = vector.extract_strided_slice %218 {offsets = [0, 96], sizes = [2, 32], strides = [1, 1]} : vector<2x128xf32> to vector<2x32xf32>
    %259 = arith.negf %258 : vector<2x32xf32>
    %260 = math.exp %259 : vector<2x32xf32>
    %cst_70 = arith.constant 1.000000e+00 : f32
    %261 = vector.broadcast %cst_70 : f32 to vector<2x32xf32>
    %262 = arith.addf %261, %260 : vector<2x32xf32>
    %263 = arith.divf %261, %262 : vector<2x32xf32>
    %264 = arith.mulf %255, %201 : vector<2x32xf32>
    %265 = arith.mulf %249, %257 : vector<2x32xf32>
    %266 = arith.addf %264, %265 : vector<2x32xf32>
    %267 = math.tanh %266 : vector<2x32xf32>
    %268 = arith.mulf %263, %267 : vector<2x32xf32>
    %269 = arith.index_cast %208 : i32 to index
    %c0_71 = arith.constant 0 : index
    %270 = vector.load %arg11[%269, %c0_71] : memref<16x32xf32, #tpu.memory_space<vmem>>, vector<2x32xf32>
    tpu.vector_store %arg11[%269, %c0_71], %243 {strides = array<i32>} : memref<16x32xf32, #tpu.memory_space<vmem>>, vector<2x32xf32>,
    %271 = arith.index_cast %210 : i32 to index
    %c0_72 = arith.constant 0 : index
    %272 = vector.load %arg12[%271, %c0_72] : memref<16x32xf32, #tpu.memory_space<vmem>>, vector<2x32xf32>
    tpu.vector_store %arg12[%271, %c0_72], %268 {strides = array<i32>} : memref<16x32xf32, #tpu.memory_space<vmem>>, vector<2x32xf32>,
    %c4_i32 = arith.constant 4 : i32
    %c2_i32_73 = arith.constant 2 : i32
    %273 = arith.muli %c4_i32, %c2_i32_73 : i32
    %c7_i32_74 = arith.constant 7 : i32
    %274 = arith.subi %c7_i32_74, %c4_i32 : i32
    %c2_i32_75 = arith.constant 2 : i32
    %275 = arith.muli %274, %c2_i32_75 : i32
    %276 = arith.index_cast %273 : i32 to index
    %c0_76 = arith.constant 0 : index
    %277 = vector.load %arg9[%276, %c0_76] : memref<16x128xf32, #tpu.memory_space<vmem>>, vector<2x128xf32>
    %cst_77 = arith.constant dense<0.000000e+00> : vector<2x128xf32>
    %278 = tpu.matmul %243, %10, %cst_77 {dimension_numbers = #tpu.dot_dimension_numbers<[1], [0], [0], [1], [0, 0, 1, 1], [], []>, precision = #tpu.contract_precision<fp32>} : vector<2x32xf32>, vector<32x128xf32>, vector<2x128xf32> -> vector<2x128xf32>
    %279 = arith.addf %277, %278 : vector<2x128xf32>
    %280 = arith.index_cast %275 : i32 to index
    %c0_78 = arith.constant 0 : index
    %281 = vector.load %arg10[%280, %c0_78] : memref<16x128xf32, #tpu.memory_space<vmem>>, vector<2x128xf32>
    %cst_79 = arith.constant dense<0.000000e+00> : vector<2x128xf32>
    %282 = tpu.matmul %268, %11, %cst_79 {dimension_numbers = #tpu.dot_dimension_numbers<[1], [0], [0], [1], [0, 0, 1, 1], [], []>, precision = #tpu.contract_precision<fp32>} : vector<2x32xf32>, vector<32x128xf32>, vector<2x128xf32> -> vector<2x128xf32>
    %283 = arith.addf %281, %282 : vector<2x128xf32>
    %284 = vector.extract_strided_slice %279 {offsets = [0, 0], sizes = [2, 32], strides = [1, 1]} : vector<2x128xf32> to vector<2x32xf32>
    %285 = arith.negf %284 : vector<2x32xf32>
    %286 = math.exp %285 : vector<2x32xf32>
    %cst_80 = arith.constant 1.000000e+00 : f32
    %287 = vector.broadcast %cst_80 : f32 to vector<2x32xf32>
    %288 = arith.addf %287, %286 : vector<2x32xf32>
    %289 = arith.divf %287, %288 : vector<2x32xf32>
    %290 = vector.extract_strided_slice %279 {offsets = [0, 32], sizes = [2, 32], strides = [1, 1]} : vector<2x128xf32> to vector<2x32xf32>
    %291 = arith.negf %290 : vector<2x32xf32>
    %292 = math.exp %291 : vector<2x32xf32>
    %cst_81 = arith.constant 1.000000e+00 : f32
    %293 = vector.broadcast %cst_81 : f32 to vector<2x32xf32>
    %294 = arith.addf %293, %292 : vector<2x32xf32>
    %295 = arith.divf %293, %294 : vector<2x32xf32>
    %296 = vector.extract_strided_slice %279 {offsets = [0, 64], sizes = [2, 32], strides = [1, 1]} : vector<2x128xf32> to vector<2x32xf32>
    %297 = math.tanh %296 : vector<2x32xf32>
    %298 = vector.extract_strided_slice %279 {offsets = [0, 96], sizes = [2, 32], strides = [1, 1]} : vector<2x128xf32> to vector<2x32xf32>
    %299 = arith.negf %298 : vector<2x32xf32>
    %300 = math.exp %299 : vector<2x32xf32>
    %cst_82 = arith.constant 1.000000e+00 : f32
    %301 = vector.broadcast %cst_82 : f32 to vector<2x32xf32>
    %302 = arith.addf %301, %300 : vector<2x32xf32>
    %303 = arith.divf %301, %302 : vector<2x32xf32>
    %304 = arith.mulf %295, %241 : vector<2x32xf32>
    %305 = arith.mulf %289, %297 : vector<2x32xf32>
    %306 = arith.addf %304, %305 : vector<2x32xf32>
    %307 = math.tanh %306 : vector<2x32xf32>
    %308 = arith.mulf %303, %307 : vector<2x32xf32>
    %309 = vector.extract_strided_slice %283 {offsets = [0, 0], sizes = [2, 32], strides = [1, 1]} : vector<2x128xf32> to vector<2x32xf32>
    %310 = arith.negf %309 : vector<2x32xf32>
    %311 = math.exp %310 : vector<2x32xf32>
    %cst_83 = arith.constant 1.000000e+00 : f32
    %312 = vector.broadcast %cst_83 : f32 to vector<2x32xf32>
    %313 = arith.addf %312, %311 : vector<2x32xf32>
    %314 = arith.divf %312, %313 : vector<2x32xf32>
    %315 = vector.extract_strided_slice %283 {offsets = [0, 32], sizes = [2, 32], strides = [1, 1]} : vector<2x128xf32> to vector<2x32xf32>
    %316 = arith.negf %315 : vector<2x32xf32>
    %317 = math.exp %316 : vector<2x32xf32>
    %cst_84 = arith.constant 1.000000e+00 : f32
    %318 = vector.broadcast %cst_84 : f32 to vector<2x32xf32>
    %319 = arith.addf %318, %317 : vector<2x32xf32>
    %320 = arith.divf %318, %319 : vector<2x32xf32>
    %321 = vector.extract_strided_slice %283 {offsets = [0, 64], sizes = [2, 32], strides = [1, 1]} : vector<2x128xf32> to vector<2x32xf32>
    %322 = math.tanh %321 : vector<2x32xf32>
    %323 = vector.extract_strided_slice %283 {offsets = [0, 96], sizes = [2, 32], strides = [1, 1]} : vector<2x128xf32> to vector<2x32xf32>
    %324 = arith.negf %323 : vector<2x32xf32>
    %325 = math.exp %324 : vector<2x32xf32>
    %cst_85 = arith.constant 1.000000e+00 : f32
    %326 = vector.broadcast %cst_85 : f32 to vector<2x32xf32>
    %327 = arith.addf %326, %325 : vector<2x32xf32>
    %328 = arith.divf %326, %327 : vector<2x32xf32>
    %329 = arith.mulf %320, %266 : vector<2x32xf32>
    %330 = arith.mulf %314, %322 : vector<2x32xf32>
    %331 = arith.addf %329, %330 : vector<2x32xf32>
    %332 = math.tanh %331 : vector<2x32xf32>
    %333 = arith.mulf %328, %332 : vector<2x32xf32>
    %334 = arith.index_cast %273 : i32 to index
    %c0_86 = arith.constant 0 : index
    %335 = vector.load %arg11[%334, %c0_86] : memref<16x32xf32, #tpu.memory_space<vmem>>, vector<2x32xf32>
    tpu.vector_store %arg11[%334, %c0_86], %308 {strides = array<i32>} : memref<16x32xf32, #tpu.memory_space<vmem>>, vector<2x32xf32>,
    %336 = arith.index_cast %275 : i32 to index
    %c0_87 = arith.constant 0 : index
    %337 = vector.load %arg12[%336, %c0_87] : memref<16x32xf32, #tpu.memory_space<vmem>>, vector<2x32xf32>
    tpu.vector_store %arg12[%336, %c0_87], %333 {strides = array<i32>} : memref<16x32xf32, #tpu.memory_space<vmem>>, vector<2x32xf32>,
    %c5_i32 = arith.constant 5 : i32
    %c2_i32_88 = arith.constant 2 : i32
    %338 = arith.muli %c5_i32, %c2_i32_88 : i32
    %c7_i32_89 = arith.constant 7 : i32
    %339 = arith.subi %c7_i32_89, %c5_i32 : i32
    %c2_i32_90 = arith.constant 2 : i32
    %340 = arith.muli %339, %c2_i32_90 : i32
    %341 = arith.index_cast %338 : i32 to index
    %c0_91 = arith.constant 0 : index
    %342 = vector.load %arg9[%341, %c0_91] : memref<16x128xf32, #tpu.memory_space<vmem>>, vector<2x128xf32>
    %cst_92 = arith.constant dense<0.000000e+00> : vector<2x128xf32>
    %343 = tpu.matmul %308, %10, %cst_92 {dimension_numbers = #tpu.dot_dimension_numbers<[1], [0], [0], [1], [0, 0, 1, 1], [], []>, precision = #tpu.contract_precision<fp32>} : vector<2x32xf32>, vector<32x128xf32>, vector<2x128xf32> -> vector<2x128xf32>
    %344 = arith.addf %342, %343 : vector<2x128xf32>
    %345 = arith.index_cast %340 : i32 to index
    %c0_93 = arith.constant 0 : index
    %346 = vector.load %arg10[%345, %c0_93] : memref<16x128xf32, #tpu.memory_space<vmem>>, vector<2x128xf32>
    %cst_94 = arith.constant dense<0.000000e+00> : vector<2x128xf32>
    %347 = tpu.matmul %333, %11, %cst_94 {dimension_numbers = #tpu.dot_dimension_numbers<[1], [0], [0], [1], [0, 0, 1, 1], [], []>, precision = #tpu.contract_precision<fp32>} : vector<2x32xf32>, vector<32x128xf32>, vector<2x128xf32> -> vector<2x128xf32>
    %348 = arith.addf %346, %347 : vector<2x128xf32>
    %349 = vector.extract_strided_slice %344 {offsets = [0, 0], sizes = [2, 32], strides = [1, 1]} : vector<2x128xf32> to vector<2x32xf32>
    %350 = arith.negf %349 : vector<2x32xf32>
    %351 = math.exp %350 : vector<2x32xf32>
    %cst_95 = arith.constant 1.000000e+00 : f32
    %352 = vector.broadcast %cst_95 : f32 to vector<2x32xf32>
    %353 = arith.addf %352, %351 : vector<2x32xf32>
    %354 = arith.divf %352, %353 : vector<2x32xf32>
    %355 = vector.extract_strided_slice %344 {offsets = [0, 32], sizes = [2, 32], strides = [1, 1]} : vector<2x128xf32> to vector<2x32xf32>
    %356 = arith.negf %355 : vector<2x32xf32>
    %357 = math.exp %356 : vector<2x32xf32>
    %cst_96 = arith.constant 1.000000e+00 : f32
    %358 = vector.broadcast %cst_96 : f32 to vector<2x32xf32>
    %359 = arith.addf %358, %357 : vector<2x32xf32>
    %360 = arith.divf %358, %359 : vector<2x32xf32>
    %361 = vector.extract_strided_slice %344 {offsets = [0, 64], sizes = [2, 32], strides = [1, 1]} : vector<2x128xf32> to vector<2x32xf32>
    %362 = math.tanh %361 : vector<2x32xf32>
    %363 = vector.extract_strided_slice %344 {offsets = [0, 96], sizes = [2, 32], strides = [1, 1]} : vector<2x128xf32> to vector<2x32xf32>
    %364 = arith.negf %363 : vector<2x32xf32>
    %365 = math.exp %364 : vector<2x32xf32>
    %cst_97 = arith.constant 1.000000e+00 : f32
    %366 = vector.broadcast %cst_97 : f32 to vector<2x32xf32>
    %367 = arith.addf %366, %365 : vector<2x32xf32>
    %368 = arith.divf %366, %367 : vector<2x32xf32>
    %369 = arith.mulf %360, %306 : vector<2x32xf32>
    %370 = arith.mulf %354, %362 : vector<2x32xf32>
    %371 = arith.addf %369, %370 : vector<2x32xf32>
    %372 = math.tanh %371 : vector<2x32xf32>
    %373 = arith.mulf %368, %372 : vector<2x32xf32>
    %374 = vector.extract_strided_slice %348 {offsets = [0, 0], sizes = [2, 32], strides = [1, 1]} : vector<2x128xf32> to vector<2x32xf32>
    %375 = arith.negf %374 : vector<2x32xf32>
    %376 = math.exp %375 : vector<2x32xf32>
    %cst_98 = arith.constant 1.000000e+00 : f32
    %377 = vector.broadcast %cst_98 : f32 to vector<2x32xf32>
    %378 = arith.addf %377, %376 : vector<2x32xf32>
    %379 = arith.divf %377, %378 : vector<2x32xf32>
    %380 = vector.extract_strided_slice %348 {offsets = [0, 32], sizes = [2, 32], strides = [1, 1]} : vector<2x128xf32> to vector<2x32xf32>
    %381 = arith.negf %380 : vector<2x32xf32>
    %382 = math.exp %381 : vector<2x32xf32>
    %cst_99 = arith.constant 1.000000e+00 : f32
    %383 = vector.broadcast %cst_99 : f32 to vector<2x32xf32>
    %384 = arith.addf %383, %382 : vector<2x32xf32>
    %385 = arith.divf %383, %384 : vector<2x32xf32>
    %386 = vector.extract_strided_slice %348 {offsets = [0, 64], sizes = [2, 32], strides = [1, 1]} : vector<2x128xf32> to vector<2x32xf32>
    %387 = math.tanh %386 : vector<2x32xf32>
    %388 = vector.extract_strided_slice %348 {offsets = [0, 96], sizes = [2, 32], strides = [1, 1]} : vector<2x128xf32> to vector<2x32xf32>
    %389 = arith.negf %388 : vector<2x32xf32>
    %390 = math.exp %389 : vector<2x32xf32>
    %cst_100 = arith.constant 1.000000e+00 : f32
    %391 = vector.broadcast %cst_100 : f32 to vector<2x32xf32>
    %392 = arith.addf %391, %390 : vector<2x32xf32>
    %393 = arith.divf %391, %392 : vector<2x32xf32>
    %394 = arith.mulf %385, %331 : vector<2x32xf32>
    %395 = arith.mulf %379, %387 : vector<2x32xf32>
    %396 = arith.addf %394, %395 : vector<2x32xf32>
    %397 = math.tanh %396 : vector<2x32xf32>
    %398 = arith.mulf %393, %397 : vector<2x32xf32>
    %399 = arith.index_cast %338 : i32 to index
    %c0_101 = arith.constant 0 : index
    %400 = vector.load %arg11[%399, %c0_101] : memref<16x32xf32, #tpu.memory_space<vmem>>, vector<2x32xf32>
    tpu.vector_store %arg11[%399, %c0_101], %373 {strides = array<i32>} : memref<16x32xf32, #tpu.memory_space<vmem>>, vector<2x32xf32>,
    %401 = arith.index_cast %340 : i32 to index
    %c0_102 = arith.constant 0 : index
    %402 = vector.load %arg12[%401, %c0_102] : memref<16x32xf32, #tpu.memory_space<vmem>>, vector<2x32xf32>
    tpu.vector_store %arg12[%401, %c0_102], %398 {strides = array<i32>} : memref<16x32xf32, #tpu.memory_space<vmem>>, vector<2x32xf32>,
    %c6_i32 = arith.constant 6 : i32
    %c2_i32_103 = arith.constant 2 : i32
    %403 = arith.muli %c6_i32, %c2_i32_103 : i32
    %c7_i32_104 = arith.constant 7 : i32
    %404 = arith.subi %c7_i32_104, %c6_i32 : i32
    %c2_i32_105 = arith.constant 2 : i32
    %405 = arith.muli %404, %c2_i32_105 : i32
    %406 = arith.index_cast %403 : i32 to index
    %c0_106 = arith.constant 0 : index
    %407 = vector.load %arg9[%406, %c0_106] : memref<16x128xf32, #tpu.memory_space<vmem>>, vector<2x128xf32>
    %cst_107 = arith.constant dense<0.000000e+00> : vector<2x128xf32>
    %408 = tpu.matmul %373, %10, %cst_107 {dimension_numbers = #tpu.dot_dimension_numbers<[1], [0], [0], [1], [0, 0, 1, 1], [], []>, precision = #tpu.contract_precision<fp32>} : vector<2x32xf32>, vector<32x128xf32>, vector<2x128xf32> -> vector<2x128xf32>
    %409 = arith.addf %407, %408 : vector<2x128xf32>
    %410 = arith.index_cast %405 : i32 to index
    %c0_108 = arith.constant 0 : index
    %411 = vector.load %arg10[%410, %c0_108] : memref<16x128xf32, #tpu.memory_space<vmem>>, vector<2x128xf32>
    %cst_109 = arith.constant dense<0.000000e+00> : vector<2x128xf32>
    %412 = tpu.matmul %398, %11, %cst_109 {dimension_numbers = #tpu.dot_dimension_numbers<[1], [0], [0], [1], [0, 0, 1, 1], [], []>, precision = #tpu.contract_precision<fp32>} : vector<2x32xf32>, vector<32x128xf32>, vector<2x128xf32> -> vector<2x128xf32>
    %413 = arith.addf %411, %412 : vector<2x128xf32>
    %414 = vector.extract_strided_slice %409 {offsets = [0, 0], sizes = [2, 32], strides = [1, 1]} : vector<2x128xf32> to vector<2x32xf32>
    %415 = arith.negf %414 : vector<2x32xf32>
    %416 = math.exp %415 : vector<2x32xf32>
    %cst_110 = arith.constant 1.000000e+00 : f32
    %417 = vector.broadcast %cst_110 : f32 to vector<2x32xf32>
    %418 = arith.addf %417, %416 : vector<2x32xf32>
    %419 = arith.divf %417, %418 : vector<2x32xf32>
    %420 = vector.extract_strided_slice %409 {offsets = [0, 32], sizes = [2, 32], strides = [1, 1]} : vector<2x128xf32> to vector<2x32xf32>
    %421 = arith.negf %420 : vector<2x32xf32>
    %422 = math.exp %421 : vector<2x32xf32>
    %cst_111 = arith.constant 1.000000e+00 : f32
    %423 = vector.broadcast %cst_111 : f32 to vector<2x32xf32>
    %424 = arith.addf %423, %422 : vector<2x32xf32>
    %425 = arith.divf %423, %424 : vector<2x32xf32>
    %426 = vector.extract_strided_slice %409 {offsets = [0, 64], sizes = [2, 32], strides = [1, 1]} : vector<2x128xf32> to vector<2x32xf32>
    %427 = math.tanh %426 : vector<2x32xf32>
    %428 = vector.extract_strided_slice %409 {offsets = [0, 96], sizes = [2, 32], strides = [1, 1]} : vector<2x128xf32> to vector<2x32xf32>
    %429 = arith.negf %428 : vector<2x32xf32>
    %430 = math.exp %429 : vector<2x32xf32>
    %cst_112 = arith.constant 1.000000e+00 : f32
    %431 = vector.broadcast %cst_112 : f32 to vector<2x32xf32>
    %432 = arith.addf %431, %430 : vector<2x32xf32>
    %433 = arith.divf %431, %432 : vector<2x32xf32>
    %434 = arith.mulf %425, %371 : vector<2x32xf32>
    %435 = arith.mulf %419, %427 : vector<2x32xf32>
    %436 = arith.addf %434, %435 : vector<2x32xf32>
    %437 = math.tanh %436 : vector<2x32xf32>
    %438 = arith.mulf %433, %437 : vector<2x32xf32>
    %439 = vector.extract_strided_slice %413 {offsets = [0, 0], sizes = [2, 32], strides = [1, 1]} : vector<2x128xf32> to vector<2x32xf32>
    %440 = arith.negf %439 : vector<2x32xf32>
    %441 = math.exp %440 : vector<2x32xf32>
    %cst_113 = arith.constant 1.000000e+00 : f32
    %442 = vector.broadcast %cst_113 : f32 to vector<2x32xf32>
    %443 = arith.addf %442, %441 : vector<2x32xf32>
    %444 = arith.divf %442, %443 : vector<2x32xf32>
    %445 = vector.extract_strided_slice %413 {offsets = [0, 32], sizes = [2, 32], strides = [1, 1]} : vector<2x128xf32> to vector<2x32xf32>
    %446 = arith.negf %445 : vector<2x32xf32>
    %447 = math.exp %446 : vector<2x32xf32>
    %cst_114 = arith.constant 1.000000e+00 : f32
    %448 = vector.broadcast %cst_114 : f32 to vector<2x32xf32>
    %449 = arith.addf %448, %447 : vector<2x32xf32>
    %450 = arith.divf %448, %449 : vector<2x32xf32>
    %451 = vector.extract_strided_slice %413 {offsets = [0, 64], sizes = [2, 32], strides = [1, 1]} : vector<2x128xf32> to vector<2x32xf32>
    %452 = math.tanh %451 : vector<2x32xf32>
    %453 = vector.extract_strided_slice %413 {offsets = [0, 96], sizes = [2, 32], strides = [1, 1]} : vector<2x128xf32> to vector<2x32xf32>
    %454 = arith.negf %453 : vector<2x32xf32>
    %455 = math.exp %454 : vector<2x32xf32>
    %cst_115 = arith.constant 1.000000e+00 : f32
    %456 = vector.broadcast %cst_115 : f32 to vector<2x32xf32>
    %457 = arith.addf %456, %455 : vector<2x32xf32>
    %458 = arith.divf %456, %457 : vector<2x32xf32>
    %459 = arith.mulf %450, %396 : vector<2x32xf32>
    %460 = arith.mulf %444, %452 : vector<2x32xf32>
    %461 = arith.addf %459, %460 : vector<2x32xf32>
    %462 = math.tanh %461 : vector<2x32xf32>
    %463 = arith.mulf %458, %462 : vector<2x32xf32>
    %464 = arith.index_cast %403 : i32 to index
    %c0_116 = arith.constant 0 : index
    %465 = vector.load %arg11[%464, %c0_116] : memref<16x32xf32, #tpu.memory_space<vmem>>, vector<2x32xf32>
    tpu.vector_store %arg11[%464, %c0_116], %438 {strides = array<i32>} : memref<16x32xf32, #tpu.memory_space<vmem>>, vector<2x32xf32>,
    %466 = arith.index_cast %405 : i32 to index
    %c0_117 = arith.constant 0 : index
    %467 = vector.load %arg12[%466, %c0_117] : memref<16x32xf32, #tpu.memory_space<vmem>>, vector<2x32xf32>
    tpu.vector_store %arg12[%466, %c0_117], %463 {strides = array<i32>} : memref<16x32xf32, #tpu.memory_space<vmem>>, vector<2x32xf32>,
    %c7_i32_118 = arith.constant 7 : i32
    %c2_i32_119 = arith.constant 2 : i32
    %468 = arith.muli %c7_i32_118, %c2_i32_119 : i32
    %c7_i32_120 = arith.constant 7 : i32
    %469 = arith.subi %c7_i32_120, %c7_i32_118 : i32
    %c2_i32_121 = arith.constant 2 : i32
    %470 = arith.muli %469, %c2_i32_121 : i32
    %471 = arith.index_cast %468 : i32 to index
    %c0_122 = arith.constant 0 : index
    %472 = vector.load %arg9[%471, %c0_122] : memref<16x128xf32, #tpu.memory_space<vmem>>, vector<2x128xf32>
    %cst_123 = arith.constant dense<0.000000e+00> : vector<2x128xf32>
    %473 = tpu.matmul %438, %10, %cst_123 {dimension_numbers = #tpu.dot_dimension_numbers<[1], [0], [0], [1], [0, 0, 1, 1], [], []>, precision = #tpu.contract_precision<fp32>} : vector<2x32xf32>, vector<32x128xf32>, vector<2x128xf32> -> vector<2x128xf32>
    %474 = arith.addf %472, %473 : vector<2x128xf32>
    %475 = arith.index_cast %470 : i32 to index
    %c0_124 = arith.constant 0 : index
    %476 = vector.load %arg10[%475, %c0_124] : memref<16x128xf32, #tpu.memory_space<vmem>>, vector<2x128xf32>
    %cst_125 = arith.constant dense<0.000000e+00> : vector<2x128xf32>
    %477 = tpu.matmul %463, %11, %cst_125 {dimension_numbers = #tpu.dot_dimension_numbers<[1], [0], [0], [1], [0, 0, 1, 1], [], []>, precision = #tpu.contract_precision<fp32>} : vector<2x32xf32>, vector<32x128xf32>, vector<2x128xf32> -> vector<2x128xf32>
    %478 = arith.addf %476, %477 : vector<2x128xf32>
    %479 = vector.extract_strided_slice %474 {offsets = [0, 0], sizes = [2, 32], strides = [1, 1]} : vector<2x128xf32> to vector<2x32xf32>
    %480 = arith.negf %479 : vector<2x32xf32>
    %481 = math.exp %480 : vector<2x32xf32>
    %cst_126 = arith.constant 1.000000e+00 : f32
    %482 = vector.broadcast %cst_126 : f32 to vector<2x32xf32>
    %483 = arith.addf %482, %481 : vector<2x32xf32>
    %484 = arith.divf %482, %483 : vector<2x32xf32>
    %485 = vector.extract_strided_slice %474 {offsets = [0, 32], sizes = [2, 32], strides = [1, 1]} : vector<2x128xf32> to vector<2x32xf32>
    %486 = arith.negf %485 : vector<2x32xf32>
    %487 = math.exp %486 : vector<2x32xf32>
    %cst_127 = arith.constant 1.000000e+00 : f32
    %488 = vector.broadcast %cst_127 : f32 to vector<2x32xf32>
    %489 = arith.addf %488, %487 : vector<2x32xf32>
    %490 = arith.divf %488, %489 : vector<2x32xf32>
    %491 = vector.extract_strided_slice %474 {offsets = [0, 64], sizes = [2, 32], strides = [1, 1]} : vector<2x128xf32> to vector<2x32xf32>
    %492 = math.tanh %491 : vector<2x32xf32>
    %493 = vector.extract_strided_slice %474 {offsets = [0, 96], sizes = [2, 32], strides = [1, 1]} : vector<2x128xf32> to vector<2x32xf32>
    %494 = arith.negf %493 : vector<2x32xf32>
    %495 = math.exp %494 : vector<2x32xf32>
    %cst_128 = arith.constant 1.000000e+00 : f32
    %496 = vector.broadcast %cst_128 : f32 to vector<2x32xf32>
    %497 = arith.addf %496, %495 : vector<2x32xf32>
    %498 = arith.divf %496, %497 : vector<2x32xf32>
    %499 = arith.mulf %490, %436 : vector<2x32xf32>
    %500 = arith.mulf %484, %492 : vector<2x32xf32>
    %501 = arith.addf %499, %500 : vector<2x32xf32>
    %502 = math.tanh %501 : vector<2x32xf32>
    %503 = arith.mulf %498, %502 : vector<2x32xf32>
    %504 = vector.extract_strided_slice %478 {offsets = [0, 0], sizes = [2, 32], strides = [1, 1]} : vector<2x128xf32> to vector<2x32xf32>
    %505 = arith.negf %504 : vector<2x32xf32>
    %506 = math.exp %505 : vector<2x32xf32>
    %cst_129 = arith.constant 1.000000e+00 : f32
    %507 = vector.broadcast %cst_129 : f32 to vector<2x32xf32>
    %508 = arith.addf %507, %506 : vector<2x32xf32>
    %509 = arith.divf %507, %508 : vector<2x32xf32>
    %510 = vector.extract_strided_slice %478 {offsets = [0, 32], sizes = [2, 32], strides = [1, 1]} : vector<2x128xf32> to vector<2x32xf32>
    %511 = arith.negf %510 : vector<2x32xf32>
    %512 = math.exp %511 : vector<2x32xf32>
    %cst_130 = arith.constant 1.000000e+00 : f32
    %513 = vector.broadcast %cst_130 : f32 to vector<2x32xf32>
    %514 = arith.addf %513, %512 : vector<2x32xf32>
    %515 = arith.divf %513, %514 : vector<2x32xf32>
    %516 = vector.extract_strided_slice %478 {offsets = [0, 64], sizes = [2, 32], strides = [1, 1]} : vector<2x128xf32> to vector<2x32xf32>
    %517 = math.tanh %516 : vector<2x32xf32>
    %518 = vector.extract_strided_slice %478 {offsets = [0, 96], sizes = [2, 32], strides = [1, 1]} : vector<2x128xf32> to vector<2x32xf32>
    %519 = arith.negf %518 : vector<2x32xf32>
    %520 = math.exp %519 : vector<2x32xf32>
    %cst_131 = arith.constant 1.000000e+00 : f32
    %521 = vector.broadcast %cst_131 : f32 to vector<2x32xf32>
    %522 = arith.addf %521, %520 : vector<2x32xf32>
    %523 = arith.divf %521, %522 : vector<2x32xf32>
    %524 = arith.mulf %515, %461 : vector<2x32xf32>
    %525 = arith.mulf %509, %517 : vector<2x32xf32>
    %526 = arith.addf %524, %525 : vector<2x32xf32>
    %527 = math.tanh %526 : vector<2x32xf32>
    %528 = arith.mulf %523, %527 : vector<2x32xf32>
    %529 = arith.index_cast %468 : i32 to index
    %c0_132 = arith.constant 0 : index
    %530 = vector.load %arg11[%529, %c0_132] : memref<16x32xf32, #tpu.memory_space<vmem>>, vector<2x32xf32>
    tpu.vector_store %arg11[%529, %c0_132], %503 {strides = array<i32>} : memref<16x32xf32, #tpu.memory_space<vmem>>, vector<2x32xf32>,
    %531 = arith.index_cast %470 : i32 to index
    %c0_133 = arith.constant 0 : index
    %532 = vector.load %arg12[%531, %c0_133] : memref<16x32xf32, #tpu.memory_space<vmem>>, vector<2x32xf32>
    tpu.vector_store %arg12[%531, %c0_133], %528 {strides = array<i32>} : memref<16x32xf32, #tpu.memory_space<vmem>>, vector<2x32xf32>,
    %c8_i32 = arith.constant 8 : i32
    %c0_134 = arith.constant 0 : index
    %c0_135 = arith.constant 0 : index
    %533 = vector.load %arg11[%c0_134, %c0_135] : memref<16x32xf32, #tpu.memory_space<vmem>>, vector<16x32xf32>
    %c0_136 = arith.constant 0 : index
    %c0_137 = arith.constant 0 : index
    %534 = vector.load %arg5[%c0_136, %c0_137] : memref<32x32xf32, #tpu.memory_space<vmem>>, vector<32x32xf32>
    %cst_138 = arith.constant dense<0.000000e+00> : vector<16x32xf32>
    %535 = tpu.matmul %533, %534, %cst_138 {dimension_numbers = #tpu.dot_dimension_numbers<[1], [0], [0], [1], [0, 0, 1, 1], [], []>, precision = #tpu.contract_precision<fp32>} : vector<16x32xf32>, vector<32x32xf32>, vector<16x32xf32> -> vector<16x32xf32>
    %c0_139 = arith.constant 0 : index
    %c0_140 = arith.constant 0 : index
    %536 = vector.load %arg12[%c0_139, %c0_140] : memref<16x32xf32, #tpu.memory_space<vmem>>, vector<16x32xf32>
    %c0_141 = arith.constant 0 : index
    %c0_142 = arith.constant 0 : index
    %537 = vector.load %arg6[%c0_141, %c0_142] : memref<32x32xf32, #tpu.memory_space<vmem>>, vector<32x32xf32>
    %cst_143 = arith.constant dense<0.000000e+00> : vector<16x32xf32>
    %538 = tpu.matmul %536, %537, %cst_143 {dimension_numbers = #tpu.dot_dimension_numbers<[1], [0], [0], [1], [0, 0, 1, 1], [], []>, precision = #tpu.contract_precision<fp32>} : vector<16x32xf32>, vector<32x32xf32>, vector<16x32xf32> -> vector<16x32xf32>
    %539 = arith.addf %535, %538 : vector<16x32xf32>
    %c0_144 = arith.constant 0 : index
    %c0_145 = arith.constant 0 : index
    %540 = vector.load %arg7[%c0_144, %c0_145] : memref<1x32xf32, #tpu.memory_space<vmem>>, vector<1x32xf32>
    %541 = vector.broadcast %540 : vector<1x32xf32> to vector<16x32xf32>
    %542 = arith.addf %539, %541 : vector<16x32xf32>
    %c0_146 = arith.constant 0 : index
    %c0_147 = arith.constant 0 : index
    %543 = vector.load %arg8[%c0_146, %c0_147] : memref<16x32xf32, #tpu.memory_space<vmem>>, vector<16x32xf32>
    tpu.vector_store %arg8[%c0_146, %c0_147], %542 {strides = array<i32>} : memref<16x32xf32, #tpu.memory_space<vmem>>, vector<16x32xf32>,
    return
  }
}

module attributes {stable_mosaic.version = 11 : i64} {
  func.func @attn_decoder_kernel(%arg0: memref<2x8x64xf32, #tpu.memory_space<vmem>>, %arg1: memref<18x12xf32, #tpu.memory_space<vmem>>, %arg2: memref<64x32xf32, #tpu.memory_space<vmem>>, %arg3: memref<32x32xf32, #tpu.memory_space<vmem>>, %arg4: memref<1x32xf32, #tpu.memory_space<vmem>>, %arg5: memref<1x32xf32, #tpu.memory_space<vmem>>, %arg6: memref<64x128xf32, #tpu.memory_space<vmem>>, %arg7: memref<12x128xf32, #tpu.memory_space<vmem>>, %arg8: memref<32x128xf32, #tpu.memory_space<vmem>>, %arg9: memref<1x128xf32, #tpu.memory_space<vmem>>, %arg10: memref<32x12xf32, #tpu.memory_space<vmem>>, %arg11: memref<1x12xf32, #tpu.memory_space<vmem>>, %arg12: memref<18x12xf32, #tpu.memory_space<vmem>>, %arg13: memref<18x128xf32, #tpu.memory_space<vmem>>, %arg14: memref<18x32xf32, #tpu.memory_space<vmem>>) attributes {dimension_semantics = [], scalar_prefetch = 0 : i64, scratch_operands = 2 : i64, tpu.core_type = #tpu.core_type<tc>} {
    %c0 = arith.constant 0 : index
    %c0_0 = arith.constant 0 : index
    %c0_1 = arith.constant 0 : index
    %0 = vector.load %arg0[%c0, %c0_0, %c0_1] : memref<2x8x64xf32, #tpu.memory_space<vmem>>, vector<2x8x64xf32>
    %c0_2 = arith.constant 0 : index
    %c0_3 = arith.constant 0 : index
    %1 = vector.load %arg2[%c0_2, %c0_3] : memref<64x32xf32, #tpu.memory_space<vmem>>, vector<64x32xf32>
    %2 = vector.shape_cast %1 : vector<64x32xf32> to vector<1x64x32xf32>
    %3 = vector.broadcast %2 : vector<1x64x32xf32> to vector<2x64x32xf32>
    "tpu.trace_start"() <{level = 10 : i32, message = "bti,bih->bth"}> : () -> ()
    %cst = arith.constant dense<0.000000e+00> : vector<2x8x32xf32>
    %4 = tpu.matmul %0, %3, %cst {dimension_numbers = #tpu.dot_dimension_numbers<[2], [1], [1], [2], [0, 0, 0, 1, 1, 2], [0], [0]>, precision = #tpu.contract_precision<fp32>} : vector<2x8x64xf32>, vector<2x64x32xf32>, vector<2x8x32xf32> -> vector<2x8x32xf32>
    "tpu.trace_stop"() : () -> ()
    %c0_4 = arith.constant 0 : index
    %c0_5 = arith.constant 0 : index
    %5 = vector.load %arg1[%c0_4, %c0_5] : memref<18x12xf32, #tpu.memory_space<vmem>>, vector<18x12xf32>
    %c0_6 = arith.constant 0 : index
    %c0_7 = arith.constant 0 : index
    %6 = vector.load %arg7[%c0_6, %c0_7] : memref<12x128xf32, #tpu.memory_space<vmem>>, vector<12x128xf32>
    %cst_8 = arith.constant dense<0.000000e+00> : vector<18x128xf32>
    %7 = tpu.matmul %5, %6, %cst_8 {dimension_numbers = #tpu.dot_dimension_numbers<[1], [0], [0], [1], [0, 0, 1, 1], [], []>, precision = #tpu.contract_precision<fp32>} : vector<18x12xf32>, vector<12x128xf32>, vector<18x128xf32> -> vector<18x128xf32>
    %c0_9 = arith.constant 0 : index
    %c0_10 = arith.constant 0 : index
    %8 = vector.load %arg13[%c0_9, %c0_10] : memref<18x128xf32, #tpu.memory_space<vmem>>, vector<18x128xf32>
    tpu.vector_store %arg13[%c0_9, %c0_10], %7 {strides = array<i32>} : memref<18x128xf32, #tpu.memory_space<vmem>>, vector<18x128xf32>,
    %c0_11 = arith.constant 0 : index
    %c0_12 = arith.constant 0 : index
    %9 = vector.load %arg3[%c0_11, %c0_12] : memref<32x32xf32, #tpu.memory_space<vmem>>, vector<32x32xf32>
    %c0_13 = arith.constant 0 : index
    %c0_14 = arith.constant 0 : index
    %10 = vector.load %arg6[%c0_13, %c0_14] : memref<64x128xf32, #tpu.memory_space<vmem>>, vector<64x128xf32>
    %c0_15 = arith.constant 0 : index
    %c0_16 = arith.constant 0 : index
    %11 = vector.load %arg8[%c0_15, %c0_16] : memref<32x128xf32, #tpu.memory_space<vmem>>, vector<32x128xf32>
    %c0_17 = arith.constant 0 : index
    %c0_18 = arith.constant 0 : index
    %12 = vector.load %arg4[%c0_17, %c0_18] : memref<1x32xf32, #tpu.memory_space<vmem>>, vector<1x32xf32>
    %13 = vector.shape_cast %12 : vector<1x32xf32> to vector<1x32xf32>
    %14 = vector.broadcast %13 : vector<1x32xf32> to vector<2x32xf32>
    %c0_19 = arith.constant 0 : index
    %c0_20 = arith.constant 0 : index
    %15 = vector.load %arg5[%c0_19, %c0_20] : memref<1x32xf32, #tpu.memory_space<vmem>>, vector<1x32xf32>
    %16 = vector.shape_cast %15 : vector<1x32xf32> to vector<1x1x32xf32>
    %17 = vector.broadcast %16 : vector<1x1x32xf32> to vector<2x8x32xf32>
    %c0_21 = arith.constant 0 : index
    %c0_22 = arith.constant 0 : index
    %18 = vector.load %arg9[%c0_21, %c0_22] : memref<1x128xf32, #tpu.memory_space<vmem>>, vector<1x128xf32>
    %19 = vector.shape_cast %18 : vector<1x128xf32> to vector<1x128xf32>
    %20 = vector.broadcast %19 : vector<1x128xf32> to vector<2x128xf32>
    %cst_23 = arith.constant 0.000000e+00 : f32
    %21 = vector.broadcast %cst_23 : f32 to vector<2x32xf32>
    %c0_i32 = arith.constant 0 : i32
    %cst_24 = arith.constant dense<0.000000e+00> : vector<2x32xf32>
    %22 = tpu.matmul %21, %9, %cst_24 {dimension_numbers = #tpu.dot_dimension_numbers<[1], [0], [0], [1], [0, 0, 1, 1], [], []>, precision = #tpu.contract_precision<fp32>} : vector<2x32xf32>, vector<32x32xf32>, vector<2x32xf32> -> vector<2x32xf32>
    %23 = arith.addf %22, %14 : vector<2x32xf32>
    %24 = vector.shape_cast %23 : vector<2x32xf32> to vector<2x1x32xf32>
    %25 = vector.broadcast %24 : vector<2x1x32xf32> to vector<2x8x32xf32>
    %26 = arith.addf %4, %25 : vector<2x8x32xf32>
    %27 = math.tanh %26 : vector<2x8x32xf32>
    %28 = arith.mulf %27, %17 : vector<2x8x32xf32>
    %cst_25 = arith.constant dense<0.000000e+00> : vector<2x8xf32>
    %29 = vector.multi_reduction <add>, %28, %cst_25 [2] : vector<2x8x32xf32> to vector<2x8xf32>
    %30 = vector.shape_cast %29 : vector<2x8xf32> to vector<2x8x1xf32>
    %cst_26 = arith.constant dense<0xFF800000> : vector<2x1xf32>
    %31 = vector.multi_reduction <maximumf>, %30, %cst_26 [1] : vector<2x8x1xf32> to vector<2x1xf32>
    %32 = vector.shape_cast %31 : vector<2x1xf32> to vector<2x1x1xf32>
    %33 = vector.broadcast %32 : vector<2x1x1xf32> to vector<2x8x1xf32>
    %34 = arith.subf %30, %33 : vector<2x8x1xf32>
    %35 = math.exp %34 : vector<2x8x1xf32>
    %cst_27 = arith.constant dense<0.000000e+00> : vector<2x1xf32>
    %36 = vector.multi_reduction <add>, %35, %cst_27 [1] : vector<2x8x1xf32> to vector<2x1xf32>
    %37 = vector.shape_cast %36 : vector<2x1xf32> to vector<2x1x1xf32>
    %38 = vector.broadcast %37 : vector<2x1x1xf32> to vector<2x8x1xf32>
    %39 = arith.divf %35, %38 : vector<2x8x1xf32>
    %40 = vector.broadcast %39 : vector<2x8x1xf32> to vector<2x8x64xf32>
    %41 = arith.mulf %40, %0 : vector<2x8x64xf32>
    %cst_28 = arith.constant dense<0.000000e+00> : vector<2x64xf32>
    %42 = vector.multi_reduction <add>, %41, %cst_28 [1] : vector<2x8x64xf32> to vector<2x64xf32>
    %c2_i32 = arith.constant 2 : i32
    %43 = arith.muli %c0_i32, %c2_i32 : i32
    %cst_29 = arith.constant dense<0.000000e+00> : vector<2x128xf32>
    %44 = tpu.matmul %42, %10, %cst_29 {dimension_numbers = #tpu.dot_dimension_numbers<[1], [0], [0], [1], [0, 0, 1, 1], [], []>, precision = #tpu.contract_precision<fp32>} : vector<2x64xf32>, vector<64x128xf32>, vector<2x128xf32> -> vector<2x128xf32>
    %cst_30 = arith.constant dense<0.000000e+00> : vector<2x128xf32>
    %45 = tpu.matmul %21, %11, %cst_30 {dimension_numbers = #tpu.dot_dimension_numbers<[1], [0], [0], [1], [0, 0, 1, 1], [], []>, precision = #tpu.contract_precision<fp32>} : vector<2x32xf32>, vector<32x128xf32>, vector<2x128xf32> -> vector<2x128xf32>
    %46 = arith.addf %44, %45 : vector<2x128xf32>
    %47 = arith.index_cast %43 : i32 to index
    %c0_31 = arith.constant 0 : index
    %48 = vector.load %arg13[%47, %c0_31] : memref<18x128xf32, #tpu.memory_space<vmem>>, vector<2x128xf32>
    %49 = arith.addf %46, %48 : vector<2x128xf32>
    %50 = arith.addf %49, %20 : vector<2x128xf32>
    %51 = vector.extract_strided_slice %50 {offsets = [0, 0], sizes = [2, 32], strides = [1, 1]} : vector<2x128xf32> to vector<2x32xf32>
    %52 = arith.negf %51 : vector<2x32xf32>
    %53 = math.exp %52 : vector<2x32xf32>
    %cst_32 = arith.constant 1.000000e+00 : f32
    %54 = vector.broadcast %cst_32 : f32 to vector<2x32xf32>
    %55 = arith.addf %54, %53 : vector<2x32xf32>
    %56 = arith.divf %54, %55 : vector<2x32xf32>
    %57 = vector.extract_strided_slice %50 {offsets = [0, 32], sizes = [2, 32], strides = [1, 1]} : vector<2x128xf32> to vector<2x32xf32>
    %58 = arith.negf %57 : vector<2x32xf32>
    %59 = math.exp %58 : vector<2x32xf32>
    %cst_33 = arith.constant 1.000000e+00 : f32
    %60 = vector.broadcast %cst_33 : f32 to vector<2x32xf32>
    %61 = arith.addf %60, %59 : vector<2x32xf32>
    %62 = arith.divf %60, %61 : vector<2x32xf32>
    %63 = vector.extract_strided_slice %50 {offsets = [0, 64], sizes = [2, 32], strides = [1, 1]} : vector<2x128xf32> to vector<2x32xf32>
    %64 = math.tanh %63 : vector<2x32xf32>
    %65 = vector.extract_strided_slice %50 {offsets = [0, 96], sizes = [2, 32], strides = [1, 1]} : vector<2x128xf32> to vector<2x32xf32>
    %66 = arith.negf %65 : vector<2x32xf32>
    %67 = math.exp %66 : vector<2x32xf32>
    %cst_34 = arith.constant 1.000000e+00 : f32
    %68 = vector.broadcast %cst_34 : f32 to vector<2x32xf32>
    %69 = arith.addf %68, %67 : vector<2x32xf32>
    %70 = arith.divf %68, %69 : vector<2x32xf32>
    %71 = arith.mulf %62, %21 : vector<2x32xf32>
    %72 = arith.mulf %56, %64 : vector<2x32xf32>
    %73 = arith.addf %71, %72 : vector<2x32xf32>
    %74 = math.tanh %73 : vector<2x32xf32>
    %75 = arith.mulf %70, %74 : vector<2x32xf32>
    %76 = arith.index_cast %43 : i32 to index
    %c0_35 = arith.constant 0 : index
    %77 = vector.load %arg14[%76, %c0_35] : memref<18x32xf32, #tpu.memory_space<vmem>>, vector<2x32xf32>
    tpu.vector_store %arg14[%76, %c0_35], %75 {strides = array<i32>} : memref<18x32xf32, #tpu.memory_space<vmem>>, vector<2x32xf32>,
    %c1_i32 = arith.constant 1 : i32
    %cst_36 = arith.constant dense<0.000000e+00> : vector<2x32xf32>
    %78 = tpu.matmul %75, %9, %cst_36 {dimension_numbers = #tpu.dot_dimension_numbers<[1], [0], [0], [1], [0, 0, 1, 1], [], []>, precision = #tpu.contract_precision<fp32>} : vector<2x32xf32>, vector<32x32xf32>, vector<2x32xf32> -> vector<2x32xf32>
    %79 = arith.addf %78, %14 : vector<2x32xf32>
    %80 = vector.shape_cast %79 : vector<2x32xf32> to vector<2x1x32xf32>
    %81 = vector.broadcast %80 : vector<2x1x32xf32> to vector<2x8x32xf32>
    %82 = arith.addf %4, %81 : vector<2x8x32xf32>
    %83 = math.tanh %82 : vector<2x8x32xf32>
    %84 = arith.mulf %83, %17 : vector<2x8x32xf32>
    %cst_37 = arith.constant dense<0.000000e+00> : vector<2x8xf32>
    %85 = vector.multi_reduction <add>, %84, %cst_37 [2] : vector<2x8x32xf32> to vector<2x8xf32>
    %86 = vector.shape_cast %85 : vector<2x8xf32> to vector<2x8x1xf32>
    %cst_38 = arith.constant dense<0xFF800000> : vector<2x1xf32>
    %87 = vector.multi_reduction <maximumf>, %86, %cst_38 [1] : vector<2x8x1xf32> to vector<2x1xf32>
    %88 = vector.shape_cast %87 : vector<2x1xf32> to vector<2x1x1xf32>
    %89 = vector.broadcast %88 : vector<2x1x1xf32> to vector<2x8x1xf32>
    %90 = arith.subf %86, %89 : vector<2x8x1xf32>
    %91 = math.exp %90 : vector<2x8x1xf32>
    %cst_39 = arith.constant dense<0.000000e+00> : vector<2x1xf32>
    %92 = vector.multi_reduction <add>, %91, %cst_39 [1] : vector<2x8x1xf32> to vector<2x1xf32>
    %93 = vector.shape_cast %92 : vector<2x1xf32> to vector<2x1x1xf32>
    %94 = vector.broadcast %93 : vector<2x1x1xf32> to vector<2x8x1xf32>
    %95 = arith.divf %91, %94 : vector<2x8x1xf32>
    %96 = vector.broadcast %95 : vector<2x8x1xf32> to vector<2x8x64xf32>
    %97 = arith.mulf %96, %0 : vector<2x8x64xf32>
    %cst_40 = arith.constant dense<0.000000e+00> : vector<2x64xf32>
    %98 = vector.multi_reduction <add>, %97, %cst_40 [1] : vector<2x8x64xf32> to vector<2x64xf32>
    %c2_i32_41 = arith.constant 2 : i32
    %99 = arith.muli %c1_i32, %c2_i32_41 : i32
    %cst_42 = arith.constant dense<0.000000e+00> : vector<2x128xf32>
    %100 = tpu.matmul %98, %10, %cst_42 {dimension_numbers = #tpu.dot_dimension_numbers<[1], [0], [0], [1], [0, 0, 1, 1], [], []>, precision = #tpu.contract_precision<fp32>} : vector<2x64xf32>, vector<64x128xf32>, vector<2x128xf32> -> vector<2x128xf32>
    %cst_43 = arith.constant dense<0.000000e+00> : vector<2x128xf32>
    %101 = tpu.matmul %75, %11, %cst_43 {dimension_numbers = #tpu.dot_dimension_numbers<[1], [0], [0], [1], [0, 0, 1, 1], [], []>, precision = #tpu.contract_precision<fp32>} : vector<2x32xf32>, vector<32x128xf32>, vector<2x128xf32> -> vector<2x128xf32>
    %102 = arith.addf %100, %101 : vector<2x128xf32>
    %103 = arith.index_cast %99 : i32 to index
    %c0_44 = arith.constant 0 : index
    %104 = vector.load %arg13[%103, %c0_44] : memref<18x128xf32, #tpu.memory_space<vmem>>, vector<2x128xf32>
    %105 = arith.addf %102, %104 : vector<2x128xf32>
    %106 = arith.addf %105, %20 : vector<2x128xf32>
    %107 = vector.extract_strided_slice %106 {offsets = [0, 0], sizes = [2, 32], strides = [1, 1]} : vector<2x128xf32> to vector<2x32xf32>
    %108 = arith.negf %107 : vector<2x32xf32>
    %109 = math.exp %108 : vector<2x32xf32>
    %cst_45 = arith.constant 1.000000e+00 : f32
    %110 = vector.broadcast %cst_45 : f32 to vector<2x32xf32>
    %111 = arith.addf %110, %109 : vector<2x32xf32>
    %112 = arith.divf %110, %111 : vector<2x32xf32>
    %113 = vector.extract_strided_slice %106 {offsets = [0, 32], sizes = [2, 32], strides = [1, 1]} : vector<2x128xf32> to vector<2x32xf32>
    %114 = arith.negf %113 : vector<2x32xf32>
    %115 = math.exp %114 : vector<2x32xf32>
    %cst_46 = arith.constant 1.000000e+00 : f32
    %116 = vector.broadcast %cst_46 : f32 to vector<2x32xf32>
    %117 = arith.addf %116, %115 : vector<2x32xf32>
    %118 = arith.divf %116, %117 : vector<2x32xf32>
    %119 = vector.extract_strided_slice %106 {offsets = [0, 64], sizes = [2, 32], strides = [1, 1]} : vector<2x128xf32> to vector<2x32xf32>
    %120 = math.tanh %119 : vector<2x32xf32>
    %121 = vector.extract_strided_slice %106 {offsets = [0, 96], sizes = [2, 32], strides = [1, 1]} : vector<2x128xf32> to vector<2x32xf32>
    %122 = arith.negf %121 : vector<2x32xf32>
    %123 = math.exp %122 : vector<2x32xf32>
    %cst_47 = arith.constant 1.000000e+00 : f32
    %124 = vector.broadcast %cst_47 : f32 to vector<2x32xf32>
    %125 = arith.addf %124, %123 : vector<2x32xf32>
    %126 = arith.divf %124, %125 : vector<2x32xf32>
    %127 = arith.mulf %118, %73 : vector<2x32xf32>
    %128 = arith.mulf %112, %120 : vector<2x32xf32>
    %129 = arith.addf %127, %128 : vector<2x32xf32>
    %130 = math.tanh %129 : vector<2x32xf32>
    %131 = arith.mulf %126, %130 : vector<2x32xf32>
    %132 = arith.index_cast %99 : i32 to index
    %c0_48 = arith.constant 0 : index
    %133 = vector.load %arg14[%132, %c0_48] : memref<18x32xf32, #tpu.memory_space<vmem>>, vector<2x32xf32>
    tpu.vector_store %arg14[%132, %c0_48], %131 {strides = array<i32>} : memref<18x32xf32, #tpu.memory_space<vmem>>, vector<2x32xf32>,
    %c2_i32_49 = arith.constant 2 : i32
    %cst_50 = arith.constant dense<0.000000e+00> : vector<2x32xf32>
    %134 = tpu.matmul %131, %9, %cst_50 {dimension_numbers = #tpu.dot_dimension_numbers<[1], [0], [0], [1], [0, 0, 1, 1], [], []>, precision = #tpu.contract_precision<fp32>} : vector<2x32xf32>, vector<32x32xf32>, vector<2x32xf32> -> vector<2x32xf32>
    %135 = arith.addf %134, %14 : vector<2x32xf32>
    %136 = vector.shape_cast %135 : vector<2x32xf32> to vector<2x1x32xf32>
    %137 = vector.broadcast %136 : vector<2x1x32xf32> to vector<2x8x32xf32>
    %138 = arith.addf %4, %137 : vector<2x8x32xf32>
    %139 = math.tanh %138 : vector<2x8x32xf32>
    %140 = arith.mulf %139, %17 : vector<2x8x32xf32>
    %cst_51 = arith.constant dense<0.000000e+00> : vector<2x8xf32>
    %141 = vector.multi_reduction <add>, %140, %cst_51 [2] : vector<2x8x32xf32> to vector<2x8xf32>
    %142 = vector.shape_cast %141 : vector<2x8xf32> to vector<2x8x1xf32>
    %cst_52 = arith.constant dense<0xFF800000> : vector<2x1xf32>
    %143 = vector.multi_reduction <maximumf>, %142, %cst_52 [1] : vector<2x8x1xf32> to vector<2x1xf32>
    %144 = vector.shape_cast %143 : vector<2x1xf32> to vector<2x1x1xf32>
    %145 = vector.broadcast %144 : vector<2x1x1xf32> to vector<2x8x1xf32>
    %146 = arith.subf %142, %145 : vector<2x8x1xf32>
    %147 = math.exp %146 : vector<2x8x1xf32>
    %cst_53 = arith.constant dense<0.000000e+00> : vector<2x1xf32>
    %148 = vector.multi_reduction <add>, %147, %cst_53 [1] : vector<2x8x1xf32> to vector<2x1xf32>
    %149 = vector.shape_cast %148 : vector<2x1xf32> to vector<2x1x1xf32>
    %150 = vector.broadcast %149 : vector<2x1x1xf32> to vector<2x8x1xf32>
    %151 = arith.divf %147, %150 : vector<2x8x1xf32>
    %152 = vector.broadcast %151 : vector<2x8x1xf32> to vector<2x8x64xf32>
    %153 = arith.mulf %152, %0 : vector<2x8x64xf32>
    %cst_54 = arith.constant dense<0.000000e+00> : vector<2x64xf32>
    %154 = vector.multi_reduction <add>, %153, %cst_54 [1] : vector<2x8x64xf32> to vector<2x64xf32>
    %c2_i32_55 = arith.constant 2 : i32
    %155 = arith.muli %c2_i32_49, %c2_i32_55 : i32
    %cst_56 = arith.constant dense<0.000000e+00> : vector<2x128xf32>
    %156 = tpu.matmul %154, %10, %cst_56 {dimension_numbers = #tpu.dot_dimension_numbers<[1], [0], [0], [1], [0, 0, 1, 1], [], []>, precision = #tpu.contract_precision<fp32>} : vector<2x64xf32>, vector<64x128xf32>, vector<2x128xf32> -> vector<2x128xf32>
    %cst_57 = arith.constant dense<0.000000e+00> : vector<2x128xf32>
    %157 = tpu.matmul %131, %11, %cst_57 {dimension_numbers = #tpu.dot_dimension_numbers<[1], [0], [0], [1], [0, 0, 1, 1], [], []>, precision = #tpu.contract_precision<fp32>} : vector<2x32xf32>, vector<32x128xf32>, vector<2x128xf32> -> vector<2x128xf32>
    %158 = arith.addf %156, %157 : vector<2x128xf32>
    %159 = arith.index_cast %155 : i32 to index
    %c0_58 = arith.constant 0 : index
    %160 = vector.load %arg13[%159, %c0_58] : memref<18x128xf32, #tpu.memory_space<vmem>>, vector<2x128xf32>
    %161 = arith.addf %158, %160 : vector<2x128xf32>
    %162 = arith.addf %161, %20 : vector<2x128xf32>
    %163 = vector.extract_strided_slice %162 {offsets = [0, 0], sizes = [2, 32], strides = [1, 1]} : vector<2x128xf32> to vector<2x32xf32>
    %164 = arith.negf %163 : vector<2x32xf32>
    %165 = math.exp %164 : vector<2x32xf32>
    %cst_59 = arith.constant 1.000000e+00 : f32
    %166 = vector.broadcast %cst_59 : f32 to vector<2x32xf32>
    %167 = arith.addf %166, %165 : vector<2x32xf32>
    %168 = arith.divf %166, %167 : vector<2x32xf32>
    %169 = vector.extract_strided_slice %162 {offsets = [0, 32], sizes = [2, 32], strides = [1, 1]} : vector<2x128xf32> to vector<2x32xf32>
    %170 = arith.negf %169 : vector<2x32xf32>
    %171 = math.exp %170 : vector<2x32xf32>
    %cst_60 = arith.constant 1.000000e+00 : f32
    %172 = vector.broadcast %cst_60 : f32 to vector<2x32xf32>
    %173 = arith.addf %172, %171 : vector<2x32xf32>
    %174 = arith.divf %172, %173 : vector<2x32xf32>
    %175 = vector.extract_strided_slice %162 {offsets = [0, 64], sizes = [2, 32], strides = [1, 1]} : vector<2x128xf32> to vector<2x32xf32>
    %176 = math.tanh %175 : vector<2x32xf32>
    %177 = vector.extract_strided_slice %162 {offsets = [0, 96], sizes = [2, 32], strides = [1, 1]} : vector<2x128xf32> to vector<2x32xf32>
    %178 = arith.negf %177 : vector<2x32xf32>
    %179 = math.exp %178 : vector<2x32xf32>
    %cst_61 = arith.constant 1.000000e+00 : f32
    %180 = vector.broadcast %cst_61 : f32 to vector<2x32xf32>
    %181 = arith.addf %180, %179 : vector<2x32xf32>
    %182 = arith.divf %180, %181 : vector<2x32xf32>
    %183 = arith.mulf %174, %129 : vector<2x32xf32>
    %184 = arith.mulf %168, %176 : vector<2x32xf32>
    %185 = arith.addf %183, %184 : vector<2x32xf32>
    %186 = math.tanh %185 : vector<2x32xf32>
    %187 = arith.mulf %182, %186 : vector<2x32xf32>
    %188 = arith.index_cast %155 : i32 to index
    %c0_62 = arith.constant 0 : index
    %189 = vector.load %arg14[%188, %c0_62] : memref<18x32xf32, #tpu.memory_space<vmem>>, vector<2x32xf32>
    tpu.vector_store %arg14[%188, %c0_62], %187 {strides = array<i32>} : memref<18x32xf32, #tpu.memory_space<vmem>>, vector<2x32xf32>,
    %c3_i32 = arith.constant 3 : i32
    %cst_63 = arith.constant dense<0.000000e+00> : vector<2x32xf32>
    %190 = tpu.matmul %187, %9, %cst_63 {dimension_numbers = #tpu.dot_dimension_numbers<[1], [0], [0], [1], [0, 0, 1, 1], [], []>, precision = #tpu.contract_precision<fp32>} : vector<2x32xf32>, vector<32x32xf32>, vector<2x32xf32> -> vector<2x32xf32>
    %191 = arith.addf %190, %14 : vector<2x32xf32>
    %192 = vector.shape_cast %191 : vector<2x32xf32> to vector<2x1x32xf32>
    %193 = vector.broadcast %192 : vector<2x1x32xf32> to vector<2x8x32xf32>
    %194 = arith.addf %4, %193 : vector<2x8x32xf32>
    %195 = math.tanh %194 : vector<2x8x32xf32>
    %196 = arith.mulf %195, %17 : vector<2x8x32xf32>
    %cst_64 = arith.constant dense<0.000000e+00> : vector<2x8xf32>
    %197 = vector.multi_reduction <add>, %196, %cst_64 [2] : vector<2x8x32xf32> to vector<2x8xf32>
    %198 = vector.shape_cast %197 : vector<2x8xf32> to vector<2x8x1xf32>
    %cst_65 = arith.constant dense<0xFF800000> : vector<2x1xf32>
    %199 = vector.multi_reduction <maximumf>, %198, %cst_65 [1] : vector<2x8x1xf32> to vector<2x1xf32>
    %200 = vector.shape_cast %199 : vector<2x1xf32> to vector<2x1x1xf32>
    %201 = vector.broadcast %200 : vector<2x1x1xf32> to vector<2x8x1xf32>
    %202 = arith.subf %198, %201 : vector<2x8x1xf32>
    %203 = math.exp %202 : vector<2x8x1xf32>
    %cst_66 = arith.constant dense<0.000000e+00> : vector<2x1xf32>
    %204 = vector.multi_reduction <add>, %203, %cst_66 [1] : vector<2x8x1xf32> to vector<2x1xf32>
    %205 = vector.shape_cast %204 : vector<2x1xf32> to vector<2x1x1xf32>
    %206 = vector.broadcast %205 : vector<2x1x1xf32> to vector<2x8x1xf32>
    %207 = arith.divf %203, %206 : vector<2x8x1xf32>
    %208 = vector.broadcast %207 : vector<2x8x1xf32> to vector<2x8x64xf32>
    %209 = arith.mulf %208, %0 : vector<2x8x64xf32>
    %cst_67 = arith.constant dense<0.000000e+00> : vector<2x64xf32>
    %210 = vector.multi_reduction <add>, %209, %cst_67 [1] : vector<2x8x64xf32> to vector<2x64xf32>
    %c2_i32_68 = arith.constant 2 : i32
    %211 = arith.muli %c3_i32, %c2_i32_68 : i32
    %cst_69 = arith.constant dense<0.000000e+00> : vector<2x128xf32>
    %212 = tpu.matmul %210, %10, %cst_69 {dimension_numbers = #tpu.dot_dimension_numbers<[1], [0], [0], [1], [0, 0, 1, 1], [], []>, precision = #tpu.contract_precision<fp32>} : vector<2x64xf32>, vector<64x128xf32>, vector<2x128xf32> -> vector<2x128xf32>
    %cst_70 = arith.constant dense<0.000000e+00> : vector<2x128xf32>
    %213 = tpu.matmul %187, %11, %cst_70 {dimension_numbers = #tpu.dot_dimension_numbers<[1], [0], [0], [1], [0, 0, 1, 1], [], []>, precision = #tpu.contract_precision<fp32>} : vector<2x32xf32>, vector<32x128xf32>, vector<2x128xf32> -> vector<2x128xf32>
    %214 = arith.addf %212, %213 : vector<2x128xf32>
    %215 = arith.index_cast %211 : i32 to index
    %c0_71 = arith.constant 0 : index
    %216 = vector.load %arg13[%215, %c0_71] : memref<18x128xf32, #tpu.memory_space<vmem>>, vector<2x128xf32>
    %217 = arith.addf %214, %216 : vector<2x128xf32>
    %218 = arith.addf %217, %20 : vector<2x128xf32>
    %219 = vector.extract_strided_slice %218 {offsets = [0, 0], sizes = [2, 32], strides = [1, 1]} : vector<2x128xf32> to vector<2x32xf32>
    %220 = arith.negf %219 : vector<2x32xf32>
    %221 = math.exp %220 : vector<2x32xf32>
    %cst_72 = arith.constant 1.000000e+00 : f32
    %222 = vector.broadcast %cst_72 : f32 to vector<2x32xf32>
    %223 = arith.addf %222, %221 : vector<2x32xf32>
    %224 = arith.divf %222, %223 : vector<2x32xf32>
    %225 = vector.extract_strided_slice %218 {offsets = [0, 32], sizes = [2, 32], strides = [1, 1]} : vector<2x128xf32> to vector<2x32xf32>
    %226 = arith.negf %225 : vector<2x32xf32>
    %227 = math.exp %226 : vector<2x32xf32>
    %cst_73 = arith.constant 1.000000e+00 : f32
    %228 = vector.broadcast %cst_73 : f32 to vector<2x32xf32>
    %229 = arith.addf %228, %227 : vector<2x32xf32>
    %230 = arith.divf %228, %229 : vector<2x32xf32>
    %231 = vector.extract_strided_slice %218 {offsets = [0, 64], sizes = [2, 32], strides = [1, 1]} : vector<2x128xf32> to vector<2x32xf32>
    %232 = math.tanh %231 : vector<2x32xf32>
    %233 = vector.extract_strided_slice %218 {offsets = [0, 96], sizes = [2, 32], strides = [1, 1]} : vector<2x128xf32> to vector<2x32xf32>
    %234 = arith.negf %233 : vector<2x32xf32>
    %235 = math.exp %234 : vector<2x32xf32>
    %cst_74 = arith.constant 1.000000e+00 : f32
    %236 = vector.broadcast %cst_74 : f32 to vector<2x32xf32>
    %237 = arith.addf %236, %235 : vector<2x32xf32>
    %238 = arith.divf %236, %237 : vector<2x32xf32>
    %239 = arith.mulf %230, %185 : vector<2x32xf32>
    %240 = arith.mulf %224, %232 : vector<2x32xf32>
    %241 = arith.addf %239, %240 : vector<2x32xf32>
    %242 = math.tanh %241 : vector<2x32xf32>
    %243 = arith.mulf %238, %242 : vector<2x32xf32>
    %244 = arith.index_cast %211 : i32 to index
    %c0_75 = arith.constant 0 : index
    %245 = vector.load %arg14[%244, %c0_75] : memref<18x32xf32, #tpu.memory_space<vmem>>, vector<2x32xf32>
    tpu.vector_store %arg14[%244, %c0_75], %243 {strides = array<i32>} : memref<18x32xf32, #tpu.memory_space<vmem>>, vector<2x32xf32>,
    %c4_i32 = arith.constant 4 : i32
    %cst_76 = arith.constant dense<0.000000e+00> : vector<2x32xf32>
    %246 = tpu.matmul %243, %9, %cst_76 {dimension_numbers = #tpu.dot_dimension_numbers<[1], [0], [0], [1], [0, 0, 1, 1], [], []>, precision = #tpu.contract_precision<fp32>} : vector<2x32xf32>, vector<32x32xf32>, vector<2x32xf32> -> vector<2x32xf32>
    %247 = arith.addf %246, %14 : vector<2x32xf32>
    %248 = vector.shape_cast %247 : vector<2x32xf32> to vector<2x1x32xf32>
    %249 = vector.broadcast %248 : vector<2x1x32xf32> to vector<2x8x32xf32>
    %250 = arith.addf %4, %249 : vector<2x8x32xf32>
    %251 = math.tanh %250 : vector<2x8x32xf32>
    %252 = arith.mulf %251, %17 : vector<2x8x32xf32>
    %cst_77 = arith.constant dense<0.000000e+00> : vector<2x8xf32>
    %253 = vector.multi_reduction <add>, %252, %cst_77 [2] : vector<2x8x32xf32> to vector<2x8xf32>
    %254 = vector.shape_cast %253 : vector<2x8xf32> to vector<2x8x1xf32>
    %cst_78 = arith.constant dense<0xFF800000> : vector<2x1xf32>
    %255 = vector.multi_reduction <maximumf>, %254, %cst_78 [1] : vector<2x8x1xf32> to vector<2x1xf32>
    %256 = vector.shape_cast %255 : vector<2x1xf32> to vector<2x1x1xf32>
    %257 = vector.broadcast %256 : vector<2x1x1xf32> to vector<2x8x1xf32>
    %258 = arith.subf %254, %257 : vector<2x8x1xf32>
    %259 = math.exp %258 : vector<2x8x1xf32>
    %cst_79 = arith.constant dense<0.000000e+00> : vector<2x1xf32>
    %260 = vector.multi_reduction <add>, %259, %cst_79 [1] : vector<2x8x1xf32> to vector<2x1xf32>
    %261 = vector.shape_cast %260 : vector<2x1xf32> to vector<2x1x1xf32>
    %262 = vector.broadcast %261 : vector<2x1x1xf32> to vector<2x8x1xf32>
    %263 = arith.divf %259, %262 : vector<2x8x1xf32>
    %264 = vector.broadcast %263 : vector<2x8x1xf32> to vector<2x8x64xf32>
    %265 = arith.mulf %264, %0 : vector<2x8x64xf32>
    %cst_80 = arith.constant dense<0.000000e+00> : vector<2x64xf32>
    %266 = vector.multi_reduction <add>, %265, %cst_80 [1] : vector<2x8x64xf32> to vector<2x64xf32>
    %c2_i32_81 = arith.constant 2 : i32
    %267 = arith.muli %c4_i32, %c2_i32_81 : i32
    %cst_82 = arith.constant dense<0.000000e+00> : vector<2x128xf32>
    %268 = tpu.matmul %266, %10, %cst_82 {dimension_numbers = #tpu.dot_dimension_numbers<[1], [0], [0], [1], [0, 0, 1, 1], [], []>, precision = #tpu.contract_precision<fp32>} : vector<2x64xf32>, vector<64x128xf32>, vector<2x128xf32> -> vector<2x128xf32>
    %cst_83 = arith.constant dense<0.000000e+00> : vector<2x128xf32>
    %269 = tpu.matmul %243, %11, %cst_83 {dimension_numbers = #tpu.dot_dimension_numbers<[1], [0], [0], [1], [0, 0, 1, 1], [], []>, precision = #tpu.contract_precision<fp32>} : vector<2x32xf32>, vector<32x128xf32>, vector<2x128xf32> -> vector<2x128xf32>
    %270 = arith.addf %268, %269 : vector<2x128xf32>
    %271 = arith.index_cast %267 : i32 to index
    %c0_84 = arith.constant 0 : index
    %272 = vector.load %arg13[%271, %c0_84] : memref<18x128xf32, #tpu.memory_space<vmem>>, vector<2x128xf32>
    %273 = arith.addf %270, %272 : vector<2x128xf32>
    %274 = arith.addf %273, %20 : vector<2x128xf32>
    %275 = vector.extract_strided_slice %274 {offsets = [0, 0], sizes = [2, 32], strides = [1, 1]} : vector<2x128xf32> to vector<2x32xf32>
    %276 = arith.negf %275 : vector<2x32xf32>
    %277 = math.exp %276 : vector<2x32xf32>
    %cst_85 = arith.constant 1.000000e+00 : f32
    %278 = vector.broadcast %cst_85 : f32 to vector<2x32xf32>
    %279 = arith.addf %278, %277 : vector<2x32xf32>
    %280 = arith.divf %278, %279 : vector<2x32xf32>
    %281 = vector.extract_strided_slice %274 {offsets = [0, 32], sizes = [2, 32], strides = [1, 1]} : vector<2x128xf32> to vector<2x32xf32>
    %282 = arith.negf %281 : vector<2x32xf32>
    %283 = math.exp %282 : vector<2x32xf32>
    %cst_86 = arith.constant 1.000000e+00 : f32
    %284 = vector.broadcast %cst_86 : f32 to vector<2x32xf32>
    %285 = arith.addf %284, %283 : vector<2x32xf32>
    %286 = arith.divf %284, %285 : vector<2x32xf32>
    %287 = vector.extract_strided_slice %274 {offsets = [0, 64], sizes = [2, 32], strides = [1, 1]} : vector<2x128xf32> to vector<2x32xf32>
    %288 = math.tanh %287 : vector<2x32xf32>
    %289 = vector.extract_strided_slice %274 {offsets = [0, 96], sizes = [2, 32], strides = [1, 1]} : vector<2x128xf32> to vector<2x32xf32>
    %290 = arith.negf %289 : vector<2x32xf32>
    %291 = math.exp %290 : vector<2x32xf32>
    %cst_87 = arith.constant 1.000000e+00 : f32
    %292 = vector.broadcast %cst_87 : f32 to vector<2x32xf32>
    %293 = arith.addf %292, %291 : vector<2x32xf32>
    %294 = arith.divf %292, %293 : vector<2x32xf32>
    %295 = arith.mulf %286, %241 : vector<2x32xf32>
    %296 = arith.mulf %280, %288 : vector<2x32xf32>
    %297 = arith.addf %295, %296 : vector<2x32xf32>
    %298 = math.tanh %297 : vector<2x32xf32>
    %299 = arith.mulf %294, %298 : vector<2x32xf32>
    %300 = arith.index_cast %267 : i32 to index
    %c0_88 = arith.constant 0 : index
    %301 = vector.load %arg14[%300, %c0_88] : memref<18x32xf32, #tpu.memory_space<vmem>>, vector<2x32xf32>
    tpu.vector_store %arg14[%300, %c0_88], %299 {strides = array<i32>} : memref<18x32xf32, #tpu.memory_space<vmem>>, vector<2x32xf32>,
    %c5_i32 = arith.constant 5 : i32
    %cst_89 = arith.constant dense<0.000000e+00> : vector<2x32xf32>
    %302 = tpu.matmul %299, %9, %cst_89 {dimension_numbers = #tpu.dot_dimension_numbers<[1], [0], [0], [1], [0, 0, 1, 1], [], []>, precision = #tpu.contract_precision<fp32>} : vector<2x32xf32>, vector<32x32xf32>, vector<2x32xf32> -> vector<2x32xf32>
    %303 = arith.addf %302, %14 : vector<2x32xf32>
    %304 = vector.shape_cast %303 : vector<2x32xf32> to vector<2x1x32xf32>
    %305 = vector.broadcast %304 : vector<2x1x32xf32> to vector<2x8x32xf32>
    %306 = arith.addf %4, %305 : vector<2x8x32xf32>
    %307 = math.tanh %306 : vector<2x8x32xf32>
    %308 = arith.mulf %307, %17 : vector<2x8x32xf32>
    %cst_90 = arith.constant dense<0.000000e+00> : vector<2x8xf32>
    %309 = vector.multi_reduction <add>, %308, %cst_90 [2] : vector<2x8x32xf32> to vector<2x8xf32>
    %310 = vector.shape_cast %309 : vector<2x8xf32> to vector<2x8x1xf32>
    %cst_91 = arith.constant dense<0xFF800000> : vector<2x1xf32>
    %311 = vector.multi_reduction <maximumf>, %310, %cst_91 [1] : vector<2x8x1xf32> to vector<2x1xf32>
    %312 = vector.shape_cast %311 : vector<2x1xf32> to vector<2x1x1xf32>
    %313 = vector.broadcast %312 : vector<2x1x1xf32> to vector<2x8x1xf32>
    %314 = arith.subf %310, %313 : vector<2x8x1xf32>
    %315 = math.exp %314 : vector<2x8x1xf32>
    %cst_92 = arith.constant dense<0.000000e+00> : vector<2x1xf32>
    %316 = vector.multi_reduction <add>, %315, %cst_92 [1] : vector<2x8x1xf32> to vector<2x1xf32>
    %317 = vector.shape_cast %316 : vector<2x1xf32> to vector<2x1x1xf32>
    %318 = vector.broadcast %317 : vector<2x1x1xf32> to vector<2x8x1xf32>
    %319 = arith.divf %315, %318 : vector<2x8x1xf32>
    %320 = vector.broadcast %319 : vector<2x8x1xf32> to vector<2x8x64xf32>
    %321 = arith.mulf %320, %0 : vector<2x8x64xf32>
    %cst_93 = arith.constant dense<0.000000e+00> : vector<2x64xf32>
    %322 = vector.multi_reduction <add>, %321, %cst_93 [1] : vector<2x8x64xf32> to vector<2x64xf32>
    %c2_i32_94 = arith.constant 2 : i32
    %323 = arith.muli %c5_i32, %c2_i32_94 : i32
    %cst_95 = arith.constant dense<0.000000e+00> : vector<2x128xf32>
    %324 = tpu.matmul %322, %10, %cst_95 {dimension_numbers = #tpu.dot_dimension_numbers<[1], [0], [0], [1], [0, 0, 1, 1], [], []>, precision = #tpu.contract_precision<fp32>} : vector<2x64xf32>, vector<64x128xf32>, vector<2x128xf32> -> vector<2x128xf32>
    %cst_96 = arith.constant dense<0.000000e+00> : vector<2x128xf32>
    %325 = tpu.matmul %299, %11, %cst_96 {dimension_numbers = #tpu.dot_dimension_numbers<[1], [0], [0], [1], [0, 0, 1, 1], [], []>, precision = #tpu.contract_precision<fp32>} : vector<2x32xf32>, vector<32x128xf32>, vector<2x128xf32> -> vector<2x128xf32>
    %326 = arith.addf %324, %325 : vector<2x128xf32>
    %327 = arith.index_cast %323 : i32 to index
    %c0_97 = arith.constant 0 : index
    %328 = vector.load %arg13[%327, %c0_97] : memref<18x128xf32, #tpu.memory_space<vmem>>, vector<2x128xf32>
    %329 = arith.addf %326, %328 : vector<2x128xf32>
    %330 = arith.addf %329, %20 : vector<2x128xf32>
    %331 = vector.extract_strided_slice %330 {offsets = [0, 0], sizes = [2, 32], strides = [1, 1]} : vector<2x128xf32> to vector<2x32xf32>
    %332 = arith.negf %331 : vector<2x32xf32>
    %333 = math.exp %332 : vector<2x32xf32>
    %cst_98 = arith.constant 1.000000e+00 : f32
    %334 = vector.broadcast %cst_98 : f32 to vector<2x32xf32>
    %335 = arith.addf %334, %333 : vector<2x32xf32>
    %336 = arith.divf %334, %335 : vector<2x32xf32>
    %337 = vector.extract_strided_slice %330 {offsets = [0, 32], sizes = [2, 32], strides = [1, 1]} : vector<2x128xf32> to vector<2x32xf32>
    %338 = arith.negf %337 : vector<2x32xf32>
    %339 = math.exp %338 : vector<2x32xf32>
    %cst_99 = arith.constant 1.000000e+00 : f32
    %340 = vector.broadcast %cst_99 : f32 to vector<2x32xf32>
    %341 = arith.addf %340, %339 : vector<2x32xf32>
    %342 = arith.divf %340, %341 : vector<2x32xf32>
    %343 = vector.extract_strided_slice %330 {offsets = [0, 64], sizes = [2, 32], strides = [1, 1]} : vector<2x128xf32> to vector<2x32xf32>
    %344 = math.tanh %343 : vector<2x32xf32>
    %345 = vector.extract_strided_slice %330 {offsets = [0, 96], sizes = [2, 32], strides = [1, 1]} : vector<2x128xf32> to vector<2x32xf32>
    %346 = arith.negf %345 : vector<2x32xf32>
    %347 = math.exp %346 : vector<2x32xf32>
    %cst_100 = arith.constant 1.000000e+00 : f32
    %348 = vector.broadcast %cst_100 : f32 to vector<2x32xf32>
    %349 = arith.addf %348, %347 : vector<2x32xf32>
    %350 = arith.divf %348, %349 : vector<2x32xf32>
    %351 = arith.mulf %342, %297 : vector<2x32xf32>
    %352 = arith.mulf %336, %344 : vector<2x32xf32>
    %353 = arith.addf %351, %352 : vector<2x32xf32>
    %354 = math.tanh %353 : vector<2x32xf32>
    %355 = arith.mulf %350, %354 : vector<2x32xf32>
    %356 = arith.index_cast %323 : i32 to index
    %c0_101 = arith.constant 0 : index
    %357 = vector.load %arg14[%356, %c0_101] : memref<18x32xf32, #tpu.memory_space<vmem>>, vector<2x32xf32>
    tpu.vector_store %arg14[%356, %c0_101], %355 {strides = array<i32>} : memref<18x32xf32, #tpu.memory_space<vmem>>, vector<2x32xf32>,
    %c6_i32 = arith.constant 6 : i32
    %cst_102 = arith.constant dense<0.000000e+00> : vector<2x32xf32>
    %358 = tpu.matmul %355, %9, %cst_102 {dimension_numbers = #tpu.dot_dimension_numbers<[1], [0], [0], [1], [0, 0, 1, 1], [], []>, precision = #tpu.contract_precision<fp32>} : vector<2x32xf32>, vector<32x32xf32>, vector<2x32xf32> -> vector<2x32xf32>
    %359 = arith.addf %358, %14 : vector<2x32xf32>
    %360 = vector.shape_cast %359 : vector<2x32xf32> to vector<2x1x32xf32>
    %361 = vector.broadcast %360 : vector<2x1x32xf32> to vector<2x8x32xf32>
    %362 = arith.addf %4, %361 : vector<2x8x32xf32>
    %363 = math.tanh %362 : vector<2x8x32xf32>
    %364 = arith.mulf %363, %17 : vector<2x8x32xf32>
    %cst_103 = arith.constant dense<0.000000e+00> : vector<2x8xf32>
    %365 = vector.multi_reduction <add>, %364, %cst_103 [2] : vector<2x8x32xf32> to vector<2x8xf32>
    %366 = vector.shape_cast %365 : vector<2x8xf32> to vector<2x8x1xf32>
    %cst_104 = arith.constant dense<0xFF800000> : vector<2x1xf32>
    %367 = vector.multi_reduction <maximumf>, %366, %cst_104 [1] : vector<2x8x1xf32> to vector<2x1xf32>
    %368 = vector.shape_cast %367 : vector<2x1xf32> to vector<2x1x1xf32>
    %369 = vector.broadcast %368 : vector<2x1x1xf32> to vector<2x8x1xf32>
    %370 = arith.subf %366, %369 : vector<2x8x1xf32>
    %371 = math.exp %370 : vector<2x8x1xf32>
    %cst_105 = arith.constant dense<0.000000e+00> : vector<2x1xf32>
    %372 = vector.multi_reduction <add>, %371, %cst_105 [1] : vector<2x8x1xf32> to vector<2x1xf32>
    %373 = vector.shape_cast %372 : vector<2x1xf32> to vector<2x1x1xf32>
    %374 = vector.broadcast %373 : vector<2x1x1xf32> to vector<2x8x1xf32>
    %375 = arith.divf %371, %374 : vector<2x8x1xf32>
    %376 = vector.broadcast %375 : vector<2x8x1xf32> to vector<2x8x64xf32>
    %377 = arith.mulf %376, %0 : vector<2x8x64xf32>
    %cst_106 = arith.constant dense<0.000000e+00> : vector<2x64xf32>
    %378 = vector.multi_reduction <add>, %377, %cst_106 [1] : vector<2x8x64xf32> to vector<2x64xf32>
    %c2_i32_107 = arith.constant 2 : i32
    %379 = arith.muli %c6_i32, %c2_i32_107 : i32
    %cst_108 = arith.constant dense<0.000000e+00> : vector<2x128xf32>
    %380 = tpu.matmul %378, %10, %cst_108 {dimension_numbers = #tpu.dot_dimension_numbers<[1], [0], [0], [1], [0, 0, 1, 1], [], []>, precision = #tpu.contract_precision<fp32>} : vector<2x64xf32>, vector<64x128xf32>, vector<2x128xf32> -> vector<2x128xf32>
    %cst_109 = arith.constant dense<0.000000e+00> : vector<2x128xf32>
    %381 = tpu.matmul %355, %11, %cst_109 {dimension_numbers = #tpu.dot_dimension_numbers<[1], [0], [0], [1], [0, 0, 1, 1], [], []>, precision = #tpu.contract_precision<fp32>} : vector<2x32xf32>, vector<32x128xf32>, vector<2x128xf32> -> vector<2x128xf32>
    %382 = arith.addf %380, %381 : vector<2x128xf32>
    %383 = arith.index_cast %379 : i32 to index
    %c0_110 = arith.constant 0 : index
    %384 = vector.load %arg13[%383, %c0_110] : memref<18x128xf32, #tpu.memory_space<vmem>>, vector<2x128xf32>
    %385 = arith.addf %382, %384 : vector<2x128xf32>
    %386 = arith.addf %385, %20 : vector<2x128xf32>
    %387 = vector.extract_strided_slice %386 {offsets = [0, 0], sizes = [2, 32], strides = [1, 1]} : vector<2x128xf32> to vector<2x32xf32>
    %388 = arith.negf %387 : vector<2x32xf32>
    %389 = math.exp %388 : vector<2x32xf32>
    %cst_111 = arith.constant 1.000000e+00 : f32
    %390 = vector.broadcast %cst_111 : f32 to vector<2x32xf32>
    %391 = arith.addf %390, %389 : vector<2x32xf32>
    %392 = arith.divf %390, %391 : vector<2x32xf32>
    %393 = vector.extract_strided_slice %386 {offsets = [0, 32], sizes = [2, 32], strides = [1, 1]} : vector<2x128xf32> to vector<2x32xf32>
    %394 = arith.negf %393 : vector<2x32xf32>
    %395 = math.exp %394 : vector<2x32xf32>
    %cst_112 = arith.constant 1.000000e+00 : f32
    %396 = vector.broadcast %cst_112 : f32 to vector<2x32xf32>
    %397 = arith.addf %396, %395 : vector<2x32xf32>
    %398 = arith.divf %396, %397 : vector<2x32xf32>
    %399 = vector.extract_strided_slice %386 {offsets = [0, 64], sizes = [2, 32], strides = [1, 1]} : vector<2x128xf32> to vector<2x32xf32>
    %400 = math.tanh %399 : vector<2x32xf32>
    %401 = vector.extract_strided_slice %386 {offsets = [0, 96], sizes = [2, 32], strides = [1, 1]} : vector<2x128xf32> to vector<2x32xf32>
    %402 = arith.negf %401 : vector<2x32xf32>
    %403 = math.exp %402 : vector<2x32xf32>
    %cst_113 = arith.constant 1.000000e+00 : f32
    %404 = vector.broadcast %cst_113 : f32 to vector<2x32xf32>
    %405 = arith.addf %404, %403 : vector<2x32xf32>
    %406 = arith.divf %404, %405 : vector<2x32xf32>
    %407 = arith.mulf %398, %353 : vector<2x32xf32>
    %408 = arith.mulf %392, %400 : vector<2x32xf32>
    %409 = arith.addf %407, %408 : vector<2x32xf32>
    %410 = math.tanh %409 : vector<2x32xf32>
    %411 = arith.mulf %406, %410 : vector<2x32xf32>
    %412 = arith.index_cast %379 : i32 to index
    %c0_114 = arith.constant 0 : index
    %413 = vector.load %arg14[%412, %c0_114] : memref<18x32xf32, #tpu.memory_space<vmem>>, vector<2x32xf32>
    tpu.vector_store %arg14[%412, %c0_114], %411 {strides = array<i32>} : memref<18x32xf32, #tpu.memory_space<vmem>>, vector<2x32xf32>,
    %c7_i32 = arith.constant 7 : i32
    %cst_115 = arith.constant dense<0.000000e+00> : vector<2x32xf32>
    %414 = tpu.matmul %411, %9, %cst_115 {dimension_numbers = #tpu.dot_dimension_numbers<[1], [0], [0], [1], [0, 0, 1, 1], [], []>, precision = #tpu.contract_precision<fp32>} : vector<2x32xf32>, vector<32x32xf32>, vector<2x32xf32> -> vector<2x32xf32>
    %415 = arith.addf %414, %14 : vector<2x32xf32>
    %416 = vector.shape_cast %415 : vector<2x32xf32> to vector<2x1x32xf32>
    %417 = vector.broadcast %416 : vector<2x1x32xf32> to vector<2x8x32xf32>
    %418 = arith.addf %4, %417 : vector<2x8x32xf32>
    %419 = math.tanh %418 : vector<2x8x32xf32>
    %420 = arith.mulf %419, %17 : vector<2x8x32xf32>
    %cst_116 = arith.constant dense<0.000000e+00> : vector<2x8xf32>
    %421 = vector.multi_reduction <add>, %420, %cst_116 [2] : vector<2x8x32xf32> to vector<2x8xf32>
    %422 = vector.shape_cast %421 : vector<2x8xf32> to vector<2x8x1xf32>
    %cst_117 = arith.constant dense<0xFF800000> : vector<2x1xf32>
    %423 = vector.multi_reduction <maximumf>, %422, %cst_117 [1] : vector<2x8x1xf32> to vector<2x1xf32>
    %424 = vector.shape_cast %423 : vector<2x1xf32> to vector<2x1x1xf32>
    %425 = vector.broadcast %424 : vector<2x1x1xf32> to vector<2x8x1xf32>
    %426 = arith.subf %422, %425 : vector<2x8x1xf32>
    %427 = math.exp %426 : vector<2x8x1xf32>
    %cst_118 = arith.constant dense<0.000000e+00> : vector<2x1xf32>
    %428 = vector.multi_reduction <add>, %427, %cst_118 [1] : vector<2x8x1xf32> to vector<2x1xf32>
    %429 = vector.shape_cast %428 : vector<2x1xf32> to vector<2x1x1xf32>
    %430 = vector.broadcast %429 : vector<2x1x1xf32> to vector<2x8x1xf32>
    %431 = arith.divf %427, %430 : vector<2x8x1xf32>
    %432 = vector.broadcast %431 : vector<2x8x1xf32> to vector<2x8x64xf32>
    %433 = arith.mulf %432, %0 : vector<2x8x64xf32>
    %cst_119 = arith.constant dense<0.000000e+00> : vector<2x64xf32>
    %434 = vector.multi_reduction <add>, %433, %cst_119 [1] : vector<2x8x64xf32> to vector<2x64xf32>
    %c2_i32_120 = arith.constant 2 : i32
    %435 = arith.muli %c7_i32, %c2_i32_120 : i32
    %cst_121 = arith.constant dense<0.000000e+00> : vector<2x128xf32>
    %436 = tpu.matmul %434, %10, %cst_121 {dimension_numbers = #tpu.dot_dimension_numbers<[1], [0], [0], [1], [0, 0, 1, 1], [], []>, precision = #tpu.contract_precision<fp32>} : vector<2x64xf32>, vector<64x128xf32>, vector<2x128xf32> -> vector<2x128xf32>
    %cst_122 = arith.constant dense<0.000000e+00> : vector<2x128xf32>
    %437 = tpu.matmul %411, %11, %cst_122 {dimension_numbers = #tpu.dot_dimension_numbers<[1], [0], [0], [1], [0, 0, 1, 1], [], []>, precision = #tpu.contract_precision<fp32>} : vector<2x32xf32>, vector<32x128xf32>, vector<2x128xf32> -> vector<2x128xf32>
    %438 = arith.addf %436, %437 : vector<2x128xf32>
    %439 = arith.index_cast %435 : i32 to index
    %c0_123 = arith.constant 0 : index
    %440 = vector.load %arg13[%439, %c0_123] : memref<18x128xf32, #tpu.memory_space<vmem>>, vector<2x128xf32>
    %441 = arith.addf %438, %440 : vector<2x128xf32>
    %442 = arith.addf %441, %20 : vector<2x128xf32>
    %443 = vector.extract_strided_slice %442 {offsets = [0, 0], sizes = [2, 32], strides = [1, 1]} : vector<2x128xf32> to vector<2x32xf32>
    %444 = arith.negf %443 : vector<2x32xf32>
    %445 = math.exp %444 : vector<2x32xf32>
    %cst_124 = arith.constant 1.000000e+00 : f32
    %446 = vector.broadcast %cst_124 : f32 to vector<2x32xf32>
    %447 = arith.addf %446, %445 : vector<2x32xf32>
    %448 = arith.divf %446, %447 : vector<2x32xf32>
    %449 = vector.extract_strided_slice %442 {offsets = [0, 32], sizes = [2, 32], strides = [1, 1]} : vector<2x128xf32> to vector<2x32xf32>
    %450 = arith.negf %449 : vector<2x32xf32>
    %451 = math.exp %450 : vector<2x32xf32>
    %cst_125 = arith.constant 1.000000e+00 : f32
    %452 = vector.broadcast %cst_125 : f32 to vector<2x32xf32>
    %453 = arith.addf %452, %451 : vector<2x32xf32>
    %454 = arith.divf %452, %453 : vector<2x32xf32>
    %455 = vector.extract_strided_slice %442 {offsets = [0, 64], sizes = [2, 32], strides = [1, 1]} : vector<2x128xf32> to vector<2x32xf32>
    %456 = math.tanh %455 : vector<2x32xf32>
    %457 = vector.extract_strided_slice %442 {offsets = [0, 96], sizes = [2, 32], strides = [1, 1]} : vector<2x128xf32> to vector<2x32xf32>
    %458 = arith.negf %457 : vector<2x32xf32>
    %459 = math.exp %458 : vector<2x32xf32>
    %cst_126 = arith.constant 1.000000e+00 : f32
    %460 = vector.broadcast %cst_126 : f32 to vector<2x32xf32>
    %461 = arith.addf %460, %459 : vector<2x32xf32>
    %462 = arith.divf %460, %461 : vector<2x32xf32>
    %463 = arith.mulf %454, %409 : vector<2x32xf32>
    %464 = arith.mulf %448, %456 : vector<2x32xf32>
    %465 = arith.addf %463, %464 : vector<2x32xf32>
    %466 = math.tanh %465 : vector<2x32xf32>
    %467 = arith.mulf %462, %466 : vector<2x32xf32>
    %468 = arith.index_cast %435 : i32 to index
    %c0_127 = arith.constant 0 : index
    %469 = vector.load %arg14[%468, %c0_127] : memref<18x32xf32, #tpu.memory_space<vmem>>, vector<2x32xf32>
    tpu.vector_store %arg14[%468, %c0_127], %467 {strides = array<i32>} : memref<18x32xf32, #tpu.memory_space<vmem>>, vector<2x32xf32>,
    %c8_i32 = arith.constant 8 : i32
    %cst_128 = arith.constant dense<0.000000e+00> : vector<2x32xf32>
    %470 = tpu.matmul %467, %9, %cst_128 {dimension_numbers = #tpu.dot_dimension_numbers<[1], [0], [0], [1], [0, 0, 1, 1], [], []>, precision = #tpu.contract_precision<fp32>} : vector<2x32xf32>, vector<32x32xf32>, vector<2x32xf32> -> vector<2x32xf32>
    %471 = arith.addf %470, %14 : vector<2x32xf32>
    %472 = vector.shape_cast %471 : vector<2x32xf32> to vector<2x1x32xf32>
    %473 = vector.broadcast %472 : vector<2x1x32xf32> to vector<2x8x32xf32>
    %474 = arith.addf %4, %473 : vector<2x8x32xf32>
    %475 = math.tanh %474 : vector<2x8x32xf32>
    %476 = arith.mulf %475, %17 : vector<2x8x32xf32>
    %cst_129 = arith.constant dense<0.000000e+00> : vector<2x8xf32>
    %477 = vector.multi_reduction <add>, %476, %cst_129 [2] : vector<2x8x32xf32> to vector<2x8xf32>
    %478 = vector.shape_cast %477 : vector<2x8xf32> to vector<2x8x1xf32>
    %cst_130 = arith.constant dense<0xFF800000> : vector<2x1xf32>
    %479 = vector.multi_reduction <maximumf>, %478, %cst_130 [1] : vector<2x8x1xf32> to vector<2x1xf32>
    %480 = vector.shape_cast %479 : vector<2x1xf32> to vector<2x1x1xf32>
    %481 = vector.broadcast %480 : vector<2x1x1xf32> to vector<2x8x1xf32>
    %482 = arith.subf %478, %481 : vector<2x8x1xf32>
    %483 = math.exp %482 : vector<2x8x1xf32>
    %cst_131 = arith.constant dense<0.000000e+00> : vector<2x1xf32>
    %484 = vector.multi_reduction <add>, %483, %cst_131 [1] : vector<2x8x1xf32> to vector<2x1xf32>
    %485 = vector.shape_cast %484 : vector<2x1xf32> to vector<2x1x1xf32>
    %486 = vector.broadcast %485 : vector<2x1x1xf32> to vector<2x8x1xf32>
    %487 = arith.divf %483, %486 : vector<2x8x1xf32>
    %488 = vector.broadcast %487 : vector<2x8x1xf32> to vector<2x8x64xf32>
    %489 = arith.mulf %488, %0 : vector<2x8x64xf32>
    %cst_132 = arith.constant dense<0.000000e+00> : vector<2x64xf32>
    %490 = vector.multi_reduction <add>, %489, %cst_132 [1] : vector<2x8x64xf32> to vector<2x64xf32>
    %c2_i32_133 = arith.constant 2 : i32
    %491 = arith.muli %c8_i32, %c2_i32_133 : i32
    %cst_134 = arith.constant dense<0.000000e+00> : vector<2x128xf32>
    %492 = tpu.matmul %490, %10, %cst_134 {dimension_numbers = #tpu.dot_dimension_numbers<[1], [0], [0], [1], [0, 0, 1, 1], [], []>, precision = #tpu.contract_precision<fp32>} : vector<2x64xf32>, vector<64x128xf32>, vector<2x128xf32> -> vector<2x128xf32>
    %cst_135 = arith.constant dense<0.000000e+00> : vector<2x128xf32>
    %493 = tpu.matmul %467, %11, %cst_135 {dimension_numbers = #tpu.dot_dimension_numbers<[1], [0], [0], [1], [0, 0, 1, 1], [], []>, precision = #tpu.contract_precision<fp32>} : vector<2x32xf32>, vector<32x128xf32>, vector<2x128xf32> -> vector<2x128xf32>
    %494 = arith.addf %492, %493 : vector<2x128xf32>
    %495 = arith.index_cast %491 : i32 to index
    %c0_136 = arith.constant 0 : index
    %496 = vector.load %arg13[%495, %c0_136] : memref<18x128xf32, #tpu.memory_space<vmem>>, vector<2x128xf32>
    %497 = arith.addf %494, %496 : vector<2x128xf32>
    %498 = arith.addf %497, %20 : vector<2x128xf32>
    %499 = vector.extract_strided_slice %498 {offsets = [0, 0], sizes = [2, 32], strides = [1, 1]} : vector<2x128xf32> to vector<2x32xf32>
    %500 = arith.negf %499 : vector<2x32xf32>
    %501 = math.exp %500 : vector<2x32xf32>
    %cst_137 = arith.constant 1.000000e+00 : f32
    %502 = vector.broadcast %cst_137 : f32 to vector<2x32xf32>
    %503 = arith.addf %502, %501 : vector<2x32xf32>
    %504 = arith.divf %502, %503 : vector<2x32xf32>
    %505 = vector.extract_strided_slice %498 {offsets = [0, 32], sizes = [2, 32], strides = [1, 1]} : vector<2x128xf32> to vector<2x32xf32>
    %506 = arith.negf %505 : vector<2x32xf32>
    %507 = math.exp %506 : vector<2x32xf32>
    %cst_138 = arith.constant 1.000000e+00 : f32
    %508 = vector.broadcast %cst_138 : f32 to vector<2x32xf32>
    %509 = arith.addf %508, %507 : vector<2x32xf32>
    %510 = arith.divf %508, %509 : vector<2x32xf32>
    %511 = vector.extract_strided_slice %498 {offsets = [0, 64], sizes = [2, 32], strides = [1, 1]} : vector<2x128xf32> to vector<2x32xf32>
    %512 = math.tanh %511 : vector<2x32xf32>
    %513 = vector.extract_strided_slice %498 {offsets = [0, 96], sizes = [2, 32], strides = [1, 1]} : vector<2x128xf32> to vector<2x32xf32>
    %514 = arith.negf %513 : vector<2x32xf32>
    %515 = math.exp %514 : vector<2x32xf32>
    %cst_139 = arith.constant 1.000000e+00 : f32
    %516 = vector.broadcast %cst_139 : f32 to vector<2x32xf32>
    %517 = arith.addf %516, %515 : vector<2x32xf32>
    %518 = arith.divf %516, %517 : vector<2x32xf32>
    %519 = arith.mulf %510, %465 : vector<2x32xf32>
    %520 = arith.mulf %504, %512 : vector<2x32xf32>
    %521 = arith.addf %519, %520 : vector<2x32xf32>
    %522 = math.tanh %521 : vector<2x32xf32>
    %523 = arith.mulf %518, %522 : vector<2x32xf32>
    %524 = arith.index_cast %491 : i32 to index
    %c0_140 = arith.constant 0 : index
    %525 = vector.load %arg14[%524, %c0_140] : memref<18x32xf32, #tpu.memory_space<vmem>>, vector<2x32xf32>
    tpu.vector_store %arg14[%524, %c0_140], %523 {strides = array<i32>} : memref<18x32xf32, #tpu.memory_space<vmem>>, vector<2x32xf32>,
    %c9_i32 = arith.constant 9 : i32
    %c0_141 = arith.constant 0 : index
    %c0_142 = arith.constant 0 : index
    %526 = vector.load %arg14[%c0_141, %c0_142] : memref<18x32xf32, #tpu.memory_space<vmem>>, vector<18x32xf32>
    %c0_143 = arith.constant 0 : index
    %c0_144 = arith.constant 0 : index
    %527 = vector.load %arg10[%c0_143, %c0_144] : memref<32x12xf32, #tpu.memory_space<vmem>>, vector<32x12xf32>
    %cst_145 = arith.constant dense<0.000000e+00> : vector<18x12xf32>
    %528 = tpu.matmul %526, %527, %cst_145 {dimension_numbers = #tpu.dot_dimension_numbers<[1], [0], [0], [1], [0, 0, 1, 1], [], []>, precision = #tpu.contract_precision<fp32>} : vector<18x32xf32>, vector<32x12xf32>, vector<18x12xf32> -> vector<18x12xf32>
    %c0_146 = arith.constant 0 : index
    %c0_147 = arith.constant 0 : index
    %529 = vector.load %arg11[%c0_146, %c0_147] : memref<1x12xf32, #tpu.memory_space<vmem>>, vector<1x12xf32>
    %530 = vector.broadcast %529 : vector<1x12xf32> to vector<18x12xf32>
    %531 = arith.addf %528, %530 : vector<18x12xf32>
    %c0_148 = arith.constant 0 : index
    %c0_149 = arith.constant 0 : index
    %532 = vector.load %arg12[%c0_148, %c0_149] : memref<18x12xf32, #tpu.memory_space<vmem>>, vector<18x12xf32>
    tpu.vector_store %arg12[%c0_148, %c0_149], %531 {strides = array<i32>} : memref<18x12xf32, #tpu.memory_space<vmem>>, vector<18x12xf32>,
    return
  }
}

</mosaic_0001>

<bundles_post_ra>
// kernel: scrb_forward.3
= control target key start
LH: loop header
LB: loop body
LE: loop exit
PB: predicated region body
PF: predicated region fallthrough
CT: control target
= control target key end

     0   :  { %vm45_vm0 = vcmask 261120   ;;  %s4810_s17 = smov 32   ;;  %vm951_vm9 = vcmask 254976   ;;  %s5723_s1 = inlined_call_operand.vmem [shape: f32[32,256], index: 1, kind: input, shape index: {}]   ;;  %s5724_s0 = inlined_call_operand.vmem [shape: f32[16,32], index: 0, kind: input, shape index: {}]   ;;  %s5725_s3 = inlined_call_operand.vmem [shape: f32[32,128], index: 3, kind: input, shape index: {}]   ;;  %s5726_s4 = inlined_call_operand.vmem [shape: f32[32,128], index: 4, kind: input, shape index: {}]   ;;  %s5727_s2 = inlined_call_operand.vmem [shape: f32[1,256], index: 2, kind: input, shape index: {}]   ;;  %s5728_s6 = inlined_call_operand.vmem [shape: f32[32,32], index: 6, kind: input, shape index: {}]   ;;  %s5729_s5 = inlined_call_operand.vmem [shape: f32[32,32], index: 5, kind: input, shape index: {}]   ;;  %s5730_s7 = inlined_call_operand.vmem [shape: f32[1,32], index: 7, kind: input, shape index: {}]   ;;  %s5731_s8 = inlined_call_operand.vmem [shape: f32[16,32], index: 8, kind: output, shape index: {}]  }
   0x1   :  { %v37_v0 = vld [vmem:[%s5723_s1 + $0x30] sm:$0xff]  ;;  %v35_v1 = vld [vmem:[%s5723_s1 + $0x20] sm:$0xff]  ;;  %v38_v8 = vld [vmem:[%s5723_s1 + $0x38] sm:$0xff] }
   0x2   :  { %v33_v2 = vld [vmem:[%s5723_s1 + $0x10] sm:$0xff]  ;;  %v4865_v3 = vand.u32 4294901760, %v37_v0  ;;  %v4867_v4 = vand.u32 4294901760, %v35_v1  ;;  %v31_v6 = vld [vmem:[%s5723_s1] sm:$0xff]  ;;  %v4883_v11 = vand.u32 4294901760, %v38_v8  ;;  %v36_v12 = vld [vmem:[%s5723_s1 + $0x28] sm:$0xff] }
   0x3   :  { %v4869_v5 = vand.u32 4294901760, %v33_v2  ;;  %v29_v7 = vld [vmem:[%s5724_s0] sm:$0xff]  ;;  %v4880_v9 = vand.u32 4294901760, %v31_v6  ;;  %v30_v13 = vld [vmem:[%s5724_s0 + $0x8] sm:$0xff]  ;;  %v4906_v20 = vand.u32 4294901760, %v36_v12  ;;  %v34_v37 = vld [vmem:[%s5723_s1 + $0x18] sm:$0xff] }
   0x4   :  { %v47_v10 = vsel %vm45_vm0, %v29_v7, 0  ;;  %65 = vmatpush.msra.mxu0 %v4865_v3  ;;  %v102_v14 = vsub.f32 %v37_v0, %v4865_v3  ;;  %182 = vmatpush.msra.mxu3 %v4865_v3  ;;  %v108_v15 = vsub.f32 %v35_v1, %v4867_v4  ;;  %v4904_v19 = vsub.f32 %v38_v8, %v4883_v11  ;;  %v32_v38 = vld [vmem:[%s5723_s1 + $0x8] sm:$0xff]  ;;  %v491_v57 = vld [vmem:[%s5725_s3 + $0x18] sm:$0xff]  ;;  %v490_v62 = vld [vmem:[%s5725_s3 + $0x10] sm:$0xff] }
   0x5   :  { %v4896_v16 = vsub.f32 %v33_v2, %v4869_v5  ;;  %v4898_v17 = vand.u32 4294901760, %v47_v10  ;;  %v4901_v18 = vsub.f32 %v31_v6, %v4880_v9  ;;  %v50_v21 = vsel %vm45_vm0, %v30_v13, 0  ;;  %v489_v2 = vld [vmem:[%s5725_s3 + $0x8] sm:$0xff]  ;;  %v495_v8 = vld [vmem:[%s5726_s4 + $0x18] sm:$0xff] }
   0x6   :  { %67 = vmatpush.msra.mxu0 %v4867_v4  ;;  %148 = vmatpush.msra.mxu2 %v102_v14  ;;  %v103_v22 = vand.u32 4294901760, %v102_v14  ;;  %v109_v24 = vand.u32 4294901760, %v108_v15  ;;  %v319_v26 = vand.u32 4294901760, %v4904_v19  ;;  %v4917_v28 = vand.u32 4294901760, %v50_v21 }
   0x7   :  { %v4911_v23 = vsub.f32 %v47_v10, %v4898_v17  ;;  %v115_v25 = vand.u32 4294901760, %v4896_v16  ;;  %184 = vmatpush.msra.mxu3 %v4867_v4  ;;  %v121_v27 = vand.u32 4294901760, %v4901_v18  ;;  %v4920_v29 = vsub.f32 %v36_v12, %v4906_v20  ;;  %v494_v12 = vld [vmem:[%s5726_s4 + $0x10] sm:$0xff] }
   0x8   :  { %69 = vmatpush.msra.mxu0 %v4869_v5  ;;  %151 = vmatpush.msra.mxu2 %v108_v15  ;;  %v104_v30 = vsub.f32 %v102_v14, %v103_v22  ;;  %v110_v32 = vsub.f32 %v108_v15, %v109_v24  ;;  %v320_v34 = vsub.f32 %v4904_v19, %v319_v26  ;;  %v4956_v48 = vand.u32 4294901760, %v34_v37 }
   0x9   :  { %v4924_v31 = vand.u32 4294901760, %v4911_v23  ;;  %v116_v33 = vsub.f32 %v4896_v16, %v115_v25  ;;  %186 = vmatpush.msra.mxu3 %v4869_v5  ;;  %v4932_v35 = vsub.f32 %v50_v21, %v4917_v28  ;;  %v325_v36 = vand.u32 4294901760, %v4920_v29 }
   0xa   :  { %71 = vmatpush.msra.mxu0 %v4880_v9  ;;  %v105_v39 = vand.u32 4294901760, %v104_v30  ;;  %154 = vmatpush.msra.mxu2 %v4896_v16  ;;  %v111_v41 = vand.u32 4294901760, %v110_v32  ;;  %v122_v42 = vsub.f32 %v4901_v18, %v121_v27  ;;  %v321_v43 = vand.u32 4294901760, %v320_v34 }
   0xb   :  { %v75_v40 = vsub.f32 %v4911_v23, %v4924_v31  ;;  %188 = vmatpush.msra.mxu3 %v4880_v9  ;;  %v4948_v44 = vand.u32 4294901760, %v4932_v35  ;;  %v326_v45 = vsub.f32 %v4920_v29, %v325_v36  ;;  %v117_v47 = vand.u32 4294901760, %v116_v33 }
   0xc   :  { %217 = vmatpush.msrb.mxu0 %v103_v22  ;;  %106 = vmatpush.msra.mxu1 %v105_v39  ;;  %v4958_v49 = vand.u32 4294901760, %v32_v38  ;;  %v123_v51 = vand.u32 4294901760, %v122_v42  ;;  %v4966_v53 = vsub.f32 %v34_v37, %v4956_v48  ;;  %v4984_v61 = vand.u32 4294901760, %v491_v57  ;;  %v492_v22 = vld [vmem:[%s5726_s4] sm:$0xff] }
   0xd   :  { %v4953_v46 = vand.u32 4294901760, %v75_v40  ;;  %157 = vmatpush.msra.mxu2 %v4901_v18  ;;  %192 = vmatmul.f32.vlgmr.msra.gmra.mxu3 %v4924_v31  ;;  %v327_v50 = vand.u32 4294901760, %v326_v45  ;;  %v83_v52 = vsub.f32 %v4932_v35, %v4948_v44  ;;  %v4992_v1 = vand.u32 4294901760, %v490_v62  ;;  %v493_v18 = vld [vmem:[%s5726_s4 + $0x8] sm:$0xff] }
   0xe   :  { %160 = vmatmul.f32.vlgmr.msra.gmra.mxu2 %v4911_v23  ;;  %112 = vmatpush.msra.mxu1 %v111_v41  ;;  %v4969_v54 = vsub.f32 %v32_v38, %v4958_v49  ;;  %v331_v55 = vand.u32 4294901760, %v4966_v53  ;;  %v5006_v6 = vand.u32 4294901760, %v489_v2  ;;  %v5036_v13 = vand.u32 4294901760, %v495_v8 }
   0xf   :  { %77 = vmatmul.f32.vlgmr.msra.gmra.mxu0 %v4953_v46  ;;  %281 = vmatpush.msrb.mxu2 %v4883_v11  ;;  %v4978_v58 = vand.u32 4294901760, %v83_v52  ;;  %v5013_v7 = vsub.f32 %v490_v62, %v4992_v1  ;;  %v5045_v15 = vand.u32 4294901760, %v494_v12  ;;  %v5091_v32 = vand.u32 4294901760, %v492_v22 }
  0x10   :  { %322 = vmatpush.msrb.mxu3 %v321_v43  ;;  %118 = vmatpush.msra.mxu1 %v117_v47  ;;  %v337_v56 = vand.u32 4294901760, %v4969_v54  ;;  %v332_v59 = vsub.f32 %v4966_v53, %v331_v55 }
  0x11   :  { %221 = vmatpush.msrb.mxu0 %v109_v24  ;;  %283 = vmatpush.msrb.mxu2 %v4906_v20  ;;  %v5041_v14 = vand.u32 4294901760, %v5013_v7  ;;  %v5073_v24 = vsub.f32 %v494_v12, %v5045_v15  ;;  %v5116_v40 = vsub.f32 %v492_v22, %v5091_v32 }
  0x12   :  { %328 = vmatpush.msrb.mxu3 %v327_v50  ;;  %124 = vmatpush.msra.mxu1 %v123_v51  ;;  %v338_v60 = vsub.f32 %v4969_v54, %v337_v56  ;;  %v333_v63 = vand.u32 4294901760, %v332_v59 }
  0x13   :  { %225 = vmatpush.msrb.mxu0 %v115_v25  ;;  %126 = vmatmul.f32.vlgmr.msra.gmra.mxu1 %v4898_v17  ;;  %v550_v21 = vsub.f32 %v5013_v7, %v5041_v14  ;;  %v5075_v25 = vand.u32 4294901760, %v493_v18  ;;  %v5100_v34 = vand.u32 4294901760, %v5073_v24 }
  0x14   :  { %285 = vmatpush.msrb.mxu2 %v4956_v48  ;;  %252 = vmatpush.msrb.mxu1 %v4865_v3  ;;  %v339_v0 = vand.u32 4294901760, %v338_v60  ;;  %v5001_v3 = vsub.f32 %v491_v57, %v4984_v61 }
  0x15   :  { %229 = vmatpush.msrb.mxu0 %v121_v27  ;;  %198 = vmatmul.f32.gmra.mxu3 %v4948_v44  ;;  %v5095_v33 = vand.u32 4294901760, %v550_v21  ;;  %v737_v41 = vsub.f32 %v5073_v24, %v5100_v34 }
  0x16   :  { %165 = vmatmul.f32.gmra.mxu2 %v4932_v35  ;;  %254 = vmatpush.msrb.mxu1 %v4867_v4  ;;  %v488_v4 = vld [vmem:[%s5725_s3] sm:$0xff] }
  0x17   :  { %85 = vmatmul.f32.gmra.mxu0 %v4978_v58  ;;  %334 = vmatpush.msrb.mxu3 %v333_v63  ;;  %v5026_v10 = vand.u32 4294901760, %v488_v4  ;;  %v5142_v47 = vand.u32 4294901760, %v737_v41 }
  0x18   :  { %287 = vmatpush.msrb.mxu2 %v4958_v49  ;;  %256 = vmatpush.msrb.mxu1 %v4869_v5  ;;  %v5024_v5 = vand.u32 4294901760, %v5001_v3 }
  0x19   :  { %340 = vmatpush.msrb.mxu3 %v339_v0  ;;  %364 = vmatpush.msra.mxu0 %v4904_v19  ;;  %v5051_v16 = vsub.f32 %v488_v4, %v5026_v10 }
  0x1a   :  { %433 = vmatpush.msra.mxu2 %v319_v26  ;;  %258 = vmatpush.msrb.mxu1 %v4880_v9  ;;  %v5034_v9 = vsub.f32 %v489_v2, %v5006_v6 }
  0x1b   :  { %468 = vmatpush.msra.mxu3 %v4883_v11  ;;  %130 = vmatmul.f32.gmra.mxu1 %v4917_v28  ;;  %v5082_v27 = vand.u32 4294901760, %v5051_v16 }
  0x1c   :  { %437 = vmatpush.msra.mxu2 %v325_v36  ;;  %398 = vmatpush.msra.mxu1 %v4883_v11  ;;  %v544_v11 = vsub.f32 %v5001_v3, %v5024_v5  ;;  %v5059_v19 = vand.u32 4294901760, %v5034_v9  ;;  %v5103_v36 = vsub.f32 %v493_v18, %v5075_v25 }
  0x1d   :  { %367 = vmatpush.msra.mxu0 %v4920_v29  ;;  %342 = vmatmul.f32.vlgmr.msrb.gmra.mxu3 %v4898_v17  ;;  %v562_v37 = vsub.f32 %v5051_v16, %v5082_v27 }
  0x1e   :  { %293 = vmatmul.f32.vlgmr.msrb.gmra.mxu2 %v4953_v46  ;;  %470 = vmatpush.msra.mxu3 %v4906_v20  ;;  %v5079_v26 = vand.u32 4294901760, %v544_v11  ;;  %v556_v29 = vsub.f32 %v5034_v9, %v5059_v19  ;;  %v5125_v42 = vand.u32 4294901760, %v5103_v36  ;;  %v5136_v46 = vand.u32 4294901760, %v5116_v40 }
  0x1f   :  { %231 = vmatmul.f32.vlgmr.msrb.gmra.mxu0 %v4898_v17  ;;  %400 = vmatpush.msra.mxu1 %v4906_v20  ;;  %v5062_v20 = vsub.f32 %v495_v8, %v5036_v13  ;;  %v5129_v43 = vand.u32 4294901760, %v562_v37 }
  0x20   :  { %441 = vmatpush.msra.mxu2 %v331_v55  ;;  %370 = vmatpush.msra.mxu0 %v4966_v53  ;;  %v5111_v38 = vand.u32 4294901760, %v556_v29 }
  0x21   :  { %472 = vmatpush.msra.mxu3 %v4956_v48  ;;  %402 = vmatpush.msra.mxu1 %v4956_v48  ;;  %v5089_v30 = vand.u32 4294901760, %v5062_v20  ;;  %v743_v48 = vsub.f32 %v5103_v36, %v5125_v42 }
  0x22   :  { %445 = vmatpush.msra.mxu2 %v337_v56  ;;  %373 = vmatpush.msra.mxu0 %v4969_v54 }
  0x23   :  { %474 = vmatpush.msra.mxu3 %v4958_v49  ;;  %260 = vmatmul.f32.vlgmr.msrb.gmra.mxu1 %v4898_v17  ;;  %v731_v39 = vsub.f32 %v5062_v20, %v5089_v30 }
  0x24   :  { %584 = vmatpush.msrb.mxu2 %v5001_v3  ;;  %404 = vmatpush.msra.mxu1 %v4958_v49 }
  0x25   :  { %513 = vmatpush.msrb.mxu0 %v4984_v61  ;;  %346 = vmatmul.f32.gmra.mxu3 %v4917_v28  ;;  %v5133_v45 = vand.u32 4294901760, %v731_v39 }
  0x26   :  { %301 = vmatmul.f32.gmra.mxu2 %v4978_v58  ;;  %613 = vmatpush.msrb.mxu3 %v4984_v61 }
  0x27   :  { %235 = vmatmul.f32.gmra.mxu0 %v4917_v28  ;;  %546 = vmatpush.msrb.mxu1 %v5079_v26 }
  0x28   :  { %587 = vmatpush.msrb.mxu2 %v5013_v7  ;;  %515 = vmatpush.msrb.mxu0 %v4992_v1 }
  0x29   :  { %615 = vmatpush.msrb.mxu3 %v4992_v1  ;;  %552 = vmatpush.msrb.mxu1 %v5095_v33 }
  0x2a   :  { %590 = vmatpush.msrb.mxu2 %v5034_v9  ;;  %517 = vmatpush.msrb.mxu0 %v5006_v6 }
  0x2b   :  { %617 = vmatpush.msrb.mxu3 %v5006_v6  ;;  %264 = vmatmul.f32.gmra.mxu1 %v4917_v28 }
  0x2c   :  { %593 = vmatpush.msrb.mxu2 %v5051_v16  ;;  %558 = vmatpush.msrb.mxu1 %v5111_v38 }
  0x2d   :  { %519 = vmatpush.msrb.mxu0 %v5026_v10  ;;  %476 = vmatmul.f32.vlgmr.msra.gmra.mxu3 %v4898_v17 }
  0x2e   :  { %447 = vmatmul.f32.vlgmr.msra.gmra.mxu2 %v4898_v17  ;;  %619 = vmatpush.msrb.mxu3 %v5026_v10  ;;  %v749_v17 = vsub.f32 %v5116_v40, %v5136_v46 }
  0x2f   :  { %376 = vmatmul.f32.vlgmr.msra.gmra.mxu0 %v4911_v23  ;;  %564 = vmatpush.msrb.mxu1 %v5129_v43  ;;  %v5155_v23 = vand.u32 4294901760, %v743_v48 }
  0x30   :  { %700 = vmatpush.msra.mxu2 %v5036_v13  ;;  %642 = vmatpush.msra.mxu0 %v5024_v5  ;;  %v5161_v49 = vand.u32 4294901760, %v749_v17 }
  0x31   :  { %733 = vmatpush.msra.mxu3 %v5133_v45 }
  0x32   :  { %702 = vmatpush.msra.mxu2 %v5045_v15  ;;  %646 = vmatpush.msra.mxu0 %v5041_v14 }
  0x33   :  { %739 = vmatpush.msra.mxu3 %v5142_v47  ;;  %408 = vmatmul.f32.vlgmr.msra.gmra.mxu1 %v4924_v31  ;;  %v4808_v31 = vmov 0.0  }
  0x34   :  { %704 = vmatpush.msra.mxu2 %v5075_v25  ;;  %673 = vmatpush.msra.mxu1 %v4984_v61 }
  0x35   :  { %650 = vmatpush.msra.mxu0 %v5059_v19  ;;  %480 = vmatmul.f32.gmra.mxu3 %v4917_v28 }
  0x36   :  { %451 = vmatmul.f32.gmra.mxu2 %v4917_v28  ;;  %745 = vmatpush.msra.mxu3 %v5155_v23  ;;  %v39_v28 = vld [vmem:[%s5727_s2] sm:$0x3]  ;;  %s4809_s2 = smov 64  }
  0x37   :  { %381 = vmatmul.f32.gmra.mxu0 %v4932_v35  ;;  %675 = vmatpush.msra.mxu1 %v4992_v1  ;;  %v42_v29 = vperm.slane %v39_v28, 1 }
  0x38   :  { %706 = vmatpush.msra.mxu2 %v5091_v32  ;;  %654 = vmatpush.msra.mxu0 %v5082_v27 }
  0x39   :  { %751 = vmatpush.msra.mxu3 %v5161_v49  ;;  %677 = vmatpush.msra.mxu1 %v5006_v6 }
  0x3b   :  { %414 = vmatmul.f32.gmra.mxu1 %v4948_v44  ;;  %v41_v44 = vperm.slane %v39_v28, 0 }
  0x3c   :  { %679 = vmatpush.msra.mxu1 %v5026_v10 }
  0x3d   :  { %623 = vmatmul.f32.vlgmr.msrb.gmra.mxu3 %v4808_v31 }
  0x3e   :  { %596 = vmatmul.f32.vlgmr.msrb.gmra.mxu2 %v4808_v31  ;;  %860 = vmatpush.msrb.mxu3 %v5036_v13 }
  0x3f   :  { %525 = vmatmul.f32.vlgmr.msrb.gmra.mxu0 %v4808_v31  ;;  %829 = vmatpush.msrb.mxu2 %v5089_v30 }
  0x40   :  { %771 = vmatpush.msrb.mxu0 %v5062_v20  ;;  %862 = vmatpush.msrb.mxu3 %v5045_v15 }
  0x41   :  { %833 = vmatpush.msrb.mxu2 %v5100_v34 }
  0x42   :  { %774 = vmatpush.msrb.mxu0 %v5073_v24  ;;  %864 = vmatpush.msrb.mxu3 %v5075_v25 }
  0x43   :  { %837 = vmatpush.msrb.mxu2 %v5125_v42  ;;  %566 = vmatmul.f32.vlgmr.msrb.gmra.mxu1 %v4808_v31 }
  0x44   :  { %777 = vmatpush.msrb.mxu0 %v5103_v36  ;;  %800 = vmatpush.msrb.mxu1 %v5036_v13 }
  0x45   :  { %841 = vmatpush.msrb.mxu2 %v5136_v46  ;;  %753 = vmatmul.f32.vlgmr.msra.gmra.mxu3 %v4808_v31 }
  0x46   :  { %712 = vmatmul.f32.vlgmr.msra.gmra.mxu2 %v4808_v31  ;;  %802 = vmatpush.msrb.mxu1 %v5045_v15 }
  0x47   :  { %656 = vmatmul.f32.vlgmr.msra.gmra.mxu0 %v4808_v31  ;;  %1045 = vmatpush.msra.mxu2 %v5001_v3 }
  0x48   :  { %780 = vmatpush.msrb.mxu0 %v5116_v40  ;;  %804 = vmatpush.msrb.mxu1 %v5075_v25 }
  0x49   :  { %866 = vmatpush.msrb.mxu3 %v5091_v32  ;;  %1048 = vmatpush.msra.mxu2 %v5013_v7 }
  0x4a   :  { %974 = vmatpush.msra.mxu0 %v4984_v61  ;;  %806 = vmatpush.msrb.mxu1 %v5091_v32 }
  0x4b   :  { %681 = vmatmul.f32.vlgmr.msra.gmra.mxu1 %v4808_v31  ;;  %1074 = vmatpush.msra.mxu3 %v4984_v61 }
  0x4c   :  { %1007 = vmatpush.msra.mxu1 %v5079_v26  ;;  %1051 = vmatpush.msra.mxu2 %v5034_v9 }
  0x4d   :  { %868 = vmatmul.f32.vlgmr.msrb.gmra.mxu3 %v4808_v31  ;;  %976 = vmatpush.msra.mxu0 %v4992_v1 }
  0x4e   :  { %843 = vmatmul.f32.vlgmr.msrb.gmra.mxu2 %v4808_v31  ;;  %1013 = vmatpush.msra.mxu1 %v5095_v33 }
  0x4f   :  { %783 = vmatmul.f32.vlgmr.msrb.gmra.mxu0 %v4808_v31  ;;  %1076 = vmatpush.msra.mxu3 %v4992_v1 }
  0x50   :  { %1054 = vmatpush.msra.mxu2 %v5051_v16  ;;  %1019 = vmatpush.msra.mxu1 %v5111_v38 }
  0x51   :  { %1078 = vmatpush.msra.mxu3 %v5006_v6  ;;  %978 = vmatpush.msra.mxu0 %v5006_v6 }
  0x52   :  { %1163 = vmatpush.msrb.mxu2 %v5036_v13  ;;  %1025 = vmatpush.msra.mxu1 %v5129_v43 }
  0x53   :  { %810 = vmatmul.f32.vlgmr.msrb.gmra.mxu1 %v4808_v31  ;;  %1080 = vmatpush.msra.mxu3 %v5026_v10 }
  0x54   :  { %1134 = vmatpush.msrb.mxu1 %v4984_v61  ;;  %980 = vmatpush.msra.mxu0 %v5026_v10 }
  0x55   :  { %1196 = vmatpush.msrb.mxu3 %v5133_v45  ;;  %1165 = vmatpush.msrb.mxu2 %v5045_v15 }
  0x56   :  { %1136 = vmatpush.msrb.mxu1 %v4992_v1  ;;  %1103 = vmatpush.msrb.mxu0 %v5024_v5 }
  0x57   :  { %1202 = vmatpush.msrb.mxu3 %v5142_v47  ;;  %1167 = vmatpush.msrb.mxu2 %v5075_v25 }
  0x58   :  { %1138 = vmatpush.msrb.mxu1 %v5006_v6  ;;  %1107 = vmatpush.msrb.mxu0 %v5041_v14 }
  0x59   :  { %1208 = vmatpush.msrb.mxu3 %v5155_v23  ;;  %1169 = vmatpush.msrb.mxu2 %v5091_v32 }
  0x5a   :  { %1140 = vmatpush.msrb.mxu1 %v5026_v10  ;;  %1111 = vmatpush.msrb.mxu0 %v5059_v19 }
  0x5b   :  { %1214 = vmatpush.msrb.mxu3 %v5161_v49 }
  0x5c   :  { %1115 = vmatpush.msrb.mxu0 %v5082_v27 }
  0x8c   :  { %v78_v35 = vpop.f32.mrf.mxu0 }
  0x8d   :  { %v79_v52 = vadd.f32 %v78_v35, %v41_v44 }
  0x90   :  { %v127_v50 = vpop.f32.mrf.mxu1  ;;  %v193_v53 = vpop.f32.mrf.mxu3 }
  0x91   :  { %v161_v51 = vpop.f32.mrf.mxu2  ;;  %v128_v55 = vadd.f32 %v127_v50, %v79_v52 }
  0x93   :  { %v162_v59 = vadd.f32 %v161_v51, %v128_v55 }
  0x94   :  { %v86_v54 = vpop.f32.mrf.mxu0 }
  0x95   :  { %v87_v58 = vadd.f32 %v86_v54, %v41_v44  ;;  %v194_v63 = vadd.f32 %v193_v53, %v162_v59 }
  0x98   :  { %v131_v56 = vpop.f32.mrf.mxu1  ;;  %v199_v60 = vpop.f32.mrf.mxu3 }
  0x99   :  { %v166_v57 = vpop.f32.mrf.mxu2  ;;  %v132_v0 = vadd.f32 %v131_v56, %v87_v58 }
  0x9b   :  { %v167_v12 = vadd.f32 %v166_v57, %v132_v0 }
  0x9c   :  { %v232_v62 = vpop.f32.mrf.mxu0 }
  0x9d   :  { %v233_v2 = vadd.f32 %v232_v62, %v194_v63  ;;  %v200_v22 = vadd.f32 %v199_v60, %v167_v12 }
  0xa0   :  { %v261_v4 = vpop.f32.mrf.mxu1  ;;  %v343_v18 = vpop.f32.mrf.mxu3 }
  0xa1   :  { %v294_v8 = vpop.f32.mrf.mxu2  ;;  %v262_v11 = vadd.f32 %v261_v4, %v233_v2 }
  0xa2   :  { %v295_v48 = vadd.f32 %v294_v8, %v42_v29 }
  0xa3   :  { %484 = vst [vmem:[#allocation2] sm:$0xff] %v262_v11 }
  0xa4   :  { %v236_v21 = vpop.f32.mrf.mxu0  ;;  %v344_v44 = vadd.f32 %v343_v18, %v295_v48 }
  0xa5   :  { %v237_v37 = vadd.f32 %v236_v21, %v200_v22 }
  0xa8   :  { %v265_v39 = vpop.f32.mrf.mxu1  ;;  %v347_v31 = vpop.f32.mrf.mxu3 }
  0xa9   :  { %v302_v41 = vpop.f32.mrf.mxu2  ;;  %v266_v17 = vadd.f32 %v265_v39, %v237_v37 }
  0xaa   :  { %v303_v53 = vadd.f32 %v302_v41, %v42_v29 }
  0xab   :  { %485 = vst [vmem:[#allocation2 + $0x8] sm:$0xff] %v266_v17 }
  0xac   :  { %v377_v35 = vpop.f32.mrf.mxu0  ;;  %v348_v58 = vadd.f32 %v347_v31, %v303_v53 }
  0xad   :  { %v378_v50 = vadd.f32 %v377_v35, %v344_v44  ;;  %v496_v35 = vld [vmem:[#allocation2] sm:$0x3] }
  0xb0   :  { %v409_v51 = vpop.f32.mrf.mxu1  ;;  %v477_v55 = vpop.f32.mrf.mxu3 }
  0xb1   :  { %v448_v52 = vpop.f32.mrf.mxu2  ;;  %v410_v54 = vadd.f32 %v409_v51, %v378_v50 }
  0xb3   :  { %v449_v57 = vadd.f32 %v448_v52, %v410_v54 }
  0xb4   :  { %v382_v56 = vpop.f32.mrf.mxu0 }
  0xb5   :  { %v478_v59 = vadd.f32 %v477_v55, %v449_v57  ;;  %v383_v28 = vadd.f32 %v382_v56, %v348_v58 }
  0xb7   :  { %486 = vst [vmem:[#allocation3] sm:$0xff] %v478_v59 }
  0xb8   :  { %v415_v60 = vpop.f32.mrf.mxu1  ;;  %v481_v0 = vpop.f32.mrf.mxu3 }
  0xb9   :  { %v452_v62 = vpop.f32.mrf.mxu2  ;;  %v416_v63 = vadd.f32 %v415_v60, %v383_v28 }
  0xbb   :  { %v453_v2 = vadd.f32 %v452_v62, %v416_v63 }
  0xbc   :  { %v526_v4 = vpop.f32.mrf.mxu0 }
  0xbd   :  { %v482_v8 = vadd.f32 %v481_v0, %v453_v2 }
  0xbf   :  { %487 = vst [vmem:[#allocation3 + $0x8] sm:$0xff] %v482_v8 }
  0xc0   :  { %v567_v12 = vpop.f32.mrf.mxu1  ;;  %v624_v21 = vpop.f32.mrf.mxu3 }
  0xc1   :  { %v597_v11 = vpop.f32.mrf.mxu2  ;;  %v568_v18 = vadd.f32 %v567_v12, %v526_v4 }
  0xc3   :  { %v598_v22 = vadd.f32 %v597_v11, %v568_v18 }
  0xc4   :  { %v657_v29 = vpop.f32.mrf.mxu0 }
  0xc5   :  { %v625_v37 = vadd.f32 %v624_v21, %v598_v22 }
  0xc6   :  { %v686_v28 = vld [vmem:[#allocation3 + $0xe] sm:$0x3] }
  0xc7   :  { %v658_v39 = vadd.f32 %v657_v29, %v625_v37 }
  0xc8   :  { %v682_v41 = vpop.f32.mrf.mxu1  ;;  %v754_v31 = vpop.f32.mrf.mxu3 }
  0xc9   :  { %v713_v48 = vpop.f32.mrf.mxu2  ;;  %v683_v17 = vadd.f32 %v682_v41, %v658_v39 }
  0xca   :  { %v755_v50 = vadd.f32 %v754_v31, %v713_v48 }
  0xcb   :  { %v685_v44 = vadd.f32 %v683_v17, %v496_v35 }
  0xcc   :  { %v784_v51 = vpop.f32.mrf.mxu0 }
  0xcd   :  { %4680 = vtanh.f32 %v685_v44  ;;  %v785_v52 = vadd.f32 %v784_v51, %v755_v50  ;;  %v4660_v63 = vmul.f32 -1.442695, %v685_v44 }
  0xd0   :  { %v811_v53 = vpop.f32.mrf.mxu1  ;;  %v869_v56 = vpop.f32.mrf.mxu3 }
  0xd1   :  { %v844_v54 = vpop.f32.mrf.mxu2  ;;  %v812_v55 = vadd.f32 %v811_v53, %v785_v52 }
  0xd3   :  { %v4681_v57 = vpop.eup %4680  ;;  %v845_v58 = vadd.f32 %v844_v54, %v812_v55 }
  0xd4   :  { %895 = vrot.lane.b32.xlu0 %v4681_v57, %s4809_s2 }
  0xd5   :  { %v870_v59 = vadd.f32 %v869_v56, %v845_v58 }
  0xd7   :  { %v872_v60 = vadd.f32 %v870_v59, %v686_v28 }
  0xd9   :  { %4682 = vtanh.f32 %v872_v60  ;;  %v4661_v2 = vmul.f32 -1.442695, %v872_v60 }
  0xda   :  { %4684 = vpow2.f32 %v4660_v63 }
  0xdb   :  { %4686 = vpow2.f32 %v4661_v2 }
  0xdf   :  { %v4683_v62 = vpop.eup %4682 }
  0xe0   :  { %932 = vrot.lane.b32.xlu0 %v4683_v62, %s4809_s2  ;;  %v4685_v0 = vpop.eup %4684 }
  0xe1   :  { %v876_v4 = vadd.f32 1.0, %v4685_v0  ;;  %v4687_v8 = vpop.eup %4686 }
  0xe2   :  { %v913_v11 = vadd.f32 1.0, %v4687_v8 }
  0xe3   :  { %4688 = vrcp.f32 %v876_v4  ;;  %v888_v41 = vand.u32 2147483648, %v876_v4  ;;  %vm882_vm2 = vweird.f32 %v876_v4  ;;  %v886_v48 = vand.u32 2147483647, %v876_v4 }
  0xe4   :  { %4690 = vrcp.f32 %v913_v11  ;;  %v925_v54 = vand.u32 2147483648, %v913_v11  ;;  %vm919_vm6 = vweird.f32 %v913_v11  ;;  %v923_v55 = vand.u32 2147483647, %v913_v11 }
  0xe5   :  { %v889_v35 = vor.u32 1.1754944e-38, %v888_v41  ;;  %vm887_vm4 = vcmp.eq.f32.partialorder %v886_v48, 8.507059e+37 }
  0xe6   :  { %v926_v57 = vor.u32 1.1754944e-38, %v925_v54  ;;  %vm924_vm8 = vcmp.eq.f32.partialorder %v923_v55, 8.507059e+37 }
  0xe9   :  { %v4689_v12 = vpop.eup %4688 }
  0xea   :  { %v878_v18 = vmul.f32 %v4689_v12, %v876_v4  ;;  %v4691_v29 = vpop.eup %4690  ;;  %vm883_vm1 = vweird.f32 %v4689_v12 }
  0xeb   :  { %v915_v39 = vmul.f32 %v4691_v29, %v913_v11  ;;  %vm884_vm3 = vmor %vm882_vm2, %vm883_vm1  ;;  %vm920_vm5 = vweird.f32 %v4691_v29 }
  0xec   :  { %v879_v21 = vsub.f32 1.0, %v878_v18  ;;  %vm921_vm7 = vmor %vm919_vm6, %vm920_vm5 }
  0xed   :  { %v916_v31 = vsub.f32 1.0, %v915_v39 }
  0xee   :  { %v880_v22 = vmul.f32 %v4689_v12, %v879_v21 }
  0xef   :  { %v917_v52 = vmul.f32 %v4691_v29, %v916_v31 }
  0xf0   :  { %v881_v37 = vadd.f32 %v4689_v12, %v880_v22 }
  0xf1   :  { %v918_v53 = vadd.f32 %v4691_v29, %v917_v52 }
  0xf2   :  { %v885_v17 = vsel %vm884_vm3, %v4689_v12, %v881_v37 }
  0xf3   :  { %v890_v50 = vsel %vm887_vm4, %v889_v35, %v885_v17  ;;  %v922_v56 = vsel %vm921_vm7, %v4691_v29, %v918_v53 }
  0xf4   :  { %v927_v58 = vsel %vm924_vm8, %v926_v57, %v922_v56  ;;  %v893_v60 = vmul.f32 0.0, %v890_v50 }
  0xf5   :  { %v930_v2 = vmul.f32 0.0, %v927_v58 }
 0x146   :  { %v896_v44 = vpop.permute.xlu0 %895 }
 0x147   :  { %v898_v51 = vmul.f32 %v896_v44, %v890_v50 }
 0x149   :  { %900 = vrot.lane.b32.xlu1 %v898_v51, %s4810_s17 }
 0x152   :  { %v933_v59 = vpop.permute.xlu0 %932 }
 0x153   :  { %v935_v28 = vmul.f32 %v933_v59, %v927_v58 }
 0x155   :  { %937 = vrot.lane.b32.xlu1 %v935_v28, %s4810_s17 }
 0x1bb   :  { %v901_v62 = vpop.permute.xlu1 %900 }
 0x1bc   :  { %v5229_v63 = vadd.f32 %v901_v62, %v893_v60 }
 0x1be   :  { %4692 = vtanh.f32 %v5229_v63 }
 0x1c4   :  { %v4693_v0 = vpop.eup %4692 }
 0x1c5   :  { %906 = vrot.lane.b32.xlu2 %v4693_v0, %s4809_s2 }
 0x1c7   :  { %v938_v4 = vpop.permute.xlu1 %937 }
 0x1c8   :  { %v5233_v8 = vadd.f32 %v938_v4, %v930_v2 }
 0x1ca   :  { %4694 = vtanh.f32 %v5233_v8 }
 0x1d0   :  { %v4695_v12 = vpop.eup %4694 }
 0x1d1   :  { %943 = vrot.lane.b32.xlu2 %v4695_v12, %s4809_s2  ;;  %v958_v12 = vld [vmem:[#allocation2 + $0x2] sm:$0x3] }
 0x21f   :  { %v907_v11 = vpop.permute.xlu2 %906 }
 0x220   :  { %v909_v18 = vmul.f32 %v907_v11, %v890_v50 }
 0x222   :  { %948 = vrot.lane.b32.xlu0 %v909_v18, %s4810_s17 }
 0x22b   :  { %v944_v21 = vpop.permute.xlu2 %943 }
 0x22c   :  { %v946_v22 = vmul.f32 %v944_v21, %v927_v58 }
 0x22e   :  { %954 = vrot.lane.b32.xlu1 %v946_v22, %s4810_s17 }
 0x294   :  { %v949_v29 = vpop.permute.xlu0 %948 }
 0x295   :  { %952 = vst.msk [vmem:[#allocation4] sm:$0x3] %vm951_vm9, %v949_v29  ;;  %v959_v37 = vsel %vm45_vm0, %v949_v29, 0 }
 0x296   :  { %v981_v39 = vand.u32 4294901760, %v959_v37 }
 0x298   :  { %v982_v41 = vsub.f32 %v959_v37, %v981_v39  ;;  %1027 = vmatmul.f32.vlgmr.msra.gmra.mxu1 %v981_v39 }
 0x299   :  { %1263 = vmatpush.msra.mxu1 %v5036_v13 }
 0x29a   :  { %v983_v48 = vand.u32 4294901760, %v982_v41  ;;  %1057 = vmatmul.f32.vlgmr.msra.gmra.mxu2 %v982_v41 }
 0x29b   :  { %1265 = vmatpush.msra.mxu1 %v5045_v15  ;;  %1292 = vmatpush.msra.mxu2 %v5089_v30 }
 0x29c   :  { %v984_v17 = vsub.f32 %v982_v41, %v983_v48  ;;  %1084 = vmatmul.f32.vlgmr.msra.gmra.mxu3 %v983_v48 }
 0x29d   :  { %1267 = vmatpush.msra.mxu1 %v5075_v25  ;;  %1323 = vmatpush.msra.mxu3 %v5036_v13 }
 0x29e   :  { %v985_v31 = vand.u32 4294901760, %v984_v17  ;;  %1296 = vmatpush.msra.mxu2 %v5100_v34 }
 0x29f   :  { %1269 = vmatpush.msra.mxu1 %v5091_v32  ;;  %1325 = vmatpush.msra.mxu3 %v5045_v15 }
 0x2a0   :  { %986 = vmatmul.f32.vlgmr.msra.gmra.mxu0 %v985_v31  ;;  %1142 = vmatmul.f32.vlgmr.msrb.gmra.mxu1 %v981_v39  ;;  %v955_v35 = vpop.permute.xlu1 %954 }
 0x2a1   :  { %957 = vst.msk [vmem:[#allocation5 + $0xe] sm:$0x3] %vm951_vm9, %v955_v35  ;;  %v1148_v44 = vsel %vm45_vm0, %v955_v35, 0  ;;  %1234 = vmatpush.msra.mxu0 %v5062_v20  ;;  %1327 = vmatpush.msra.mxu3 %v5075_v25 }
 0x2a2   :  { %v1170_v50 = vand.u32 4294901760, %v1148_v44  ;;  %1300 = vmatpush.msra.mxu2 %v5125_v42  ;;  %1469 = vmatpush.msrb.mxu1 %v5079_v26 }
 0x2a3   :  { %1237 = vmatpush.msra.mxu0 %v5073_v24  ;;  %1329 = vmatpush.msra.mxu3 %v5091_v32 }
 0x2a4   :  { %v1171_v51 = vsub.f32 %v1148_v44, %v1170_v50  ;;  %1216 = vmatmul.f32.vlgmr.msrb.gmra.mxu3 %v1170_v50  ;;  %1304 = vmatpush.msra.mxu2 %v5136_v46 }
 0x2a5   :  { %1240 = vmatpush.msra.mxu0 %v5103_v36  ;;  %1475 = vmatpush.msrb.mxu1 %v5095_v33 }
 0x2a6   :  { %v1172_v52 = vand.u32 4294901760, %v1171_v51  ;;  %1536 = vmatpush.msrb.mxu3 %v4984_v61 }
 0x2a7   :  { %1243 = vmatpush.msra.mxu0 %v5116_v40  ;;  %1481 = vmatpush.msrb.mxu1 %v5111_v38 }
 0x2a8   :  { %v1173_v53 = vsub.f32 %v1171_v51, %v1172_v52  ;;  %1117 = vmatmul.f32.vlgmr.msrb.gmra.mxu0 %v981_v39  ;;  %1273 = vmatmul.f32.vlgmr.msra.gmra.mxu1 %v1172_v52 }
 0x2a9   :  { %1487 = vmatpush.msrb.mxu1 %v5129_v43  ;;  %1538 = vmatpush.msrb.mxu3 %v4992_v1 }
 0x2aa   :  { %v1174_v54 = vand.u32 4294901760, %v1173_v53  ;;  %1436 = vmatpush.msrb.mxu0 %v4984_v61 }
 0x2ab   :  { %1596 = vmatpush.msra.mxu1 %v4984_v61  ;;  %1540 = vmatpush.msrb.mxu3 %v5006_v6 }
 0x2ac   :  { %1175 = vmatmul.f32.vlgmr.msrb.gmra.mxu2 %v1174_v54  ;;  %1331 = vmatmul.f32.vlgmr.msra.gmra.mxu3 %v1170_v50 }
 0x2ad   :  { %1507 = vmatpush.msrb.mxu2 %v5001_v3  ;;  %1438 = vmatpush.msrb.mxu0 %v4992_v1 }
 0x2ae   :  { %1542 = vmatpush.msrb.mxu3 %v5026_v10  ;;  %1598 = vmatpush.msra.mxu1 %v4992_v1 }
 0x2af   :  { %1510 = vmatpush.msrb.mxu2 %v5013_v7  ;;  %1440 = vmatpush.msrb.mxu0 %v5006_v6 }
 0x2b0   :  { %1246 = vmatmul.f32.vlgmr.msra.gmra.mxu0 %v1171_v51  ;;  %1600 = vmatpush.msra.mxu1 %v5006_v6 }
 0x2b1   :  { %1513 = vmatpush.msrb.mxu2 %v5034_v9  ;;  %1442 = vmatpush.msrb.mxu0 %v5026_v10 }
 0x2b2   :  { %1602 = vmatpush.msra.mxu1 %v5026_v10  ;;  %1658 = vmatpush.msra.mxu3 %v5133_v45 }
 0x2b3   :  { %1565 = vmatpush.msra.mxu0 %v5024_v5  ;;  %1516 = vmatpush.msrb.mxu2 %v5051_v16 }
 0x2b4   :  { %1306 = vmatmul.f32.vlgmr.msra.gmra.mxu2 %v1170_v50  ;;  %1664 = vmatpush.msra.mxu3 %v5142_v47  ;;  %v1147_v50 = vld [vmem:[#allocation3 + $0xc] sm:$0x3] }
 0x2b5   :  { %1569 = vmatpush.msra.mxu0 %v5041_v14  ;;  %1625 = vmatpush.msra.mxu2 %v5036_v13 }
 0x2b6   :  { %1670 = vmatpush.msra.mxu3 %v5155_v23 }
 0x2b7   :  { %1573 = vmatpush.msra.mxu0 %v5059_v19  ;;  %1627 = vmatpush.msra.mxu2 %v5045_v15 }
 0x2b8   :  { %1676 = vmatpush.msra.mxu3 %v5161_v49 }
 0x2b9   :  { %1577 = vmatpush.msra.mxu0 %v5082_v27  ;;  %1629 = vmatpush.msra.mxu2 %v5075_v25 }
 0x2bb   :  { %1631 = vmatpush.msra.mxu2 %v5091_v32 }
 0x315   :  { %v1028_v55 = vpop.f32.mrf.mxu1 }
 0x31d   :  { %v987_v56 = vpop.f32.mrf.mxu0  ;;  %v1058_v58 = vpop.f32.mrf.mxu2 }
 0x31e   :  { %v1029_v57 = vadd.f32 %v1028_v55, %v987_v56  ;;  %v1143_v2 = vpop.f32.mrf.mxu1 }
 0x31f   :  { %v1085_v28 = vpop.f32.mrf.mxu3 }
 0x320   :  { %v1059_v59 = vadd.f32 %v1058_v58, %v1029_v57 }
 0x322   :  { %v1086_v60 = vadd.f32 %v1085_v28, %v1059_v59 }
 0x325   :  { %v1118_v62 = vpop.f32.mrf.mxu0 }
 0x326   :  { %v1119_v0 = vadd.f32 %v1118_v62, %v1086_v60  ;;  %v1274_v41 = vpop.f32.mrf.mxu1 }
 0x327   :  { %v1217_v18 = vpop.f32.mrf.mxu3 }
 0x328   :  { %v1144_v4 = vadd.f32 %v1143_v2, %v1119_v0 }
 0x32a   :  { %v1146_v11 = vadd.f32 %v1144_v4, %v958_v12 }
 0x32c   :  { %4696 = vtanh.f32 %v1146_v11  ;;  %v4662_v53 = vmul.f32 -1.442695, %v1146_v11 }
 0x32d   :  { %v1247_v29 = vpop.f32.mrf.mxu0 }
 0x32f   :  { %v1176_v21 = vpop.f32.mrf.mxu2  ;;  %v1332_v35 = vpop.f32.mrf.mxu3 }
 0x330   :  { %v1218_v22 = vadd.f32 %v1217_v18, %v1176_v21 }
 0x332   :  { %v4697_v37 = vpop.eup %4696  ;;  %v1248_v39 = vadd.f32 %v1247_v29, %v1218_v22 }
 0x333   :  { %1358 = vrot.lane.b32.xlu2 %v4697_v37, %s4809_s2 }
 0x334   :  { %v1275_v48 = vadd.f32 %v1274_v41, %v1248_v39 }
 0x337   :  { %v1307_v17 = vpop.f32.mrf.mxu2 }
 0x338   :  { %v1308_v31 = vadd.f32 %v1307_v17, %v1275_v48 }
 0x33a   :  { %v1333_v44 = vadd.f32 %v1332_v35, %v1308_v31 }
 0x33c   :  { %v1335_v51 = vadd.f32 %v1333_v44, %v1147_v50 }
 0x33e   :  { %4698 = vtanh.f32 %v1335_v51  ;;  %v4663_v0 = vmul.f32 -1.442695, %v1335_v51 }
 0x33f   :  { %4700 = vpow2.f32 %v4662_v53 }
 0x344   :  { %v4699_v52 = vpop.eup %4698 }
 0x345   :  { %1395 = vrot.lane.b32.xlu0 %v4699_v52, %s4809_s2  ;;  %v4701_v54 = vpop.eup %4700 }
 0x346   :  { %v1339_v55 = vadd.f32 1.0, %v4701_v54 }
 0x348   :  { %4702 = vrcp.f32 %v1339_v55  ;;  %v1351_v60 = vand.u32 2147483648, %v1339_v55  ;;  %vm1345_vm11 = vweird.f32 %v1339_v55  ;;  %v1349_v62 = vand.u32 2147483647, %v1339_v55 }
 0x349   :  { %4704 = vpow2.f32 %v4663_v0 }
 0x34a   :  { %v1352_v4 = vor.u32 1.1754944e-38, %v1351_v60  ;;  %vm1350_vm13 = vcmp.eq.f32.partialorder %v1349_v62, 8.507059e+37 }
 0x34e   :  { %v4703_v56 = vpop.eup %4702 }
 0x34f   :  { %v1341_v57 = vmul.f32 %v4703_v56, %v1339_v55  ;;  %vm1346_vm10 = vweird.f32 %v4703_v56  ;;  %v4705_v21 = vpop.eup %4704 }
 0x350   :  { %vm1347_vm12 = vmor %vm1345_vm11, %vm1346_vm10  ;;  %v1376_v22 = vadd.f32 1.0, %v4705_v21 }
 0x351   :  { %v1342_v58 = vsub.f32 1.0, %v1341_v57 }
 0x352   :  { %4706 = vrcp.f32 %v1376_v22  ;;  %v1388_v17 = vand.u32 2147483648, %v1376_v22  ;;  %vm1382_vm15 = vweird.f32 %v1376_v22  ;;  %v1386_v31 = vand.u32 2147483647, %v1376_v22 }
 0x353   :  { %v1343_v59 = vmul.f32 %v4703_v56, %v1342_v58 }
 0x354   :  { %v1389_v44 = vor.u32 1.1754944e-38, %v1388_v17  ;;  %vm1387_vm2 = vcmp.eq.f32.partialorder %v1386_v31, 8.507059e+37 }
 0x355   :  { %v1344_v28 = vadd.f32 %v4703_v56, %v1343_v59 }
 0x357   :  { %v1348_v2 = vsel %vm1347_vm12, %v4703_v56, %v1344_v28 }
 0x358   :  { %v1353_v12 = vsel %vm1350_vm13, %v1352_v4, %v1348_v2  ;;  %v4707_v29 = vpop.eup %4706 }
 0x359   :  { %v1378_v37 = vmul.f32 %v4707_v29, %v1376_v22  ;;  %vm1383_vm14 = vweird.f32 %v4707_v29  ;;  %v1356_v53 = vmul.f32 %v1353_v12, %v5229_v63 }
 0x35a   :  { %vm1384_vm1 = vmor %vm1382_vm15, %vm1383_vm14 }
 0x35b   :  { %v1379_v39 = vsub.f32 1.0, %v1378_v37 }
 0x35d   :  { %v1380_v41 = vmul.f32 %v4707_v29, %v1379_v39 }
 0x35f   :  { %v1381_v48 = vadd.f32 %v4707_v29, %v1380_v41 }
 0x361   :  { %v1385_v35 = vsel %vm1384_vm1, %v4707_v29, %v1381_v48 }
 0x362   :  { %v1390_v51 = vsel %vm1387_vm2, %v1389_v44, %v1385_v35 }
 0x363   :  { %v1393_v57 = vmul.f32 %v1390_v51, %v5233_v8 }
 0x38d   :  { %v1359_v11 = vpop.permute.xlu2 %1358 }
 0x38e   :  { %v1361_v18 = vmul.f32 %v1359_v11, %v1353_v12 }
 0x390   :  { %1363 = vrot.lane.b32.xlu1 %v1361_v18, %s4810_s17 }
 0x3b7   :  { %v1396_v50 = vpop.permute.xlu0 %1395 }
 0x3b8   :  { %v1398_v52 = vmul.f32 %v1396_v50, %v1390_v51 }
 0x3ba   :  { %1400 = vrot.lane.b32.xlu2 %v1398_v52, %s4810_s17 }
 0x402   :  { %v1364_v54 = vpop.permute.xlu1 %1363 }
 0x403   :  { %v5296_v55 = vadd.f32 %v1364_v54, %v1356_v53 }
 0x405   :  { %4708 = vtanh.f32 %v5296_v55 }
 0x40b   :  { %v4709_v56 = vpop.eup %4708 }
 0x40c   :  { %1369 = vrot.lane.b32.xlu0 %v4709_v56, %s4809_s2 }
 0x414   :  { %v1401_v58 = vpop.permute.xlu2 %1400 }
 0x415   :  { %v5301_v59 = vadd.f32 %v1401_v58, %v1393_v57 }
 0x417   :  { %4710 = vtanh.f32 %v5301_v59 }
 0x41d   :  { %v4711_v28 = vpop.eup %4710 }
 0x41e   :  { %1406 = vrot.lane.b32.xlu1 %v4711_v28, %s4809_s2  ;;  %v1420_v28 = vld [vmem:[#allocation2 + $0x4] sm:$0x3] }
 0x47e   :  { %v1370_v60 = vpop.permute.xlu0 %1369 }
 0x47f   :  { %v1372_v63 = vmul.f32 %v1370_v60, %v1353_v12 }
 0x481   :  { %1411 = vrot.lane.b32.xlu2 %v1372_v63, %s4810_s17 }
 0x490   :  { %v1407_v62 = vpop.permute.xlu1 %1406 }
 0x491   :  { %v1409_v0 = vmul.f32 %v1407_v62, %v1390_v51 }
 0x493   :  { %1416 = vrot.lane.b32.xlu0 %v1409_v0, %s4810_s17 }
 0x4db   :  { %v1412_v2 = vpop.permute.xlu2 %1411 }
 0x4dc   :  { %1414 = vst.msk [vmem:[#allocation4 + $0x2] sm:$0x3] %vm951_vm9, %v1412_v2  ;;  %v1421_v8 = vsel %vm45_vm0, %v1412_v2, 0 }
 0x4dd   :  { %v1443_v4 = vand.u32 4294901760, %v1421_v8 }
 0x4df   :  { %v1444_v11 = vsub.f32 %v1421_v8, %v1443_v4  ;;  %1489 = vmatmul.f32.vlgmr.msrb.gmra.mxu1 %v1443_v4 }
 0x4e0   :  { %1725 = vmatpush.msrb.mxu1 %v5036_v13 }
 0x4e1   :  { %v1445_v18 = vand.u32 4294901760, %v1444_v11  ;;  %1519 = vmatmul.f32.vlgmr.msrb.gmra.mxu2 %v1444_v11 }
 0x4e2   :  { %1727 = vmatpush.msrb.mxu1 %v5045_v15  ;;  %1754 = vmatpush.msrb.mxu2 %v5089_v30 }
 0x4e3   :  { %v1446_v12 = vsub.f32 %v1444_v11, %v1445_v18  ;;  %1546 = vmatmul.f32.vlgmr.msrb.gmra.mxu3 %v1445_v18 }
 0x4e4   :  { %1729 = vmatpush.msrb.mxu1 %v5075_v25  ;;  %1785 = vmatpush.msrb.mxu3 %v5036_v13 }
 0x4e5   :  { %v1447_v21 = vand.u32 4294901760, %v1446_v12  ;;  %1758 = vmatpush.msrb.mxu2 %v5100_v34 }
 0x4e6   :  { %1731 = vmatpush.msrb.mxu1 %v5091_v32  ;;  %1787 = vmatpush.msrb.mxu3 %v5045_v15 }
 0x4e7   :  { %1448 = vmatmul.f32.vlgmr.msrb.gmra.mxu0 %v1447_v21  ;;  %1604 = vmatmul.f32.vlgmr.msra.gmra.mxu1 %v1443_v4 }
 0x4e8   :  { %1696 = vmatpush.msrb.mxu0 %v5062_v20  ;;  %1789 = vmatpush.msrb.mxu3 %v5075_v25 }
 0x4e9   :  { %1762 = vmatpush.msrb.mxu2 %v5125_v42  ;;  %1931 = vmatpush.msra.mxu1 %v5079_v26 }
 0x4ea   :  { %1699 = vmatpush.msrb.mxu0 %v5073_v24  ;;  %1791 = vmatpush.msrb.mxu3 %v5091_v32 }
 0x4eb   :  { %1766 = vmatpush.msrb.mxu2 %v5136_v46  ;;  %1937 = vmatpush.msra.mxu1 %v5095_v33 }
 0x4ec   :  { %1702 = vmatpush.msrb.mxu0 %v5103_v36 }
 0x4ed   :  { %1943 = vmatpush.msra.mxu1 %v5111_v38 }
 0x4ee   :  { %1705 = vmatpush.msrb.mxu0 %v5116_v40 }
 0x4ef   :  { %1579 = vmatmul.f32.vlgmr.msra.gmra.mxu0 %v1443_v4  ;;  %1949 = vmatpush.msra.mxu1 %v5129_v43 }
 0x4f0   :  { %1898 = vmatpush.msra.mxu0 %v4984_v61 }
 0x4f2   :  { %1900 = vmatpush.msra.mxu0 %v4992_v1 }
 0x4f4   :  { %1902 = vmatpush.msra.mxu0 %v5006_v6 }
 0x4f6   :  { %1904 = vmatpush.msra.mxu0 %v5026_v10 }
 0x505   :  { %v1417_v22 = vpop.permute.xlu0 %1416 }
 0x506   :  { %1419 = vst.msk [vmem:[#allocation5 + $0xc] sm:$0x3] %vm951_vm9, %v1417_v22  ;;  %v1610_v29 = vsel %vm45_vm0, %v1417_v22, 0 }
 0x507   :  { %v1632_v37 = vand.u32 4294901760, %v1610_v29 }
 0x509   :  { %v1633_v39 = vsub.f32 %v1610_v29, %v1632_v37  ;;  %1678 = vmatmul.f32.vlgmr.msra.gmra.mxu3 %v1632_v37 }
 0x50a   :  { %1998 = vmatpush.msra.mxu3 %v4984_v61 }
 0x50b   :  { %v1634_v41 = vand.u32 4294901760, %v1633_v39  ;;  %1708 = vmatmul.f32.vlgmr.msrb.gmra.mxu0 %v1633_v39 }
 0x50c   :  { %2000 = vmatpush.msra.mxu3 %v4992_v1  ;;  %2027 = vmatpush.msrb.mxu0 %v5024_v5 }
 0x50d   :  { %v1635_v48 = vsub.f32 %v1633_v39, %v1634_v41  ;;  %1735 = vmatmul.f32.vlgmr.msrb.gmra.mxu1 %v1634_v41 }
 0x50e   :  { %2002 = vmatpush.msra.mxu3 %v5006_v6  ;;  %2058 = vmatpush.msrb.mxu1 %v4984_v61 }
 0x50f   :  { %v1636_v17 = vand.u32 4294901760, %v1635_v48  ;;  %2031 = vmatpush.msrb.mxu0 %v5041_v14 }
 0x510   :  { %2004 = vmatpush.msra.mxu3 %v5026_v10  ;;  %2060 = vmatpush.msrb.mxu1 %v4992_v1 }
 0x511   :  { %1637 = vmatmul.f32.vlgmr.msra.gmra.mxu2 %v1636_v17  ;;  %1793 = vmatmul.f32.vlgmr.msrb.gmra.mxu3 %v1632_v37 }
 0x512   :  { %1969 = vmatpush.msra.mxu2 %v5001_v3  ;;  %2062 = vmatpush.msrb.mxu1 %v5006_v6 }
 0x513   :  { %2035 = vmatpush.msrb.mxu0 %v5059_v19  ;;  %2120 = vmatpush.msrb.mxu3 %v5133_v45 }
 0x514   :  { %1972 = vmatpush.msra.mxu2 %v5013_v7  ;;  %2064 = vmatpush.msrb.mxu1 %v5026_v10 }
 0x515   :  { %2039 = vmatpush.msrb.mxu0 %v5082_v27  ;;  %2126 = vmatpush.msrb.mxu3 %v5142_v47 }
 0x516   :  { %1975 = vmatpush.msra.mxu2 %v5034_v9 }
 0x517   :  { %2132 = vmatpush.msrb.mxu3 %v5155_v23 }
 0x518   :  { %1978 = vmatpush.msra.mxu2 %v5051_v16 }
 0x519   :  { %1768 = vmatmul.f32.vlgmr.msrb.gmra.mxu2 %v1632_v37  ;;  %2138 = vmatpush.msrb.mxu3 %v5161_v49  ;;  %v1609_v37 = vld [vmem:[#allocation3 + $0xa] sm:$0x3] }
 0x51a   :  { %2087 = vmatpush.msrb.mxu2 %v5036_v13 }
 0x51c   :  { %2089 = vmatpush.msrb.mxu2 %v5045_v15 }
 0x51e   :  { %2091 = vmatpush.msrb.mxu2 %v5075_v25 }
 0x520   :  { %2093 = vmatpush.msrb.mxu2 %v5091_v32 }
 0x55c   :  { %v1490_v31 = vpop.f32.mrf.mxu1 }
 0x564   :  { %v1449_v35 = vpop.f32.mrf.mxu0  ;;  %v1520_v50 = vpop.f32.mrf.mxu2 }
 0x565   :  { %v1491_v44 = vadd.f32 %v1490_v31, %v1449_v35  ;;  %v1605_v57 = vpop.f32.mrf.mxu1 }
 0x566   :  { %v1547_v52 = vpop.f32.mrf.mxu3 }
 0x567   :  { %v1521_v51 = vadd.f32 %v1520_v50, %v1491_v44 }
 0x569   :  { %v1548_v53 = vadd.f32 %v1547_v52, %v1521_v51 }
 0x56c   :  { %v1580_v54 = vpop.f32.mrf.mxu0 }
 0x56d   :  { %v1581_v56 = vadd.f32 %v1580_v54, %v1548_v53 }
 0x56f   :  { %v1606_v58 = vadd.f32 %v1605_v57, %v1581_v56 }
 0x571   :  { %v1608_v60 = vadd.f32 %v1606_v58, %v1420_v28 }
 0x573   :  { %4712 = vtanh.f32 %v1608_v60  ;;  %v4664_v48 = vmul.f32 -1.442695, %v1608_v60 }
 0x579   :  { %v4713_v63 = vpop.eup %4712 }
 0x57a   :  { %1820 = vrot.lane.b32.xlu1 %v4713_v63, %s4809_s2 }
 0x588   :  { %v1709_v8 = vpop.f32.mrf.mxu0 }
 0x58a   :  { %v1736_v11 = vpop.f32.mrf.mxu1 }
 0x58c   :  { %v1679_v62 = vpop.f32.mrf.mxu3 }
 0x594   :  { %v1638_v0 = vpop.f32.mrf.mxu2  ;;  %v1794_v22 = vpop.f32.mrf.mxu3 }
 0x595   :  { %v1680_v2 = vadd.f32 %v1679_v62, %v1638_v0 }
 0x597   :  { %v1710_v4 = vadd.f32 %v1709_v8, %v1680_v2 }
 0x599   :  { %v1737_v18 = vadd.f32 %v1736_v11, %v1710_v4 }
 0x59c   :  { %v1769_v12 = vpop.f32.mrf.mxu2 }
 0x59d   :  { %v1770_v21 = vadd.f32 %v1769_v12, %v1737_v18 }
 0x59f   :  { %v1795_v29 = vadd.f32 %v1794_v22, %v1770_v21 }
 0x5a1   :  { %v1797_v39 = vadd.f32 %v1795_v29, %v1609_v37 }
 0x5a3   :  { %4714 = vtanh.f32 %v1797_v39  ;;  %v4665_v44 = vmul.f32 -1.442695, %v1797_v39 }
 0x5a4   :  { %4716 = vpow2.f32 %v4664_v48 }
 0x5a9   :  { %v4715_v41 = vpop.eup %4714 }
 0x5aa   :  { %1857 = vrot.lane.b32.xlu2 %v4715_v41, %s4809_s2  ;;  %v4717_v17 = vpop.eup %4716 }
 0x5ab   :  { %v1801_v31 = vadd.f32 1.0, %v4717_v17 }
 0x5ad   :  { %4718 = vrcp.f32 %v1801_v31  ;;  %v1813_v57 = vand.u32 2147483648, %v1801_v31  ;;  %vm1807_vm4 = vweird.f32 %v1801_v31  ;;  %v1811_v58 = vand.u32 2147483647, %v1801_v31 }
 0x5ae   :  { %4720 = vpow2.f32 %v4665_v44 }
 0x5af   :  { %v1814_v60 = vor.u32 1.1754944e-38, %v1813_v57  ;;  %vm1812_vm6 = vcmp.eq.f32.partialorder %v1811_v58, 8.507059e+37 }
 0x5b3   :  { %v4719_v35 = vpop.eup %4718 }
 0x5b4   :  { %v1803_v50 = vmul.f32 %v4719_v35, %v1801_v31  ;;  %v4721_v52 = vpop.eup %4720  ;;  %vm1808_vm3 = vweird.f32 %v4719_v35 }
 0x5b5   :  { %v1838_v54 = vadd.f32 1.0, %v4721_v52  ;;  %vm1809_vm5 = vmor %vm1807_vm4, %vm1808_vm3 }
 0x5b6   :  { %v1804_v51 = vsub.f32 1.0, %v1803_v50 }
 0x5b7   :  { %4722 = vrcp.f32 %v1838_v54  ;;  %v1850_v12 = vand.u32 2147483648, %v1838_v54  ;;  %vm1844_vm8 = vweird.f32 %v1838_v54  ;;  %v1848_v21 = vand.u32 2147483647, %v1838_v54 }
 0x5b8   :  { %v1805_v53 = vmul.f32 %v4719_v35, %v1804_v51 }
 0x5b9   :  { %v1851_v29 = vor.u32 1.1754944e-38, %v1850_v12  ;;  %vm1849_vm11 = vcmp.eq.f32.partialorder %v1848_v21, 8.507059e+37 }
 0x5ba   :  { %v1806_v56 = vadd.f32 %v4719_v35, %v1805_v53 }
 0x5bc   :  { %v1810_v28 = vsel %vm1809_vm5, %v4719_v35, %v1806_v56 }
 0x5bd   :  { %v1815_v62 = vsel %vm1812_vm6, %v1814_v60, %v1810_v28  ;;  %v4723_v2 = vpop.eup %4722 }
 0x5be   :  { %v1840_v8 = vmul.f32 %v4723_v2, %v1838_v54  ;;  %vm1845_vm7 = vweird.f32 %v4723_v2  ;;  %v1818_v48 = vmul.f32 %v1815_v62, %v5296_v55 }
 0x5bf   :  { %vm1846_vm10 = vmor %vm1844_vm8, %vm1845_vm7 }
 0x5c0   :  { %v1841_v4 = vsub.f32 1.0, %v1840_v8 }
 0x5c2   :  { %v1842_v11 = vmul.f32 %v4723_v2, %v1841_v4 }
 0x5c4   :  { %v1843_v18 = vadd.f32 %v4723_v2, %v1842_v11 }
 0x5c6   :  { %v1847_v22 = vsel %vm1846_vm10, %v4723_v2, %v1843_v18 }
 0x5c7   :  { %v1852_v39 = vsel %vm1849_vm11, %v1851_v29, %v1847_v22 }
 0x5c8   :  { %v1855_v44 = vmul.f32 %v1852_v39, %v5301_v59 }
 0x5ec   :  { %v1821_v63 = vpop.permute.xlu1 %1820 }
 0x5ed   :  { %v1823_v0 = vmul.f32 %v1821_v63, %v1815_v62 }
 0x5ef   :  { %1825 = vrot.lane.b32.xlu0 %v1823_v0, %s4810_s17 }
 0x604   :  { %v1858_v37 = vpop.permute.xlu2 %1857 }
 0x605   :  { %v1860_v41 = vmul.f32 %v1858_v37, %v1852_v39 }
 0x607   :  { %1862 = vrot.lane.b32.xlu1 %v1860_v41, %s4810_s17 }
 0x661   :  { %v1826_v17 = vpop.permute.xlu0 %1825 }
 0x662   :  { %v5364_v31 = vadd.f32 %v1826_v17, %v1818_v48 }
 0x664   :  { %4724 = vtanh.f32 %v5364_v31 }
 0x66a   :  { %v4725_v35 = vpop.eup %4724 }
 0x66b   :  { %1831 = vrot.lane.b32.xlu2 %v4725_v35, %s4809_s2 }
 0x679   :  { %v1863_v50 = vpop.permute.xlu1 %1862 }
 0x67a   :  { %v5369_v51 = vadd.f32 %v1863_v50, %v1855_v44 }
 0x67c   :  { %4726 = vtanh.f32 %v5369_v51 }
 0x682   :  { %v4727_v52 = vpop.eup %4726 }
 0x683   :  { %1868 = vrot.lane.b32.xlu0 %v4727_v52, %s4809_s2  ;;  %v1882_v52 = vld [vmem:[#allocation2 + $0x6] sm:$0x3] }
 0x6c5   :  { %v1832_v53 = vpop.permute.xlu2 %1831 }
 0x6c6   :  { %v1834_v55 = vmul.f32 %v1832_v53, %v1815_v62 }
 0x6c8   :  { %1873 = vrot.lane.b32.xlu1 %v1834_v55, %s4810_s17 }
 0x6f5   :  { %v1869_v54 = vpop.permute.xlu0 %1868 }
 0x6f6   :  { %v1871_v56 = vmul.f32 %v1869_v54, %v1852_v39 }
 0x6f8   :  { %1878 = vrot.lane.b32.xlu2 %v1871_v56, %s4810_s17 }
 0x73a   :  { %v1874_v57 = vpop.permute.xlu1 %1873 }
 0x73b   :  { %1876 = vst.msk [vmem:[#allocation4 + $0x4] sm:$0x3] %vm951_vm9, %v1874_v57  ;;  %v1883_v59 = vsel %vm45_vm0, %v1874_v57, 0 }
 0x73c   :  { %v1905_v58 = vand.u32 4294901760, %v1883_v59 }
 0x73e   :  { %v1906_v28 = vsub.f32 %v1883_v59, %v1905_v58  ;;  %1951 = vmatmul.f32.vlgmr.msra.gmra.mxu1 %v1905_v58 }
 0x73f   :  { %2187 = vmatpush.msra.mxu1 %v5036_v13 }
 0x740   :  { %v1907_v60 = vand.u32 4294901760, %v1906_v28  ;;  %1981 = vmatmul.f32.vlgmr.msra.gmra.mxu2 %v1906_v28 }
 0x741   :  { %2189 = vmatpush.msra.mxu1 %v5045_v15  ;;  %2216 = vmatpush.msra.mxu2 %v5089_v30 }
 0x742   :  { %v1908_v63 = vsub.f32 %v1906_v28, %v1907_v60  ;;  %2008 = vmatmul.f32.vlgmr.msra.gmra.mxu3 %v1907_v60 }
 0x743   :  { %2191 = vmatpush.msra.mxu1 %v5075_v25  ;;  %2247 = vmatpush.msra.mxu3 %v5036_v13 }
 0x744   :  { %v1909_v62 = vand.u32 4294901760, %v1908_v63  ;;  %2220 = vmatpush.msra.mxu2 %v5100_v34 }
 0x745   :  { %2193 = vmatpush.msra.mxu1 %v5091_v32  ;;  %2249 = vmatpush.msra.mxu3 %v5045_v15 }
 0x746   :  { %1910 = vmatmul.f32.vlgmr.msra.gmra.mxu0 %v1909_v62  ;;  %2066 = vmatmul.f32.vlgmr.msrb.gmra.mxu1 %v1905_v58 }
 0x747   :  { %2158 = vmatpush.msra.mxu0 %v5062_v20  ;;  %2251 = vmatpush.msra.mxu3 %v5075_v25 }
 0x748   :  { %2224 = vmatpush.msra.mxu2 %v5125_v42  ;;  %2393 = vmatpush.msrb.mxu1 %v5079_v26 }
 0x749   :  { %2161 = vmatpush.msra.mxu0 %v5073_v24  ;;  %2253 = vmatpush.msra.mxu3 %v5091_v32 }
 0x74a   :  { %2228 = vmatpush.msra.mxu2 %v5136_v46  ;;  %2399 = vmatpush.msrb.mxu1 %v5095_v33 }
 0x74b   :  { %2164 = vmatpush.msra.mxu0 %v5103_v36 }
 0x74c   :  { %2405 = vmatpush.msrb.mxu1 %v5111_v38 }
 0x74d   :  { %2167 = vmatpush.msra.mxu0 %v5116_v40 }
 0x74e   :  { %2041 = vmatmul.f32.vlgmr.msrb.gmra.mxu0 %v1905_v58  ;;  %2411 = vmatpush.msrb.mxu1 %v5129_v43 }
 0x74f   :  { %2360 = vmatpush.msrb.mxu0 %v4984_v61 }
 0x751   :  { %2362 = vmatpush.msrb.mxu0 %v4992_v1 }
 0x752   :  { %v1879_v0 = vpop.permute.xlu2 %1878 }
 0x753   :  { %1881 = vst.msk [vmem:[#allocation5 + $0xa] sm:$0x3] %vm951_vm9, %v1879_v0  ;;  %v2072_v2 = vsel %vm45_vm0, %v1879_v0, 0  ;;  %2364 = vmatpush.msrb.mxu0 %v5006_v6 }
 0x754   :  { %v2094_v8 = vand.u32 4294901760, %v2072_v2 }
 0x755   :  { %2366 = vmatpush.msrb.mxu0 %v5026_v10 }
 0x756   :  { %v2095_v4 = vsub.f32 %v2072_v2, %v2094_v8  ;;  %2140 = vmatmul.f32.vlgmr.msrb.gmra.mxu3 %v2094_v8 }
 0x757   :  { %2460 = vmatpush.msrb.mxu3 %v4984_v61 }
 0x758   :  { %v2096_v11 = vand.u32 4294901760, %v2095_v4  ;;  %2170 = vmatmul.f32.vlgmr.msra.gmra.mxu0 %v2095_v4 }
 0x759   :  { %2462 = vmatpush.msrb.mxu3 %v4992_v1  ;;  %2489 = vmatpush.msra.mxu0 %v5024_v5 }
 0x75a   :  { %v2097_v18 = vsub.f32 %v2095_v4, %v2096_v11  ;;  %2197 = vmatmul.f32.vlgmr.msra.gmra.mxu1 %v2096_v11 }
 0x75b   :  { %2464 = vmatpush.msrb.mxu3 %v5006_v6  ;;  %2520 = vmatpush.msra.mxu1 %v4984_v61 }
 0x75c   :  { %v2098_v12 = vand.u32 4294901760, %v2097_v18  ;;  %2493 = vmatpush.msra.mxu0 %v5041_v14 }
 0x75d   :  { %2466 = vmatpush.msrb.mxu3 %v5026_v10  ;;  %2522 = vmatpush.msra.mxu1 %v4992_v1 }
 0x75e   :  { %2099 = vmatmul.f32.vlgmr.msrb.gmra.mxu2 %v2098_v12  ;;  %2255 = vmatmul.f32.vlgmr.msra.gmra.mxu3 %v2094_v8 }
 0x75f   :  { %2431 = vmatpush.msrb.mxu2 %v5001_v3  ;;  %2524 = vmatpush.msra.mxu1 %v5006_v6 }
 0x760   :  { %2497 = vmatpush.msra.mxu0 %v5059_v19  ;;  %2582 = vmatpush.msra.mxu3 %v5133_v45 }
 0x761   :  { %2434 = vmatpush.msrb.mxu2 %v5013_v7  ;;  %2526 = vmatpush.msra.mxu1 %v5026_v10 }
 0x762   :  { %2501 = vmatpush.msra.mxu0 %v5082_v27  ;;  %2588 = vmatpush.msra.mxu3 %v5142_v47 }
 0x763   :  { %2437 = vmatpush.msrb.mxu2 %v5034_v9 }
 0x764   :  { %2594 = vmatpush.msra.mxu3 %v5155_v23 }
 0x765   :  { %2440 = vmatpush.msrb.mxu2 %v5051_v16 }
 0x766   :  { %2230 = vmatmul.f32.vlgmr.msra.gmra.mxu2 %v2094_v8  ;;  %2600 = vmatpush.msra.mxu3 %v5161_v49  ;;  %v2071_v8 = vld [vmem:[#allocation3 + $0x8] sm:$0x3] }
 0x767   :  { %2549 = vmatpush.msra.mxu2 %v5036_v13 }
 0x769   :  { %2551 = vmatpush.msra.mxu2 %v5045_v15 }
 0x76b   :  { %2553 = vmatpush.msra.mxu2 %v5075_v25 }
 0x76d   :  { %2555 = vmatpush.msra.mxu2 %v5091_v32 }
 0x7bb   :  { %v1952_v21 = vpop.f32.mrf.mxu1 }
 0x7c3   :  { %v1911_v22 = vpop.f32.mrf.mxu0  ;;  %v1982_v37 = vpop.f32.mrf.mxu2 }
 0x7c4   :  { %v1953_v29 = vadd.f32 %v1952_v21, %v1911_v22  ;;  %v2067_v44 = vpop.f32.mrf.mxu1 }
 0x7c5   :  { %v2009_v41 = vpop.f32.mrf.mxu3 }
 0x7c6   :  { %v1983_v39 = vadd.f32 %v1982_v37, %v1953_v29 }
 0x7c8   :  { %v2010_v48 = vadd.f32 %v2009_v41, %v1983_v39 }
 0x7cb   :  { %v2042_v17 = vpop.f32.mrf.mxu0 }
 0x7cc   :  { %v2043_v35 = vadd.f32 %v2042_v17, %v2010_v48 }
 0x7ce   :  { %v2068_v50 = vadd.f32 %v2067_v44, %v2043_v35 }
 0x7d0   :  { %v2070_v53 = vadd.f32 %v2068_v50, %v1882_v52 }
 0x7d2   :  { %4728 = vtanh.f32 %v2070_v53  ;;  %v4666_v18 = vmul.f32 -1.442695, %v2070_v53 }
 0x7d5   :  { %v2171_v59 = vpop.f32.mrf.mxu0 }
 0x7d7   :  { %v2198_v28 = vpop.f32.mrf.mxu1 }
 0x7d8   :  { %v4729_v55 = vpop.eup %4728 }
 0x7d9   :  { %2282 = vrot.lane.b32.xlu0 %v4729_v55, %s4809_s2  ;;  %v2141_v54 = vpop.f32.mrf.mxu3 }
 0x7e1   :  { %v2100_v56 = vpop.f32.mrf.mxu2  ;;  %v2256_v0 = vpop.f32.mrf.mxu3 }
 0x7e2   :  { %v2142_v57 = vadd.f32 %v2141_v54, %v2100_v56 }
 0x7e4   :  { %v2172_v58 = vadd.f32 %v2171_v59, %v2142_v57 }
 0x7e6   :  { %v2199_v60 = vadd.f32 %v2198_v28, %v2172_v58 }
 0x7e9   :  { %v2231_v63 = vpop.f32.mrf.mxu2 }
 0x7ea   :  { %v2232_v62 = vadd.f32 %v2231_v63, %v2199_v60 }
 0x7ec   :  { %v2257_v2 = vadd.f32 %v2256_v0, %v2232_v62 }
 0x7ee   :  { %v2259_v4 = vadd.f32 %v2257_v2, %v2071_v8 }
 0x7f0   :  { %4730 = vtanh.f32 %v2259_v4  ;;  %v4667_v37 = vmul.f32 -1.442695, %v2259_v4 }
 0x7f1   :  { %4732 = vpow2.f32 %v4666_v18 }
 0x7f6   :  { %v4731_v11 = vpop.eup %4730 }
 0x7f7   :  { %2319 = vrot.lane.b32.xlu1 %v4731_v11, %s4809_s2  ;;  %v4733_v12 = vpop.eup %4732 }
 0x7f8   :  { %v2263_v21 = vadd.f32 1.0, %v4733_v12 }
 0x7fa   :  { %4734 = vrcp.f32 %v2263_v21  ;;  %v2275_v17 = vand.u32 2147483648, %v2263_v21  ;;  %vm2269_vm13 = vweird.f32 %v2263_v21  ;;  %v2273_v44 = vand.u32 2147483647, %v2263_v21 }
 0x7fb   :  { %4736 = vpow2.f32 %v4667_v37 }
 0x7fc   :  { %v2276_v53 = vor.u32 1.1754944e-38, %v2275_v17  ;;  %vm2274_vm15 = vcmp.eq.f32.partialorder %v2273_v44, 8.507059e+37 }
 0x800   :  { %v4735_v22 = vpop.eup %4734 }
 0x801   :  { %v2265_v29 = vmul.f32 %v4735_v22, %v2263_v21  ;;  %vm2270_vm12 = vweird.f32 %v4735_v22  ;;  %v4737_v35 = vpop.eup %4736 }
 0x802   :  { %vm2271_vm14 = vmor %vm2269_vm13, %vm2270_vm12  ;;  %v2300_v52 = vadd.f32 1.0, %v4737_v35 }
 0x803   :  { %v2266_v39 = vsub.f32 1.0, %v2265_v29 }
 0x804   :  { %4738 = vrcp.f32 %v2300_v52  ;;  %v2312_v63 = vand.u32 2147483648, %v2300_v52  ;;  %vm2306_vm2 = vweird.f32 %v2300_v52  ;;  %v2310_v62 = vand.u32 2147483647, %v2300_v52 }
 0x805   :  { %v2267_v41 = vmul.f32 %v4735_v22, %v2266_v39 }
 0x806   :  { %v2313_v2 = vor.u32 1.1754944e-38, %v2312_v63  ;;  %vm2311_vm4 = vcmp.eq.f32.partialorder %v2310_v62, 8.507059e+37 }
 0x807   :  { %v2268_v48 = vadd.f32 %v4735_v22, %v2267_v41 }
 0x809   :  { %v2272_v50 = vsel %vm2271_vm14, %v4735_v22, %v2268_v48 }
 0x80a   :  { %v2277_v54 = vsel %vm2274_vm15, %v2276_v53, %v2272_v50  ;;  %v4739_v57 = vpop.eup %4738 }
 0x80b   :  { %v2302_v59 = vmul.f32 %v4739_v57, %v2300_v52  ;;  %vm2307_vm1 = vweird.f32 %v4739_v57  ;;  %v2280_v18 = vmul.f32 %v2277_v54, %v5364_v31 }
 0x80c   :  { %vm2308_vm3 = vmor %vm2306_vm2, %vm2307_vm1 }
 0x80d   :  { %v2303_v58 = vsub.f32 1.0, %v2302_v59 }
 0x80f   :  { %v2304_v28 = vmul.f32 %v4739_v57, %v2303_v58 }
 0x811   :  { %v2305_v60 = vadd.f32 %v4739_v57, %v2304_v28 }
 0x813   :  { %v2309_v0 = vsel %vm2308_vm3, %v4739_v57, %v2305_v60 }
 0x814   :  { %v2314_v4 = vsel %vm2311_vm4, %v2313_v2, %v2309_v0 }
 0x815   :  { %v2317_v29 = vmul.f32 %v2314_v4, %v5369_v51 }
 0x84b   :  { %v2283_v55 = vpop.permute.xlu0 %2282 }
 0x84c   :  { %v2285_v56 = vmul.f32 %v2283_v55, %v2277_v54 }
 0x84e   :  { %2287 = vrot.lane.b32.xlu2 %v2285_v56, %s4810_s17 }
 0x869   :  { %v2320_v8 = vpop.permute.xlu1 %2319 }
 0x86a   :  { %v2322_v11 = vmul.f32 %v2320_v8, %v2314_v4 }
 0x86c   :  { %2324 = vrot.lane.b32.xlu0 %v2322_v11, %s4810_s17 }
 0x8a8   :  { %v2288_v12 = vpop.permute.xlu2 %2287 }
 0x8a9   :  { %v5432_v21 = vadd.f32 %v2288_v12, %v2280_v18 }
 0x8ab   :  { %4740 = vtanh.f32 %v5432_v21 }
 0x8b1   :  { %v4741_v22 = vpop.eup %4740 }
 0x8b2   :  { %2293 = vrot.lane.b32.xlu1 %v4741_v22, %s4809_s2 }
 0x8de   :  { %v2325_v37 = vpop.permute.xlu0 %2324 }
 0x8df   :  { %v5437_v39 = vadd.f32 %v2325_v37, %v2317_v29 }
 0x8e1   :  { %4742 = vtanh.f32 %v5437_v39 }
 0x8e7   :  { %v4743_v41 = vpop.eup %4742 }
 0x8e8   :  { %2330 = vrot.lane.b32.xlu2 %v4743_v41, %s4809_s2  ;;  %v2344_v41 = vld [vmem:[#allocation2 + $0x8] sm:$0x3] }
 0x924   :  { %v2294_v48 = vpop.permute.xlu1 %2293 }
 0x925   :  { %v2296_v31 = vmul.f32 %v2294_v48, %v2277_v54 }
 0x927   :  { %2335 = vrot.lane.b32.xlu0 %v2296_v31, %s4810_s17 }
 0x942   :  { %v2331_v17 = vpop.permute.xlu2 %2330 }
 0x943   :  { %v2333_v35 = vmul.f32 %v2331_v17, %v2314_v4 }
 0x945   :  { %2340 = vrot.lane.b32.xlu1 %v2333_v35, %s4810_s17 }
 0x999   :  { %v2336_v44 = vpop.permute.xlu0 %2335 }
 0x99a   :  { %2338 = vst.msk [vmem:[#allocation4 + $0x6] sm:$0x3] %vm951_vm9, %v2336_v44  ;;  %v2345_v51 = vsel %vm45_vm0, %v2336_v44, 0 }
 0x99b   :  { %v2367_v50 = vand.u32 4294901760, %v2345_v51 }
 0x99d   :  { %v2368_v52 = vsub.f32 %v2345_v51, %v2367_v50  ;;  %2413 = vmatmul.f32.vlgmr.msrb.gmra.mxu1 %v2367_v50 }
 0x99e   :  { %2649 = vmatpush.msrb.mxu1 %v5036_v13 }
 0x99f   :  { %v2369_v53 = vand.u32 4294901760, %v2368_v52  ;;  %2443 = vmatmul.f32.vlgmr.msrb.gmra.mxu2 %v2368_v52 }
 0x9a0   :  { %2651 = vmatpush.msrb.mxu1 %v5045_v15  ;;  %2678 = vmatpush.msrb.mxu2 %v5089_v30 }
 0x9a1   :  { %v2370_v55 = vsub.f32 %v2368_v52, %v2369_v53  ;;  %2470 = vmatmul.f32.vlgmr.msrb.gmra.mxu3 %v2369_v53 }
 0x9a2   :  { %2653 = vmatpush.msrb.mxu1 %v5075_v25  ;;  %2709 = vmatpush.msrb.mxu3 %v5036_v13 }
 0x9a3   :  { %v2371_v54 = vand.u32 4294901760, %v2370_v55  ;;  %2682 = vmatpush.msrb.mxu2 %v5100_v34 }
 0x9a4   :  { %2655 = vmatpush.msrb.mxu1 %v5091_v32  ;;  %2711 = vmatpush.msrb.mxu3 %v5045_v15 }
 0x9a5   :  { %2372 = vmatmul.f32.vlgmr.msrb.gmra.mxu0 %v2371_v54  ;;  %2528 = vmatmul.f32.vlgmr.msra.gmra.mxu1 %v2367_v50 }
 0x9a6   :  { %2620 = vmatpush.msrb.mxu0 %v5062_v20  ;;  %2713 = vmatpush.msrb.mxu3 %v5075_v25 }
 0x9a7   :  { %2686 = vmatpush.msrb.mxu2 %v5125_v42  ;;  %2855 = vmatpush.msra.mxu1 %v5079_v26 }
 0x9a8   :  { %2623 = vmatpush.msrb.mxu0 %v5073_v24  ;;  %2715 = vmatpush.msrb.mxu3 %v5091_v32 }
 0x9a9   :  { %2690 = vmatpush.msrb.mxu2 %v5136_v46  ;;  %2861 = vmatpush.msra.mxu1 %v5095_v33 }
 0x9aa   :  { %2626 = vmatpush.msrb.mxu0 %v5103_v36 }
 0x9ab   :  { %2867 = vmatpush.msra.mxu1 %v5111_v38 }
 0x9ac   :  { %2629 = vmatpush.msrb.mxu0 %v5116_v40 }
 0x9ad   :  { %2503 = vmatmul.f32.vlgmr.msra.gmra.mxu0 %v2367_v50  ;;  %2873 = vmatpush.msra.mxu1 %v5129_v43 }
 0x9ae   :  { %2822 = vmatpush.msra.mxu0 %v4984_v61 }
 0x9b0   :  { %2824 = vmatpush.msra.mxu0 %v4992_v1 }
 0x9b2   :  { %2826 = vmatpush.msra.mxu0 %v5006_v6 }
 0x9b4   :  { %2828 = vmatpush.msra.mxu0 %v5026_v10 }
 0x9b7   :  { %v2341_v56 = vpop.permute.xlu1 %2340 }
 0x9b8   :  { %2343 = vst.msk [vmem:[#allocation5 + $0x8] sm:$0x3] %vm951_vm9, %v2341_v56  ;;  %v2534_v57 = vsel %vm45_vm0, %v2341_v56, 0 }
 0x9b9   :  { %v2556_v59 = vand.u32 4294901760, %v2534_v57 }
 0x9bb   :  { %v2557_v58 = vsub.f32 %v2534_v57, %v2556_v59  ;;  %2602 = vmatmul.f32.vlgmr.msra.gmra.mxu3 %v2556_v59 }
 0x9bc   :  { %2922 = vmatpush.msra.mxu3 %v4984_v61 }
 0x9bd   :  { %v2558_v28 = vand.u32 4294901760, %v2557_v58  ;;  %2632 = vmatmul.f32.vlgmr.msrb.gmra.mxu0 %v2557_v58 }
 0x9be   :  { %2924 = vmatpush.msra.mxu3 %v4992_v1  ;;  %2951 = vmatpush.msrb.mxu0 %v5024_v5 }
 0x9bf   :  { %v2559_v60 = vsub.f32 %v2557_v58, %v2558_v28  ;;  %2659 = vmatmul.f32.vlgmr.msrb.gmra.mxu1 %v2558_v28 }
 0x9c0   :  { %2926 = vmatpush.msra.mxu3 %v5006_v6  ;;  %2982 = vmatpush.msrb.mxu1 %v4984_v61 }
 0x9c1   :  { %v2560_v63 = vand.u32 4294901760, %v2559_v60  ;;  %2955 = vmatpush.msrb.mxu0 %v5041_v14 }
 0x9c2   :  { %2928 = vmatpush.msra.mxu3 %v5026_v10  ;;  %2984 = vmatpush.msrb.mxu1 %v4992_v1 }
 0x9c3   :  { %2561 = vmatmul.f32.vlgmr.msra.gmra.mxu2 %v2560_v63  ;;  %2717 = vmatmul.f32.vlgmr.msrb.gmra.mxu3 %v2556_v59 }
 0x9c4   :  { %2893 = vmatpush.msra.mxu2 %v5001_v3  ;;  %2986 = vmatpush.msrb.mxu1 %v5006_v6 }
 0x9c5   :  { %2959 = vmatpush.msrb.mxu0 %v5059_v19  ;;  %3044 = vmatpush.msrb.mxu3 %v5133_v45 }
 0x9c6   :  { %2896 = vmatpush.msra.mxu2 %v5013_v7  ;;  %2988 = vmatpush.msrb.mxu1 %v5026_v10 }
 0x9c7   :  { %2963 = vmatpush.msrb.mxu0 %v5082_v27  ;;  %3050 = vmatpush.msrb.mxu3 %v5142_v47 }
 0x9c8   :  { %2899 = vmatpush.msra.mxu2 %v5034_v9 }
 0x9c9   :  { %3056 = vmatpush.msrb.mxu3 %v5155_v23 }
 0x9ca   :  { %2902 = vmatpush.msra.mxu2 %v5051_v16 }
 0x9cb   :  { %2692 = vmatmul.f32.vlgmr.msrb.gmra.mxu2 %v2556_v59  ;;  %3062 = vmatpush.msrb.mxu3 %v5161_v49  ;;  %v2533_v59 = vld [vmem:[#allocation3 + $0x6] sm:$0x3] }
 0x9cc   :  { %3011 = vmatpush.msrb.mxu2 %v5036_v13 }
 0x9ce   :  { %3013 = vmatpush.msrb.mxu2 %v5045_v15 }
 0x9d0   :  { %3015 = vmatpush.msrb.mxu2 %v5075_v25 }
 0x9d2   :  { %3017 = vmatpush.msrb.mxu2 %v5091_v32 }
 0xa1a   :  { %v2414_v62 = vpop.f32.mrf.mxu1 }
 0xa22   :  { %v2373_v0 = vpop.f32.mrf.mxu0  ;;  %v2444_v8 = vpop.f32.mrf.mxu2 }
 0xa23   :  { %v2415_v2 = vadd.f32 %v2414_v62, %v2373_v0  ;;  %v2529_v29 = vpop.f32.mrf.mxu1 }
 0xa24   :  { %v2471_v11 = vpop.f32.mrf.mxu3 }
 0xa25   :  { %v2445_v4 = vadd.f32 %v2444_v8, %v2415_v2 }
 0xa27   :  { %v2472_v18 = vadd.f32 %v2471_v11, %v2445_v4 }
 0xa2a   :  { %v2504_v12 = vpop.f32.mrf.mxu0 }
 0xa2b   :  { %v2505_v22 = vadd.f32 %v2504_v12, %v2472_v18 }
 0xa2d   :  { %v2530_v37 = vadd.f32 %v2529_v29, %v2505_v22 }
 0xa2f   :  { %v2532_v48 = vadd.f32 %v2530_v37, %v2344_v41 }
 0xa31   :  { %4744 = vtanh.f32 %v2532_v48  ;;  %v4668_v60 = vmul.f32 -1.442695, %v2532_v48 }
 0xa37   :  { %v4745_v31 = vpop.eup %4744 }
 0xa38   :  { %2744 = vrot.lane.b32.xlu2 %v4745_v31, %s4809_s2 }
 0xa3a   :  { %v2633_v51 = vpop.f32.mrf.mxu0 }
 0xa3c   :  { %v2660_v52 = vpop.f32.mrf.mxu1 }
 0xa3e   :  { %v2603_v17 = vpop.f32.mrf.mxu3 }
 0xa46   :  { %v2562_v35 = vpop.f32.mrf.mxu2  ;;  %v2718_v56 = vpop.f32.mrf.mxu3 }
 0xa47   :  { %v2604_v44 = vadd.f32 %v2603_v17, %v2562_v35 }
 0xa49   :  { %v2634_v50 = vadd.f32 %v2633_v51, %v2604_v44 }
 0xa4b   :  { %v2661_v53 = vadd.f32 %v2660_v52, %v2634_v50 }
 0xa4e   :  { %v2693_v55 = vpop.f32.mrf.mxu2 }
 0xa4f   :  { %v2694_v54 = vadd.f32 %v2693_v55, %v2661_v53 }
 0xa51   :  { %v2719_v57 = vadd.f32 %v2718_v56, %v2694_v54 }
 0xa53   :  { %v2721_v58 = vadd.f32 %v2719_v57, %v2533_v59 }
 0xa55   :  { %4746 = vtanh.f32 %v2721_v58  ;;  %v4669_v31 = vmul.f32 -1.442695, %v2721_v58 }
 0xa56   :  { %4748 = vpow2.f32 %v4668_v60 }
 0xa5b   :  { %v4747_v28 = vpop.eup %4746 }
 0xa5c   :  { %2781 = vrot.lane.b32.xlu0 %v4747_v28, %s4809_s2  ;;  %v4749_v63 = vpop.eup %4748 }
 0xa5d   :  { %v2725_v62 = vadd.f32 1.0, %v4749_v63 }
 0xa5f   :  { %4750 = vrcp.f32 %v2725_v62  ;;  %v2737_v18 = vand.u32 2147483648, %v2725_v62  ;;  %vm2731_vm6 = vweird.f32 %v2725_v62  ;;  %v2735_v12 = vand.u32 2147483647, %v2725_v62 }
 0xa60   :  { %4752 = vpow2.f32 %v4669_v31 }
 0xa61   :  { %v2738_v29 = vor.u32 1.1754944e-38, %v2737_v18  ;;  %vm2736_vm8 = vcmp.eq.f32.partialorder %v2735_v12, 8.507059e+37 }
 0xa65   :  { %v4751_v0 = vpop.eup %4750 }
 0xa66   :  { %v2727_v2 = vmul.f32 %v4751_v0, %v2725_v62  ;;  %vm2732_vm5 = vweird.f32 %v4751_v0  ;;  %v4753_v17 = vpop.eup %4752 }
 0xa67   :  { %vm2733_vm7 = vmor %vm2731_vm6, %vm2732_vm5  ;;  %v2762_v35 = vadd.f32 1.0, %v4753_v17 }
 0xa68   :  { %v2728_v8 = vsub.f32 1.0, %v2727_v2 }
 0xa69   :  { %4754 = vrcp.f32 %v2762_v35  ;;  %v2774_v55 = vand.u32 2147483648, %v2762_v35  ;;  %vm2768_vm11 = vweird.f32 %v2762_v35  ;;  %v2772_v54 = vand.u32 2147483647, %v2762_v35 }
 0xa6a   :  { %v2729_v4 = vmul.f32 %v4751_v0, %v2728_v8 }
 0xa6b   :  { %v2775_v57 = vor.u32 1.1754944e-38, %v2774_v55  ;;  %vm2773_vm13 = vcmp.eq.f32.partialorder %v2772_v54, 8.507059e+37 }
 0xa6c   :  { %v2730_v11 = vadd.f32 %v4751_v0, %v2729_v4 }
 0xa6e   :  { %v2734_v22 = vsel %vm2733_vm7, %v4751_v0, %v2730_v11 }
 0xa6f   :  { %v2739_v37 = vsel %vm2736_vm8, %v2738_v29, %v2734_v22  ;;  %v4755_v44 = vpop.eup %4754 }
 0xa70   :  { %v2764_v51 = vmul.f32 %v4755_v44, %v2762_v35  ;;  %vm2769_vm10 = vweird.f32 %v4755_v44  ;;  %v2742_v60 = vmul.f32 %v2739_v37, %v5432_v21 }
 0xa71   :  { %vm2770_vm12 = vmor %vm2768_vm11, %vm2769_vm10 }
 0xa72   :  { %v2765_v50 = vsub.f32 1.0, %v2764_v51 }
 0xa74   :  { %v2766_v52 = vmul.f32 %v4755_v44, %v2765_v50 }
 0xa76   :  { %v2767_v53 = vadd.f32 %v4755_v44, %v2766_v52 }
 0xa78   :  { %v2771_v56 = vsel %vm2770_vm12, %v4755_v44, %v2767_v53 }
 0xa79   :  { %v2776_v28 = vsel %vm2773_vm13, %v2775_v57, %v2771_v56 }
 0xa7a   :  { %v2779_v2 = vmul.f32 %v2776_v28, %v5437_v39 }
 0xa92   :  { %v2745_v41 = vpop.permute.xlu2 %2744 }
 0xa93   :  { %v2747_v48 = vmul.f32 %v2745_v41, %v2739_v37 }
 0xa95   :  { %2749 = vrot.lane.b32.xlu1 %v2747_v48, %s4810_s17 }
 0xace   :  { %v2782_v59 = vpop.permute.xlu0 %2781 }
 0xacf   :  { %v2784_v58 = vmul.f32 %v2782_v59, %v2776_v28 }
 0xad1   :  { %2786 = vrot.lane.b32.xlu2 %v2784_v58, %s4810_s17 }
 0xb07   :  { %v2750_v63 = vpop.permute.xlu1 %2749 }
 0xb08   :  { %v5500_v62 = vadd.f32 %v2750_v63, %v2742_v60 }
 0xb0a   :  { %4756 = vtanh.f32 %v5500_v62 }
 0xb10   :  { %v4757_v0 = vpop.eup %4756 }
 0xb11   :  { %2755 = vrot.lane.b32.xlu0 %v4757_v0, %s4809_s2 }
 0xb2b   :  { %v2787_v8 = vpop.permute.xlu2 %2786 }
 0xb2c   :  { %v5505_v4 = vadd.f32 %v2787_v8, %v2779_v2 }
 0xb2e   :  { %4758 = vtanh.f32 %v5505_v4 }
 0xb34   :  { %v4759_v11 = vpop.eup %4758 }
 0xb35   :  { %2792 = vrot.lane.b32.xlu1 %v4759_v11, %s4809_s2  ;;  %v2806_v11 = vld [vmem:[#allocation2 + $0xa] sm:$0x3] }
 0xb83   :  { %v2756_v18 = vpop.permute.xlu0 %2755 }
 0xb84   :  { %v2758_v21 = vmul.f32 %v2756_v18, %v2739_v37 }
 0xb86   :  { %2797 = vrot.lane.b32.xlu2 %v2758_v21, %s4810_s17 }
 0xba7   :  { %v2793_v12 = vpop.permute.xlu1 %2792 }
 0xba8   :  { %v2795_v22 = vmul.f32 %v2793_v12, %v2776_v28 }
 0xbaa   :  { %2802 = vrot.lane.b32.xlu0 %v2795_v22, %s4810_s17 }
 0xbe0   :  { %v2798_v29 = vpop.permute.xlu2 %2797 }
 0xbe1   :  { %2800 = vst.msk [vmem:[#allocation4 + $0x8] sm:$0x3] %vm951_vm9, %v2798_v29  ;;  %v2807_v39 = vsel %vm45_vm0, %v2798_v29, 0 }
 0xbe2   :  { %v2829_v41 = vand.u32 4294901760, %v2807_v39 }
 0xbe4   :  { %v2830_v48 = vsub.f32 %v2807_v39, %v2829_v41  ;;  %2875 = vmatmul.f32.vlgmr.msra.gmra.mxu1 %v2829_v41 }
 0xbe5   :  { %3111 = vmatpush.msra.mxu1 %v5036_v13 }
 0xbe6   :  { %v2831_v31 = vand.u32 4294901760, %v2830_v48  ;;  %2905 = vmatmul.f32.vlgmr.msra.gmra.mxu2 %v2830_v48 }
 0xbe7   :  { %3113 = vmatpush.msra.mxu1 %v5045_v15  ;;  %3140 = vmatpush.msra.mxu2 %v5089_v30 }
 0xbe8   :  { %v2832_v37 = vsub.f32 %v2830_v48, %v2831_v31  ;;  %2932 = vmatmul.f32.vlgmr.msra.gmra.mxu3 %v2831_v31 }
 0xbe9   :  { %3115 = vmatpush.msra.mxu1 %v5075_v25  ;;  %3171 = vmatpush.msra.mxu3 %v5036_v13 }
 0xbea   :  { %v2833_v17 = vand.u32 4294901760, %v2832_v37  ;;  %3144 = vmatpush.msra.mxu2 %v5100_v34 }
 0xbeb   :  { %3117 = vmatpush.msra.mxu1 %v5091_v32  ;;  %3173 = vmatpush.msra.mxu3 %v5045_v15 }
 0xbec   :  { %2834 = vmatmul.f32.vlgmr.msra.gmra.mxu0 %v2833_v17  ;;  %2990 = vmatmul.f32.vlgmr.msrb.gmra.mxu1 %v2829_v41 }
 0xbed   :  { %3082 = vmatpush.msra.mxu0 %v5062_v20  ;;  %3175 = vmatpush.msra.mxu3 %v5075_v25 }
 0xbee   :  { %3148 = vmatpush.msra.mxu2 %v5125_v42  ;;  %3317 = vmatpush.msrb.mxu1 %v5079_v26 }
 0xbef   :  { %3085 = vmatpush.msra.mxu0 %v5073_v24  ;;  %3177 = vmatpush.msra.mxu3 %v5091_v32 }
 0xbf0   :  { %3152 = vmatpush.msra.mxu2 %v5136_v46  ;;  %3323 = vmatpush.msrb.mxu1 %v5095_v33 }
 0xbf1   :  { %3088 = vmatpush.msra.mxu0 %v5103_v36 }
 0xbf2   :  { %3329 = vmatpush.msrb.mxu1 %v5111_v38 }
 0xbf3   :  { %3091 = vmatpush.msra.mxu0 %v5116_v40 }
 0xbf4   :  { %2965 = vmatmul.f32.vlgmr.msrb.gmra.mxu0 %v2829_v41  ;;  %3335 = vmatpush.msrb.mxu1 %v5129_v43 }
 0xbf5   :  { %3284 = vmatpush.msrb.mxu0 %v4984_v61 }
 0xbf7   :  { %3286 = vmatpush.msrb.mxu0 %v4992_v1 }
 0xbf9   :  { %3288 = vmatpush.msrb.mxu0 %v5006_v6 }
 0xbfb   :  { %3290 = vmatpush.msrb.mxu0 %v5026_v10 }
 0xc1c   :  { %v2803_v35 = vpop.permute.xlu0 %2802 }
 0xc1d   :  { %2805 = vst.msk [vmem:[#allocation5 + $0x6] sm:$0x3] %vm951_vm9, %v2803_v35  ;;  %v2996_v44 = vsel %vm45_vm0, %v2803_v35, 0 }
 0xc1e   :  { %v3018_v51 = vand.u32 4294901760, %v2996_v44 }
 0xc20   :  { %v3019_v50 = vsub.f32 %v2996_v44, %v3018_v51  ;;  %3064 = vmatmul.f32.vlgmr.msrb.gmra.mxu3 %v3018_v51 }
 0xc21   :  { %3384 = vmatpush.msrb.mxu3 %v4984_v61 }
 0xc22   :  { %v3020_v52 = vand.u32 4294901760, %v3019_v50  ;;  %3094 = vmatmul.f32.vlgmr.msra.gmra.mxu0 %v3019_v50 }
 0xc23   :  { %3386 = vmatpush.msrb.mxu3 %v4992_v1  ;;  %3413 = vmatpush.msra.mxu0 %v5024_v5 }
 0xc24   :  { %v3021_v53 = vsub.f32 %v3019_v50, %v3020_v52  ;;  %3121 = vmatmul.f32.vlgmr.msra.gmra.mxu1 %v3020_v52 }
 0xc25   :  { %3388 = vmatpush.msrb.mxu3 %v5006_v6  ;;  %3444 = vmatpush.msra.mxu1 %v4984_v61 }
 0xc26   :  { %v3022_v55 = vand.u32 4294901760, %v3021_v53  ;;  %3417 = vmatpush.msra.mxu0 %v5041_v14 }
 0xc27   :  { %3390 = vmatpush.msrb.mxu3 %v5026_v10  ;;  %3446 = vmatpush.msra.mxu1 %v4992_v1 }
 0xc28   :  { %3023 = vmatmul.f32.vlgmr.msrb.gmra.mxu2 %v3022_v55  ;;  %3179 = vmatmul.f32.vlgmr.msra.gmra.mxu3 %v3018_v51 }
 0xc29   :  { %3355 = vmatpush.msrb.mxu2 %v5001_v3  ;;  %3448 = vmatpush.msra.mxu1 %v5006_v6 }
 0xc2a   :  { %3421 = vmatpush.msra.mxu0 %v5059_v19  ;;  %3506 = vmatpush.msra.mxu3 %v5133_v45 }
 0xc2b   :  { %3358 = vmatpush.msrb.mxu2 %v5013_v7  ;;  %3450 = vmatpush.msra.mxu1 %v5026_v10 }
 0xc2c   :  { %3425 = vmatpush.msra.mxu0 %v5082_v27  ;;  %3512 = vmatpush.msra.mxu3 %v5142_v47 }
 0xc2d   :  { %3361 = vmatpush.msrb.mxu2 %v5034_v9 }
 0xc2e   :  { %3518 = vmatpush.msra.mxu3 %v5155_v23 }
 0xc2f   :  { %3364 = vmatpush.msrb.mxu2 %v5051_v16 }
 0xc30   :  { %3154 = vmatmul.f32.vlgmr.msra.gmra.mxu2 %v3018_v51  ;;  %3524 = vmatpush.msra.mxu3 %v5161_v49  ;;  %v2995_v51 = vld [vmem:[#allocation3 + $0x4] sm:$0x3] }
 0xc31   :  { %3473 = vmatpush.msra.mxu2 %v5036_v13 }
 0xc33   :  { %3475 = vmatpush.msra.mxu2 %v5045_v15 }
 0xc35   :  { %3477 = vmatpush.msra.mxu2 %v5075_v25 }
 0xc37   :  { %3479 = vmatpush.msra.mxu2 %v5091_v32 }
 0xc61   :  { %v2876_v54 = vpop.f32.mrf.mxu1 }
 0xc69   :  { %v2835_v56 = vpop.f32.mrf.mxu0  ;;  %v2906_v59 = vpop.f32.mrf.mxu2 }
 0xc6a   :  { %v2877_v57 = vadd.f32 %v2876_v54, %v2835_v56  ;;  %v2991_v2 = vpop.f32.mrf.mxu1 }
 0xc6b   :  { %v2933_v58 = vpop.f32.mrf.mxu3 }
 0xc6c   :  { %v2907_v28 = vadd.f32 %v2906_v59, %v2877_v57 }
 0xc6e   :  { %v2934_v60 = vadd.f32 %v2933_v58, %v2907_v28 }
 0xc71   :  { %v2966_v63 = vpop.f32.mrf.mxu0 }
 0xc72   :  { %v2967_v0 = vadd.f32 %v2966_v63, %v2934_v60 }
 0xc74   :  { %v2992_v8 = vadd.f32 %v2991_v2, %v2967_v0 }
 0xc76   :  { %v2994_v18 = vadd.f32 %v2992_v8, %v2806_v11 }
 0xc78   :  { %4760 = vtanh.f32 %v2994_v18  ;;  %v4670_v53 = vmul.f32 -1.442695, %v2994_v18 }
 0xc7e   :  { %v4761_v21 = vpop.eup %4760 }
 0xc7f   :  { %3206 = vrot.lane.b32.xlu1 %v4761_v21, %s4809_s2 }
 0xc9f   :  { %v3095_v39 = vpop.f32.mrf.mxu0 }
 0xca1   :  { %v3122_v48 = vpop.f32.mrf.mxu1 }
 0xca3   :  { %v3065_v12 = vpop.f32.mrf.mxu3 }
 0xcab   :  { %v3024_v22 = vpop.f32.mrf.mxu2  ;;  %v3180_v35 = vpop.f32.mrf.mxu3 }
 0xcac   :  { %v3066_v29 = vadd.f32 %v3065_v12, %v3024_v22 }
 0xcae   :  { %v3096_v41 = vadd.f32 %v3095_v39, %v3066_v29 }
 0xcb0   :  { %v3123_v31 = vadd.f32 %v3122_v48, %v3096_v41 }
 0xcb3   :  { %v3155_v37 = vpop.f32.mrf.mxu2 }
 0xcb4   :  { %v3156_v17 = vadd.f32 %v3155_v37, %v3123_v31 }
 0xcb6   :  { %v3181_v44 = vadd.f32 %v3180_v35, %v3156_v17 }
 0xcb8   :  { %v3183_v50 = vadd.f32 %v3181_v44, %v2995_v51 }
 0xcba   :  { %4762 = vtanh.f32 %v3183_v50  ;;  %v4671_v0 = vmul.f32 -1.442695, %v3183_v50 }
 0xcbb   :  { %4764 = vpow2.f32 %v4670_v53 }
 0xcc0   :  { %v4763_v52 = vpop.eup %4762 }
 0xcc1   :  { %3243 = vrot.lane.b32.xlu2 %v4763_v52, %s4809_s2  ;;  %v4765_v55 = vpop.eup %4764 }
 0xcc2   :  { %v3187_v54 = vadd.f32 1.0, %v4765_v55 }
 0xcc4   :  { %4766 = vrcp.f32 %v3187_v54  ;;  %v3199_v60 = vand.u32 2147483648, %v3187_v54  ;;  %vm3193_vm15 = vweird.f32 %v3187_v54  ;;  %v3197_v63 = vand.u32 2147483647, %v3187_v54 }
 0xcc5   :  { %4768 = vpow2.f32 %v4671_v0 }
 0xcc6   :  { %v3200_v8 = vor.u32 1.1754944e-38, %v3199_v60  ;;  %vm3198_vm2 = vcmp.eq.f32.partialorder %v3197_v63, 8.507059e+37 }
 0xcca   :  { %v4767_v56 = vpop.eup %4766 }
 0xccb   :  { %v3189_v57 = vmul.f32 %v4767_v56, %v3187_v54  ;;  %vm3194_vm14 = vweird.f32 %v4767_v56  ;;  %v4769_v12 = vpop.eup %4768 }
 0xccc   :  { %vm3195_vm1 = vmor %vm3193_vm15, %vm3194_vm14  ;;  %v3224_v22 = vadd.f32 1.0, %v4769_v12 }
 0xccd   :  { %v3190_v59 = vsub.f32 1.0, %v3189_v57 }
 0xcce   :  { %4770 = vrcp.f32 %v3224_v22  ;;  %v3236_v37 = vand.u32 2147483648, %v3224_v22  ;;  %vm3230_vm4 = vweird.f32 %v3224_v22  ;;  %v3234_v17 = vand.u32 2147483647, %v3224_v22 }
 0xccf   :  { %v3191_v28 = vmul.f32 %v4767_v56, %v3190_v59 }
 0xcd0   :  { %v3237_v44 = vor.u32 1.1754944e-38, %v3236_v37  ;;  %vm3235_vm6 = vcmp.eq.f32.partialorder %v3234_v17, 8.507059e+37 }
 0xcd1   :  { %v3192_v58 = vadd.f32 %v4767_v56, %v3191_v28 }
 0xcd3   :  { %v3196_v2 = vsel %vm3195_vm1, %v4767_v56, %v3192_v58 }
 0xcd4   :  { %v3201_v18 = vsel %vm3198_vm2, %v3200_v8, %v3196_v2  ;;  %v4771_v29 = vpop.eup %4770 }
 0xcd5   :  { %v3226_v39 = vmul.f32 %v4771_v29, %v3224_v22  ;;  %vm3231_vm3 = vweird.f32 %v4771_v29  ;;  %v3204_v53 = vmul.f32 %v3201_v18, %v5500_v62 }
 0xcd6   :  { %vm3232_vm5 = vmor %vm3230_vm4, %vm3231_vm3 }
 0xcd7   :  { %v3227_v41 = vsub.f32 1.0, %v3226_v39 }
 0xcd9   :  { %v3228_v48 = vmul.f32 %v4771_v29, %v3227_v41 }
 0xcdb   :  { %v3229_v31 = vadd.f32 %v4771_v29, %v3228_v48 }
 0xcdd   :  { %v3233_v35 = vsel %vm3232_vm5, %v4771_v29, %v3229_v31 }
 0xcde   :  { %v3238_v50 = vsel %vm3235_vm6, %v3237_v44, %v3233_v35 }
 0xcdf   :  { %v3241_v57 = vmul.f32 %v3238_v50, %v5505_v4 }
 0xcf1   :  { %v3207_v11 = vpop.permute.xlu1 %3206 }
 0xcf2   :  { %v3209_v21 = vmul.f32 %v3207_v11, %v3201_v18 }
 0xcf4   :  { %3211 = vrot.lane.b32.xlu0 %v3209_v21, %s4810_s17 }
 0xd1b   :  { %v3244_v51 = vpop.permute.xlu2 %3243 }
 0xd1c   :  { %v3246_v52 = vmul.f32 %v3244_v51, %v3238_v50 }
 0xd1e   :  { %3248 = vrot.lane.b32.xlu1 %v3246_v52, %s4810_s17  ;;  %v3457_v52 = vld [vmem:[#allocation3 + $0x2] sm:$0x3] }
 0xd66   :  { %v3212_v55 = vpop.permute.xlu0 %3211 }
 0xd67   :  { %v5568_v54 = vadd.f32 %v3212_v55, %v3204_v53 }
 0xd69   :  { %4772 = vtanh.f32 %v5568_v54 }
 0xd6f   :  { %v4773_v56 = vpop.eup %4772 }
 0xd70   :  { %3217 = vrot.lane.b32.xlu2 %v4773_v56, %s4809_s2 }
 0xd90   :  { %v3249_v59 = vpop.permute.xlu1 %3248 }
 0xd91   :  { %v5573_v28 = vadd.f32 %v3249_v59, %v3241_v57 }
 0xd93   :  { %4774 = vtanh.f32 %v5573_v28 }
 0xd99   :  { %v4775_v58 = vpop.eup %4774 }
 0xd9a   :  { %3254 = vrot.lane.b32.xlu0 %v4775_v58, %s4809_s2 }
 0xdca   :  { %v3218_v60 = vpop.permute.xlu2 %3217 }
 0xdcb   :  { %v3220_v62 = vmul.f32 %v3218_v60, %v3201_v18 }
 0xdcd   :  { %3259 = vrot.lane.b32.xlu1 %v3220_v62, %s4810_s17 }
 0xe0c   :  { %v3255_v63 = vpop.permute.xlu0 %3254 }
 0xe0d   :  { %v3257_v0 = vmul.f32 %v3255_v63, %v3238_v50 }
 0xe0f   :  { %3264 = vrot.lane.b32.xlu2 %v3257_v0, %s4810_s17 }
 0xe3f   :  { %v3260_v2 = vpop.permute.xlu1 %3259 }
 0xe40   :  { %3262 = vst.msk [vmem:[#allocation4 + $0xa] sm:$0x3] %vm951_vm9, %v3260_v2  ;;  %v3269_v4 = vsel %vm45_vm0, %v3260_v2, 0 }
 0xe41   :  { %v3291_v8 = vand.u32 4294901760, %v3269_v4 }
 0xe43   :  { %v3292_v11 = vsub.f32 %v3269_v4, %v3291_v8  ;;  %3337 = vmatmul.f32.vlgmr.msrb.gmra.mxu1 %v3291_v8 }
 0xe44   :  { %3573 = vmatpush.msrb.mxu1 %v5036_v13 }
 0xe45   :  { %v3293_v21 = vand.u32 4294901760, %v3292_v11  ;;  %3367 = vmatmul.f32.vlgmr.msrb.gmra.mxu2 %v3292_v11 }
 0xe46   :  { %3575 = vmatpush.msrb.mxu1 %v5045_v15  ;;  %3602 = vmatpush.msrb.mxu2 %v5089_v30 }
 0xe47   :  { %v3294_v18 = vsub.f32 %v3292_v11, %v3293_v21  ;;  %3394 = vmatmul.f32.vlgmr.msrb.gmra.mxu3 %v3293_v21 }
 0xe48   :  { %3577 = vmatpush.msrb.mxu1 %v5075_v25  ;;  %3633 = vmatpush.msrb.mxu3 %v5036_v13 }
 0xe49   :  { %v3295_v12 = vand.u32 4294901760, %v3294_v18  ;;  %3606 = vmatpush.msrb.mxu2 %v5100_v34 }
 0xe4a   :  { %3579 = vmatpush.msrb.mxu1 %v5091_v32  ;;  %3635 = vmatpush.msrb.mxu3 %v5045_v15 }
 0xe4b   :  { %3296 = vmatmul.f32.vlgmr.msrb.gmra.mxu0 %v3295_v12  ;;  %3452 = vmatmul.f32.vlgmr.msra.gmra.mxu1 %v3291_v8 }
 0xe4c   :  { %3544 = vmatpush.msrb.mxu0 %v5062_v20  ;;  %3637 = vmatpush.msrb.mxu3 %v5075_v25 }
 0xe4d   :  { %3610 = vmatpush.msrb.mxu2 %v5125_v42  ;;  %3779 = vmatpush.msra.mxu1 %v5079_v26 }
 0xe4e   :  { %3547 = vmatpush.msrb.mxu0 %v5073_v24  ;;  %3639 = vmatpush.msrb.mxu3 %v5091_v32 }
 0xe4f   :  { %3614 = vmatpush.msrb.mxu2 %v5136_v46  ;;  %3785 = vmatpush.msra.mxu1 %v5095_v33 }
 0xe50   :  { %3550 = vmatpush.msrb.mxu0 %v5103_v36 }
 0xe51   :  { %3791 = vmatpush.msra.mxu1 %v5111_v38 }
 0xe52   :  { %3553 = vmatpush.msrb.mxu0 %v5116_v40 }
 0xe53   :  { %3427 = vmatmul.f32.vlgmr.msra.gmra.mxu0 %v3291_v8  ;;  %3797 = vmatpush.msra.mxu1 %v5129_v43 }
 0xe54   :  { %3746 = vmatpush.msra.mxu0 %v4984_v61 }
 0xe56   :  { %3748 = vmatpush.msra.mxu0 %v4992_v1 }
 0xe58   :  { %3750 = vmatpush.msra.mxu0 %v5006_v6 }
 0xe5a   :  { %3752 = vmatpush.msra.mxu0 %v5026_v10 }
 0xe69   :  { %v3265_v26 = vpop.permute.xlu2 %3264 }
 0xe6a   :  { %3267 = vst.msk [vmem:[#allocation5 + $0x4] sm:$0x3] %vm951_vm9, %v3265_v26  ;;  %v3458_v33 = vsel %vm45_vm0, %v3265_v26, 0 }
 0xe6b   :  { %v3480_v22 = vand.u32 4294901760, %v3458_v33 }
 0xe6d   :  { %v3481_v38 = vsub.f32 %v3458_v33, %v3480_v22  ;;  %3526 = vmatmul.f32.vlgmr.msra.gmra.mxu3 %v3480_v22 }
 0xe6e   :  { %3846 = vmatpush.msra.mxu3 %v4984_v61 }
 0xe6f   :  { %v3482_v29 = vand.u32 4294901760, %v3481_v38  ;;  %3556 = vmatmul.f32.vlgmr.msrb.gmra.mxu0 %v3481_v38 }
 0xe70   :  { %3848 = vmatpush.msra.mxu3 %v4992_v1  ;;  %3875 = vmatpush.msrb.mxu0 %v5024_v5 }
 0xe71   :  { %v3483_v43 = vsub.f32 %v3481_v38, %v3482_v29  ;;  %3583 = vmatmul.f32.vlgmr.msrb.gmra.mxu1 %v3482_v29 }
 0xe72   :  { %3850 = vmatpush.msra.mxu3 %v5006_v6  ;;  %3906 = vmatpush.msrb.mxu1 %v4984_v61 }
 0xe73   :  { %v3484_v39 = vand.u32 4294901760, %v3483_v43  ;;  %3879 = vmatpush.msrb.mxu0 %v5041_v14 }
 0xe74   :  { %3852 = vmatpush.msra.mxu3 %v5026_v10  ;;  %3908 = vmatpush.msrb.mxu1 %v4992_v1 }
 0xe75   :  { %3485 = vmatmul.f32.vlgmr.msra.gmra.mxu2 %v3484_v39  ;;  %3641 = vmatmul.f32.vlgmr.msrb.gmra.mxu3 %v3480_v22 }
 0xe76   :  { %3817 = vmatpush.msra.mxu2 %v5001_v3  ;;  %3910 = vmatpush.msrb.mxu1 %v5006_v6 }
 0xe77   :  { %3883 = vmatpush.msrb.mxu0 %v5059_v19  ;;  %3968 = vmatpush.msrb.mxu3 %v5133_v45 }
 0xe78   :  { %3820 = vmatpush.msra.mxu2 %v5013_v7  ;;  %3912 = vmatpush.msrb.mxu1 %v5026_v10 }
 0xe79   :  { %3887 = vmatpush.msrb.mxu0 %v5082_v27  ;;  %3974 = vmatpush.msrb.mxu3 %v5142_v47  ;;  %v3268_v27 = vld [vmem:[#allocation2 + $0xc] sm:$0x3] }
 0xe7a   :  { %3823 = vmatpush.msra.mxu2 %v5034_v9 }
 0xe7b   :  { %3980 = vmatpush.msrb.mxu3 %v5155_v23 }
 0xe7c   :  { %3826 = vmatpush.msra.mxu2 %v5051_v16 }
 0xe7d   :  { %3616 = vmatmul.f32.vlgmr.msrb.gmra.mxu2 %v3480_v22  ;;  %3986 = vmatpush.msrb.mxu3 %v5161_v49 }
 0xe7e   :  { %3935 = vmatpush.msrb.mxu2 %v5036_v13 }
 0xe80   :  { %3937 = vmatpush.msrb.mxu2 %v5045_v15 }
 0xe82   :  { %3939 = vmatpush.msrb.mxu2 %v5075_v25 }
 0xe84   :  { %3941 = vmatpush.msrb.mxu2 %v5091_v32 }
 0xec0   :  { %v3338_v61 = vpop.f32.mrf.mxu1 }
 0xec8   :  { %v3297_v1 = vpop.f32.mrf.mxu0  ;;  %v3368_v6 = vpop.f32.mrf.mxu2 }
 0xec9   :  { %v3339_v3 = vadd.f32 %v3338_v61, %v3297_v1  ;;  %v3453_v16 = vpop.f32.mrf.mxu1 }
 0xeca   :  { %v3395_v5 = vpop.f32.mrf.mxu3 }
 0xecb   :  { %v3369_v7 = vadd.f32 %v3368_v6, %v3339_v3 }
 0xecd   :  { %v3396_v10 = vadd.f32 %v3395_v5, %v3369_v7 }
 0xed0   :  { %v3428_v9 = vpop.f32.mrf.mxu0 }
 0xed1   :  { %v3429_v14 = vadd.f32 %v3428_v9, %v3396_v10 }
 0xed3   :  { %v3454_v19 = vadd.f32 %v3453_v16, %v3429_v14 }
 0xed5   :  { %v3456_v45 = vadd.f32 %v3454_v19, %v3268_v27 }
 0xed7   :  { %4776 = vtanh.f32 %v3456_v45  ;;  %v4672_v56 = vmul.f32 -1.442695, %v3456_v45 }
 0xedd   :  { %v4777_v47 = vpop.eup %4776 }
 0xede   :  { %3668 = vrot.lane.b32.xlu0 %v4777_v47, %s4809_s2 }
 0xeec   :  { %v3557_v48 = vpop.f32.mrf.mxu0 }
 0xeee   :  { %v3584_v37 = vpop.f32.mrf.mxu1 }
 0xef0   :  { %v3527_v23 = vpop.f32.mrf.mxu3 }
 0xef8   :  { %v3486_v49 = vpop.f32.mrf.mxu2  ;;  %v3642_v51 = vpop.f32.mrf.mxu3 }
 0xef9   :  { %v3528_v41 = vadd.f32 %v3527_v23, %v3486_v49 }
 0xefb   :  { %v3558_v31 = vadd.f32 %v3557_v48, %v3528_v41 }
 0xefd   :  { %v3585_v17 = vadd.f32 %v3584_v37, %v3558_v31 }
 0xf00   :  { %v3617_v35 = vpop.f32.mrf.mxu2 }
 0xf01   :  { %v3618_v44 = vadd.f32 %v3617_v35, %v3585_v17 }
 0xf03   :  { %v3643_v50 = vadd.f32 %v3642_v51, %v3618_v44 }
 0xf05   :  { %v3645_v53 = vadd.f32 %v3643_v50, %v3457_v52 }
 0xf07   :  { %4778 = vtanh.f32 %v3645_v53  ;;  %v4673_v26 = vmul.f32 -1.442695, %v3645_v53 }
 0xf08   :  { %4780 = vpow2.f32 %v4672_v56 }
 0xf0d   :  { %v4779_v55 = vpop.eup %4778 }
 0xf0e   :  { %3705 = vrot.lane.b32.xlu1 %v4779_v55, %s4809_s2  ;;  %v4781_v57 = vpop.eup %4780 }
 0xf0f   :  { %v3649_v59 = vadd.f32 1.0, %v4781_v57 }
 0xf11   :  { %4782 = vrcp.f32 %v3649_v59  ;;  %v3661_v2 = vand.u32 2147483648, %v3649_v59  ;;  %vm3655_vm8 = vweird.f32 %v3649_v59  ;;  %v3659_v4 = vand.u32 2147483647, %v3649_v59 }
 0xf12   :  { %4784 = vpow2.f32 %v4673_v26 }
 0xf13   :  { %v3662_v11 = vor.u32 1.1754944e-38, %v3661_v2  ;;  %vm3660_vm11 = vcmp.eq.f32.partialorder %v3659_v4, 8.507059e+37 }
 0xf17   :  { %v4783_v58 = vpop.eup %4782 }
 0xf18   :  { %v3651_v60 = vmul.f32 %v4783_v58, %v3649_v59  ;;  %vm3656_vm7 = vweird.f32 %v4783_v58  ;;  %v4785_v33 = vpop.eup %4784 }
 0xf19   :  { %vm3657_vm10 = vmor %vm3655_vm8, %vm3656_vm7  ;;  %v3686_v22 = vadd.f32 1.0, %v4785_v33 }
 0xf1a   :  { %v3652_v62 = vsub.f32 1.0, %v3651_v60 }
 0xf1b   :  { %4786 = vrcp.f32 %v3686_v22  ;;  %v3698_v1 = vand.u32 2147483648, %v3686_v22  ;;  %vm3692_vm13 = vweird.f32 %v3686_v22  ;;  %v3696_v3 = vand.u32 2147483647, %v3686_v22 }
 0xf1c   :  { %v3653_v63 = vmul.f32 %v4783_v58, %v3652_v62 }
 0xf1d   :  { %v3699_v7 = vor.u32 1.1754944e-38, %v3698_v1  ;;  %vm3697_vm15 = vcmp.eq.f32.partialorder %v3696_v3, 8.507059e+37 }
 0xf1e   :  { %v3654_v0 = vadd.f32 %v4783_v58, %v3653_v63 }
 0xf20   :  { %v3658_v8 = vsel %vm3657_vm10, %v4783_v58, %v3654_v0  ;;  %v3730_v58 = vld [vmem:[#allocation2 + $0xe] sm:$0x3] }
 0xf21   :  { %v3663_v18 = vsel %vm3660_vm11, %v3662_v11, %v3658_v8  ;;  %v4787_v38 = vpop.eup %4786 }
 0xf22   :  { %v3688_v29 = vmul.f32 %v4787_v38, %v3686_v22  ;;  %vm3693_vm12 = vweird.f32 %v4787_v38  ;;  %v3666_v14 = vmul.f32 %v3663_v18, %v5568_v54  ;;  %v3919_v22 = vld [vmem:[#allocation3] sm:$0x3] }
 0xf23   :  { %vm3694_vm14 = vmor %vm3692_vm13, %vm3693_vm12 }
 0xf24   :  { %v3689_v43 = vsub.f32 1.0, %v3688_v29 }
 0xf26   :  { %v3690_v39 = vmul.f32 %v4787_v38, %v3689_v43 }
 0xf28   :  { %v3691_v61 = vadd.f32 %v4787_v38, %v3690_v39 }
 0xf2a   :  { %v3695_v6 = vsel %vm3694_vm14, %v4787_v38, %v3691_v61 }
 0xf2b   :  { %v3700_v10 = vsel %vm3697_vm15, %v3699_v7, %v3695_v6 }
 0xf2c   :  { %v3703_v45 = vmul.f32 %v3700_v10, %v5573_v28 }
 0xf50   :  { %v3669_v21 = vpop.permute.xlu0 %3668 }
 0xf51   :  { %v3671_v12 = vmul.f32 %v3669_v21, %v3663_v18 }
 0xf53   :  { %3673 = vrot.lane.b32.xlu2 %v3671_v12, %s4810_s17 }
 0xf80   :  { %v3706_v5 = vpop.permute.xlu1 %3705 }
 0xf81   :  { %v3708_v9 = vmul.f32 %v3706_v5, %v3700_v10 }
 0xf83   :  { %3710 = vrot.lane.b32.xlu0 %v3708_v9, %s4810_s17 }
 0xfad   :  { %v3674_v16 = vpop.permute.xlu2 %3673 }
 0xfae   :  { %v5636_v19 = vadd.f32 %v3674_v16, %v3666_v14 }
 0xfb0   :  { %4788 = vtanh.f32 %v5636_v19 }
 0xfb6   :  { %v4789_v27 = vpop.eup %4788 }
 0xfb7   :  { %3679 = vrot.lane.b32.xlu1 %v4789_v27, %s4809_s2 }
 0xff5   :  { %v3711_v47 = vpop.permute.xlu0 %3710 }
 0xff6   :  { %v5641_v23 = vadd.f32 %v3711_v47, %v3703_v45 }
 0xff8   :  { %4790 = vtanh.f32 %v5641_v23 }
 0xffe   :  { %v4791_v49 = vpop.eup %4790 }
 0xfff   :  { %3716 = vrot.lane.b32.xlu2 %v4791_v49, %s4809_s2 }
0x1029   :  { %v3680_v41 = vpop.permute.xlu1 %3679 }
0x102a   :  { %v3682_v54 = vmul.f32 %v3680_v41, %v3663_v18 }
0x102c   :  { %3721 = vrot.lane.b32.xlu0 %v3682_v54, %s4810_s17 }
0x1059   :  { %v3717_v48 = vpop.permute.xlu2 %3716 }
0x105a   :  { %v3719_v31 = vmul.f32 %v3717_v48, %v3700_v10 }
0x105c   :  { %3726 = vrot.lane.b32.xlu1 %v3719_v31, %s4810_s17 }
0x109e   :  { %v3722_v37 = vpop.permute.xlu0 %3721 }
0x109f   :  { %3724 = vst.msk [vmem:[#allocation4 + $0xc] sm:$0x3] %vm951_vm9, %v3722_v37  ;;  %v3731_v28 = vsel %vm45_vm0, %v3722_v37, 0 }
0x10a0   :  { %v3753_v17 = vand.u32 4294901760, %v3731_v28 }
0x10a2   :  { %v3754_v35 = vsub.f32 %v3731_v28, %v3753_v17  ;;  %3799 = vmatmul.f32.vlgmr.msra.gmra.mxu1 %v3753_v17 }
0x10a3   :  { %4035 = vmatpush.msra.mxu1 %v5036_v13 }
0x10a4   :  { %v3755_v44 = vand.u32 4294901760, %v3754_v35  ;;  %3829 = vmatmul.f32.vlgmr.msra.gmra.mxu2 %v3754_v35 }
0x10a5   :  { %4037 = vmatpush.msra.mxu1 %v5045_v15  ;;  %4064 = vmatpush.msra.mxu2 %v5089_v30 }
0x10a6   :  { %v3756_v51 = vsub.f32 %v3754_v35, %v3755_v44  ;;  %3856 = vmatmul.f32.vlgmr.msra.gmra.mxu3 %v3755_v44 }
0x10a7   :  { %4039 = vmatpush.msra.mxu1 %v5075_v25  ;;  %4095 = vmatpush.msra.mxu3 %v5036_v13 }
0x10a8   :  { %v3757_v50 = vand.u32 4294901760, %v3756_v51  ;;  %4068 = vmatpush.msra.mxu2 %v5100_v34 }
0x10a9   :  { %4041 = vmatpush.msra.mxu1 %v5091_v32  ;;  %4097 = vmatpush.msra.mxu3 %v5045_v15 }
0x10aa   :  { %3758 = vmatmul.f32.vlgmr.msra.gmra.mxu0 %v3757_v50  ;;  %3914 = vmatmul.f32.vlgmr.msrb.gmra.mxu1 %v3753_v17 }
0x10ab   :  { %4006 = vmatpush.msra.mxu0 %v5062_v20  ;;  %4099 = vmatpush.msra.mxu3 %v5075_v25 }
0x10ac   :  { %4072 = vmatpush.msra.mxu2 %v5125_v42 }
0x10ad   :  { %4009 = vmatpush.msra.mxu0 %v5073_v24  ;;  %4101 = vmatpush.msra.mxu3 %v5091_v32 }
0x10ae   :  { %4076 = vmatpush.msra.mxu2 %v5136_v46 }
0x10af   :  { %4012 = vmatpush.msra.mxu0 %v5103_v36 }
0x10b1   :  { %4015 = vmatpush.msra.mxu0 %v5116_v40 }
0x10b2   :  { %3889 = vmatmul.f32.vlgmr.msrb.gmra.mxu0 %v3753_v17 }
0x10ce   :  { %v3727_v13 = vpop.permute.xlu1 %3726 }
0x10cf   :  { %3729 = vst.msk [vmem:[#allocation5 + $0x2] sm:$0x3] %vm951_vm9, %v3727_v13  ;;  %v3920_v15 = vsel %vm45_vm0, %v3727_v13, 0 }
0x10d0   :  { %v3942_v20 = vand.u32 4294901760, %v3920_v15 }
0x10d2   :  { %v3943_v25 = vsub.f32 %v3920_v15, %v3942_v20  ;;  %3988 = vmatmul.f32.vlgmr.msrb.gmra.mxu3 %v3942_v20 }
0x10d4   :  { %v3944_v30 = vand.u32 4294901760, %v3943_v25  ;;  %4018 = vmatmul.f32.vlgmr.msra.gmra.mxu0 %v3943_v25 }
0x10d6   :  { %v3945_v24 = vsub.f32 %v3943_v25, %v3944_v30  ;;  %4045 = vmatmul.f32.vlgmr.msra.gmra.mxu1 %v3944_v30 }
0x10d8   :  { %v3946_v32 = vand.u32 4294901760, %v3945_v24 }
0x10da   :  { %3947 = vmatmul.f32.vlgmr.msrb.gmra.mxu2 %v3946_v32  ;;  %4103 = vmatmul.f32.vlgmr.msra.gmra.mxu3 %v3942_v20 }
0x10e2   :  { %4078 = vmatmul.f32.vlgmr.msra.gmra.mxu2 %v3942_v20 }
0x111f   :  { %v3800_v34 = vpop.f32.mrf.mxu1 }
0x1127   :  { %v3759_v36 = vpop.f32.mrf.mxu0  ;;  %v3830_v42 = vpop.f32.mrf.mxu2 }
0x1128   :  { %v3801_v40 = vadd.f32 %v3800_v34, %v3759_v36  ;;  %v3915_v57 = vpop.f32.mrf.mxu1 }
0x1129   :  { %v3857_v52 = vpop.f32.mrf.mxu3 }
0x112a   :  { %v3831_v46 = vadd.f32 %v3830_v42, %v3801_v40 }
0x112c   :  { %v3858_v53 = vadd.f32 %v3857_v52, %v3831_v46 }
0x112f   :  { %v3890_v55 = vpop.f32.mrf.mxu0 }
0x1130   :  { %v3891_v56 = vadd.f32 %v3890_v55, %v3858_v53  ;;  %v4203_v55 = vld [vmem:[%s5728_s6 + $0x18] sm:$0xff] }
0x1132   :  { %v3916_v59 = vadd.f32 %v3915_v57, %v3891_v56  ;;  %v4222_v56 = vand.u32 4294901760, %v4203_v55 }
0x1134   :  { %v3918_v60 = vadd.f32 %v3916_v59, %v3730_v58  ;;  %v4260_v57 = vsub.f32 %v4203_v55, %v4222_v56  ;;  %4340 = vmatpush.msrb.mxu3 %v4222_v56  ;;  %4223 = vmatpush.msrb.mxu0 %v4222_v56  ;;  %v4201_v58 = vld [vmem:[%s5728_s6 + $0x8] sm:$0xff] }
0x1136   :  { %4792 = vtanh.f32 %v3918_v60  ;;  %v4674_v43 = vmul.f32 -1.442695, %v3918_v60  ;;  %v4261_v60 = vand.u32 4294901760, %v4260_v57  ;;  %4306 = vmatpush.msrb.mxu2 %v4260_v57 }
0x113c   :  { %v4793_v62 = vpop.eup %4792 }
0x113d   :  { %4130 = vrot.lane.b32.xlu0 %v4793_v62, %s4809_s2 }
0x1151   :  { %v4019_v4 = vpop.f32.mrf.mxu0 }
0x1153   :  { %v4046_v11 = vpop.f32.mrf.mxu1 }
0x1155   :  { %v3989_v63 = vpop.f32.mrf.mxu3 }
0x115d   :  { %v3948_v0 = vpop.f32.mrf.mxu2  ;;  %v4104_v26 = vpop.f32.mrf.mxu3 }
0x115e   :  { %v3990_v2 = vadd.f32 %v3989_v63, %v3948_v0  ;;  %v4226_v63 = vand.u32 4294901760, %v4201_v58  ;;  %v4200_v0 = vld [vmem:[%s5728_s6] sm:$0xff] }
0x1160   :  { %v4020_v8 = vadd.f32 %v4019_v4, %v3990_v2  ;;  %v4262_v4 = vsub.f32 %v4260_v57, %v4261_v60 }
0x1162   :  { %v4047_v21 = vadd.f32 %v4046_v11, %v4020_v8  ;;  %v4272_v11 = vsub.f32 %v4201_v58, %v4226_v63 }
0x1165   :  { %v4079_v18 = vpop.f32.mrf.mxu2 }
0x1166   :  { %v4080_v12 = vadd.f32 %v4079_v18, %v4047_v21  ;;  %v4228_v21 = vand.u32 4294901760, %v4200_v0  ;;  %v4263_v18 = vand.u32 4294901760, %v4262_v4 }
0x1168   :  { %v4105_v33 = vadd.f32 %v4104_v26, %v4080_v12  ;;  %v4273_v26 = vand.u32 4294901760, %v4272_v11  ;;  %4264 = vmatpush.msrb.mxu1 %v4263_v18 }
0x116a   :  { %v4107_v38 = vadd.f32 %v4105_v33, %v3919_v22  ;;  %v4278_v33 = vsub.f32 %v4200_v0, %v4228_v21 }
0x116c   :  { %4794 = vtanh.f32 %v4107_v38  ;;  %v4675_v6 = vmul.f32 -1.442695, %v4107_v38  ;;  %v4274_v38 = vsub.f32 %v4272_v11, %v4273_v26 }
0x116d   :  { %4796 = vpow2.f32 %v4674_v43 }
0x116e   :  { %v4275_v43 = vand.u32 4294901760, %v4274_v38 }
0x1172   :  { %v4795_v29 = vpop.eup %4794 }
0x1173   :  { %4167 = vrot.lane.b32.xlu2 %v4795_v29, %s4809_s2  ;;  %v4797_v39 = vpop.eup %4796  ;;  %v4279_v29 = vand.u32 4294901760, %v4278_v33 }
0x1174   :  { %v4111_v61 = vadd.f32 1.0, %v4797_v39 }
0x1175   :  { %v4280_v39 = vsub.f32 %v4278_v33, %v4279_v29 }
0x1176   :  { %4798 = vrcp.f32 %v4111_v61  ;;  %v4123_v9 = vand.u32 2147483648, %v4111_v61  ;;  %vm4117_vm2 = vweird.f32 %v4111_v61  ;;  %v4121_v16 = vand.u32 2147483647, %v4111_v61 }
0x1177   :  { %4800 = vpow2.f32 %v4675_v6  ;;  %v4196_v6 = vld [vmem:[%s5729_s5 + $0x10] sm:$0xff] }
0x1178   :  { %v4124_v47 = vor.u32 1.1754944e-38, %v4123_v9  ;;  %vm4122_vm4 = vcmp.eq.f32.partialorder %v4121_v16, 8.507059e+37 }
0x117c   :  { %v4799_v1 = vpop.eup %4798 }
0x117d   :  { %v4113_v3 = vmul.f32 %v4799_v1, %v4111_v61  ;;  %vm4118_vm1 = vweird.f32 %v4799_v1  ;;  %v4801_v14 = vpop.eup %4800  ;;  %v4281_v61 = vand.u32 4294901760, %v4280_v39 }
0x117e   :  { %vm4119_vm3 = vmor %vm4117_vm2, %vm4118_vm1  ;;  %v4148_v45 = vadd.f32 1.0, %v4801_v14 }
0x117f   :  { %v4114_v7 = vsub.f32 1.0, %v4113_v3 }
0x1180   :  { %4802 = vrcp.f32 %v4148_v45  ;;  %v4160_v35 = vand.u32 2147483648, %v4148_v45  ;;  %vm4154_vm6 = vweird.f32 %v4148_v45  ;;  %v4158_v44 = vand.u32 2147483647, %v4148_v45 }
0x1181   :  { %v4115_v5 = vmul.f32 %v4799_v1, %v4114_v7 }
0x1182   :  { %v4161_v50 = vor.u32 1.1754944e-38, %v4160_v35  ;;  %vm4159_vm8 = vcmp.eq.f32.partialorder %v4158_v44, 8.507059e+37 }
0x1183   :  { %v4116_v10 = vadd.f32 %v4799_v1, %v4115_v5  ;;  %v4446_v5 = vand.u32 4294901760, %v4196_v6 }
0x1185   :  { %v4120_v27 = vsel %vm4119_vm3, %v4799_v1, %v4116_v10  ;;  %v4197_v1 = vld [vmem:[%s5729_s5 + $0x18] sm:$0xff]  ;;  %v4195_v10 = vld [vmem:[%s5729_s5 + $0x8] sm:$0xff]  ;;  %v4488_v14 = vsub.f32 %v4196_v6, %v4446_v5 }
0x1186   :  { %v4125_v41 = vsel %vm4122_vm4, %v4124_v47, %v4120_v27  ;;  %v4803_v48 = vpop.eup %4802  ;;  %v4444_v3 = vand.u32 4294901760, %v4197_v1  ;;  %v4448_v16 = vand.u32 4294901760, %v4195_v10  ;;  %v4194_v27 = vld [vmem:[%s5729_s5] sm:$0xff] }
0x1187   :  { %v4150_v31 = vmul.f32 %v4803_v48, %v4148_v45  ;;  %vm4155_vm5 = vweird.f32 %v4803_v48  ;;  %v4128_v25 = vmul.f32 %v4125_v41, %v5636_v19  ;;  %v4489_v47 = vand.u32 4294901760, %v4488_v14 }
0x1188   :  { %vm4156_vm7 = vmor %vm4154_vm6, %vm4155_vm5  ;;  %v5696_v7 = vsub.f32 %v4197_v1, %v4444_v3 }
0x1189   :  { %v4151_v37 = vsub.f32 1.0, %v4150_v31 }
0x118a   :  { %v4483_v9 = vand.u32 4294901760, %v5696_v7 }
0x118b   :  { %v4152_v28 = vmul.f32 %v4803_v48, %v4151_v37 }
0x118c   :  { %v4484_v45 = vsub.f32 %v5696_v7, %v4483_v9 }
0x118d   :  { %v4153_v17 = vadd.f32 %v4803_v48, %v4152_v28 }
0x118f   :  { %v4157_v51 = vsel %vm4156_vm7, %v4803_v48, %v4153_v17  ;;  %v4490_v48 = vsub.f32 %v4488_v14, %v4489_v47 }
0x1190   :  { %v4162_v15 = vsel %vm4159_vm8, %v4161_v50, %v4157_v51 }
0x1191   :  { %v4165_v34 = vmul.f32 %v4162_v15, %v5641_v23  ;;  %v4202_v23 = vld [vmem:[%s5728_s6 + $0x10] sm:$0xff]  ;;  %v4491_v28 = vand.u32 4294901760, %v4490_v48 }
0x1192   :  { %v4224_v59 = vand.u32 4294901760, %v4202_v23 }
0x1194   :  { %v4266_v62 = vsub.f32 %v4202_v23, %v4224_v59  ;;  %4342 = vmatpush.msrb.mxu3 %v4224_v59  ;;  %4225 = vmatpush.msrb.mxu0 %v4224_v59 }
0x1196   :  { %v4267_v8 = vand.u32 4294901760, %v4266_v62  ;;  %4309 = vmatpush.msrb.mxu2 %v4266_v62  ;;  %4344 = vmatpush.msrb.mxu3 %v4226_v63 }
0x1197   :  { %4227 = vmatpush.msrb.mxu0 %v4226_v63 }
0x1198   :  { %v4268_v12 = vsub.f32 %v4266_v62, %v4267_v8  ;;  %4312 = vmatpush.msrb.mxu2 %v4272_v11  ;;  %4346 = vmatpush.msrb.mxu3 %v4228_v21 }
0x1199   :  { %4229 = vmatpush.msrb.mxu0 %v4228_v21 }
0x119a   :  { %v4269_v22 = vand.u32 4294901760, %v4268_v12  ;;  %4315 = vmatpush.msrb.mxu2 %v4278_v33 }
0x119b   :  { %4375 = vmatpush.msra.mxu0 %v4261_v60 }
0x119c   :  { %4270 = vmatpush.msrb.mxu1 %v4269_v22  ;;  %4445 = vmatpush.msra.mxu2 %v4444_v3 }
0x119d   :  { %4379 = vmatpush.msra.mxu0 %v4267_v8 }
0x119e   :  { %4276 = vmatpush.msrb.mxu1 %v4275_v43  ;;  %4447 = vmatpush.msra.mxu2 %v4446_v5 }
0x119f   :  { %4383 = vmatpush.msra.mxu0 %v4273_v26 }
0x11a0   :  { %4282 = vmatpush.msrb.mxu1 %v4281_v61  ;;  %4449 = vmatpush.msra.mxu2 %v4448_v16 }
0x11a1   :  { %4387 = vmatpush.msra.mxu0 %v4279_v29 }
0x11a2   :  { %4410 = vmatpush.msra.mxu1 %v4222_v56 }
0x11a4   :  { %4412 = vmatpush.msra.mxu1 %v4224_v59 }
0x11a6   :  { %4414 = vmatpush.msra.mxu1 %v4226_v63 }
0x11a8   :  { %4416 = vmatpush.msra.mxu1 %v4228_v21 }
0x11af   :  { %v4131_v49 = vpop.permute.xlu0 %4130 }
0x11b0   :  { %v4133_v54 = vmul.f32 %v4131_v49, %v4125_v41  ;;  %v4494_v49 = vsub.f32 %v4195_v10, %v4448_v16 }
0x11b2   :  { %4135 = vrot.lane.b32.xlu2 %v4133_v54, %s4810_s17  ;;  %v4485_v54 = vand.u32 4294901760, %v4484_v45  ;;  %v4495_v31 = vand.u32 4294901760, %v4494_v49 }
0x11b4   :  { %4486 = vmatpush.msra.mxu3 %v4485_v54  ;;  %v4496_v17 = vsub.f32 %v4494_v49, %v4495_v31 }
0x11b6   :  { %4492 = vmatpush.msra.mxu3 %v4491_v28  ;;  %v4497_v44 = vand.u32 4294901760, %v4496_v17 }
0x11b8   :  { %4498 = vmatpush.msra.mxu3 %v4497_v44 }
0x11cd   :  { %v4168_v13 = vpop.permute.xlu2 %4167 }
0x11ce   :  { %v4170_v20 = vmul.f32 %v4168_v13, %v4162_v15 }
0x11d0   :  { %4172 = vrot.lane.b32.xlu1 %v4170_v20, %s4810_s17  ;;  %v4192_v20 = vld [vmem:[#allocation4] sm:$0xff] }
0x120c   :  { %v4136_v30 = vpop.permute.xlu2 %4135 }
0x120d   :  { %v4138_v24 = vadd.f32 %v4136_v30, %v4128_v25 }
0x120f   :  { %4804 = vtanh.f32 %v4138_v24 }
0x1215   :  { %v4805_v32 = vpop.eup %4804 }
0x1216   :  { %4141 = vrot.lane.b32.xlu1 %v4805_v32, %s4809_s2  ;;  %v4427_v32 = vsel %vm45_vm0, %v4192_v20, 0 }
0x1242   :  { %v4173_v36 = vpop.permute.xlu1 %4172 }
0x1243   :  { %v4175_v40 = vadd.f32 %v4173_v36, %v4165_v34 }
0x1245   :  { %4806 = vtanh.f32 %v4175_v40 }
0x124b   :  { %v4807_v42 = vpop.eup %4806 }
0x124c   :  { %4178 = vrot.lane.b32.xlu0 %v4807_v42, %s4809_s2  ;;  %v4452_v42 = vand.u32 4294901760, %v4427_v32 }
0x124e   :  { %v4453_v55 = vsub.f32 %v4427_v32, %v4452_v42 }
0x1250   :  { %v4454_v59 = vand.u32 4294901760, %v4453_v55 }
0x1252   :  { %v4455_v62 = vsub.f32 %v4453_v55, %v4454_v59 }
0x1288   :  { %v4142_v46 = vpop.permute.xlu1 %4141 }
0x1289   :  { %v4144_v52 = vmul.f32 %v4142_v46, %v4125_v41  ;;  %v4450_v41 = vand.u32 4294901760, %v4194_v27 }
0x128b   :  { %4183 = vrot.lane.b32.xlu0 %v4144_v52, %s4810_s17  ;;  %4451 = vmatpush.msra.mxu2 %v4450_v41  ;;  %v4500_v37 = vsub.f32 %v4194_v27, %v4450_v41 }
0x128d   :  { %v4501_v35 = vand.u32 4294901760, %v4500_v37 }
0x128f   :  { %v4502_v51 = vsub.f32 %v4500_v37, %v4501_v35 }
0x1291   :  { %v4503_v50 = vand.u32 4294901760, %v4502_v51 }
0x1293   :  { %4504 = vmatpush.msra.mxu3 %v4503_v50 }
0x12be   :  { %v4179_v53 = vpop.permute.xlu0 %4178 }
0x12bf   :  { %v4181_v19 = vmul.f32 %v4179_v53, %v4162_v15  ;;  %v4199_v15 = vld [vmem:[#allocation5 + $0x8] sm:$0xff] }
0x12c0   :  { %v4208_v25 = vsel %vm45_vm0, %v4199_v15, 0  ;;  %v4679_v15 = vld [vmem:[%s5730_s7] ss:$0 sm:$0xff] }
0x12c1   :  { %4188 = vrot.lane.b32.xlu2 %v4181_v19, %s4810_s17  ;;  %v4238_v36 = vand.u32 4294901760, %v4208_v25 }
0x12c3   :  { %v4239_v52 = vsub.f32 %v4208_v25, %v4238_v36 }
0x12c5   :  { %v4240_v57 = vand.u32 4294901760, %v4239_v52 }
0x12c7   :  { %v4241_v60 = vsub.f32 %v4239_v52, %v4240_v57 }
0x12c9   :  { %v4242_v0 = vand.u32 4294901760, %v4241_v60 }
0x12fd   :  { %v4184_v2 = vpop.permute.xlu0 %4183 }
0x12fe   :  { %4186 = vst.msk [vmem:[#allocation4 + $0xe] sm:$0x3] %vm951_vm9, %v4184_v2  ;;  %v4456_v2 = vand.u32 4294901760, %v4455_v62 }
0x1305   :  { %v4193_v53 = vld [vmem:[#allocation4 + $0x8] sm:$0xff] }
0x1306   :  { %v4430_v56 = vsel %vm45_vm0, %v4193_v53, 0 }
0x1307   :  { %v4460_v58 = vand.u32 4294901760, %v4430_v56 }
0x1309   :  { %v4461_v63 = vsub.f32 %v4430_v56, %v4460_v58 }
0x130b   :  { %v4462_v4 = vand.u32 4294901760, %v4461_v63 }
0x130d   :  { %v4463_v8 = vsub.f32 %v4461_v63, %v4462_v4 }
0x130f   :  { %v4464_v11 = vand.u32 4294901760, %v4463_v8 }
0x131b   :  { %v4189_v13 = vpop.permute.xlu2 %4188 }
0x131c   :  { %4191 = vst.msk [vmem:[#allocation5] sm:$0x3] %vm951_vm9, %v4189_v13 }
0x1323   :  { %v4198_v30 = vld [vmem:[#allocation5] sm:$0xff] }
0x1324   :  { %v4205_v24 = vsel %vm45_vm0, %v4198_v30, 0 }
0x1325   :  { %v4230_v34 = vand.u32 4294901760, %v4205_v24 }
0x1327   :  { %4284 = vmatmul.f32.vlgmr.msrb.gmra.mxu1 %v4230_v34  ;;  %v4231_v40 = vsub.f32 %v4205_v24, %v4230_v34 }
0x1328   :  { %4562 = vmatpush.msrb.mxu1 %v4444_v3 }
0x1329   :  { %4318 = vmatmul.f32.vlgmr.msrb.gmra.mxu2 %v4231_v40  ;;  %v4232_v46 = vand.u32 4294901760, %v4231_v40 }
0x132a   :  { %4597 = vmatpush.msrb.mxu2 %v4483_v9  ;;  %4564 = vmatpush.msrb.mxu1 %v4446_v5 }
0x132b   :  { %4350 = vmatmul.f32.vlgmr.msrb.gmra.mxu3 %v4232_v46  ;;  %v4233_v19 = vsub.f32 %v4231_v40, %v4232_v46 }
0x132c   :  { %4632 = vmatpush.msrb.mxu3 %v4444_v3  ;;  %4601 = vmatpush.msrb.mxu2 %v4489_v47 }
0x132d   :  { %v4234_v23 = vand.u32 4294901760, %v4233_v19  ;;  %4566 = vmatpush.msrb.mxu1 %v4448_v16 }
0x132e   :  { %4634 = vmatpush.msrb.mxu3 %v4446_v5  ;;  %4605 = vmatpush.msrb.mxu2 %v4495_v31 }
0x132f   :  { %4235 = vmatmul.f32.vlgmr.msrb.gmra.mxu0 %v4234_v23  ;;  %4288 = vmatmul.f32.gmra.mxu1 %v4238_v36 }
0x1330   :  { %4528 = vmatpush.msrb.mxu0 %v5696_v7  ;;  %4568 = vmatpush.msrb.mxu1 %v4450_v41 }
0x1331   :  { %4323 = vmatmul.f32.gmra.mxu2 %v4239_v52  ;;  %4636 = vmatpush.msrb.mxu3 %v4448_v16 }
0x1332   :  { %4531 = vmatpush.msrb.mxu0 %v4488_v14  ;;  %4609 = vmatpush.msrb.mxu2 %v4501_v35 }
0x1333   :  { %4356 = vmatmul.f32.gmra.mxu3 %v4240_v57 }
0x1334   :  { %4534 = vmatpush.msrb.mxu0 %v4494_v49  ;;  %4638 = vmatpush.msrb.mxu3 %v4450_v41 }
0x1336   :  { %4537 = vmatpush.msrb.mxu0 %v4500_v37 }
0x1337   :  { %4243 = vmatmul.f32.gmra.mxu0 %v4242_v0  ;;  %4418 = vmatmul.f32.vlgmr.msra.gmra.mxu1 %v4230_v34 }
0x1339   :  { %4457 = vmatmul.f32.vlgmr.msra.gmra.mxu2 %v4456_v2 }
0x133b   :  { %4506 = vmatmul.f32.vlgmr.msra.gmra.mxu3 %v4452_v42 }
0x133f   :  { %4389 = vmatmul.f32.vlgmr.msra.gmra.mxu0 %v4230_v34  ;;  %4422 = vmatmul.f32.gmra.mxu1 %v4238_v36 }
0x1341   :  { %4465 = vmatmul.f32.gmra.mxu2 %v4464_v11 }
0x1343   :  { %4510 = vmatmul.f32.gmra.mxu3 %v4460_v58 }
0x1347   :  { %4393 = vmatmul.f32.gmra.mxu0 %v4238_v36  ;;  %4572 = vmatmul.f32.vlgmr.msrb.gmra.mxu1 %v4454_v59 }
0x1349   :  { %4611 = vmatmul.f32.vlgmr.msrb.gmra.mxu2 %v4452_v42 }
0x134b   :  { %4640 = vmatmul.f32.vlgmr.msrb.gmra.mxu3 %v4452_v42 }
0x134f   :  { %4540 = vmatmul.f32.vlgmr.msrb.gmra.mxu0 %v4453_v55  ;;  %4578 = vmatmul.f32.gmra.mxu1 %v4462_v4 }
0x1351   :  { %4615 = vmatmul.f32.gmra.mxu2 %v4460_v58 }
0x1353   :  { %4644 = vmatmul.f32.gmra.mxu3 %v4460_v58 }
0x1357   :  { %4545 = vmatmul.f32.gmra.mxu0 %v4461_v63 }
0x13a4   :  { %v4285_v21 = vpop.f32.mrf.mxu1 }
0x13ac   :  { %v4236_v18 = vpop.f32.mrf.mxu0  ;;  %v4319_v12 = vpop.f32.mrf.mxu2 }
0x13ad   :  { %v4289_v26 = vpop.f32.mrf.mxu1  ;;  %v4286_v38 = vadd.f32 %v4285_v21, %v4236_v18 }
0x13ae   :  { %v4351_v33 = vpop.f32.mrf.mxu3 }
0x13af   :  { %v4320_v61 = vadd.f32 %v4319_v12, %v4286_v38 }
0x13b1   :  { %v4352_v3 = vadd.f32 %v4351_v33, %v4320_v61 }
0x13b4   :  { %v4244_v22 = vpop.f32.mrf.mxu0  ;;  %v4324_v29 = vpop.f32.mrf.mxu2 }
0x13b5   :  { %v4419_v39 = vpop.f32.mrf.mxu1  ;;  %v4290_v6 = vadd.f32 %v4289_v26, %v4244_v22 }
0x13b6   :  { %v4357_v43 = vpop.f32.mrf.mxu3 }
0x13b7   :  { %v4325_v9 = vadd.f32 %v4324_v29, %v4290_v6 }
0x13b9   :  { %v4358_v45 = vadd.f32 %v4357_v43, %v4325_v9 }
0x13bc   :  { %v4390_v1 = vpop.f32.mrf.mxu0  ;;  %v4458_v7 = vpop.f32.mrf.mxu2 }
0x13bd   :  { %v4391_v10 = vadd.f32 %v4390_v1, %v4352_v3  ;;  %v4423_v14 = vpop.f32.mrf.mxu1 }
0x13be   :  { %v4507_v5 = vpop.f32.mrf.mxu3 }
0x13bf   :  { %v4420_v16 = vadd.f32 %v4419_v39, %v4391_v10 }
0x13c1   :  { %v4459_v41 = vadd.f32 %v4458_v7, %v4420_v16 }
0x13c3   :  { %v4508_v48 = vadd.f32 %v4507_v5, %v4459_v41 }
0x13c4   :  { %v4394_v27 = vpop.f32.mrf.mxu0  ;;  %v4466_v47 = vpop.f32.mrf.mxu2 }
0x13c5   :  { %v4395_v54 = vadd.f32 %v4394_v27, %v4358_v45  ;;  %v4573_v37 = vpop.f32.mrf.mxu1 }
0x13c6   :  { %v4511_v49 = vpop.f32.mrf.mxu3 }
0x13c7   :  { %v4424_v31 = vadd.f32 %v4423_v14, %v4395_v54 }
0x13c9   :  { %v4467_v44 = vadd.f32 %v4466_v47, %v4424_v31 }
0x13cb   :  { %v4512_v20 = vadd.f32 %v4511_v49, %v4467_v44 }
0x13cc   :  { %v4541_v28 = vpop.f32.mrf.mxu0  ;;  %v4612_v35 = vpop.f32.mrf.mxu2 }
0x13cd   :  { %v4542_v17 = vadd.f32 %v4541_v28, %v4508_v48  ;;  %v4579_v34 = vpop.f32.mrf.mxu1 }
0x13ce   :  { %v4641_v50 = vpop.f32.mrf.mxu3 }
0x13cf   :  { %v4574_v51 = vadd.f32 %v4573_v37, %v4542_v17 }
0x13d1   :  { %v4613_v13 = vadd.f32 %v4612_v35, %v4574_v51 }
0x13d3   :  { %v4642_v25 = vadd.f32 %v4641_v50, %v4613_v13 }
0x13d4   :  { %v4546_v30 = vpop.f32.mrf.mxu0  ;;  %v4616_v40 = vpop.f32.mrf.mxu2 }
0x13d5   :  { %v4652_v24 = vadd.f32 %v4679_v15, %v4642_v25  ;;  %v4547_v32 = vadd.f32 %v4546_v30, %v4512_v20 }
0x13d6   :  { %v4645_v46 = vpop.f32.mrf.mxu3 }
0x13d7   :  { %4654 = vst.msk [vmem:[%s5731_s8] sm:$0xff] %vm45_vm0, %v4652_v24  ;;  %v4580_v36 = vadd.f32 %v4579_v34, %v4547_v32 }
0x13d9   :  { %v4617_v42 = vadd.f32 %v4616_v40, %v4580_v36 }
0x13db   :  { %v4646_v52 = vadd.f32 %v4645_v46, %v4617_v42 }
0x13dd   :  { %v4653_v53 = vadd.f32 %v4679_v15, %v4646_v52 }
0x13df   :  { %4655 = vst.msk [vmem:[%s5731_s8 + $0x8] sm:$0xff] %vm45_vm0, %v4653_v53 }

// kernel: scrb_forward.5
= control target key start
LH: loop header
LB: loop body
LE: loop exit
PB: predicated region body
PF: predicated region fallthrough
CT: control target
= control target key end

     0   :  { %vm51_vm0 = vcmask 523264   ;;  %vm547_vm1 = vcmask 1043456   ;;  %vm537_vm2 = vcmask 97280   ;;  %vm803_vm3 = vcmask 261120   ;;  %s8082_s28 = smov 64   ;;  %s8083_s29 = smov 32   ;;  %s10101_s2 = inlined_call_operand.vmem [shape: f32[64,32], index: 2, kind: input, shape index: {}]   ;;  %s10102_s0 = inlined_call_operand.vmem [shape: f32[2,8,64], index: 0, kind: input, shape index: {}]   ;;  %s10103_s7 = inlined_call_operand.vmem [shape: f32[12,128], index: 7, kind: input, shape index: {}]   ;;  %s10104_s1 = inlined_call_operand.vmem [shape: f32[18,12], index: 1, kind: input, shape index: {}]   ;;  %s10105_s3 = inlined_call_operand.vmem [shape: f32[32,32], index: 3, kind: input, shape index: {}]   ;;  %s10106_s4 = inlined_call_operand.vmem [shape: f32[1,32], index: 4, kind: input, shape index: {}]   ;;  %s10107_s5 = inlined_call_operand.vmem [shape: f32[1,32], index: 5, kind: input, shape index: {}]   ;;  %s10108_s8 = inlined_call_operand.vmem [shape: f32[32,128], index: 8, kind: input, shape index: {}]   ;;  %s10109_s6 = inlined_call_operand.vmem [shape: f32[64,128], index: 6, kind: input, shape index: {}]   ;;  %s10110_s9 = inlined_call_operand.vmem [shape: f32[1,128], index: 9, kind: input, shape index: {}]   ;;  %s10111_s10 = inlined_call_operand.vmem [shape: f32[32,12], index: 10, kind: input, shape index: {}]   ;;  %s10112_s11 = inlined_call_operand.vmem [shape: f32[1,12], index: 11, kind: input, shape index: {}]   ;;  %s10113_s12 = inlined_call_operand.vmem [shape: f32[18,12], index: 12, kind: output, shape index: {}]  }
   0x1   :  { %v50_v0 = vld [vmem:[%s10101_s2 + $0x38] sm:$0xff]  ;;  %v49_v1 = vld [vmem:[%s10101_s2 + $0x30] sm:$0xff]  ;;  %v48_v2 = vld [vmem:[%s10101_s2 + $0x28] sm:$0xff]  ;;  %vm1273_vm12 = vcmask 1041409  }
   0x2   :  { %v8158_v3 = vand.u32 4294901760, %v50_v0  ;;  %v8160_v4 = vand.u32 4294901760, %v49_v1  ;;  %v8162_v5 = vand.u32 4294901760, %v48_v2  ;;  %v47_v6 = vld [vmem:[%s10101_s2 + $0x20] sm:$0xff]  ;;  %v46_v7 = vld [vmem:[%s10101_s2 + $0x18] sm:$0xff]  ;;  %v45_v8 = vld [vmem:[%s10101_s2 + $0x10] sm:$0xff] }
   0x3   :  { %v8173_v9 = vand.u32 4294901760, %v47_v6  ;;  %v8175_v10 = vand.u32 4294901760, %v46_v7  ;;  %v8177_v11 = vand.u32 4294901760, %v45_v8  ;;  %v44_v12 = vld [vmem:[%s10101_s2 + $0x8] sm:$0xff]  ;;  %v43_v13 = vld [vmem:[%s10101_s2] sm:$0xff] }
   0x4   :  { %64 = vmatpush.msra.mxu0 %v8158_v3  ;;  %v8187_v14 = vsub.f32 %v50_v0, %v8158_v3  ;;  %196 = vmatpush.msra.mxu3 %v8158_v3  ;;  %v8191_v15 = vsub.f32 %v49_v1, %v8160_v4  ;;  %v8194_v16 = vsub.f32 %v48_v2, %v8162_v5  ;;  %v8196_v17 = vand.u32 4294901760, %v44_v12  ;;  %v41_v32 = vld [vmem:[%s10102_s0] sm:$0xff]  ;;  %v42_v51 = vld [vmem:[%s10102_s0 + $0x8] sm:$0xff]  ;;  %v534_v63 = vld [vmem:[%s10104_s1 + $0x10] sm:$0x3] }
   0x5   :  { %v8199_v18 = vsub.f32 %v47_v6, %v8173_v9  ;;  %v8202_v19 = vsub.f32 %v46_v7, %v8175_v10  ;;  %v8204_v20 = vand.u32 4294901760, %v43_v13  ;;  %v8218_v24 = vsub.f32 %v45_v8, %v8177_v11  ;;  %v536_v59 = vld [vmem:[%s10103_s7 + $0x8] sm:$0xf]  ;;  %v535_v62 = vld [vmem:[%s10103_s7] sm:$0xff] }
   0x6   :  { %159 = vmatpush.msra.mxu2 %v8187_v14  ;;  %66 = vmatpush.msra.mxu0 %v8160_v4  ;;  %v8209_v21 = vand.u32 4294901760, %v8187_v14  ;;  %v8212_v22 = vand.u32 4294901760, %v8191_v15  ;;  %v8215_v23 = vand.u32 4294901760, %v8194_v16  ;;  %v8225_v26 = vsub.f32 %v44_v12, %v8196_v17  ;;  %v532_v2 = vld [vmem:[%s10104_s1] sm:$0xff] }
   0x7   :  { %198 = vmatpush.msra.mxu3 %v8160_v4  ;;  %v8222_v25 = vand.u32 4294901760, %v8199_v18  ;;  %v8236_v30 = vand.u32 4294901760, %v8202_v19  ;;  %v8240_v31 = vsub.f32 %v43_v13, %v8204_v20  ;;  %v8250_v36 = vand.u32 4294901760, %v8218_v24 }
   0x8   :  { %162 = vmatpush.msra.mxu2 %v8191_v15  ;;  %68 = vmatpush.msra.mxu0 %v8162_v5  ;;  %v99_v27 = vsub.f32 %v8187_v14, %v8209_v21  ;;  %v105_v28 = vsub.f32 %v8191_v15, %v8212_v22  ;;  %v111_v29 = vsub.f32 %v8194_v16, %v8215_v23  ;;  %v8257_v39 = vand.u32 4294901760, %v8225_v26 }
   0x9   :  { %200 = vmatpush.msra.mxu3 %v8162_v5  ;;  %v117_v35 = vsub.f32 %v8199_v18, %v8222_v25  ;;  %v123_v38 = vsub.f32 %v8202_v19, %v8236_v30  ;;  %v53_v40 = vsel %vm51_vm0, %v41_v32, 0  ;;  %v129_v42 = vsub.f32 %v8218_v24, %v8250_v36  ;;  %v776_v32 = vld [vmem:[%s10105_s3 + $0x8] sm:$0xff] }
   0xa   :  { %165 = vmatpush.msra.mxu2 %v8194_v16  ;;  %70 = vmatpush.msra.mxu0 %v8173_v9  ;;  %v100_v33 = vand.u32 4294901760, %v99_v27  ;;  %v106_v34 = vand.u32 4294901760, %v105_v28  ;;  %v112_v37 = vand.u32 4294901760, %v111_v29  ;;  %v8266_v43 = vand.u32 4294901760, %v8240_v31 }
   0xb   :  { %202 = vmatpush.msra.mxu3 %v8173_v9  ;;  %v118_v41 = vand.u32 4294901760, %v117_v35  ;;  %v8270_v44 = vand.u32 4294901760, %v53_v40  ;;  %v124_v45 = vand.u32 4294901760, %v123_v38  ;;  %v135_v46 = vsub.f32 %v8225_v26, %v8257_v39 }
   0xc   :  { %101 = vmatpush.msra.mxu1 %v100_v33  ;;  %168 = vmatpush.msra.mxu2 %v8199_v18  ;;  %v130_v47 = vand.u32 4294901760, %v129_v42  ;;  %v141_v48 = vsub.f32 %v8240_v31, %v8266_v43  ;;  %v293_v54 = vsel %vm51_vm0, %v42_v51, 0  ;;  %v549_v61 = vsel %vm547_vm1, %v536_v59, 0 }
   0xd   :  { %72 = vmatpush.msra.mxu0 %v8175_v10  ;;  %204 = vmatpush.msra.mxu3 %v8175_v10  ;;  %v80_v49 = vsub.f32 %v53_v40, %v8270_v44  ;;  %v136_v50 = vand.u32 4294901760, %v135_v46  ;;  %v8296_v56 = vand.u32 4294901760, %v293_v54  ;;  %v8330_v1 = vand.u32 4294901760, %v549_v61 }
   0xe   :  { %107 = vmatpush.msra.mxu1 %v106_v34  ;;  %171 = vmatpush.msra.mxu2 %v8202_v19  ;;  %v142_v52 = vand.u32 4294901760, %v141_v48  ;;  %v8339_v6 = vand.u32 4294901760, %v535_v62  ;;  %v545_v7 = vsel %vm537_vm2, %v534_v63, 0  ;;  %v539_v8 = vsel %vm537_vm2, %v532_v2, 0 }
   0xf   :  { %74 = vmatpush.msra.mxu0 %v8177_v11  ;;  %206 = vmatpush.msra.mxu3 %v8177_v11  ;;  %v81_v53 = vand.u32 4294901760, %v80_v49  ;;  %v8305_v58 = vsub.f32 %v293_v54, %v8296_v56  ;;  %v8348_v13 = vsub.f32 %v549_v61, %v8330_v1 }
  0x10   :  { %113 = vmatpush.msra.mxu1 %v112_v37  ;;  %174 = vmatpush.msra.mxu2 %v8218_v24 }
  0x11   :  { %76 = vmatpush.msra.mxu0 %v8196_v17  ;;  %208 = vmatpush.msra.mxu3 %v8196_v17  ;;  %v82_v55 = vsub.f32 %v80_v49, %v81_v53  ;;  %v321_v60 = vand.u32 4294901760, %v8305_v58 }
  0x12   :  { %119 = vmatpush.msra.mxu1 %v118_v41  ;;  %177 = vmatpush.msra.mxu2 %v8225_v26 }
  0x13   :  { %78 = vmatpush.msra.mxu0 %v8204_v20  ;;  %210 = vmatpush.msra.mxu3 %v8204_v20  ;;  %v83_v57 = vand.u32 4294901760, %v82_v55  ;;  %v322_v0 = vsub.f32 %v8305_v58, %v321_v60 }
  0x14   :  { %125 = vmatpush.msra.mxu1 %v124_v45  ;;  %180 = vmatpush.msra.mxu2 %v8240_v31 }
  0x15   :  { %229 = vmatpush.msrb.mxu0 %v8209_v21  ;;  %341 = vmatpush.msrb.mxu3 %v100_v33  ;;  %v323_v12 = vand.u32 4294901760, %v322_v0  ;;  %v8406_v33 = vand.u32 4294901760, %v776_v32 }
  0x16   :  { %304 = vmatpush.msrb.mxu2 %v8158_v3  ;;  %131 = vmatpush.msra.mxu1 %v130_v47 }
  0x17   :  { %233 = vmatpush.msrb.mxu0 %v8212_v22  ;;  %347 = vmatpush.msrb.mxu3 %v106_v34  ;;  %v8432_v38 = vsub.f32 %v776_v32, %v8406_v33 }
  0x18   :  { %306 = vmatpush.msrb.mxu2 %v8160_v4  ;;  %137 = vmatpush.msra.mxu1 %v136_v50 }
  0x19   :  { %237 = vmatpush.msrb.mxu0 %v8215_v23  ;;  %353 = vmatpush.msrb.mxu3 %v112_v37 }
  0x1a   :  { %308 = vmatpush.msrb.mxu2 %v8162_v5  ;;  %143 = vmatpush.msra.mxu1 %v142_v52 }
  0x1b   :  { %241 = vmatpush.msrb.mxu0 %v8222_v25  ;;  %359 = vmatpush.msrb.mxu3 %v118_v41 }
  0x1c   :  { %272 = vmatpush.msrb.mxu1 %v8158_v3  ;;  %310 = vmatpush.msrb.mxu2 %v8173_v9 }
  0x1d   :  { %245 = vmatpush.msrb.mxu0 %v8236_v30  ;;  %365 = vmatpush.msrb.mxu3 %v124_v45  ;;  %v8461_v45 = vand.u32 4294901760, %v8432_v38 }
  0x1e   :  { %274 = vmatpush.msrb.mxu1 %v8160_v4  ;;  %312 = vmatpush.msrb.mxu2 %v8175_v10 }
  0x1f   :  { %249 = vmatpush.msrb.mxu0 %v8250_v36  ;;  %371 = vmatpush.msrb.mxu3 %v130_v47 }
  0x20   :  { %276 = vmatpush.msrb.mxu1 %v8162_v5  ;;  %314 = vmatpush.msrb.mxu2 %v8177_v11 }
  0x21   :  { %253 = vmatpush.msrb.mxu0 %v8257_v39  ;;  %377 = vmatpush.msrb.mxu3 %v136_v50  ;;  %v863_v50 = vsub.f32 %v8432_v38, %v8461_v45 }
  0x22   :  { %278 = vmatpush.msrb.mxu1 %v8173_v9  ;;  %316 = vmatpush.msrb.mxu2 %v8196_v17 }
  0x23   :  { %84 = vmatmul.f32.vlgmr.msra.gmra.mxu0 %v83_v57  ;;  %183 = vmatmul.f32.vlgmr.msra.gmra.mxu2 %v80_v49 }
  0x24   :  { %214 = vmatmul.f32.vlgmr.msra.gmra.mxu3 %v81_v53  ;;  %257 = vmatpush.msrb.mxu0 %v8266_v43  ;;  %v8490_v53 = vand.u32 4294901760, %v863_v50 }
  0x25   :  { %280 = vmatpush.msrb.mxu1 %v8175_v10  ;;  %318 = vmatpush.msrb.mxu2 %v8204_v20 }
  0x26   :  { %383 = vmatpush.msrb.mxu3 %v142_v52  ;;  %399 = vmatpush.msra.mxu0 %v8187_v14  ;;  %v8352_v14 = vand.u32 4294901760, %v545_v7  ;;  %10222 = vst [vmem:[#allocation7_spill] sm:$0xff] %v8490_v53 }
  0x27   :  { %469 = vmatpush.msra.mxu2 %v8209_v21  ;;  %282 = vmatpush.msrb.mxu1 %v8177_v11  ;;  %v778_v21 = vld [vmem:[%s10105_s3 + $0x18] sm:$0xff] }
  0x28   :  { %512 = vmatpush.msra.mxu3 %v8158_v3  ;;  %402 = vmatpush.msra.mxu0 %v8191_v15  ;;  %v8357_v15 = vsub.f32 %v535_v62, %v8339_v6 }
  0x29   :  { %473 = vmatpush.msra.mxu2 %v8212_v22  ;;  %145 = vmatmul.f32.vlgmr.msra.gmra.mxu1 %v8270_v44  ;;  %v533_v22 = vld [vmem:[%s10104_s1 + $0x8] sm:$0xff] }
  0x2a   :  { %514 = vmatpush.msra.mxu3 %v8160_v4  ;;  %405 = vmatpush.msra.mxu0 %v8194_v16  ;;  %v8359_v16 = vand.u32 4294901760, %v539_v8  ;;  %v616_v27 = vand.u32 4294901760, %v8357_v15 }
  0x2b   :  { %284 = vmatpush.msrb.mxu1 %v8196_v17  ;;  %477 = vmatpush.msra.mxu2 %v8215_v23  ;;  %v8374_v23 = vsub.f32 %v545_v7, %v8352_v14 }
  0x2c   :  { %516 = vmatpush.msra.mxu3 %v8162_v5  ;;  %408 = vmatpush.msra.mxu0 %v8199_v18  ;;  %v610_v18 = vand.u32 4294901760, %v8348_v13  ;;  %v8385_v28 = vsub.f32 %v539_v8, %v8359_v16 }
  0x2d   :  { %286 = vmatpush.msrb.mxu1 %v8204_v20  ;;  %481 = vmatpush.msra.mxu2 %v8222_v25  ;;  %v8376_v25 = vand.u32 4294901760, %v778_v21 }
  0x2e   :  { %518 = vmatpush.msra.mxu3 %v8173_v9  ;;  %259 = vmatmul.f32.vlgmr.msrb.gmra.mxu0 %v8270_v44  ;;  %v571_v34 = vand.u32 4294901760, %v8385_v28 }
  0x2f   :  { %436 = vmatpush.msra.mxu1 %v8158_v3  ;;  %324 = vmatmul.f32.vlgmr.msrb.gmra.mxu2 %v323_v12  ;;  %v777_v3 = vld [vmem:[%s10105_s3 + $0x10] sm:$0xff] }
  0x30   :  { %385 = vmatmul.f32.vlgmr.msrb.gmra.mxu3 %v8296_v56  ;;  %411 = vmatpush.msra.mxu0 %v8202_v19  ;;  %v542_v19 = vsel %vm537_vm2, %v533_v22, 0  ;;  %v8390_v29 = vand.u32 4294901760, %v777_v3 }
  0x31   :  { %438 = vmatpush.msra.mxu1 %v8160_v4  ;;  %485 = vmatpush.msra.mxu2 %v8236_v30  ;;  %v611_v4 = vsub.f32 %v8348_v13, %v610_v18  ;;  %v8404_v30 = vsub.f32 %v778_v21, %v8376_v25  ;;  %v8414_v35 = vand.u32 4294901760, %v542_v19 }
  0x32   :  { %520 = vmatpush.msra.mxu3 %v8175_v10  ;;  %414 = vmatpush.msra.mxu0 %v8218_v24  ;;  %v587_v24 = vand.u32 4294901760, %v8374_v23 }
  0x33   :  { %440 = vmatpush.msra.mxu1 %v8162_v5  ;;  %489 = vmatpush.msra.mxu2 %v8250_v36  ;;  %v617_v5 = vsub.f32 %v8357_v15, %v616_v27  ;;  %v8419_v36 = vsub.f32 %v777_v3, %v8390_v29  ;;  %v8429_v37 = vand.u32 4294901760, %v8404_v30  ;;  %v8443_v40 = vsub.f32 %v542_v19, %v8414_v35 }
  0x34   :  { %522 = vmatpush.msra.mxu3 %v8177_v11  ;;  %288 = vmatmul.f32.vlgmr.msrb.gmra.mxu1 %v8270_v44 }
  0x35   :  { %417 = vmatpush.msra.mxu0 %v8225_v26  ;;  %442 = vmatpush.msra.mxu1 %v8173_v9  ;;  %v612_v9 = vand.u32 4294901760, %v611_v4  ;;  %v588_v26 = vsub.f32 %v8374_v23, %v587_v24  ;;  %v8450_v42 = vand.u32 4294901760, %v8419_v36  ;;  %v851_v44 = vsub.f32 %v8404_v30, %v8429_v37 }
  0x36   :  { %493 = vmatpush.msra.mxu2 %v8257_v39  ;;  %524 = vmatpush.msra.mxu3 %v8196_v17  ;;  %v572_v39 = vsub.f32 %v8385_v28, %v571_v34 }
  0x37   :  { %420 = vmatpush.msra.mxu0 %v8240_v31  ;;  %444 = vmatpush.msra.mxu1 %v8175_v10  ;;  %v775_v31 = vld [vmem:[%s10105_s3] sm:$0xff]  ;;  %v618_v10 = vand.u32 4294901760, %v617_v5  ;;  %v589_v46 = vand.u32 4294901760, %v588_v26  ;;  %v857_v48 = vsub.f32 %v8419_v36, %v8450_v42 }
  0x38   :  { %497 = vmatpush.msra.mxu2 %v8266_v43  ;;  %526 = vmatpush.msra.mxu3 %v8204_v20  ;;  %v8445_v41 = vand.u32 4294901760, %v775_v31  ;;  %v573_v47 = vand.u32 4294901760, %v572_v39 }
  0x39   :  { %423 = vmatmul.f32.vlgmr.msra.gmra.mxu0 %v8305_v58  ;;  %499 = vmatmul.f32.vlgmr.msra.gmra.mxu2 %v8296_v56 }
  0x3a   :  { %528 = vmatmul.f32.vlgmr.msra.gmra.mxu3 %v8296_v56  ;;  %7868 = vmatpush.msrb.mxu2 %v8330_v1  ;;  %v8454_v43 = vsub.f32 %v775_v31, %v8445_v41  ;;  %v10118_v56 = vmov 0.0  }
  0x3b   :  { %446 = vmatpush.msra.mxu1 %v8177_v11  ;;  %7870 = vmatpush.msrb.mxu3 %v612_v9  ;;  %v579_v11 = vand.u32 4294901760, %v8443_v40 }
  0x3c   :  { %7869 = vmatpush.msrb.mxu2 %v8339_v6  ;;  %566 = vmatpush.msrb.mxu0 %v8330_v1  ;;  %v8472_v49 = vand.u32 4294901760, %v8454_v43 }
  0x3d   :  { %448 = vmatpush.msra.mxu1 %v8196_v17  ;;  %7871 = vmatpush.msrb.mxu3 %v618_v10  ;;  %v8477_v17 = vand.u32 4294901760, %v851_v44  ;;  %v580_v51 = vsub.f32 %v8443_v40, %v579_v11 }
  0x3e   :  { %649 = vmatpush.msra.mxu2 %v8348_v13  ;;  %568 = vmatpush.msrb.mxu0 %v8339_v6  ;;  %10219 = vst [vmem:[#allocation4_spill] sm:$0xff] %v8472_v49  ;;  %v869_v52 = vsub.f32 %v8454_v43, %v8472_v49 }
  0x3f   :  { %450 = vmatpush.msra.mxu1 %v8204_v20  ;;  %684 = vmatpush.msra.mxu3 %v8330_v1  ;;  %10220 = vst [vmem:[#allocation5_spill] sm:$0xff] %v8477_v17  ;;  %v8483_v20 = vand.u32 4294901760, %v857_v48  ;;  %v581_v54 = vand.u32 4294901760, %v580_v51 }
  0x40   :  { %454 = vmatmul.f32.vlgmr.msra.gmra.mxu1 %v321_v60  ;;  %652 = vmatpush.msra.mxu2 %v8357_v15  ;;  %v8500_v55 = vand.u32 4294901760, %v869_v52  ;;  %v8546_v52 = vld [vmem:[%s10106_s4] ss:$0 sm:$0xff] }
  0x41   :  { %590 = vmatmul.f32.vlgmr.msrb.gmra.mxu2 %v589_v46  ;;  %574 = vmatmul.f32.vlgmr.msrb.gmra.mxu0 %v573_v47  ;;  %10221 = vst [vmem:[#allocation6_spill] sm:$0xff] %v8483_v20 }
  0x42   :  { %629 = vmatmul.f32.vlgmr.msrb.gmra.mxu3 %v8352_v14  ;;  %613 = vmatpush.msrb.mxu1 %v612_v9  ;;  %10223 = vst [vmem:[#allocation8_spill] sm:$0xff] %v8500_v55 }
  0x43   :  { %686 = vmatpush.msra.mxu3 %v8339_v6  ;;  %820 = vmatpush.msrb.mxu2 %v8376_v25  ;;  %10224 = vst [vmem:[#allocation9_spill] sm:$0xff] %v8546_v52 }
  0x44   :  { %619 = vmatpush.msrb.mxu1 %v618_v10  ;;  %723 = vmatpush.msra.mxu0 %v610_v18 }
  0x45   :  { %853 = vmatpush.msrb.mxu3 %v8477_v17  ;;  %822 = vmatpush.msrb.mxu2 %v8390_v29 }
  0x46   :  { %756 = vmatpush.msra.mxu1 %v8330_v1  ;;  %727 = vmatpush.msra.mxu0 %v616_v27 }
  0x47   :  { %859 = vmatpush.msrb.mxu3 %v8483_v20  ;;  %824 = vmatpush.msrb.mxu2 %v8406_v33 }
  0x48   :  { %621 = vmatmul.f32.vlgmr.msrb.gmra.mxu1 %v8359_v16 }
  0x49   :  { %865 = vmatpush.msrb.mxu3 %v8490_v53  ;;  %655 = vmatmul.f32.vlgmr.msra.gmra.mxu2 %v8385_v28 }
  0x4a   :  { %582 = vmatmul.f32.gmra.mxu0 %v581_v54  ;;  %690 = vmatmul.f32.vlgmr.msra.gmra.mxu3 %v571_v34 }
  0x4b   :  { %758 = vmatpush.msra.mxu1 %v8339_v6  ;;  %826 = vmatpush.msrb.mxu2 %v8445_v41 }
  0x4c   :  { %871 = vmatpush.msrb.mxu3 %v8500_v55 }
  0x4d   :  { %891 = vmatpush.msra.mxu2 %v8404_v30 }
  0x4e   :  { %920 = vmatpush.msra.mxu3 %v8376_v25 }
  0x4f   :  { %894 = vmatpush.msra.mxu2 %v8419_v36 }
  0x50   :  { %922 = vmatpush.msra.mxu3 %v8390_v29  ;;  %625 = vmatmul.f32.gmra.mxu1 %v8414_v35 }
  0x51   :  { %897 = vmatpush.msra.mxu2 %v8432_v38 }
  0x52   :  { %660 = vmatmul.f32.gmra.mxu2 %v8443_v40  ;;  %729 = vmatmul.f32.vlgmr.msra.gmra.mxu0 %v8359_v16 }
  0x53   :  { %696 = vmatmul.f32.gmra.mxu3 %v579_v11  ;;  %900 = vmatpush.msra.mxu2 %v8454_v43 }
  0x54   :  { %924 = vmatpush.msra.mxu3 %v8406_v33 }
  0x56   :  { %926 = vmatpush.msra.mxu3 %v8445_v41 }
  0x58   :  { %760 = vmatmul.f32.vlgmr.msra.gmra.mxu1 %v8359_v16 }
  0x5a   :  { %665 = vmatmul.f32.gmra.mxu2 %v8374_v23  ;;  %733 = vmatmul.f32.gmra.mxu0 %v8414_v35 }
  0x5b   :  { %702 = vmatmul.f32.gmra.mxu3 %v587_v24 }
  0x60   :  { %764 = vmatmul.f32.gmra.mxu1 %v8414_v35 }
  0x62   :  { %832 = vmatmul.f32.vlgmr.msrb.gmra.mxu2 %v10118_v56  ;;  %737 = vmatmul.f32.gmra.mxu0 %v8352_v14 }
  0x63   :  { %873 = vmatmul.f32.vlgmr.msrb.gmra.mxu3 %v10118_v56  ;;  %949 = vmatpush.msrb.mxu2 %v8429_v37 }
  0x64   :  { %980 = vmatpush.msrb.mxu3 %v8376_v25 }
  0x65   :  { %953 = vmatpush.msrb.mxu2 %v8450_v42 }
  0x66   :  { %982 = vmatpush.msrb.mxu3 %v8390_v29 }
  0x67   :  { %957 = vmatpush.msrb.mxu2 %v8461_v45 }
  0x68   :  { %984 = vmatpush.msrb.mxu3 %v8406_v33  ;;  %768 = vmatmul.f32.gmra.mxu1 %v8352_v14 }
  0x69   :  { %961 = vmatpush.msrb.mxu2 %v8472_v49 }
  0x6a   :  { %903 = vmatmul.f32.vlgmr.msra.gmra.mxu2 %v10118_v56  ;;  %986 = vmatpush.msrb.mxu3 %v8445_v41 }
  0x6b   :  { %930 = vmatmul.f32.vlgmr.msra.gmra.mxu3 %v10118_v56 }
  0x72   :  { %963 = vmatmul.f32.vlgmr.msrb.gmra.mxu2 %v10118_v56 }
  0x73   :  { %988 = vmatmul.f32.vlgmr.msrb.gmra.mxu3 %v10118_v56 }
  0xa0   :  { %v85_v57 = vpop.f32.mrf.mxu0 }
  0xa6   :  { %v184_v58 = vpop.f32.mrf.mxu2  ;;  %v146_v60 = vpop.f32.mrf.mxu1 }
  0xa7   :  { %v215_v59 = vpop.f32.mrf.mxu3 }
  0xab   :  { %v260_v61 = vpop.f32.mrf.mxu0 }
  0xb1   :  { %v289_v0 = vpop.f32.mrf.mxu1 }
  0xb2   :  { %v325_v62 = vpop.f32.mrf.mxu2 }
  0xb3   :  { %v386_v63 = vpop.f32.mrf.mxu3 }
  0xb6   :  { %v424_v1 = vpop.f32.mrf.mxu0 }
  0xbc   :  { %v500_v2 = vpop.f32.mrf.mxu2 }
  0xbd   :  { %v455_v6 = vpop.f32.mrf.mxu1  ;;  %v529_v7 = vpop.f32.mrf.mxu3 }
  0xbe   :  { %v575_v8 = vpop.f32.mrf.mxu0 }
  0xc4   :  { %v591_v12 = vpop.f32.mrf.mxu2 }
  0xc5   :  { %v622_v13 = vpop.f32.mrf.mxu1  ;;  %v630_v14 = vpop.f32.mrf.mxu3 }
  0xc6   :  { %v623_v16 = vadd.f32 %v622_v13, %v575_v8  ;;  %v631_v26 = vadd.f32 %v630_v14, %v591_v12  ;;  %v147_v12 = vadd.f32 %v146_v60, %v85_v57 }
  0xc7   :  { %v583_v15 = vpop.f32.mrf.mxu0 }
  0xcc   :  { %v656_v21 = vpop.f32.mrf.mxu2 }
  0xcd   :  { %v626_v18 = vpop.f32.mrf.mxu1  ;;  %v657_v22 = vadd.f32 %v656_v21, %v623_v16  ;;  %v691_v23 = vpop.f32.mrf.mxu3  ;;  %v387_v16 = vadd.f32 %v386_v63, %v325_v62 }
  0xce   :  { %v627_v28 = vadd.f32 %v626_v18, %v583_v15  ;;  %v185_v15 = vadd.f32 %v184_v58, %v147_v12  ;;  %v790_v12 = vld [vmem:[%s10108_s8 + $0x18] sm:$0xff] }
  0xcf   :  { %v730_v3 = vpop.f32.mrf.mxu0  ;;  %v692_v27 = vadd.f32 %v691_v23, %v657_v22 }
  0xd0   :  { %v216_v23 = vadd.f32 %v215_v59, %v185_v15  ;;  %v789_v15 = vld [vmem:[%s10108_s8 + $0x10] sm:$0xff] }
  0xd1   :  { %v731_v19 = vadd.f32 %v730_v3, %v692_v27  ;;  %v425_v3 = vadd.f32 %v424_v1, %v387_v16 }
  0xd3   :  { %v456_v27 = vadd.f32 %v455_v6, %v425_v3 }
  0xd5   :  { %v661_v32 = vpop.f32.mrf.mxu2  ;;  %v761_v24 = vpop.f32.mrf.mxu1 }
  0xd6   :  { %v662_v4 = vadd.f32 %v661_v32, %v627_v28  ;;  %v697_v5 = vpop.f32.mrf.mxu3  ;;  %v762_v34 = vadd.f32 %v761_v24, %v731_v19  ;;  %v261_v32 = vadd.f32 %v260_v61, %v216_v23  ;;  %v8558_v61 = vld [vmem:[%s10107_s5] ss:$0 sm:$0xff]  ;;  %v788_v23 = vld [vmem:[%s10108_s8 + $0x8] sm:$0xff] }
  0xd7   :  { %v734_v35 = vpop.f32.mrf.mxu0  ;;  %10227 = vst [vmem:[#allocation12_spill] sm:$0xff] %v8558_v61 }
  0xd8   :  { %772 = vst [vmem:[#allocation2] sm:$0xff] %v762_v34  ;;  %v698_v9 = vadd.f32 %v697_v5, %v662_v4  ;;  %v501_v5 = vadd.f32 %v500_v2, %v456_v27 }
  0xda   :  { %v735_v31 = vadd.f32 %v734_v35, %v698_v9  ;;  %v8549_v35 = vadd.f32 %v289_v0, %v261_v32  ;;  %v8551_v9 = vadd.f32 %v529_v7, %v501_v5 }
  0xdc   :  { %10225 = vst [vmem:[#allocation10_spill] sm:$0xff] %v8549_v35 }
  0xdd   :  { %v666_v10 = vpop.f32.mrf.mxu2  ;;  %v765_v40 = vpop.f32.mrf.mxu1  ;;  %10226 = vst [vmem:[#allocation11_spill] sm:$0xff] %v8551_v9 }
  0xde   :  { %v667_v39 = vadd.f32 %v666_v10, %v631_v26  ;;  %v703_v44 = vpop.f32.mrf.mxu3  ;;  %v766_v46 = vadd.f32 %v765_v40, %v735_v31 }
  0xdf   :  { %v738_v11 = vpop.f32.mrf.mxu0 }
  0xe0   :  { %773 = vst [vmem:[#allocation2 + $0x8] sm:$0xff] %v766_v46  ;;  %v704_v47 = vadd.f32 %v703_v44, %v667_v39 }
  0xe2   :  { %v739_v48 = vadd.f32 %v738_v11, %v704_v47 }
  0xe5   :  { %v833_v50 = vpop.f32.mrf.mxu2  ;;  %v769_v51 = vpop.f32.mrf.mxu1 }
  0xe6   :  { %v874_v54 = vpop.f32.mrf.mxu3  ;;  %v770_v8 = vadd.f32 %v769_v51, %v739_v48  ;;  %v834_v13 = vadd.f32 %v8546_v52, %v833_v50 }
  0xe8   :  { %774 = vst [vmem:[#allocation2 + $0x10] sm:$0x3] %v770_v8  ;;  %v875_v21 = vadd.f32 %v874_v54, %v834_v13 }
  0xed   :  { %v904_v14 = vpop.f32.mrf.mxu2 }
  0xee   :  { %v931_v18 = vpop.f32.mrf.mxu3  ;;  %v905_v22 = vadd.f32 %v904_v14, %v875_v21  ;;  %v8567_v14 = vand.u32 4294901760, %v790_v12  ;;  %v8574_v21 = vand.u32 4294901760, %v789_v15 }
  0xf0   :  { %v932_v28 = vadd.f32 %v931_v18, %v905_v22  ;;  %1199 = vmatpush.msra.mxu3 %v8567_v14  ;;  %1099 = vmatpush.msrb.mxu0 %v8567_v14  ;;  %v8577_v18 = vsub.f32 %v790_v12, %v8567_v14  ;;  %v786_v22 = vld [vmem:[%s10109_s6 + $0x38] sm:$0xff]  ;;  %v8595_v32 = vsub.f32 %v789_v15, %v8574_v21 }
  0xf1   :  { %v8585_v3 = vand.u32 4294901760, %v786_v22 }
  0xf2   :  { %10228 = vst [vmem:[#allocation13_spill] sm:$0xff] %v8577_v18  ;;  %1201 = vmatpush.msra.mxu3 %v8574_v21  ;;  %1101 = vmatpush.msrb.mxu0 %v8574_v21 }
  0xf3   :  { %10230 = vst [vmem:[#allocation15_spill] sm:$0xff] %v8595_v32  ;;  %v8604_v5 = vsub.f32 %v786_v22, %v8585_v3  ;;  %1170 = vmatpush.msra.mxu2 %v8577_v18 }
  0xf5   :  { %v964_v19 = vpop.f32.mrf.mxu2  ;;  %10231 = vst [vmem:[#allocation16_spill] sm:$0xff] %v8604_v5  ;;  %1173 = vmatpush.msra.mxu2 %v8595_v32 }
  0xf6   :  { %v965_v4 = vadd.f32 %v964_v19, %v932_v28  ;;  %v989_v24 = vpop.f32.mrf.mxu3  ;;  %v8590_v28 = vand.u32 4294901760, %v8577_v18  ;;  %v8592_v19 = vand.u32 4294901760, %v788_v23 }
  0xf8   :  { %v990_v34 = vadd.f32 %v989_v24, %v965_v4  ;;  %10229 = vst [vmem:[#allocation14_spill] sm:$0xff] %v8590_v28  ;;  %v785_v4 = vld [vmem:[%s10109_s6 + $0x30] sm:$0xff]  ;;  %v787_v24 = vld [vmem:[%s10108_s8] sm:$0xff]  ;;  %1203 = vmatpush.msra.mxu3 %v8592_v19  ;;  %1103 = vmatpush.msrb.mxu0 %v8592_v19 }
  0xfa   :  { %v993_v57 = vrot.slane %v990_v34, 1  ;;  %v994_v60 = vperm.slane %v990_v34, 0  ;;  %v8607_v34 = vand.u32 4294901760, %v785_v4 }
  0xfc   :  { %v995_v58 = vperm.slane %v993_v57, 0  ;;  %v998_v62 = vadd.f32 %v994_v60, %v8549_v35 }
  0xfe   :  { %v999_v59 = vadd.f32 %v995_v58, %v8551_v9  ;;  %7879 = vtanh.f32 %v998_v62  ;;  %v1130_v58 = vsub.f32 %v8577_v18, %v8590_v28  ;;  %v8616_v62 = vand.u32 4294901760, %v8595_v32 }
 0x100   :  { %7881 = vtanh.f32 %v999_v59  ;;  %10232 = vst [vmem:[#allocation17_spill] sm:$0xff] %v8616_v62  ;;  %v8618_v59 = vand.u32 4294901760, %v787_v24 }
 0x102   :  { %1205 = vmatpush.msra.mxu3 %v8618_v59  ;;  %1105 = vmatpush.msrb.mxu0 %v8618_v59 }
 0x103   :  { %1111 = vmatmul.f32.vlgmr.msrb.gmra.mxu0 %v10118_v56  ;;  %1209 = vmatmul.f32.vlgmr.msra.gmra.mxu3 %v10118_v56 }
 0x104   :  { %v7880_v63 = vpop.eup %7879  ;;  %1228 = vmatpush.msra.mxu0 %v8590_v28 }
 0x105   :  { %v1002_v0 = vmul.f32 %v7880_v63, %v8558_v61 }
 0x106   :  { %v7882_v2 = vpop.eup %7881  ;;  %1232 = vmatpush.msra.mxu0 %v8616_v62 }
 0x107   :  { %v1004_v1 = vsel %vm803_vm3, %v1002_v0, 0.0  ;;  %v1003_v6 = vmul.f32 %v7882_v2, %v8558_v61  ;;  %v8622_v0 = vand.u32 4294901760, %v8604_v5  ;;  %v8628_v2 = vsub.f32 %v785_v4, %v8607_v34 }
 0x108   :  { %1005 = vadd.xlane.f32.xlu0 %v1004_v1  ;;  %v8625_v1 = vsub.f32 %v788_v23, %v8592_v19 }
 0x109   :  { %v1007_v7 = vsel %vm803_vm3, %v1003_v6, 0.0  ;;  %10233 = vst [vmem:[#allocation18_spill] sm:$0xff] %v8622_v0  ;;  %v784_v6 = vld [vmem:[%s10109_s6 + $0x28] sm:$0xff] }
 0x10a   :  { %10234 = vst [vmem:[#allocation19_spill] sm:$0xff] %v8625_v1  ;;  %1176 = vmatpush.msra.mxu2 %v8625_v1 }
 0x10b   :  { %10235 = vst [vmem:[#allocation20_spill] sm:$0xff] %v8628_v2 }
 0x110   :  { %1008 = vadd.xlane.f32.xlu0 %v1007_v7  ;;  %v8634_v7 = vand.u32 4294901760, %v1130_v58 }
 0x112   :  { %1132 = vmatpush.msrb.mxu1 %v8634_v7 }
 0x17b   :  { %v1006_v26 = vpop.xlane.xlu0 %1005 }
 0x17c   :  { %v1010_v31 = vrot.slane %v1006_v26, 4 }
 0x17e   :  { %v1011_v10 = vmax.f32 %v1006_v26, %v1010_v31  ;;  %v8641_v31 = vsub.f32 %v787_v24, %v8618_v59 }
 0x180   :  { %v1012_v39 = vrot.slane %v1011_v10, 2  ;;  %10236 = vst [vmem:[#allocation21_spill] sm:$0xff] %v8641_v31  ;;  %1179 = vmatpush.msra.mxu2 %v8641_v31 }
 0x182   :  { %v1013_v40 = vmax.f32 %v1011_v10, %v1012_v39  ;;  %v783_v10 = vld [vmem:[%s10109_s6 + $0x20] sm:$0xff]  ;;  %1286 = vmatpush.msrb.mxu2 %v8585_v3 }
 0x183   :  { %v1009_v44 = vpop.xlane.xlu0 %1008 }
 0x184   :  { %v1014_v46 = vrot.slane %v1013_v40, 1  ;;  %v1016_v47 = vrot.slane %v1009_v44, 4  ;;  %1288 = vmatpush.msrb.mxu2 %v8607_v34 }
 0x186   :  { %v1015_v11 = vmax.f32 %v1013_v40, %v1014_v46  ;;  %v1017_v48 = vmax.f32 %v1009_v44, %v1016_v47  ;;  %v1321_v40 = vsub.f32 %v8604_v5, %v8622_v0  ;;  %v8654_v46 = vand.u32 4294901760, %v8628_v2 }
 0x188   :  { %v1022_v50 = vsub.f32 %v1006_v26, %v1015_v11  ;;  %v1018_v51 = vrot.slane %v1017_v48, 2  ;;  %v1136_v26 = vsub.f32 %v8595_v32, %v8616_v62  ;;  %10238 = vst [vmem:[#allocation23_spill] sm:$0xff] %v8654_v46  ;;  %v8661_v11 = vand.u32 4294901760, %v8641_v31 }
 0x18a   :  { %v1024_v54 = vmul.f32 1.442695, %v1022_v50  ;;  %v1019_v8 = vmax.f32 %v1017_v48, %v1018_v51  ;;  %v8658_v47 = vand.u32 4294901760, %v1136_v26  ;;  %10239 = vst [vmem:[#allocation24_spill] sm:$0xff] %v8661_v11  ;;  %v8663_v48 = vand.u32 4294901760, %v784_v6  ;;  %v782_v51 = vld [vmem:[%s10109_s6 + $0x18] sm:$0xff] }
 0x18b   :  { %v8665_v50 = vand.u32 4294901760, %v783_v10  ;;  %v1148_v15 = vsub.f32 %v8641_v31, %v8661_v11  ;;  %v8689_v23 = vand.u32 4294901760, %v782_v51 }
 0x18c   :  { %7883 = vpow2.f32 %v1024_v54  ;;  %v1020_v13 = vrot.slane %v1019_v8, 1  ;;  %1138 = vmatpush.msrb.mxu1 %v8658_v47  ;;  %1290 = vmatpush.msrb.mxu2 %v8663_v48 }
 0x18d   :  { %v8686_v22 = vsub.f32 %v783_v10, %v8665_v50  ;;  %v8710_v10 = vand.u32 4294901760, %v1148_v15 }
 0x18e   :  { %v1021_v16 = vmax.f32 %v1019_v8, %v1020_v13  ;;  %v8671_v8 = vand.u32 4294901760, %v1321_v40  ;;  %v1327_v13 = vsub.f32 %v8628_v2, %v8654_v46  ;;  %1292 = vmatpush.msrb.mxu2 %v8665_v50 }
 0x18f   :  { %10241 = vst [vmem:[#allocation26_spill] sm:$0xff] %v8686_v22  ;;  %v8716_v40 = vand.u32 4294901760, %v8686_v22 }
 0x190   :  { %v1023_v27 = vsub.f32 %v1009_v44, %v1021_v16  ;;  %v8650_v44 = vand.u32 4294901760, %v8625_v1  ;;  %v8683_v16 = vsub.f32 %v784_v6, %v8663_v48  ;;  %1323 = vmatpush.msrb.mxu3 %v8671_v8  ;;  %v779_v6 = vld [vmem:[%s10109_s6] sm:$0xff]  ;;  %10242 = vst [vmem:[#allocation27_spill] sm:$0xff] %v8710_v10  ;;  %1294 = vmatpush.msrb.mxu2 %v8689_v23 }
 0x191   :  { %10244 = vst [vmem:[#allocation29_spill] sm:$0xff] %v8716_v40  ;;  %v1339_v9 = vsub.f32 %v8686_v22, %v8716_v40  ;;  %v8740_v35 = vand.u32 4294901760, %v779_v6 }
 0x192   :  { %v8609_v57 = vpop.eup %7883  ;;  %v1026_v60 = vmul.f32 1.442695, %v1023_v27  ;;  %10237 = vst [vmem:[#allocation22_spill] sm:$0xff] %v8650_v44  ;;  %v1142_v12 = vsub.f32 %v8625_v1, %v8650_v44  ;;  %v781_v27 = vld [vmem:[%s10109_s6 + $0x10] sm:$0xff]  ;;  %1236 = vmatpush.msra.mxu0 %v8650_v44 }
 0x193   :  { %v1028_v63 = vrot.slane %v8609_v57, 4  ;;  %10240 = vst [vmem:[#allocation25_spill] sm:$0xff] %v8683_v16  ;;  %v8700_v58 = vand.u32 4294901760, %v781_v27  ;;  %v8756_v28 = vand.u32 4294901760, %v1339_v9 }
 0x194   :  { %7885 = vpow2.f32 %v1026_v60  ;;  %v8695_v24 = vand.u32 4294901760, %v1142_v12  ;;  %v8697_v60 = vand.u32 4294901760, %v1327_v13  ;;  %1240 = vmatpush.msra.mxu0 %v8661_v11  ;;  %10249 = vst [vmem:[#allocation34_spill] sm:$0xff] %v8740_v35 }
 0x195   :  { %v1029_v39 = vadd.f32 %v8609_v57, %v1028_v63  ;;  %v780_v63 = vld [vmem:[%s10109_s6 + $0x8] sm:$0xff]  ;;  %v8727_v15 = vsub.f32 %v781_v27, %v8700_v58  ;;  %10253 = vst [vmem:[#allocation38_spill] sm:$0xff] %v8756_v28  ;;  %1296 = vmatpush.msrb.mxu2 %v8700_v58 }
 0x196   :  { %1144 = vmatpush.msrb.mxu1 %v8695_v24  ;;  %1329 = vmatpush.msrb.mxu3 %v8697_v60  ;;  %v8729_v61 = vand.u32 4294901760, %v780_v63 }
 0x197   :  { %v1030_v54 = vrot.slane %v1029_v39, 2  ;;  %10246 = vst [vmem:[#allocation31_spill] sm:$0xff] %v8727_v15  ;;  %1381 = vmatpush.msrb.mxu0 %v8604_v5  ;;  %v8748_v44 = vand.u32 4294901760, %v8727_v15 }
 0x198   :  { %10247 = vst [vmem:[#allocation32_spill] sm:$0xff] %v8729_v61  ;;  %1150 = vmatpush.msrb.mxu1 %v8710_v10  ;;  %v8751_v11 = vsub.f32 %v780_v63, %v8729_v61  ;;  %1298 = vmatpush.msrb.mxu2 %v8729_v61 }
 0x199   :  { %v1031_v4 = vadd.f32 %v1030_v54, %v1029_v39  ;;  %v8713_v39 = vand.u32 4294901760, %v8683_v16  ;;  %v8719_v54 = vsub.f32 %v782_v51, %v8689_v23  ;;  %10250 = vst [vmem:[#allocation35_spill] sm:$0xff] %v8748_v44  ;;  %1384 = vmatpush.msrb.mxu0 %v8628_v2 }
 0x19a   :  { %v8708_v26 = vpop.eup %7885  ;;  %10251 = vst [vmem:[#allocation36_spill] sm:$0xff] %v8751_v11  ;;  %1259 = vmatpush.msra.mxu1 %v8567_v14  ;;  %v8774_v5 = vand.u32 4294901760, %v8751_v11  ;;  %1300 = vmatpush.msrb.mxu2 %v8740_v35 }
 0x19b   :  { %10243 = vst [vmem:[#allocation28_spill] sm:$0xff] %v8713_v39  ;;  %v1032_v12 = vrot.slane %v1031_v4, 1  ;;  %v1034_v13 = vrot.slane %v8708_v26, 4  ;;  %v1333_v51 = vsub.f32 %v8683_v16, %v8713_v39  ;;  %v8737_v56 = vand.u32 4294901760, %v8719_v54  ;;  %1387 = vmatpush.msrb.mxu0 %v8683_v16 }
 0x19c   :  { %10245 = vst [vmem:[#allocation30_spill] sm:$0xff] %v8719_v54  ;;  %1261 = vmatpush.msra.mxu1 %v8574_v21  ;;  %v1357_v10 = vsub.f32 %v8751_v11, %v8774_v5 }
 0x19d   :  { %10248 = vst [vmem:[#allocation33_spill] sm:$0xff] %v8737_v56  ;;  %v8742_v52 = vadd.f32 %v1032_v12, %v1031_v4  ;;  %v1035_v27 = vadd.f32 %v8708_v26, %v1034_v13  ;;  %v8754_v62 = vand.u32 4294901760, %v1333_v51  ;;  %v1345_v4 = vsub.f32 %v8719_v54, %v8737_v56  ;;  %1390 = vmatpush.msrb.mxu0 %v8686_v22 }
 0x19e   :  { %v8762_v12 = vsub.f32 %v779_v6, %v8740_v35  ;;  %v10255_v13 = vmov 0.0   ;;  %v1351_v51 = vsub.f32 %v8727_v15, %v8748_v44  ;;  %10256 = vst [vmem:[#allocation40_spill] sm:$0xff] %v8774_v5  ;;  %1263 = vmatpush.msra.mxu1 %v8592_v19 }
 0x19f   :  { %10252 = vst [vmem:[#allocation37_spill] sm:$0xff] %v8754_v62  ;;  %7887 = vrcp.f32 %v8742_v52  ;;  %1152 = vmatmul.f32.vlgmr.msrb.gmra.mxu1 %v10255_v13  ;;  %v1036_v63 = vrot.slane %v1035_v27, 2  ;;  %1335 = vmatpush.msrb.mxu3 %v8754_v62  ;;  %v8769_v9 = vand.u32 4294901760, %v1345_v4  ;;  %vm1045_vm5 = vweird.f32 %v8742_v52 }
 0x1a0   :  { %10254 = vst [vmem:[#allocation39_spill] sm:$0xff] %v8762_v12  ;;  %v8778_v6 = vand.u32 4294901760, %v8762_v12  ;;  %v8783_v4 = vand.u32 4294901760, %v1351_v51  ;;  %1265 = vmatpush.msra.mxu1 %v8618_v59  ;;  %1242 = vmatmul.f32.vlgmr.msra.gmra.mxu0 %v10255_v13 }
 0x1a1   :  { %v1037_v2 = vadd.f32 %v1036_v63, %v1035_v27  ;;  %1341 = vmatpush.msrb.mxu3 %v8756_v28  ;;  %v8793_v27 = vand.u32 4294901760, %v1357_v10  ;;  %1393 = vmatpush.msrb.mxu0 %v8719_v54 }
 0x1a2   :  { %10257 = vst [vmem:[#allocation41_spill] sm:$0xff] %v8778_v6  ;;  %v1363_v62 = vsub.f32 %v8762_v12, %v8778_v6  ;;  %1418 = vmatpush.msrb.mxu1 %v8585_v3  ;;  %1182 = vmatmul.f32.vlgmr.msra.gmra.mxu2 %v10255_v13 }
 0x1a3   :  { %v1038_v16 = vrot.slane %v1037_v2, 1  ;;  %1347 = vmatpush.msrb.mxu3 %v8769_v9  ;;  %10258 = vst [vmem:[#allocation42_spill] sm:$0xff] %v8793_v27  ;;  %1396 = vmatpush.msrb.mxu0 %v8727_v15 }
 0x1a4   :  { %v8801_v22 = vand.u32 4294901760, %v1363_v62  ;;  %1420 = vmatpush.msrb.mxu1 %v8607_v34  ;;  %1451 = vmatpush.msra.mxu2 %v8622_v0 }
 0x1a5   :  { %v7888_v63 = vpop.eup %7887  ;;  %v8798_v28 = vadd.f32 %v1038_v16, %v1037_v2  ;;  %1353 = vmatpush.msrb.mxu3 %v8783_v4  ;;  %v1051_v2 = vand.u32 2147483648, %v8742_v52  ;;  %v1049_v16 = vand.u32 2147483647, %v8742_v52  ;;  %1399 = vmatpush.msrb.mxu0 %v8751_v11 }
 0x1a6   :  { %v1041_v51 = vmul.f32 %v7888_v63, %v8742_v52  ;;  %10259 = vst [vmem:[#allocation43_spill] sm:$0xff] %v8801_v22  ;;  %1422 = vmatpush.msrb.mxu1 %v8663_v48  ;;  %vm1046_vm4 = vweird.f32 %v7888_v63  ;;  %1455 = vmatpush.msra.mxu2 %v8654_v46 }
 0x1a7   :  { %7889 = vrcp.f32 %v8798_v28  ;;  %1359 = vmatpush.msrb.mxu3 %v8793_v27  ;;  %1267 = vmatmul.f32.vlgmr.msra.gmra.mxu1 %v10255_v13  ;;  %vm1047_vm6 = vmor %vm1045_vm5, %vm1046_vm4  ;;  %v1052_v13 = vor.u32 1.1754944e-38, %v1051_v2  ;;  %vm1050_vm7 = vcmp.eq.f32.partialorder %v1049_v16, 8.507059e+37  ;;  %vm1060_vm9 = vweird.f32 %v8798_v28 }
 0x1a8   :  { %v1042_v10 = vsub.f32 1.0, %v1041_v51  ;;  %1424 = vmatpush.msrb.mxu1 %v8665_v50  ;;  %1402 = vmatpush.msrb.mxu0 %v8762_v12  ;;  %vm1558_vm4 = vcmask 254976  }
 0x1a9   :  { %1365 = vmatpush.msrb.mxu3 %v8801_v22  ;;  %1459 = vmatpush.msra.mxu2 %v8713_v39 }
 0x1aa   :  { %v1043_v62 = vmul.f32 %v7888_v63, %v1042_v10  ;;  %1426 = vmatpush.msrb.mxu1 %v8689_v23  ;;  %1575 = vmatpush.msra.mxu0 %v8376_v25 }
 0x1ab   :  { %1494 = vmatpush.msra.mxu3 %v8585_v3  ;;  %1463 = vmatpush.msra.mxu2 %v8716_v40 }
 0x1ac   :  { %v1044_v51 = vadd.f32 %v7888_v63, %v1043_v62  ;;  %1428 = vmatpush.msrb.mxu1 %v8700_v58  ;;  %1577 = vmatpush.msra.mxu0 %v8390_v29 }
 0x1ad   :  { %1496 = vmatpush.msra.mxu3 %v8607_v34  ;;  %v7890_v10 = vpop.eup %7889  ;;  %1467 = vmatpush.msra.mxu2 %v8737_v56 }
 0x1ae   :  { %v1048_v15 = vsel %vm1047_vm6, %v7888_v63, %v1044_v51  ;;  %v1056_v52 = vmul.f32 %v7890_v10, %v8798_v28  ;;  %1430 = vmatpush.msrb.mxu1 %v8729_v61  ;;  %v1066_v63 = vand.u32 2147483648, %v8798_v28  ;;  %vm1061_vm8 = vweird.f32 %v7890_v10  ;;  %1579 = vmatpush.msra.mxu0 %v8406_v33 }
 0x1af   :  { %v1053_v62 = vsel %vm1050_vm7, %v1052_v13, %v1048_v15  ;;  %1498 = vmatpush.msra.mxu3 %v8663_v48  ;;  %v8836_v15 = vld [vmem:[%s10102_s0] sm:$0xff]  ;;  %v1064_v51 = vand.u32 2147483647, %v8798_v28  ;;  %vm1062_vm10 = vmor %vm1060_vm9, %vm1061_vm8  ;;  %1471 = vmatpush.msra.mxu2 %v8748_v44 }
 0x1b0   :  { %v1054_v2 = vmul.f32 %v8609_v57, %v1053_v62  ;;  %v1057_v11 = vsub.f32 1.0, %v1056_v52  ;;  %10260 = vst [vmem:[#allocation44_spill] sm:$0xff] %v8836_v15  ;;  %1432 = vmatpush.msrb.mxu1 %v8740_v35  ;;  %1581 = vmatpush.msra.mxu0 %v8445_v41 }
 0x1b1   :  { %1500 = vmatpush.msra.mxu3 %v8665_v50  ;;  %vm1065_vm11 = vcmp.eq.f32.partialorder %v1064_v51, 8.507059e+37  ;;  %1475 = vmatpush.msra.mxu2 %v8774_v5 }
 0x1b2   :  { %v1070_v16 = vmul.f32 %v8836_v15, %v1054_v2  ;;  %v1058_v57 = vmul.f32 %v7890_v10, %v1057_v11  ;;  %1608 = vmatpush.msra.mxu1 %v8477_v17  ;;  %v1067_v11 = vor.u32 1.1754944e-38, %v1066_v63 }
 0x1b3   :  { %1502 = vmatpush.msra.mxu3 %v8689_v23  ;;  %1479 = vmatpush.msra.mxu2 %v8778_v6 }
 0x1b4   :  { %v1072_v13 = vsel %vm51_vm0, %v1070_v16, 0.0  ;;  %v1059_v62 = vadd.f32 %v7890_v10, %v1058_v57  ;;  %1614 = vmatpush.msra.mxu1 %v8483_v20 }
 0x1b5   :  { %v1073_v52 = vrot.slane %v1072_v13, 4  ;;  %1504 = vmatpush.msra.mxu3 %v8700_v58 }
 0x1b6   :  { %v1063_v2 = vsel %vm1062_vm10, %v7890_v10, %v1059_v62  ;;  %1620 = vmatpush.msra.mxu1 %v8490_v53  ;;  %v8863_v10 = vld [vmem:[%s10102_s0 + $0x8] sm:$0xff] }
 0x1b7   :  { %1506 = vmatpush.msra.mxu3 %v8729_v61  ;;  %v1068_v16 = vsel %vm1065_vm11, %v1067_v11, %v1063_v2  ;;  %v1074_v57 = vadd.f32 %v1073_v52, %v1072_v13  ;;  %10261 = vst [vmem:[#allocation45_spill] sm:$0xff] %v8863_v10 }
 0x1b8   :  { %v1069_v28 = vmul.f32 %v8708_v26, %v1068_v16  ;;  %1626 = vmatpush.msra.mxu1 %v8500_v55 }
 0x1b9   :  { %1508 = vmatpush.msra.mxu3 %v8740_v35  ;;  %v1075_v51 = vrot.slane %v1074_v57, 2 }
 0x1ba   :  { %v1071_v63 = vmul.f32 %v8863_v10, %v1069_v28 }
 0x1bb   :  { %v1076_v26 = vadd.f32 %v1075_v51, %v1074_v57  ;;  %v1210_v51 = vpop.f32.mrf.mxu3 }
 0x1bc   :  { %v1079_v13 = vsel %vm51_vm0, %v1071_v63, 0.0 }
 0x1bd   :  { %v1080_v62 = vrot.slane %v1079_v13, 4  ;;  %v1077_v2 = vrot.slane %v1076_v26, 1 }
 0x1bf   :  { %v1081_v52 = vadd.f32 %v1080_v62, %v1079_v13  ;;  %v1078_v55 = vadd.f32 %v1077_v2, %v1076_v26 }
 0x1c1   :  { %v1082_v11 = vrot.slane %v1081_v52, 2 }
 0x1c3   :  { %v1083_v16 = vadd.f32 %v1082_v11, %v1081_v52 }
 0x1c5   :  { %v1084_v15 = vrot.slane %v1083_v16, 1 }
 0x1c7   :  { %v1085_v12 = vadd.f32 %v1084_v15, %v1083_v16 }
 0x1c9   :  { %v1274_v53 = vsel %vm1273_vm12, %v1085_v12, %v1078_v55 }
 0x1ca   :  { %v1275_v5 = vsel %vm51_vm0, %v1274_v53, 0  ;;  %v1112_v53 = vpop.f32.mrf.mxu0 }
 0x1cb   :  { %v1301_v28 = vand.u32 4294901760, %v1275_v5 }
 0x1cd   :  { %1367 = vmatmul.f32.vlgmr.msrb.gmra.mxu3 %v1301_v28  ;;  %v1302_v10 = vsub.f32 %v1275_v5, %v1301_v28 }
 0x1ce   :  { %1735 = vmatpush.msrb.mxu3 %v8376_v25 }
 0x1cf   :  { %1405 = vmatmul.f32.vlgmr.msrb.gmra.mxu0 %v1302_v10  ;;  %v1303_v63 = vand.u32 4294901760, %v1302_v10 }
 0x1d0   :  { %1737 = vmatpush.msrb.mxu3 %v8390_v29  ;;  %1646 = vmatpush.msrb.mxu0 %v8404_v30 }
 0x1d1   :  { %1436 = vmatmul.f32.vlgmr.msrb.gmra.mxu1 %v1303_v63  ;;  %v1304_v57 = vsub.f32 %v1302_v10, %v1303_v63 }
 0x1d2   :  { %1739 = vmatpush.msrb.mxu3 %v8406_v33  ;;  %1675 = vmatpush.msrb.mxu1 %v8376_v25 }
 0x1d3   :  { %v1305_v55 = vand.u32 4294901760, %v1304_v57  ;;  %1649 = vmatpush.msrb.mxu0 %v8419_v36 }
 0x1d4   :  { %1741 = vmatpush.msrb.mxu3 %v8445_v41  ;;  %1677 = vmatpush.msrb.mxu1 %v8390_v29 }
 0x1d5   :  { %1306 = vmatmul.f32.vlgmr.msrb.gmra.mxu2 %v1305_v55  ;;  %1510 = vmatmul.f32.vlgmr.msra.gmra.mxu3 %v1301_v28 }
 0x1d6   :  { %1704 = vmatpush.msrb.mxu2 %v8429_v37  ;;  %1954 = vmatpush.msra.mxu3 %v8567_v14 }
 0x1d7   :  { %1679 = vmatpush.msrb.mxu1 %v8406_v33  ;;  %1652 = vmatpush.msrb.mxu0 %v8432_v38 }
 0x1d8   :  { %1708 = vmatpush.msrb.mxu2 %v8450_v42  ;;  %1956 = vmatpush.msra.mxu3 %v8574_v21 }
 0x1d9   :  { %1681 = vmatpush.msrb.mxu1 %v8445_v41  ;;  %1655 = vmatpush.msrb.mxu0 %v8454_v43 }
 0x1da   :  { %1712 = vmatpush.msrb.mxu2 %v8461_v45  ;;  %1958 = vmatpush.msra.mxu3 %v8592_v19 }
 0x1dc   :  { %1716 = vmatpush.msrb.mxu2 %v8472_v49  ;;  %1960 = vmatpush.msra.mxu3 %v8618_v59 }
 0x1dd   :  { %1481 = vmatmul.f32.vlgmr.msra.gmra.mxu2 %v1301_v28 }
 0x1de   :  { %1925 = vmatpush.msra.mxu2 %v8577_v18 }
 0x1e0   :  { %1928 = vmatpush.msra.mxu2 %v8595_v32 }
 0x1e2   :  { %1931 = vmatpush.msra.mxu2 %v8625_v1 }
 0x1e4   :  { %1934 = vmatpush.msra.mxu2 %v8641_v31 }
 0x21c   :  { %v1153_v5 = vpop.f32.mrf.mxu1 }
 0x21d   :  { %v1154_v12 = vadd.f32 %v1153_v5, %v1112_v53  ;;  %v1243_v62 = vpop.f32.mrf.mxu0  ;;  %v8897_v53 = vld [vmem:[%s10110_s9] ss:$0 sm:$0xff] }
 0x224   :  { %v1268_v52 = vpop.f32.mrf.mxu1 }
 0x225   :  { %v1183_v15 = vpop.f32.mrf.mxu2 }
 0x226   :  { %v1184_v10 = vadd.f32 %v1183_v15, %v1154_v12  ;;  %v1514_v12 = vld [vmem:[#allocation2] sm:$0x3] }
 0x228   :  { %v1211_v13 = vadd.f32 %v1210_v51, %v1184_v10 }
 0x22a   :  { %v1244_v26 = vadd.f32 %v1243_v62, %v1211_v13 }
 0x22c   :  { %v1269_v11 = vadd.f32 %v1268_v52, %v1244_v26 }
 0x24c   :  { %v1406_v57 = vpop.f32.mrf.mxu0 }
 0x24e   :  { %v1437_v1 = vpop.f32.mrf.mxu1 }
 0x250   :  { %v1368_v2 = vpop.f32.mrf.mxu3 }
 0x258   :  { %v1307_v16 = vpop.f32.mrf.mxu2  ;;  %v1511_v49 = vpop.f32.mrf.mxu3 }
 0x259   :  { %v1308_v28 = vadd.f32 %v1307_v16, %v1269_v11 }
 0x25b   :  { %v1369_v63 = vadd.f32 %v1368_v2, %v1308_v28 }
 0x25d   :  { %v1407_v55 = vadd.f32 %v1406_v57, %v1369_v63 }
 0x25f   :  { %v1438_v32 = vadd.f32 %v1437_v1, %v1407_v55 }
 0x260   :  { %v1482_v31 = vpop.f32.mrf.mxu2 }
 0x261   :  { %v1483_v18 = vadd.f32 %v1482_v31, %v1438_v32 }
 0x263   :  { %v1512_v5 = vadd.f32 %v1511_v49, %v1483_v18 }
 0x265   :  { %v1515_v15 = vadd.f32 %v1514_v12, %v1512_v5 }
 0x267   :  { %v1516_v10 = vadd.f32 %v8897_v53, %v1515_v15 }
 0x269   :  { %7891 = vtanh.f32 %v1516_v10  ;;  %v7859_v13 = vmul.f32 -1.442695, %v1516_v10 }
 0x26b   :  { %7893 = vpow2.f32 %v7859_v13 }
 0x26f   :  { %v7892_v51 = vpop.eup %7891 }
 0x270   :  { %1539 = vrot.lane.b32.xlu1 %v7892_v51, %s8082_s28 }
 0x271   :  { %v7894_v1 = vpop.eup %7893 }
 0x272   :  { %v1520_v32 = vadd.f32 1.0, %v7894_v1 }
 0x274   :  { %7895 = vrcp.f32 %v1520_v32  ;;  %v1532_v49 = vand.u32 2147483648, %v1520_v32  ;;  %vm1526_vm14 = vweird.f32 %v1520_v32  ;;  %v1530_v18 = vand.u32 2147483647, %v1520_v32 }
 0x276   :  { %v1533_v16 = vor.u32 1.1754944e-38, %v1532_v49  ;;  %vm1531_vm1 = vcmp.eq.f32.partialorder %v1530_v18, 8.507059e+37  ;;  %v10263_v49 = vld [vmem:[#allocation27_spill] sm:$0xff]  ;;  %v10264_v18 = vld [vmem:[#allocation38_spill] sm:$0xff] }
 0x27a   :  { %v7896_v31 = vpop.eup %7895 }
 0x27b   :  { %v1522_v62 = vmul.f32 %v7896_v31, %v1520_v32  ;;  %vm1527_vm13 = vweird.f32 %v7896_v31 }
 0x27c   :  { %vm1528_vm15 = vmor %vm1526_vm14, %vm1527_vm13 }
 0x27d   :  { %v1523_v26 = vsub.f32 1.0, %v1522_v62 }
 0x27f   :  { %v1524_v52 = vmul.f32 %v7896_v31, %v1523_v26 }
 0x281   :  { %v1525_v11 = vadd.f32 %v7896_v31, %v1524_v52 }
 0x283   :  { %v1529_v2 = vsel %vm1528_vm15, %v7896_v31, %v1525_v11  ;;  %v10262_v11 = vld [vmem:[#allocation37_spill] sm:$0xff] }
 0x284   :  { %v1534_v63 = vsel %vm1531_vm1, %v1533_v16, %v1529_v2  ;;  %v10265_v2 = vld [vmem:[#allocation14_spill] sm:$0xff]  ;;  %v10266_v16 = vld [vmem:[#allocation17_spill] sm:$0xff] }
 0x285   :  { %v1537_v55 = vmul.f32 0.0, %v1534_v63 }
 0x2e2   :  { %v1540_v28 = vpop.permute.xlu1 %1539 }
 0x2e3   :  { %v1542_v57 = vmul.f32 %v1540_v28, %v1534_v63  ;;  %v10267_v28 = vld [vmem:[#allocation22_spill] sm:$0xff] }
 0x2e5   :  { %1544 = vrot.lane.b32.xlu1 %v1542_v57, %s8083_s29  ;;  %v10269_v57 = vld [vmem:[#allocation16_spill] sm:$0xff] }
 0x357   :  { %v1545_v5 = vpop.permute.xlu1 %1544 }
 0x358   :  { %v8902_v12 = vadd.f32 %v1545_v5, %v1537_v55  ;;  %v10270_v55 = vld [vmem:[#allocation20_spill] sm:$0xff]  ;;  %v10271_v5 = vld [vmem:[#allocation25_spill] sm:$0xff] }
 0x35a   :  { %7897 = vtanh.f32 %v8902_v12 }
 0x360   :  { %v7898_v15 = vpop.eup %7897 }
 0x361   :  { %1550 = vrot.lane.b32.xlu2 %v7898_v15, %s8082_s28  ;;  %v10272_v15 = vld [vmem:[#allocation26_spill] sm:$0xff] }
 0x3bb   :  { %v1551_v10 = vpop.permute.xlu2 %1550 }
 0x3bc   :  { %v1553_v51 = vmul.f32 %v1551_v10, %v1534_v63  ;;  %v10268_v63 = vld [vmem:[#allocation24_spill] sm:$0xff]  ;;  %v10273_v10 = vld [vmem:[#allocation31_spill] sm:$0xff] }
 0x3be   :  { %1555 = vrot.lane.b32.xlu2 %v1553_v51, %s8083_s29  ;;  %v10274_v51 = vld [vmem:[#allocation40_spill] sm:$0xff] }
 0x418   :  { %v1556_v13 = vpop.permute.xlu2 %1555 }
 0x419   :  { %1559 = vst.msk [vmem:[#allocation3] sm:$0x3] %vm1558_vm4, %v1556_v13  ;;  %v1560_v1 = vsel %vm803_vm3, %v1556_v13, 0  ;;  %v10275_v13 = vld [vmem:[#allocation36_spill] sm:$0xff] }
 0x41a   :  { %v8909_v32 = vand.u32 4294901760, %v1560_v1 }
 0x41c   :  { %v1583_v31 = vsub.f32 %v1560_v1, %v8909_v32  ;;  %1628 = vmatmul.f32.vlgmr.msra.gmra.mxu1 %v8909_v32  ;;  %1718 = vmatmul.f32.vlgmr.msrb.gmra.mxu2 %v8909_v32  ;;  %v10276_v1 = vld [vmem:[#allocation7_spill] sm:$0xff] }
 0x41d   :  { %1743 = vmatmul.f32.vlgmr.msrb.gmra.mxu3 %v8909_v32  ;;  %1887 = vmatpush.msra.mxu1 %v8634_v7 }
 0x41e   :  { %v1584_v62 = vand.u32 4294901760, %v1583_v31  ;;  %2077 = vmatpush.msrb.mxu3 %v8671_v8  ;;  %2040 = vmatpush.msrb.mxu2 %v8585_v3 }
 0x41f   :  { %1893 = vmatpush.msra.mxu1 %v8658_v47 }
 0x420   :  { %v1585_v26 = vsub.f32 %v1583_v31, %v1584_v62  ;;  %2083 = vmatpush.msrb.mxu3 %v8697_v60  ;;  %2042 = vmatpush.msrb.mxu2 %v8607_v34 }
 0x421   :  { %1899 = vmatpush.msra.mxu1 %v8695_v24 }
 0x422   :  { %v1586_v52 = vand.u32 4294901760, %v1585_v26  ;;  %2089 = vmatpush.msrb.mxu3 %v10262_v11  ;;  %2044 = vmatpush.msrb.mxu2 %v8663_v48 }
 0x423   :  { %1905 = vmatpush.msra.mxu1 %v10263_v49 }
 0x424   :  { %1587 = vmatmul.f32.vlgmr.msra.gmra.mxu0 %v1586_v52  ;;  %1685 = vmatmul.f32.vlgmr.msrb.gmra.mxu1 %v1584_v62 }
 0x425   :  { %1937 = vmatmul.f32.vlgmr.msra.gmra.mxu2 %v1583_v31  ;;  %1964 = vmatmul.f32.vlgmr.msra.gmra.mxu3 %v1584_v62 }
 0x426   :  { %1854 = vmatpush.msra.mxu0 %v8567_v14  ;;  %2014 = vmatpush.msrb.mxu1 %v8567_v14 }
 0x427   :  { %2095 = vmatpush.msrb.mxu3 %v10264_v18  ;;  %2046 = vmatpush.msrb.mxu2 %v8665_v50 }
 0x428   :  { %1856 = vmatpush.msra.mxu0 %v8574_v21  ;;  %2016 = vmatpush.msrb.mxu1 %v8574_v21 }
 0x429   :  { %2101 = vmatpush.msrb.mxu3 %v8769_v9  ;;  %2048 = vmatpush.msrb.mxu2 %v8689_v23 }
 0x42a   :  { %1858 = vmatpush.msra.mxu0 %v8592_v19  ;;  %2018 = vmatpush.msrb.mxu1 %v8592_v19 }
 0x42b   :  { %2107 = vmatpush.msrb.mxu3 %v8783_v4  ;;  %2050 = vmatpush.msrb.mxu2 %v8700_v58 }
 0x42c   :  { %1658 = vmatmul.f32.vlgmr.msrb.gmra.mxu0 %v1583_v31  ;;  %1907 = vmatmul.f32.vlgmr.msra.gmra.mxu1 %v8909_v32  ;;  %v10278_v31 = vld [vmem:[#allocation8_spill] sm:$0xff] }
 0x42d   :  { %1860 = vmatpush.msra.mxu0 %v8618_v59  ;;  %2020 = vmatpush.msrb.mxu1 %v8618_v59 }
 0x42e   :  { %2113 = vmatpush.msrb.mxu3 %v8793_v27  ;;  %2052 = vmatpush.msrb.mxu2 %v8729_v61 }
 0x42f   :  { %1983 = vmatpush.msrb.mxu0 %v10265_v2  ;;  %2172 = vmatpush.msra.mxu1 %v8585_v3 }
 0x430   :  { %2119 = vmatpush.msrb.mxu3 %v8801_v22  ;;  %2054 = vmatpush.msrb.mxu2 %v8740_v35 }
 0x431   :  { %1987 = vmatpush.msrb.mxu0 %v10266_v16  ;;  %2174 = vmatpush.msra.mxu1 %v8607_v34 }
 0x432   :  { %2248 = vmatpush.msra.mxu3 %v8585_v3  ;;  %2205 = vmatpush.msra.mxu2 %v8622_v0 }
 0x433   :  { %1991 = vmatpush.msrb.mxu0 %v10267_v28  ;;  %2176 = vmatpush.msra.mxu1 %v8663_v48 }
 0x434   :  { %1866 = vmatmul.f32.vlgmr.msra.gmra.mxu0 %v1586_v52  ;;  %2022 = vmatmul.f32.vlgmr.msrb.gmra.mxu1 %v8909_v32  ;;  %v10279_v52 = vld [vmem:[#allocation9_spill] sm:$0xff] }
 0x435   :  { %1995 = vmatpush.msrb.mxu0 %v10268_v63  ;;  %2178 = vmatpush.msra.mxu1 %v8665_v50 }
 0x436   :  { %2250 = vmatpush.msra.mxu3 %v8607_v34  ;;  %2209 = vmatpush.msra.mxu2 %v8654_v46 }
 0x437   :  { %2135 = vmatpush.msra.mxu0 %v10269_v57  ;;  %2180 = vmatpush.msra.mxu1 %v8689_v23 }
 0x438   :  { %2252 = vmatpush.msra.mxu3 %v8663_v48  ;;  %2213 = vmatpush.msra.mxu2 %v8713_v39  ;;  %v10281_v39 = vld [vmem:[#allocation11_spill] sm:$0xff] }
 0x439   :  { %2138 = vmatpush.msra.mxu0 %v10270_v55  ;;  %2182 = vmatpush.msra.mxu1 %v8700_v58 }
 0x43a   :  { %2254 = vmatpush.msra.mxu3 %v8665_v50  ;;  %2217 = vmatpush.msra.mxu2 %v8716_v40  ;;  %v10280_v40 = vld [vmem:[#allocation10_spill] sm:$0xff] }
 0x43b   :  { %2141 = vmatpush.msra.mxu0 %v10271_v5  ;;  %2184 = vmatpush.msra.mxu1 %v8729_v61 }
 0x43c   :  { %1997 = vmatmul.f32.vlgmr.msrb.gmra.mxu0 %v8909_v32  ;;  %2256 = vmatpush.msra.mxu3 %v8689_v23  ;;  %v10277_v32 = vld [vmem:[#allocation39_spill] sm:$0xff] }
 0x43d   :  { %2144 = vmatpush.msra.mxu0 %v10272_v15  ;;  %2186 = vmatpush.msra.mxu1 %v8740_v35 }
 0x43e   :  { %2258 = vmatpush.msra.mxu3 %v8700_v58  ;;  %2221 = vmatpush.msra.mxu2 %v8737_v56 }
 0x43f   :  { %2147 = vmatpush.msra.mxu0 %v8719_v54  ;;  %2361 = vmatpush.msrb.mxu1 %v8477_v17 }
 0x440   :  { %2260 = vmatpush.msra.mxu3 %v8729_v61  ;;  %2225 = vmatpush.msra.mxu2 %v8748_v44 }
 0x441   :  { %2150 = vmatpush.msra.mxu0 %v10273_v10  ;;  %2367 = vmatpush.msrb.mxu1 %v8483_v20 }
 0x442   :  { %2262 = vmatpush.msra.mxu3 %v8740_v35  ;;  %2229 = vmatpush.msra.mxu2 %v10274_v51 }
 0x443   :  { %2153 = vmatpush.msra.mxu0 %v10275_v13  ;;  %2373 = vmatpush.msrb.mxu1 %v10276_v1 }
 0x444   :  { %2233 = vmatpush.msra.mxu2 %v8778_v6 }
 0x445   :  { %2156 = vmatpush.msra.mxu0 %v10277_v32  ;;  %2379 = vmatpush.msrb.mxu1 %v10278_v31 }
 0x447   :  { %2328 = vmatpush.msrb.mxu0 %v8376_v25 }
 0x449   :  { %2330 = vmatpush.msrb.mxu0 %v8390_v29 }
 0x44b   :  { %2332 = vmatpush.msrb.mxu0 %v8406_v33 }
 0x44d   :  { %2334 = vmatpush.msrb.mxu0 %v8445_v41 }
 0x499   :  { %v1629_v62 = vpop.f32.mrf.mxu1 }
 0x49f   :  { %v1719_v32 = vpop.f32.mrf.mxu2 }
 0x4a0   :  { %v1744_v31 = vpop.f32.mrf.mxu3 }
 0x4a1   :  { %v1588_v26 = vpop.f32.mrf.mxu0  ;;  %v1686_v6 = vpop.f32.mrf.mxu1 }
 0x4a2   :  { %v1589_v13 = vadd.f32 %v10279_v52, %v1588_v26  ;;  %v10282_v26 = vld [vmem:[#allocation12_spill] sm:$0xff] }
 0x4a4   :  { %v1630_v51 = vadd.f32 %v1629_v62, %v1589_v13 }
 0x4a9   :  { %v1659_v1 = vpop.f32.mrf.mxu0 }
 0x4aa   :  { %v1660_v20 = vadd.f32 %v1659_v1, %v1630_v51 }
 0x4ac   :  { %v1687_v10 = vadd.f32 %v1686_v6, %v1660_v20 }
 0x4ae   :  { %v1720_v44 = vadd.f32 %v1719_v32, %v1687_v10 }
 0x4b0   :  { %v1745_v17 = vadd.f32 %v1744_v31, %v1720_v44 }
 0x4b2   :  { %v1748_v54 = vrot.slane %v1745_v17, 1  ;;  %v1749_v56 = vperm.slane %v1745_v17, 0 }
 0x4b4   :  { %v1750_v15 = vperm.slane %v1748_v54, 0  ;;  %v1753_v5 = vadd.f32 %v1749_v56, %v10280_v40 }
 0x4b6   :  { %7899 = vtanh.f32 %v1753_v5  ;;  %v1754_v55 = vadd.f32 %v1750_v15, %v10281_v39 }
 0x4b8   :  { %7901 = vtanh.f32 %v1754_v55 }
 0x4bc   :  { %v7900_v46 = vpop.eup %7899 }
 0x4bd   :  { %v1757_v13 = vmul.f32 %v7900_v46, %v10282_v26 }
 0x4be   :  { %v7902_v62 = vpop.eup %7901 }
 0x4bf   :  { %v1759_v51 = vsel %vm803_vm3, %v1757_v13, 0.0  ;;  %v1758_v20 = vmul.f32 %v7902_v62, %v10282_v26 }
 0x4c0   :  { %1760 = vadd.xlane.f32.xlu0 %v1759_v51 }
 0x4c1   :  { %v1762_v44 = vsel %vm803_vm3, %v1758_v20, 0.0 }
 0x4c2   :  { %1763 = vadd.xlane.f32.xlu1 %v1762_v44 }
 0x533   :  { %v1761_v17 = vpop.xlane.xlu0 %1760 }
 0x534   :  { %v1765_v54 = vrot.slane %v1761_v17, 4 }
 0x535   :  { %v1764_v6 = vpop.xlane.xlu1 %1763 }
 0x536   :  { %v1766_v56 = vmax.f32 %v1761_v17, %v1765_v54  ;;  %v1771_v5 = vrot.slane %v1764_v6, 4 }
 0x538   :  { %v1767_v10 = vrot.slane %v1766_v56, 2  ;;  %v1772_v15 = vmax.f32 %v1764_v6, %v1771_v5 }
 0x53a   :  { %v1768_v55 = vmax.f32 %v1766_v56, %v1767_v10  ;;  %v1773_v1 = vrot.slane %v1772_v15, 2 }
 0x53c   :  { %v1769_v32 = vrot.slane %v1768_v55, 1  ;;  %v1774_v46 = vmax.f32 %v1772_v15, %v1773_v1 }
 0x53e   :  { %v1770_v31 = vmax.f32 %v1768_v55, %v1769_v32  ;;  %v1775_v52 = vrot.slane %v1774_v46, 1 }
 0x540   :  { %v1777_v13 = vsub.f32 %v1761_v17, %v1770_v31  ;;  %v1776_v39 = vmax.f32 %v1774_v46, %v1775_v52 }
 0x542   :  { %v1779_v26 = vmul.f32 1.442695, %v1777_v13  ;;  %v1778_v62 = vsub.f32 %v1764_v6, %v1776_v39 }
 0x544   :  { %7903 = vpow2.f32 %v1779_v26  ;;  %v1781_v51 = vmul.f32 1.442695, %v1778_v62 }
 0x546   :  { %7905 = vpow2.f32 %v1781_v51 }
 0x54a   :  { %v7904_v20 = vpop.eup %7903 }
 0x54b   :  { %v1783_v44 = vrot.slane %v7904_v20, 4 }
 0x54c   :  { %v7906_v40 = vpop.eup %7905 }
 0x54d   :  { %v1784_v54 = vadd.f32 %v7904_v20, %v1783_v44  ;;  %v1789_v57 = vrot.slane %v7906_v40, 4 }
 0x54f   :  { %v1785_v63 = vrot.slane %v1784_v54, 2  ;;  %v1790_v5 = vadd.f32 %v7906_v40, %v1789_v57 }
 0x551   :  { %v1786_v56 = vadd.f32 %v1785_v63, %v1784_v54  ;;  %v1791_v10 = vrot.slane %v1790_v5, 2 }
 0x553   :  { %v1787_v0 = vrot.slane %v1786_v56, 1  ;;  %v1792_v15 = vadd.f32 %v1791_v10, %v1790_v5 }
 0x555   :  { %v1788_v55 = vadd.f32 %v1787_v0, %v1786_v56  ;;  %v1793_v1 = vrot.slane %v1792_v15, 1 }
 0x557   :  { %7907 = vrcp.f32 %v1788_v55  ;;  %v1794_v17 = vadd.f32 %v1793_v1, %v1792_v15  ;;  %v1806_v31 = vand.u32 2147483648, %v1788_v55  ;;  %v1804_v26 = vand.u32 2147483647, %v1788_v55 }
 0x558   :  { %vm1800_vm6 = vweird.f32 %v1788_v55 }
 0x559   :  { %7909 = vrcp.f32 %v1794_v17  ;;  %v1821_v63 = vand.u32 2147483648, %v1794_v17  ;;  %v1807_v51 = vor.u32 1.1754944e-38, %v1806_v31  ;;  %v1819_v44 = vand.u32 2147483647, %v1794_v17  ;;  %v10284_v31 = vld [vmem:[#allocation45_spill] sm:$0xff] }
 0x55a   :  { %vm1805_vm9 = vcmp.eq.f32.partialorder %v1804_v26, 8.507059e+37  ;;  %vm1815_vm10 = vweird.f32 %v1794_v17 }
 0x55b   :  { %v1822_v15 = vor.u32 1.1754944e-38, %v1821_v63  ;;  %vm1820_vm13 = vcmp.eq.f32.partialorder %v1819_v44, 8.507059e+37 }
 0x55d   :  { %v7908_v39 = vpop.eup %7907 }
 0x55e   :  { %v1796_v6 = vmul.f32 %v7908_v39, %v1788_v55  ;;  %vm1801_vm5 = vweird.f32 %v7908_v39 }
 0x55f   :  { %v7910_v32 = vpop.eup %7909  ;;  %vm1802_vm7 = vmor %vm1800_vm6, %vm1801_vm5 }
 0x560   :  { %v1797_v46 = vsub.f32 1.0, %v1796_v6  ;;  %v1811_v52 = vmul.f32 %v7910_v32, %v1794_v17  ;;  %vm1816_vm8 = vweird.f32 %v7910_v32 }
 0x561   :  { %vm1817_vm11 = vmor %vm1815_vm10, %vm1816_vm8 }
 0x562   :  { %v1798_v13 = vmul.f32 %v7908_v39, %v1797_v46  ;;  %v1812_v62 = vsub.f32 1.0, %v1811_v52  ;;  %v10283_v46 = vld [vmem:[#allocation44_spill] sm:$0xff] }
 0x564   :  { %v1799_v57 = vadd.f32 %v7908_v39, %v1798_v13  ;;  %v1813_v0 = vmul.f32 %v7910_v32, %v1812_v62 }
 0x566   :  { %v1803_v54 = vsel %vm1802_vm7, %v7908_v39, %v1799_v57  ;;  %v1814_v56 = vadd.f32 %v7910_v32, %v1813_v0 }
 0x567   :  { %v1808_v5 = vsel %vm1805_vm9, %v1807_v51, %v1803_v54 }
 0x568   :  { %v1809_v10 = vmul.f32 %v7904_v20, %v1808_v5  ;;  %v1818_v1 = vsel %vm1817_vm11, %v7910_v32, %v1814_v56 }
 0x569   :  { %v1823_v6 = vsel %vm1820_vm13, %v1822_v15, %v1818_v1  ;;  %v10285_v1 = vld [vmem:[#allocation4_spill] sm:$0xff] }
 0x56a   :  { %v1825_v52 = vmul.f32 %v10283_v46, %v1809_v10  ;;  %v1824_v55 = vmul.f32 %v7906_v40, %v1823_v6  ;;  %v10286_v6 = vld [vmem:[#allocation13_spill] sm:$0xff]  ;;  %v10287_v46 = vld [vmem:[#allocation15_spill] sm:$0xff] }
 0x56c   :  { %v1827_v13 = vsel %vm51_vm0, %v1825_v52, 0.0  ;;  %v1826_v62 = vmul.f32 %v10284_v31, %v1824_v55  ;;  %v10288_v52 = vld [vmem:[#allocation19_spill] sm:$0xff]  ;;  %v10289_v55 = vld [vmem:[#allocation21_spill] sm:$0xff]  ;;  %v1908_v31 = vpop.f32.mrf.mxu1 }
 0x56d   :  { %v1828_v28 = vrot.slane %v1827_v13, 4 }
 0x56e   :  { %v1834_v39 = vsel %vm51_vm0, %v1826_v62, 0.0 }
 0x56f   :  { %v1829_v35 = vadd.f32 %v1828_v28, %v1827_v13  ;;  %v1835_v26 = vrot.slane %v1834_v39, 4  ;;  %v1867_v13 = vpop.f32.mrf.mxu0 }
 0x570   :  { %v1909_v62 = vadd.f32 %v1908_v31, %v1867_v13  ;;  %v2268_v31 = vld [vmem:[#allocation2 + $0x2] sm:$0x3] }
 0x571   :  { %v1830_v57 = vrot.slane %v1829_v35, 2  ;;  %v1836_v17 = vadd.f32 %v1835_v26, %v1834_v39  ;;  %v1938_v39 = vpop.f32.mrf.mxu2 }
 0x572   :  { %v1939_v26 = vadd.f32 %v1938_v39, %v1909_v62 }
 0x573   :  { %v1831_v20 = vadd.f32 %v1830_v57, %v1829_v35  ;;  %v1837_v51 = vrot.slane %v1836_v17, 2  ;;  %v1965_v57 = vpop.f32.mrf.mxu3 }
 0x575   :  { %v1832_v63 = vrot.slane %v1831_v20, 1  ;;  %v1838_v32 = vadd.f32 %v1837_v51, %v1836_v17 }
 0x577   :  { %v1839_v0 = vrot.slane %v1838_v32, 1  ;;  %v1833_v44 = vadd.f32 %v1832_v63, %v1831_v20  ;;  %v1998_v17 = vpop.f32.mrf.mxu0  ;;  %v1966_v20 = vadd.f32 %v1965_v57, %v1939_v26  ;;  %v2023_v63 = vpop.f32.mrf.mxu1 }
 0x579   :  { %v1840_v54 = vadd.f32 %v1839_v0, %v1838_v32  ;;  %v1999_v51 = vadd.f32 %v1998_v17, %v1966_v20 }
 0x57b   :  { %v2028_v40 = vsel %vm1273_vm12, %v1840_v54, %v1833_v44  ;;  %v2024_v32 = vadd.f32 %v2023_v63, %v1999_v51 }
 0x57c   :  { %v2029_v5 = vsel %vm51_vm0, %v2028_v40, 0 }
 0x57d   :  { %v2055_v56 = vand.u32 4294901760, %v2029_v5 }
 0x57f   :  { %2121 = vmatmul.f32.vlgmr.msrb.gmra.mxu3 %v2055_v56  ;;  %v2056_v10 = vsub.f32 %v2029_v5, %v2055_v56 }
 0x580   :  { %2488 = vmatpush.msrb.mxu3 %v8376_v25 }
 0x581   :  { %2159 = vmatmul.f32.vlgmr.msra.gmra.mxu0 %v2056_v10  ;;  %v2057_v28 = vand.u32 4294901760, %v2056_v10 }
 0x582   :  { %2490 = vmatpush.msrb.mxu3 %v8390_v29  ;;  %2399 = vmatpush.msra.mxu0 %v8404_v30 }
 0x583   :  { %2190 = vmatmul.f32.vlgmr.msra.gmra.mxu1 %v2057_v28  ;;  %v2058_v35 = vsub.f32 %v2056_v10, %v2057_v28 }
 0x584   :  { %2492 = vmatpush.msrb.mxu3 %v8406_v33  ;;  %2428 = vmatpush.msra.mxu1 %v8376_v25 }
 0x585   :  { %v2059_v15 = vand.u32 4294901760, %v2058_v35  ;;  %2402 = vmatpush.msra.mxu0 %v8419_v36 }
 0x586   :  { %2494 = vmatpush.msrb.mxu3 %v8445_v41  ;;  %2430 = vmatpush.msra.mxu1 %v8390_v29 }
 0x587   :  { %2060 = vmatmul.f32.vlgmr.msrb.gmra.mxu2 %v2059_v15  ;;  %2264 = vmatmul.f32.vlgmr.msra.gmra.mxu3 %v2055_v56 }
 0x588   :  { %2457 = vmatpush.msrb.mxu2 %v8429_v37  ;;  %2707 = vmatpush.msra.mxu3 %v8567_v14 }
 0x589   :  { %2432 = vmatpush.msra.mxu1 %v8406_v33  ;;  %2405 = vmatpush.msra.mxu0 %v8432_v38 }
 0x58a   :  { %2461 = vmatpush.msrb.mxu2 %v8450_v42  ;;  %2709 = vmatpush.msra.mxu3 %v8574_v21 }
 0x58b   :  { %2434 = vmatpush.msra.mxu1 %v8445_v41  ;;  %2408 = vmatpush.msra.mxu0 %v8454_v43 }
 0x58c   :  { %2465 = vmatpush.msrb.mxu2 %v8461_v45  ;;  %2711 = vmatpush.msra.mxu3 %v8592_v19 }
 0x58e   :  { %2469 = vmatpush.msrb.mxu2 %v10285_v1  ;;  %2713 = vmatpush.msra.mxu3 %v8618_v59 }
 0x58f   :  { %2235 = vmatmul.f32.vlgmr.msra.gmra.mxu2 %v2055_v56 }
 0x590   :  { %2678 = vmatpush.msra.mxu2 %v10286_v6 }
 0x592   :  { %2681 = vmatpush.msra.mxu2 %v10287_v46 }
 0x594   :  { %2684 = vmatpush.msra.mxu2 %v10288_v52 }
 0x596   :  { %2687 = vmatpush.msra.mxu2 %v10289_v55 }
 0x5fe   :  { %v2160_v5 = vpop.f32.mrf.mxu0 }
 0x600   :  { %v2191_v10 = vpop.f32.mrf.mxu1 }
 0x602   :  { %v2122_v0 = vpop.f32.mrf.mxu3 }
 0x60a   :  { %v2061_v44 = vpop.f32.mrf.mxu2  ;;  %v2265_v55 = vpop.f32.mrf.mxu3 }
 0x60b   :  { %v2062_v54 = vadd.f32 %v2061_v44, %v2024_v32 }
 0x60d   :  { %v2123_v40 = vadd.f32 %v2122_v0, %v2062_v54 }
 0x60f   :  { %v2161_v56 = vadd.f32 %v2160_v5, %v2123_v40 }
 0x611   :  { %v2192_v28 = vadd.f32 %v2191_v10, %v2161_v56 }
 0x612   :  { %v2236_v35 = vpop.f32.mrf.mxu2 }
 0x613   :  { %v2237_v15 = vadd.f32 %v2236_v35, %v2192_v28 }
 0x615   :  { %v2266_v13 = vadd.f32 %v2265_v55, %v2237_v15 }
 0x617   :  { %v2269_v62 = vadd.f32 %v2268_v31, %v2266_v13 }
 0x619   :  { %v2270_v39 = vadd.f32 %v8897_v53, %v2269_v62 }
 0x61b   :  { %7911 = vtanh.f32 %v2270_v39  ;;  %v7860_v57 = vmul.f32 -1.442695, %v2270_v39 }
 0x61d   :  { %7913 = vpow2.f32 %v7860_v57 }
 0x621   :  { %v7912_v26 = vpop.eup %7911 }
 0x622   :  { %2293 = vrot.lane.b32.xlu2 %v7912_v26, %s8082_s28 }
 0x623   :  { %v7914_v17 = vpop.eup %7913 }
 0x624   :  { %v2274_v20 = vadd.f32 1.0, %v7914_v17 }
 0x626   :  { %7915 = vrcp.f32 %v2274_v20  ;;  %v2286_v55 = vand.u32 2147483648, %v2274_v20  ;;  %vm2280_vm15 = vweird.f32 %v2274_v20  ;;  %v2284_v54 = vand.u32 2147483647, %v2274_v20 }
 0x628   :  { %v2287_v40 = vor.u32 1.1754944e-38, %v2286_v55  ;;  %vm2285_vm5 = vcmp.eq.f32.partialorder %v2284_v54, 8.507059e+37  ;;  %v10294_v55 = vld [vmem:[#allocation16_spill] sm:$0xff]  ;;  %v10295_v54 = vld [vmem:[#allocation23_spill] sm:$0xff] }
 0x62c   :  { %v7916_v51 = vpop.eup %7915 }
 0x62d   :  { %v2276_v63 = vmul.f32 %v7916_v51, %v2274_v20  ;;  %vm2281_vm14 = vweird.f32 %v7916_v51 }
 0x62e   :  { %vm2282_vm1 = vmor %vm2280_vm15, %vm2281_vm14 }
 0x62f   :  { %v2277_v32 = vsub.f32 1.0, %v2276_v63  ;;  %v10290_v63 = vld [vmem:[#allocation34_spill] sm:$0xff] }
 0x631   :  { %v2278_v0 = vmul.f32 %v7916_v51, %v2277_v32  ;;  %v10291_v32 = vld [vmem:[#allocation22_spill] sm:$0xff] }
 0x633   :  { %v2279_v44 = vadd.f32 %v7916_v51, %v2278_v0  ;;  %v10292_v0 = vld [vmem:[#allocation18_spill] sm:$0xff] }
 0x635   :  { %v2283_v53 = vsel %vm2282_vm1, %v7916_v51, %v2279_v44  ;;  %v10293_v44 = vld [vmem:[#allocation24_spill] sm:$0xff] }
 0x636   :  { %v2288_v56 = vsel %vm2285_vm5, %v2287_v40, %v2283_v53  ;;  %v10296_v53 = vld [vmem:[#allocation20_spill] sm:$0xff] }
 0x637   :  { %v2291_v28 = vmul.f32 %v2288_v56, %v8902_v12  ;;  %v10297_v40 = vld [vmem:[#allocation28_spill] sm:$0xff] }
 0x67c   :  { %v2294_v5 = vpop.permute.xlu2 %2293 }
 0x67d   :  { %v2296_v10 = vmul.f32 %v2294_v5, %v2288_v56  ;;  %v10298_v5 = vld [vmem:[#allocation25_spill] sm:$0xff] }
 0x67f   :  { %2298 = vrot.lane.b32.xlu0 %v2296_v10, %s8083_s29  ;;  %v10300_v10 = vld [vmem:[#allocation26_spill] sm:$0xff] }
 0x6f1   :  { %v2299_v35 = vpop.permute.xlu0 %2298 }
 0x6f2   :  { %v9031_v15 = vadd.f32 %v2299_v35, %v2291_v28  ;;  %v10301_v28 = vld [vmem:[#allocation33_spill] sm:$0xff]  ;;  %v10302_v35 = vld [vmem:[#allocation30_spill] sm:$0xff] }
 0x6f4   :  { %7917 = vtanh.f32 %v9031_v15 }
 0x6fa   :  { %v7918_v13 = vpop.eup %7917 }
 0x6fb   :  { %2304 = vrot.lane.b32.xlu2 %v7918_v13, %s8082_s28  ;;  %v10303_v13 = vld [vmem:[#allocation5_spill] sm:$0xff] }
 0x755   :  { %v2305_v31 = vpop.permute.xlu2 %2304 }
 0x756   :  { %v2307_v62 = vmul.f32 %v2305_v31, %v2288_v56  ;;  %v10299_v56 = vld [vmem:[#allocation29_spill] sm:$0xff]  ;;  %v10304_v31 = vld [vmem:[#allocation35_spill] sm:$0xff] }
 0x758   :  { %2309 = vrot.lane.b32.xlu2 %v2307_v62, %s8083_s29  ;;  %v10305_v62 = vld [vmem:[#allocation31_spill] sm:$0xff] }
 0x7b2   :  { %v2310_v39 = vpop.permute.xlu2 %2309 }
 0x7b3   :  { %2312 = vst.msk [vmem:[#allocation3 + $0x2] sm:$0x3] %vm1558_vm4, %v2310_v39  ;;  %v2313_v26 = vsel %vm803_vm3, %v2310_v39, 0  ;;  %v10306_v39 = vld [vmem:[#allocation6_spill] sm:$0xff] }
 0x7b4   :  { %v9038_v57 = vand.u32 4294901760, %v2313_v26 }
 0x7b6   :  { %v2336_v12 = vsub.f32 %v2313_v26, %v9038_v57  ;;  %2381 = vmatmul.f32.vlgmr.msrb.gmra.mxu1 %v9038_v57  ;;  %2471 = vmatmul.f32.vlgmr.msrb.gmra.mxu2 %v9038_v57  ;;  %v10307_v26 = vld [vmem:[#allocation40_spill] sm:$0xff] }
 0x7b7   :  { %2496 = vmatmul.f32.vlgmr.msrb.gmra.mxu3 %v9038_v57  ;;  %2640 = vmatpush.msrb.mxu1 %v8634_v7 }
 0x7b8   :  { %v2337_v17 = vand.u32 4294901760, %v2336_v12  ;;  %2830 = vmatpush.msrb.mxu3 %v8671_v8  ;;  %2793 = vmatpush.msrb.mxu2 %v8585_v3 }
 0x7b9   :  { %2646 = vmatpush.msrb.mxu1 %v8658_v47 }
 0x7ba   :  { %v2338_v20 = vsub.f32 %v2336_v12, %v2337_v17  ;;  %2836 = vmatpush.msrb.mxu3 %v8697_v60  ;;  %2795 = vmatpush.msrb.mxu2 %v8607_v34 }
 0x7bb   :  { %2652 = vmatpush.msrb.mxu1 %v8695_v24 }
 0x7bc   :  { %v2339_v51 = vand.u32 4294901760, %v2338_v20  ;;  %2842 = vmatpush.msrb.mxu3 %v10262_v11  ;;  %2797 = vmatpush.msrb.mxu2 %v8663_v48  ;;  %v10311_v20 = vld [vmem:[#allocation39_spill] sm:$0xff] }
 0x7bd   :  { %2658 = vmatpush.msrb.mxu1 %v10263_v49 }
 0x7be   :  { %2340 = vmatmul.f32.vlgmr.msrb.gmra.mxu0 %v2339_v51  ;;  %2438 = vmatmul.f32.vlgmr.msra.gmra.mxu1 %v2337_v17 }
 0x7bf   :  { %2690 = vmatmul.f32.vlgmr.msra.gmra.mxu2 %v2336_v12  ;;  %2717 = vmatmul.f32.vlgmr.msra.gmra.mxu3 %v2337_v17  ;;  %v10310_v17 = vld [vmem:[#allocation41_spill] sm:$0xff] }
 0x7c0   :  { %2607 = vmatpush.msrb.mxu0 %v8567_v14  ;;  %2767 = vmatpush.msra.mxu1 %v8567_v14 }
 0x7c1   :  { %2848 = vmatpush.msrb.mxu3 %v10264_v18  ;;  %2799 = vmatpush.msrb.mxu2 %v8665_v50 }
 0x7c2   :  { %2609 = vmatpush.msrb.mxu0 %v8574_v21  ;;  %2769 = vmatpush.msra.mxu1 %v8574_v21 }
 0x7c3   :  { %2854 = vmatpush.msrb.mxu3 %v8769_v9  ;;  %2801 = vmatpush.msrb.mxu2 %v8689_v23 }
 0x7c4   :  { %2611 = vmatpush.msrb.mxu0 %v8592_v19  ;;  %2771 = vmatpush.msra.mxu1 %v8592_v19 }
 0x7c5   :  { %2860 = vmatpush.msrb.mxu3 %v8783_v4  ;;  %2803 = vmatpush.msrb.mxu2 %v8700_v58 }
 0x7c6   :  { %2411 = vmatmul.f32.vlgmr.msra.gmra.mxu0 %v2336_v12  ;;  %2660 = vmatmul.f32.vlgmr.msrb.gmra.mxu1 %v9038_v57  ;;  %v10309_v12 = vld [vmem:[#allocation7_spill] sm:$0xff] }
 0x7c7   :  { %2613 = vmatpush.msrb.mxu0 %v8618_v59  ;;  %2773 = vmatpush.msra.mxu1 %v8618_v59 }
 0x7c8   :  { %2866 = vmatpush.msrb.mxu3 %v8793_v27  ;;  %2805 = vmatpush.msrb.mxu2 %v8729_v61 }
 0x7c9   :  { %2736 = vmatpush.msra.mxu0 %v10265_v2  ;;  %2925 = vmatpush.msrb.mxu1 %v8585_v3 }
 0x7ca   :  { %2872 = vmatpush.msrb.mxu3 %v8801_v22  ;;  %2807 = vmatpush.msrb.mxu2 %v10290_v63 }
 0x7cb   :  { %2740 = vmatpush.msra.mxu0 %v10266_v16  ;;  %2927 = vmatpush.msrb.mxu1 %v8607_v34 }
 0x7cc   :  { %3001 = vmatpush.msra.mxu3 %v8585_v3  ;;  %2958 = vmatpush.msra.mxu2 %v10292_v0 }
 0x7cd   :  { %2744 = vmatpush.msra.mxu0 %v10291_v32  ;;  %2929 = vmatpush.msrb.mxu1 %v8663_v48 }
 0x7ce   :  { %2619 = vmatmul.f32.vlgmr.msrb.gmra.mxu0 %v2339_v51  ;;  %2775 = vmatmul.f32.vlgmr.msra.gmra.mxu1 %v9038_v57  ;;  %v10312_v51 = vld [vmem:[#allocation8_spill] sm:$0xff] }
 0x7cf   :  { %2748 = vmatpush.msra.mxu0 %v10293_v44  ;;  %2931 = vmatpush.msrb.mxu1 %v8665_v50 }
 0x7d0   :  { %3003 = vmatpush.msra.mxu3 %v8607_v34  ;;  %2962 = vmatpush.msra.mxu2 %v10295_v54 }
 0x7d1   :  { %2888 = vmatpush.msrb.mxu0 %v10294_v55  ;;  %2933 = vmatpush.msrb.mxu1 %v8689_v23  ;;  %v10315_v55 = vld [vmem:[#allocation11_spill] sm:$0xff] }
 0x7d2   :  { %3005 = vmatpush.msra.mxu3 %v8663_v48  ;;  %2966 = vmatpush.msra.mxu2 %v10297_v40 }
 0x7d3   :  { %2891 = vmatpush.msrb.mxu0 %v10296_v53  ;;  %2935 = vmatpush.msrb.mxu1 %v8700_v58  ;;  %v10314_v53 = vld [vmem:[#allocation10_spill] sm:$0xff] }
 0x7d4   :  { %3007 = vmatpush.msra.mxu3 %v8665_v50  ;;  %2970 = vmatpush.msra.mxu2 %v10299_v56 }
 0x7d5   :  { %2894 = vmatpush.msrb.mxu0 %v10298_v5  ;;  %2937 = vmatpush.msrb.mxu1 %v8729_v61 }
 0x7d6   :  { %2750 = vmatmul.f32.vlgmr.msra.gmra.mxu0 %v9038_v57  ;;  %3009 = vmatpush.msra.mxu3 %v8689_v23  ;;  %v10308_v57 = vld [vmem:[#allocation36_spill] sm:$0xff] }
 0x7d7   :  { %2897 = vmatpush.msrb.mxu0 %v10300_v10  ;;  %2939 = vmatpush.msrb.mxu1 %v10290_v63 }
 0x7d8   :  { %3011 = vmatpush.msra.mxu3 %v8700_v58  ;;  %2974 = vmatpush.msra.mxu2 %v10301_v28 }
 0x7d9   :  { %2900 = vmatpush.msrb.mxu0 %v10302_v35  ;;  %3114 = vmatpush.msra.mxu1 %v10303_v13 }
 0x7da   :  { %3013 = vmatpush.msra.mxu3 %v8729_v61  ;;  %2978 = vmatpush.msra.mxu2 %v10304_v31 }
 0x7db   :  { %2903 = vmatpush.msrb.mxu0 %v10305_v62  ;;  %3120 = vmatpush.msra.mxu1 %v10306_v39 }
 0x7dc   :  { %3015 = vmatpush.msra.mxu3 %v10290_v63  ;;  %2982 = vmatpush.msra.mxu2 %v10307_v26 }
 0x7dd   :  { %2906 = vmatpush.msrb.mxu0 %v10308_v57  ;;  %3126 = vmatpush.msra.mxu1 %v10309_v12  ;;  %v9122_v12 = vld [vmem:[%s10106_s4] ss:$0 sm:$0xff] }
 0x7de   :  { %2986 = vmatpush.msra.mxu2 %v10310_v17  ;;  %10313 = vst [vmem:[#allocation37_spill] sm:$0xff] %v9122_v12 }
 0x7df   :  { %2909 = vmatpush.msrb.mxu0 %v10311_v20  ;;  %3132 = vmatpush.msra.mxu1 %v10312_v51 }
 0x7e1   :  { %3081 = vmatpush.msra.mxu0 %v8376_v25 }
 0x7e3   :  { %3083 = vmatpush.msra.mxu0 %v8390_v29 }
 0x7e5   :  { %3085 = vmatpush.msra.mxu0 %v8406_v33 }
 0x7e7   :  { %3087 = vmatpush.msra.mxu0 %v8445_v41 }
 0x833   :  { %v2382_v39 = vpop.f32.mrf.mxu1 }
 0x839   :  { %v2472_v13 = vpop.f32.mrf.mxu2 }
 0x83a   :  { %v2497_v28 = vpop.f32.mrf.mxu3 }
 0x83b   :  { %v2341_v26 = vpop.f32.mrf.mxu0  ;;  %v2439_v62 = vpop.f32.mrf.mxu1 }
 0x83c   :  { %v2342_v17 = vadd.f32 %v9122_v12, %v2341_v26 }
 0x83e   :  { %v2383_v20 = vadd.f32 %v2382_v39, %v2342_v17  ;;  %v9130_v39 = vld [vmem:[%s10107_s5] ss:$0 sm:$0xff] }
 0x83f   :  { %10316 = vst [vmem:[#allocation27_spill] sm:$0xff] %v9130_v39 }
 0x843   :  { %v2412_v57 = vpop.f32.mrf.mxu0 }
 0x844   :  { %v2413_v51 = vadd.f32 %v2412_v57, %v2383_v20 }
 0x846   :  { %v2440_v31 = vadd.f32 %v2439_v62, %v2413_v51 }
 0x848   :  { %v2473_v35 = vadd.f32 %v2472_v13, %v2440_v31 }
 0x84a   :  { %v2498_v10 = vadd.f32 %v2497_v28, %v2473_v35 }
 0x84c   :  { %v2501_v56 = vrot.slane %v2498_v10, 1  ;;  %v2502_v5 = vperm.slane %v2498_v10, 0 }
 0x84e   :  { %v2503_v40 = vperm.slane %v2501_v56, 0  ;;  %v2506_v54 = vadd.f32 %v2502_v5, %v10314_v53 }
 0x850   :  { %7919 = vtanh.f32 %v2506_v54  ;;  %v2507_v44 = vadd.f32 %v2503_v40, %v10315_v55 }
 0x852   :  { %7921 = vtanh.f32 %v2507_v44 }
 0x856   :  { %v7920_v0 = vpop.eup %7919 }
 0x857   :  { %v2510_v62 = vmul.f32 %v9130_v39, %v7920_v0 }
 0x858   :  { %v7922_v13 = vpop.eup %7921 }
 0x859   :  { %v2512_v28 = vsel %vm803_vm3, %v2510_v62, 0.0  ;;  %v2511_v10 = vmul.f32 %v9130_v39, %v7922_v13 }
 0x85a   :  { %2513 = vadd.xlane.f32.xlu2 %v2512_v28 }
 0x85b   :  { %v2515_v5 = vsel %vm803_vm3, %v2511_v10, 0.0 }
 0x85c   :  { %2516 = vadd.xlane.f32.xlu0 %v2515_v5 }
 0x8cd   :  { %v2514_v54 = vpop.xlane.xlu2 %2513 }
 0x8ce   :  { %v2518_v40 = vrot.slane %v2514_v54, 4 }
 0x8cf   :  { %v2517_v44 = vpop.xlane.xlu0 %2516 }
 0x8d0   :  { %v2519_v56 = vmax.f32 %v2514_v54, %v2518_v40  ;;  %v2524_v35 = vrot.slane %v2517_v44, 4 }
 0x8d2   :  { %v2520_v31 = vrot.slane %v2519_v56, 2  ;;  %v2525_v26 = vmax.f32 %v2517_v44, %v2524_v35 }
 0x8d4   :  { %v2521_v57 = vmax.f32 %v2519_v56, %v2520_v31  ;;  %v2526_v17 = vrot.slane %v2525_v26, 2 }
 0x8d6   :  { %v2522_v20 = vrot.slane %v2521_v57, 1  ;;  %v2527_v0 = vmax.f32 %v2525_v26, %v2526_v17 }
 0x8d8   :  { %v2523_v51 = vmax.f32 %v2521_v57, %v2522_v20  ;;  %v2528_v55 = vrot.slane %v2527_v0, 1 }
 0x8da   :  { %v2530_v62 = vsub.f32 %v2514_v54, %v2523_v51  ;;  %v2529_v53 = vmax.f32 %v2527_v0, %v2528_v55 }
 0x8dc   :  { %v2532_v13 = vmul.f32 1.442695, %v2530_v62  ;;  %v2531_v28 = vsub.f32 %v2517_v44, %v2529_v53 }
 0x8de   :  { %7923 = vpow2.f32 %v2532_v13  ;;  %v2534_v10 = vmul.f32 1.442695, %v2531_v28 }
 0x8e0   :  { %7925 = vpow2.f32 %v2534_v10 }
 0x8e4   :  { %v7924_v5 = vpop.eup %7923 }
 0x8e5   :  { %v2536_v39 = vrot.slane %v7924_v5, 4 }
 0x8e6   :  { %v7926_v12 = vpop.eup %7925 }
 0x8e7   :  { %v2537_v40 = vadd.f32 %v7924_v5, %v2536_v39  ;;  %v2542_v32 = vrot.slane %v7926_v12, 4 }
 0x8e9   :  { %v2538_v63 = vrot.slane %v2537_v40, 2  ;;  %v2543_v35 = vadd.f32 %v7926_v12, %v2542_v32 }
 0x8eb   :  { %v2539_v56 = vadd.f32 %v2538_v63, %v2537_v40  ;;  %v2544_v31 = vrot.slane %v2543_v35, 2 }
 0x8ed   :  { %v2540_v22 = vrot.slane %v2539_v56, 1  ;;  %v2545_v26 = vadd.f32 %v2544_v31, %v2543_v35 }
 0x8ef   :  { %v2541_v57 = vadd.f32 %v2540_v22, %v2539_v56  ;;  %v2546_v17 = vrot.slane %v2545_v26, 1 }
 0x8f1   :  { %7927 = vrcp.f32 %v2541_v57  ;;  %v2547_v55 = vadd.f32 %v2546_v17, %v2545_v26  ;;  %v2559_v0 = vand.u32 2147483648, %v2541_v57  ;;  %v2557_v39 = vand.u32 2147483647, %v2541_v57 }
 0x8f2   :  { %vm2553_vm7 = vweird.f32 %v2541_v57 }
 0x8f3   :  { %7929 = vrcp.f32 %v2547_v55  ;;  %v2574_v63 = vand.u32 2147483648, %v2547_v55  ;;  %v2560_v28 = vor.u32 1.1754944e-38, %v2559_v0  ;;  %v2572_v10 = vand.u32 2147483647, %v2547_v55 }
 0x8f4   :  { %vm2558_vm10 = vcmp.eq.f32.partialorder %v2557_v39, 8.507059e+37  ;;  %vm2568_vm11 = vweird.f32 %v2547_v55 }
 0x8f5   :  { %v2575_v26 = vor.u32 1.1754944e-38, %v2574_v63  ;;  %vm2573_vm14 = vcmp.eq.f32.partialorder %v2572_v10, 8.507059e+37 }
 0x8f7   :  { %v7928_v53 = vpop.eup %7927 }
 0x8f8   :  { %v2549_v54 = vmul.f32 %v7928_v53, %v2541_v57  ;;  %vm2554_vm6 = vweird.f32 %v7928_v53  ;;  %v9139_v57 = vld [vmem:[%s10102_s0] sm:$0xff] }
 0x8f9   :  { %v7930_v44 = vpop.eup %7929  ;;  %vm2555_vm8 = vmor %vm2553_vm7, %vm2554_vm6 }
 0x8fa   :  { %v2550_v20 = vsub.f32 1.0, %v2549_v54  ;;  %v2564_v51 = vmul.f32 %v7930_v44, %v2547_v55  ;;  %vm2569_vm9 = vweird.f32 %v7930_v44  ;;  %v9146_v55 = vld [vmem:[%s10102_s0 + $0x8] sm:$0xff] }
 0x8fb   :  { %vm2570_vm13 = vmor %vm2568_vm11, %vm2569_vm9 }
 0x8fc   :  { %v2551_v62 = vmul.f32 %v7928_v53, %v2550_v20  ;;  %v2565_v13 = vsub.f32 1.0, %v2564_v51 }
 0x8fe   :  { %v2552_v32 = vadd.f32 %v7928_v53, %v2551_v62  ;;  %v2566_v22 = vmul.f32 %v7930_v44, %v2565_v13 }
 0x900   :  { %v2556_v40 = vsel %vm2555_vm8, %v7928_v53, %v2552_v32  ;;  %v2567_v56 = vadd.f32 %v7930_v44, %v2566_v22 }
 0x901   :  { %v2561_v35 = vsel %vm2558_vm10, %v2560_v28, %v2556_v40 }
 0x902   :  { %v2562_v31 = vmul.f32 %v7924_v5, %v2561_v35  ;;  %v2571_v17 = vsel %vm2570_vm13, %v7930_v44, %v2567_v56 }
 0x903   :  { %v2576_v54 = vsel %vm2573_vm14, %v2575_v26, %v2571_v17 }
 0x904   :  { %v2578_v20 = vmul.f32 %v9139_v57, %v2562_v31  ;;  %v2577_v0 = vmul.f32 %v7926_v12, %v2576_v54 }
 0x906   :  { %v2580_v53 = vsel %vm51_vm0, %v2578_v20, 0.0  ;;  %v2579_v5 = vmul.f32 %v9146_v55, %v2577_v0 }
 0x907   :  { %v2581_v44 = vrot.slane %v2580_v53, 4 }
 0x908   :  { %v2587_v62 = vsel %vm51_vm0, %v2579_v5, 0.0  ;;  %v2620_v5 = vpop.f32.mrf.mxu0 }
 0x909   :  { %v2582_v51 = vadd.f32 %v2581_v44, %v2580_v53  ;;  %v2588_v39 = vrot.slane %v2587_v62, 4  ;;  %v10317_v53 = vld [vmem:[#allocation21_spill] sm:$0xff]  ;;  %v2661_v44 = vpop.f32.mrf.mxu1 }
 0x90b   :  { %v2583_v13 = vrot.slane %v2582_v51, 2  ;;  %v2589_v32 = vadd.f32 %v2588_v39, %v2587_v62  ;;  %v2691_v62 = vpop.f32.mrf.mxu2 }
 0x90d   :  { %v2584_v63 = vadd.f32 %v2583_v13, %v2582_v51  ;;  %v2590_v28 = vrot.slane %v2589_v32, 2  ;;  %v2662_v51 = vadd.f32 %v2661_v44, %v2620_v5  ;;  %v2718_v13 = vpop.f32.mrf.mxu3  ;;  %v3021_v44 = vld [vmem:[#allocation2 + $0x4] sm:$0x3] }
 0x90f   :  { %v2585_v22 = vrot.slane %v2584_v63, 1  ;;  %v2591_v12 = vadd.f32 %v2590_v28, %v2589_v32  ;;  %v2692_v39 = vadd.f32 %v2691_v62, %v2662_v51  ;;  %v9179_v62 = vld [vmem:[%s10110_s9] ss:$0 sm:$0xff] }
 0x910   :  { %v2751_v32 = vpop.f32.mrf.mxu0 }
 0x911   :  { %v2592_v10 = vrot.slane %v2591_v12, 1  ;;  %v2586_v40 = vadd.f32 %v2585_v22, %v2584_v63  ;;  %v2719_v63 = vadd.f32 %v2718_v13, %v2692_v39  ;;  %v2776_v22 = vpop.f32.mrf.mxu1 }
 0x913   :  { %v2593_v35 = vadd.f32 %v2592_v10, %v2591_v12  ;;  %v2752_v28 = vadd.f32 %v2751_v32, %v2719_v63 }
 0x915   :  { %v2781_v56 = vsel %vm1273_vm12, %v2593_v35, %v2586_v40  ;;  %v2777_v12 = vadd.f32 %v2776_v22, %v2752_v28 }
 0x916   :  { %v2782_v31 = vsel %vm51_vm0, %v2781_v56, 0 }
 0x917   :  { %v2808_v26 = vand.u32 4294901760, %v2782_v31 }
 0x919   :  { %2874 = vmatmul.f32.vlgmr.msrb.gmra.mxu3 %v2808_v26  ;;  %v2809_v17 = vsub.f32 %v2782_v31, %v2808_v26 }
 0x91a   :  { %3241 = vmatpush.msrb.mxu3 %v8376_v25 }
 0x91b   :  { %2912 = vmatmul.f32.vlgmr.msrb.gmra.mxu0 %v2809_v17  ;;  %v2810_v54 = vand.u32 4294901760, %v2809_v17 }
 0x91c   :  { %3243 = vmatpush.msrb.mxu3 %v8390_v29  ;;  %3152 = vmatpush.msrb.mxu0 %v8404_v30 }
 0x91d   :  { %2943 = vmatmul.f32.vlgmr.msrb.gmra.mxu1 %v2810_v54  ;;  %v2811_v20 = vsub.f32 %v2809_v17, %v2810_v54 }
 0x91e   :  { %3245 = vmatpush.msrb.mxu3 %v8406_v33  ;;  %3181 = vmatpush.msrb.mxu1 %v8376_v25 }
 0x91f   :  { %v2812_v0 = vand.u32 4294901760, %v2811_v20  ;;  %3155 = vmatpush.msrb.mxu0 %v8419_v36 }
 0x920   :  { %3247 = vmatpush.msrb.mxu3 %v8445_v41  ;;  %3183 = vmatpush.msrb.mxu1 %v8390_v29 }
 0x921   :  { %2813 = vmatmul.f32.vlgmr.msrb.gmra.mxu2 %v2812_v0  ;;  %3017 = vmatmul.f32.vlgmr.msra.gmra.mxu3 %v2808_v26 }
 0x922   :  { %3210 = vmatpush.msrb.mxu2 %v8429_v37  ;;  %3460 = vmatpush.msra.mxu3 %v8567_v14 }
 0x923   :  { %3185 = vmatpush.msrb.mxu1 %v8406_v33  ;;  %3158 = vmatpush.msrb.mxu0 %v8432_v38 }
 0x924   :  { %3214 = vmatpush.msrb.mxu2 %v8450_v42  ;;  %3462 = vmatpush.msra.mxu3 %v8574_v21 }
 0x925   :  { %3187 = vmatpush.msrb.mxu1 %v8445_v41  ;;  %3161 = vmatpush.msrb.mxu0 %v8454_v43 }
 0x926   :  { %3218 = vmatpush.msrb.mxu2 %v8461_v45  ;;  %3464 = vmatpush.msra.mxu3 %v8592_v19 }
 0x928   :  { %3222 = vmatpush.msrb.mxu2 %v10285_v1  ;;  %3466 = vmatpush.msra.mxu3 %v8618_v59 }
 0x929   :  { %2988 = vmatmul.f32.vlgmr.msra.gmra.mxu2 %v2808_v26 }
 0x92a   :  { %3431 = vmatpush.msra.mxu2 %v10286_v6 }
 0x92c   :  { %3434 = vmatpush.msra.mxu2 %v10287_v46 }
 0x92e   :  { %3437 = vmatpush.msra.mxu2 %v10288_v52 }
 0x930   :  { %3440 = vmatpush.msra.mxu2 %v10317_v53 }
 0x998   :  { %v2913_v31 = vpop.f32.mrf.mxu0 }
 0x99a   :  { %v2944_v17 = vpop.f32.mrf.mxu1 }
 0x99c   :  { %v2875_v10 = vpop.f32.mrf.mxu3 }
 0x9a4   :  { %v2814_v40 = vpop.f32.mrf.mxu2  ;;  %v3018_v53 = vpop.f32.mrf.mxu3 }
 0x9a5   :  { %v2815_v35 = vadd.f32 %v2814_v40, %v2777_v12 }
 0x9a7   :  { %v2876_v56 = vadd.f32 %v2875_v10, %v2815_v35 }
 0x9a9   :  { %v2914_v26 = vadd.f32 %v2913_v31, %v2876_v56 }
 0x9ab   :  { %v2945_v54 = vadd.f32 %v2944_v17, %v2914_v26 }
 0x9ac   :  { %v2989_v20 = vpop.f32.mrf.mxu2 }
 0x9ad   :  { %v2990_v0 = vadd.f32 %v2989_v20, %v2945_v54 }
 0x9af   :  { %v3019_v5 = vadd.f32 %v3018_v53, %v2990_v0 }
 0x9b1   :  { %v3022_v51 = vadd.f32 %v3021_v44, %v3019_v5 }
 0x9b3   :  { %v3023_v39 = vadd.f32 %v9179_v62, %v3022_v51 }
 0x9b5   :  { %7931 = vtanh.f32 %v3023_v39  ;;  %v7861_v32 = vmul.f32 -1.442695, %v3023_v39 }
 0x9b7   :  { %7933 = vpow2.f32 %v7861_v32 }
 0x9bb   :  { %v7932_v13 = vpop.eup %7931 }
 0x9bc   :  { %3046 = vrot.lane.b32.xlu1 %v7932_v13, %s8082_s28 }
 0x9bd   :  { %v7934_v63 = vpop.eup %7933 }
 0x9be   :  { %v3027_v28 = vadd.f32 1.0, %v7934_v63 }
 0x9c0   :  { %7935 = vrcp.f32 %v3027_v28  ;;  %v3039_v35 = vand.u32 2147483648, %v3027_v28  ;;  %vm3033_vm1 = vweird.f32 %v3027_v28  ;;  %v3037_v56 = vand.u32 2147483647, %v3027_v28 }
 0x9c2   :  { %v3040_v26 = vor.u32 1.1754944e-38, %v3039_v35  ;;  %vm3038_vm6 = vcmp.eq.f32.partialorder %v3037_v56, 8.507059e+37  ;;  %v10320_v35 = vld [vmem:[#allocation22_spill] sm:$0xff] }
 0x9c3   :  { %v10321_v56 = vld [vmem:[#allocation18_spill] sm:$0xff] }
 0x9c6   :  { %v7936_v22 = vpop.eup %7935 }
 0x9c7   :  { %v3029_v53 = vmul.f32 %v7936_v22, %v3027_v28  ;;  %vm3034_vm15 = vweird.f32 %v7936_v22 }
 0x9c8   :  { %vm3035_vm5 = vmor %vm3033_vm1, %vm3034_vm15 }
 0x9c9   :  { %v3030_v12 = vsub.f32 1.0, %v3029_v53 }
 0x9cb   :  { %v3031_v10 = vmul.f32 %v7936_v22, %v3030_v12 }
 0x9cd   :  { %v3032_v40 = vadd.f32 %v7936_v22, %v3031_v10  ;;  %v10318_v10 = vld [vmem:[#allocation43_spill] sm:$0xff] }
 0x9cf   :  { %v3036_v31 = vsel %vm3035_vm5, %v7936_v22, %v3032_v40  ;;  %v10319_v40 = vld [vmem:[#allocation34_spill] sm:$0xff] }
 0x9d0   :  { %v3041_v54 = vsel %vm3038_vm6, %v3040_v26, %v3036_v31  ;;  %v10322_v31 = vld [vmem:[#allocation24_spill] sm:$0xff] }
 0x9d1   :  { %v3044_v0 = vmul.f32 %v3041_v54, %v9031_v15  ;;  %v10323_v26 = vld [vmem:[#allocation16_spill] sm:$0xff] }
 0xa2e   :  { %v3047_v17 = vpop.permute.xlu1 %3046 }
 0xa2f   :  { %v3049_v20 = vmul.f32 %v3047_v17, %v3041_v54  ;;  %v10324_v17 = vld [vmem:[#allocation23_spill] sm:$0xff] }
 0xa31   :  { %3051 = vrot.lane.b32.xlu2 %v3049_v20, %s8083_s29  ;;  %v10326_v20 = vld [vmem:[#allocation28_spill] sm:$0xff] }
 0xa8b   :  { %v3052_v5 = vpop.permute.xlu2 %3051 }
 0xa8c   :  { %v9185_v44 = vadd.f32 %v3052_v5, %v3044_v0  ;;  %v10327_v0 = vld [vmem:[#allocation25_spill] sm:$0xff] }
 0xa8d   :  { %v10328_v5 = vld [vmem:[#allocation29_spill] sm:$0xff] }
 0xa8e   :  { %7937 = vtanh.f32 %v9185_v44 }
 0xa94   :  { %v7938_v51 = vpop.eup %7937 }
 0xa95   :  { %3057 = vrot.lane.b32.xlu1 %v7938_v51, %s8082_s28  ;;  %v10329_v51 = vld [vmem:[#allocation26_spill] sm:$0xff] }
 0xb07   :  { %v3058_v39 = vpop.permute.xlu1 %3057 }
 0xb08   :  { %v3060_v13 = vmul.f32 %v3058_v39, %v3041_v54  ;;  %v10325_v54 = vld [vmem:[#allocation20_spill] sm:$0xff]  ;;  %v10330_v39 = vld [vmem:[#allocation33_spill] sm:$0xff] }
 0xb0a   :  { %3062 = vrot.lane.b32.xlu0 %v3060_v13, %s8083_s29  ;;  %v10331_v13 = vld [vmem:[#allocation30_spill] sm:$0xff] }
 0xb7c   :  { %v3063_v32 = vpop.permute.xlu0 %3062 }
 0xb7d   :  { %3065 = vst.msk [vmem:[#allocation3 + $0x4] sm:$0x3] %vm1558_vm4, %v3063_v32  ;;  %v3066_v63 = vsel %vm803_vm3, %v3063_v32, 0  ;;  %v10332_v32 = vld [vmem:[#allocation5_spill] sm:$0xff] }
 0xb7e   :  { %v9192_v28 = vand.u32 4294901760, %v3066_v63 }
 0xb80   :  { %v3089_v15 = vsub.f32 %v3066_v63, %v9192_v28  ;;  %3134 = vmatmul.f32.vlgmr.msra.gmra.mxu1 %v9192_v28  ;;  %3224 = vmatmul.f32.vlgmr.msrb.gmra.mxu2 %v9192_v28  ;;  %v10333_v63 = vld [vmem:[#allocation35_spill] sm:$0xff] }
 0xb81   :  { %3249 = vmatmul.f32.vlgmr.msrb.gmra.mxu3 %v9192_v28  ;;  %3393 = vmatpush.msra.mxu1 %v8634_v7 }
 0xb82   :  { %v3090_v22 = vand.u32 4294901760, %v3089_v15  ;;  %3583 = vmatpush.msrb.mxu3 %v8671_v8  ;;  %3546 = vmatpush.msrb.mxu2 %v8585_v3 }
 0xb83   :  { %3399 = vmatpush.msra.mxu1 %v8658_v47 }
 0xb84   :  { %v3091_v53 = vsub.f32 %v3089_v15, %v3090_v22  ;;  %3589 = vmatpush.msrb.mxu3 %v8697_v60  ;;  %3548 = vmatpush.msrb.mxu2 %v8607_v34 }
 0xb85   :  { %3405 = vmatpush.msra.mxu1 %v8695_v24 }
 0xb86   :  { %v3092_v12 = vand.u32 4294901760, %v3091_v53  ;;  %3595 = vmatpush.msrb.mxu3 %v10262_v11  ;;  %3550 = vmatpush.msrb.mxu2 %v8663_v48  ;;  %v10337_v53 = vld [vmem:[#allocation36_spill] sm:$0xff] }
 0xb87   :  { %3411 = vmatpush.msra.mxu1 %v10263_v49 }
 0xb88   :  { %3093 = vmatmul.f32.vlgmr.msra.gmra.mxu0 %v3092_v12  ;;  %3191 = vmatmul.f32.vlgmr.msrb.gmra.mxu1 %v3090_v22 }
 0xb89   :  { %3443 = vmatmul.f32.vlgmr.msra.gmra.mxu2 %v3089_v15  ;;  %3470 = vmatmul.f32.vlgmr.msra.gmra.mxu3 %v3090_v22  ;;  %v10336_v22 = vld [vmem:[#allocation40_spill] sm:$0xff] }
 0xb8a   :  { %3360 = vmatpush.msra.mxu0 %v8567_v14  ;;  %3520 = vmatpush.msrb.mxu1 %v8567_v14 }
 0xb8b   :  { %3601 = vmatpush.msrb.mxu3 %v10264_v18  ;;  %3552 = vmatpush.msrb.mxu2 %v8665_v50 }
 0xb8c   :  { %3362 = vmatpush.msra.mxu0 %v8574_v21  ;;  %3522 = vmatpush.msrb.mxu1 %v8574_v21 }
 0xb8d   :  { %3607 = vmatpush.msrb.mxu3 %v8769_v9  ;;  %3554 = vmatpush.msrb.mxu2 %v8689_v23 }
 0xb8e   :  { %3364 = vmatpush.msra.mxu0 %v8592_v19  ;;  %3524 = vmatpush.msrb.mxu1 %v8592_v19 }
 0xb8f   :  { %3613 = vmatpush.msrb.mxu3 %v8783_v4  ;;  %3556 = vmatpush.msrb.mxu2 %v8700_v58 }
 0xb90   :  { %3164 = vmatmul.f32.vlgmr.msrb.gmra.mxu0 %v3089_v15  ;;  %3413 = vmatmul.f32.vlgmr.msra.gmra.mxu1 %v9192_v28  ;;  %v10334_v15 = vld [vmem:[#allocation31_spill] sm:$0xff] }
 0xb91   :  { %3366 = vmatpush.msra.mxu0 %v8618_v59  ;;  %3526 = vmatpush.msrb.mxu1 %v8618_v59 }
 0xb92   :  { %3619 = vmatpush.msrb.mxu3 %v8793_v27  ;;  %3558 = vmatpush.msrb.mxu2 %v8729_v61 }
 0xb93   :  { %3489 = vmatpush.msrb.mxu0 %v10265_v2  ;;  %3678 = vmatpush.msra.mxu1 %v8585_v3 }
 0xb94   :  { %3625 = vmatpush.msrb.mxu3 %v10318_v10  ;;  %3560 = vmatpush.msrb.mxu2 %v10319_v40 }
 0xb95   :  { %3493 = vmatpush.msrb.mxu0 %v10266_v16  ;;  %3680 = vmatpush.msra.mxu1 %v8607_v34 }
 0xb96   :  { %3754 = vmatpush.msra.mxu3 %v8585_v3  ;;  %3711 = vmatpush.msra.mxu2 %v10321_v56 }
 0xb97   :  { %3497 = vmatpush.msrb.mxu0 %v10320_v35  ;;  %3682 = vmatpush.msra.mxu1 %v8663_v48  ;;  %v10344_v35 = vld [vmem:[#allocation11_spill] sm:$0xff] }
 0xb98   :  { %3372 = vmatmul.f32.vlgmr.msra.gmra.mxu0 %v3092_v12  ;;  %3528 = vmatmul.f32.vlgmr.msrb.gmra.mxu1 %v9192_v28  ;;  %v10338_v12 = vld [vmem:[#allocation7_spill] sm:$0xff] }
 0xb99   :  { %3501 = vmatpush.msrb.mxu0 %v10322_v31  ;;  %3684 = vmatpush.msra.mxu1 %v8665_v50  ;;  %v10343_v31 = vld [vmem:[#allocation10_spill] sm:$0xff] }
 0xb9a   :  { %3756 = vmatpush.msra.mxu3 %v8607_v34  ;;  %3715 = vmatpush.msra.mxu2 %v10324_v17 }
 0xb9b   :  { %3641 = vmatpush.msra.mxu0 %v10323_v26  ;;  %3686 = vmatpush.msra.mxu1 %v8689_v23 }
 0xb9c   :  { %3758 = vmatpush.msra.mxu3 %v8663_v48  ;;  %3719 = vmatpush.msra.mxu2 %v10326_v20 }
 0xb9d   :  { %3644 = vmatpush.msra.mxu0 %v10325_v54  ;;  %3688 = vmatpush.msra.mxu1 %v8700_v58 }
 0xb9e   :  { %3760 = vmatpush.msra.mxu3 %v8665_v50  ;;  %3723 = vmatpush.msra.mxu2 %v10328_v5 }
 0xb9f   :  { %3647 = vmatpush.msra.mxu0 %v10327_v0  ;;  %3690 = vmatpush.msra.mxu1 %v8729_v61 }
 0xba0   :  { %3503 = vmatmul.f32.vlgmr.msrb.gmra.mxu0 %v9192_v28  ;;  %3762 = vmatpush.msra.mxu3 %v8689_v23  ;;  %v10335_v28 = vld [vmem:[#allocation6_spill] sm:$0xff] }
 0xba1   :  { %3650 = vmatpush.msra.mxu0 %v10329_v51  ;;  %3692 = vmatpush.msra.mxu1 %v10319_v40 }
 0xba2   :  { %3764 = vmatpush.msra.mxu3 %v8700_v58  ;;  %3727 = vmatpush.msra.mxu2 %v10330_v39  ;;  %v10339_v39 = vld [vmem:[#allocation41_spill] sm:$0xff] }
 0xba3   :  { %3653 = vmatpush.msra.mxu0 %v10331_v13  ;;  %3867 = vmatpush.msrb.mxu1 %v10332_v32  ;;  %v10340_v13 = vld [vmem:[#allocation39_spill] sm:$0xff]  ;;  %v10341_v32 = vld [vmem:[#allocation8_spill] sm:$0xff] }
 0xba4   :  { %3766 = vmatpush.msra.mxu3 %v8729_v61  ;;  %3731 = vmatpush.msra.mxu2 %v10333_v63 }
 0xba5   :  { %3656 = vmatpush.msra.mxu0 %v10334_v15  ;;  %3873 = vmatpush.msrb.mxu1 %v10335_v28  ;;  %v10342_v15 = vld [vmem:[#allocation37_spill] sm:$0xff] }
 0xba6   :  { %3768 = vmatpush.msra.mxu3 %v10319_v40  ;;  %3735 = vmatpush.msra.mxu2 %v10336_v22 }
 0xba7   :  { %3659 = vmatpush.msra.mxu0 %v10337_v53  ;;  %3879 = vmatpush.msrb.mxu1 %v10338_v12 }
 0xba8   :  { %3739 = vmatpush.msra.mxu2 %v10339_v39 }
 0xba9   :  { %3662 = vmatpush.msra.mxu0 %v10340_v13  ;;  %3885 = vmatpush.msrb.mxu1 %v10341_v32 }
 0xbab   :  { %3834 = vmatpush.msrb.mxu0 %v8376_v25 }
 0xbad   :  { %3836 = vmatpush.msrb.mxu0 %v8390_v29 }
 0xbaf   :  { %3838 = vmatpush.msrb.mxu0 %v8406_v33 }
 0xbb1   :  { %3840 = vmatpush.msrb.mxu0 %v8445_v41 }
 0xbfd   :  { %v3135_v28 = vpop.f32.mrf.mxu1 }
 0xc03   :  { %v3225_v13 = vpop.f32.mrf.mxu2 }
 0xc04   :  { %v3250_v32 = vpop.f32.mrf.mxu3 }
 0xc05   :  { %v3094_v22 = vpop.f32.mrf.mxu0  ;;  %v3192_v39 = vpop.f32.mrf.mxu1 }
 0xc06   :  { %v3095_v53 = vadd.f32 %v10342_v15, %v3094_v22  ;;  %v10345_v15 = vld [vmem:[#allocation27_spill] sm:$0xff] }
 0xc08   :  { %v3136_v63 = vadd.f32 %v3135_v28, %v3095_v53 }
 0xc0d   :  { %v3165_v12 = vpop.f32.mrf.mxu0 }
 0xc0e   :  { %v3166_v51 = vadd.f32 %v3165_v12, %v3136_v63 }
 0xc10   :  { %v3193_v5 = vadd.f32 %v3192_v39, %v3166_v51 }
 0xc12   :  { %v3226_v0 = vadd.f32 %v3225_v13, %v3193_v5 }
 0xc14   :  { %v3251_v20 = vadd.f32 %v3250_v32, %v3226_v0 }
 0xc16   :  { %v3254_v54 = vrot.slane %v3251_v20, 1  ;;  %v3255_v17 = vperm.slane %v3251_v20, 0 }
 0xc18   :  { %v3256_v26 = vperm.slane %v3254_v54, 0  ;;  %v3259_v56 = vadd.f32 %v3255_v17, %v10343_v31 }
 0xc1a   :  { %7939 = vtanh.f32 %v3259_v56  ;;  %v3260_v40 = vadd.f32 %v3256_v26, %v10344_v35 }
 0xc1c   :  { %7941 = vtanh.f32 %v3260_v40 }
 0xc20   :  { %v7940_v10 = vpop.eup %7939 }
 0xc21   :  { %v3263_v28 = vmul.f32 %v10345_v15, %v7940_v10 }
 0xc22   :  { %v7942_v22 = vpop.eup %7941 }
 0xc23   :  { %v3265_v63 = vsel %vm803_vm3, %v3263_v28, 0.0  ;;  %v3264_v51 = vmul.f32 %v10345_v15, %v7942_v22 }
 0xc24   :  { %3266 = vadd.xlane.f32.xlu1 %v3265_v63 }
 0xc25   :  { %v3268_v0 = vsel %vm803_vm3, %v3264_v51, 0.0 }
 0xc26   :  { %3269 = vadd.xlane.f32.xlu2 %v3268_v0 }
 0xc97   :  { %v3267_v20 = vpop.xlane.xlu1 %3266 }
 0xc98   :  { %v3271_v54 = vrot.slane %v3267_v20, 4 }
 0xc99   :  { %v3270_v5 = vpop.xlane.xlu2 %3269 }
 0xc9a   :  { %v3272_v17 = vmax.f32 %v3267_v20, %v3271_v54  ;;  %v3277_v56 = vrot.slane %v3270_v5, 4 }
 0xc9c   :  { %v3273_v39 = vrot.slane %v3272_v17, 2  ;;  %v3278_v26 = vmax.f32 %v3270_v5, %v3277_v56 }
 0xc9e   :  { %v3274_v40 = vmax.f32 %v3272_v17, %v3273_v39  ;;  %v3279_v13 = vrot.slane %v3278_v26, 2 }
 0xca0   :  { %v3275_v32 = vrot.slane %v3274_v40, 1  ;;  %v3280_v10 = vmax.f32 %v3278_v26, %v3279_v13 }
 0xca2   :  { %v3276_v53 = vmax.f32 %v3274_v40, %v3275_v32  ;;  %v3281_v12 = vrot.slane %v3280_v10, 1 }
 0xca4   :  { %v3283_v28 = vsub.f32 %v3267_v20, %v3276_v53  ;;  %v3282_v35 = vmax.f32 %v3280_v10, %v3281_v12 }
 0xca6   :  { %v3285_v15 = vmul.f32 1.442695, %v3283_v28  ;;  %v3284_v22 = vsub.f32 %v3270_v5, %v3282_v35 }
 0xca8   :  { %7943 = vpow2.f32 %v3285_v15  ;;  %v3287_v63 = vmul.f32 1.442695, %v3284_v22 }
 0xcaa   :  { %7945 = vpow2.f32 %v3287_v63 }
 0xcae   :  { %v7944_v51 = vpop.eup %7943 }
 0xcaf   :  { %v3289_v0 = vrot.slane %v7944_v51, 4 }
 0xcb0   :  { %v7946_v31 = vpop.eup %7945 }
 0xcb1   :  { %v3290_v54 = vadd.f32 %v7944_v51, %v3289_v0  ;;  %v3295_v16 = vrot.slane %v7946_v31, 4 }
 0xcb3   :  { %v3291_v61 = vrot.slane %v3290_v54, 2  ;;  %v3296_v56 = vadd.f32 %v7946_v31, %v3295_v16 }
 0xcb5   :  { %v3292_v17 = vadd.f32 %v3291_v61, %v3290_v54  ;;  %v3297_v39 = vrot.slane %v3296_v56, 2 }
 0xcb7   :  { %v3293_v27 = vrot.slane %v3292_v17, 1  ;;  %v3298_v26 = vadd.f32 %v3297_v39, %v3296_v56 }
 0xcb9   :  { %v3294_v40 = vadd.f32 %v3293_v27, %v3292_v17  ;;  %v3299_v13 = vrot.slane %v3298_v26, 1 }
 0xcbb   :  { %7947 = vrcp.f32 %v3294_v40  ;;  %v3300_v20 = vadd.f32 %v3299_v13, %v3298_v26  ;;  %v3312_v53 = vand.u32 2147483648, %v3294_v40  ;;  %v3310_v15 = vand.u32 2147483647, %v3294_v40 }
 0xcbc   :  { %vm3306_vm8 = vweird.f32 %v3294_v40 }
 0xcbd   :  { %7949 = vrcp.f32 %v3300_v20  ;;  %v3327_v61 = vand.u32 2147483648, %v3300_v20  ;;  %v3313_v63 = vor.u32 1.1754944e-38, %v3312_v53  ;;  %v3325_v0 = vand.u32 2147483647, %v3300_v20 }
 0xcbe   :  { %vm3311_vm11 = vcmp.eq.f32.partialorder %v3310_v15, 8.507059e+37  ;;  %vm3321_vm13 = vweird.f32 %v3300_v20 }
 0xcbf   :  { %v3328_v26 = vor.u32 1.1754944e-38, %v3327_v61  ;;  %vm3326_vm15 = vcmp.eq.f32.partialorder %v3325_v0, 8.507059e+37 }
 0xcc1   :  { %v7948_v35 = vpop.eup %7947 }
 0xcc2   :  { %v3302_v5 = vmul.f32 %v7948_v35, %v3294_v40  ;;  %vm3307_vm7 = vweird.f32 %v7948_v35 }
 0xcc3   :  { %v7950_v32 = vpop.eup %7949  ;;  %vm3308_vm9 = vmor %vm3306_vm8, %vm3307_vm7 }
 0xcc4   :  { %v3303_v10 = vsub.f32 1.0, %v3302_v5  ;;  %v3317_v12 = vmul.f32 %v7950_v32, %v3300_v20  ;;  %vm3322_vm10 = vweird.f32 %v7950_v32 }
 0xcc5   :  { %vm3323_vm14 = vmor %vm3321_vm13, %vm3322_vm10 }
 0xcc6   :  { %v3304_v28 = vmul.f32 %v7948_v35, %v3303_v10  ;;  %v3318_v22 = vsub.f32 1.0, %v3317_v12 }
 0xcc8   :  { %v3305_v16 = vadd.f32 %v7948_v35, %v3304_v28  ;;  %v3319_v27 = vmul.f32 %v7950_v32, %v3318_v22 }
 0xcca   :  { %v3309_v54 = vsel %vm3308_vm9, %v7948_v35, %v3305_v16  ;;  %v3320_v17 = vadd.f32 %v7950_v32, %v3319_v27 }
 0xccb   :  { %v3314_v56 = vsel %vm3311_vm11, %v3313_v63, %v3309_v54 }
 0xccc   :  { %v3315_v39 = vmul.f32 %v7944_v51, %v3314_v56  ;;  %v3324_v13 = vsel %vm3323_vm14, %v7950_v32, %v3320_v17 }
 0xccd   :  { %v3329_v5 = vsel %vm3326_vm15, %v3328_v26, %v3324_v13  ;;  %v10346_v13 = vld [vmem:[#allocation21_spill] sm:$0xff] }
 0xcce   :  { %v3331_v10 = vmul.f32 %v9139_v57, %v3315_v39  ;;  %v3330_v40 = vmul.f32 %v7946_v31, %v3329_v5  ;;  %v3373_v5 = vpop.f32.mrf.mxu0 }
 0xcd0   :  { %v3333_v12 = vsel %vm51_vm0, %v3331_v10, 0.0  ;;  %v3332_v53 = vmul.f32 %v9146_v55, %v3330_v40  ;;  %v3414_v10 = vpop.f32.mrf.mxu1 }
 0xcd1   :  { %v3334_v28 = vrot.slane %v3333_v12, 4  ;;  %v3415_v40 = vadd.f32 %v3414_v10, %v3373_v5 }
 0xcd2   :  { %v3340_v35 = vsel %vm51_vm0, %v3332_v53, 0.0 }
 0xcd3   :  { %v3335_v22 = vadd.f32 %v3334_v28, %v3333_v12  ;;  %v3341_v15 = vrot.slane %v3340_v35, 4  ;;  %v3444_v12 = vpop.f32.mrf.mxu2  ;;  %v3471_v28 = vpop.f32.mrf.mxu3 }
 0xcd4   :  { %v3445_v53 = vadd.f32 %v3444_v12, %v3415_v40 }
 0xcd5   :  { %v3336_v16 = vrot.slane %v3335_v22, 2  ;;  %v3342_v20 = vadd.f32 %v3341_v15, %v3340_v35 }
 0xcd6   :  { %v3472_v35 = vadd.f32 %v3471_v28, %v3445_v53 }
 0xcd7   :  { %v3337_v51 = vadd.f32 %v3336_v16, %v3335_v22  ;;  %v3343_v63 = vrot.slane %v3342_v20, 2  ;;  %v3504_v22 = vpop.f32.mrf.mxu0 }
 0xcd8   :  { %v3505_v15 = vadd.f32 %v3504_v22, %v3472_v35  ;;  %v3529_v16 = vpop.f32.mrf.mxu1 }
 0xcd9   :  { %v3338_v61 = vrot.slane %v3337_v51, 1  ;;  %v3344_v32 = vadd.f32 %v3343_v63, %v3342_v20 }
 0xcda   :  { %v3530_v20 = vadd.f32 %v3529_v16, %v3505_v15 }
 0xcdb   :  { %v3345_v27 = vrot.slane %v3344_v32, 1  ;;  %v3339_v0 = vadd.f32 %v3338_v61, %v3337_v51 }
 0xcdd   :  { %v3346_v54 = vadd.f32 %v3345_v27, %v3344_v32 }
 0xcdf   :  { %v3534_v57 = vsel %vm1273_vm12, %v3346_v54, %v3339_v0 }
 0xce0   :  { %v3535_v31 = vsel %vm51_vm0, %v3534_v57, 0 }
 0xce1   :  { %v3561_v56 = vand.u32 4294901760, %v3535_v31 }
 0xce3   :  { %v3562_v55 = vsub.f32 %v3535_v31, %v3561_v56  ;;  %3627 = vmatmul.f32.vlgmr.msrb.gmra.mxu3 %v3561_v56 }
 0xce4   :  { %3994 = vmatpush.msrb.mxu3 %v8376_v25 }
 0xce5   :  { %3665 = vmatmul.f32.vlgmr.msra.gmra.mxu0 %v3562_v55  ;;  %v3563_v17 = vand.u32 4294901760, %v3562_v55 }
 0xce6   :  { %3996 = vmatpush.msrb.mxu3 %v8390_v29  ;;  %3905 = vmatpush.msra.mxu0 %v8404_v30 }
 0xce7   :  { %3696 = vmatmul.f32.vlgmr.msra.gmra.mxu1 %v3563_v17  ;;  %v3564_v39 = vsub.f32 %v3562_v55, %v3563_v17 }
 0xce8   :  { %3998 = vmatpush.msrb.mxu3 %v8406_v33  ;;  %3934 = vmatpush.msra.mxu1 %v8376_v25 }
 0xce9   :  { %v3565_v26 = vand.u32 4294901760, %v3564_v39  ;;  %3908 = vmatpush.msra.mxu0 %v8419_v36  ;;  %v3774_v39 = vld [vmem:[#allocation2 + $0x6] sm:$0x3] }
 0xcea   :  { %4000 = vmatpush.msrb.mxu3 %v8445_v41  ;;  %3936 = vmatpush.msra.mxu1 %v8390_v29 }
 0xceb   :  { %3566 = vmatmul.f32.vlgmr.msrb.gmra.mxu2 %v3565_v26  ;;  %3770 = vmatmul.f32.vlgmr.msra.gmra.mxu3 %v3561_v56 }
 0xcec   :  { %3963 = vmatpush.msrb.mxu2 %v8429_v37  ;;  %4213 = vmatpush.msra.mxu3 %v8567_v14 }
 0xced   :  { %3938 = vmatpush.msra.mxu1 %v8406_v33  ;;  %3911 = vmatpush.msra.mxu0 %v8432_v38 }
 0xcee   :  { %3967 = vmatpush.msrb.mxu2 %v8450_v42  ;;  %4215 = vmatpush.msra.mxu3 %v8574_v21 }
 0xcef   :  { %3940 = vmatpush.msra.mxu1 %v8445_v41  ;;  %3914 = vmatpush.msra.mxu0 %v8454_v43 }
 0xcf0   :  { %3971 = vmatpush.msrb.mxu2 %v8461_v45  ;;  %4217 = vmatpush.msra.mxu3 %v8592_v19 }
 0xcf2   :  { %3975 = vmatpush.msrb.mxu2 %v10285_v1  ;;  %4219 = vmatpush.msra.mxu3 %v8618_v59 }
 0xcf3   :  { %3741 = vmatmul.f32.vlgmr.msra.gmra.mxu2 %v3561_v56 }
 0xcf4   :  { %4184 = vmatpush.msra.mxu2 %v10286_v6 }
 0xcf6   :  { %4187 = vmatpush.msra.mxu2 %v10287_v46 }
 0xcf8   :  { %4190 = vmatpush.msra.mxu2 %v10288_v52 }
 0xcfa   :  { %4193 = vmatpush.msra.mxu2 %v10346_v13 }
 0xd62   :  { %v3666_v27 = vpop.f32.mrf.mxu0 }
 0xd64   :  { %v3697_v54 = vpop.f32.mrf.mxu1 }
 0xd66   :  { %v3628_v51 = vpop.f32.mrf.mxu3 }
 0xd6e   :  { %v3567_v63 = vpop.f32.mrf.mxu2  ;;  %v3771_v55 = vpop.f32.mrf.mxu3 }
 0xd6f   :  { %v3568_v61 = vadd.f32 %v3567_v63, %v3530_v20 }
 0xd71   :  { %v3629_v32 = vadd.f32 %v3628_v51, %v3568_v61 }
 0xd73   :  { %v3667_v0 = vadd.f32 %v3666_v27, %v3629_v32 }
 0xd75   :  { %v3698_v57 = vadd.f32 %v3697_v54, %v3667_v0 }
 0xd76   :  { %v3742_v31 = vpop.f32.mrf.mxu2 }
 0xd77   :  { %v3743_v56 = vadd.f32 %v3742_v31, %v3698_v57 }
 0xd79   :  { %v3772_v17 = vadd.f32 %v3771_v55, %v3743_v56 }
 0xd7b   :  { %v3775_v26 = vadd.f32 %v3774_v39, %v3772_v17 }
 0xd7d   :  { %v3776_v5 = vadd.f32 %v9179_v62, %v3775_v26 }
 0xd7f   :  { %7951 = vtanh.f32 %v3776_v5  ;;  %v7862_v40 = vmul.f32 -1.442695, %v3776_v5 }
 0xd81   :  { %7953 = vpow2.f32 %v7862_v40 }
 0xd85   :  { %v7952_v10 = vpop.eup %7951 }
 0xd86   :  { %3799 = vrot.lane.b32.xlu0 %v7952_v10, %s8082_s28 }
 0xd87   :  { %v7954_v12 = vpop.eup %7953 }
 0xd88   :  { %v3780_v53 = vadd.f32 1.0, %v7954_v12  ;;  %v10347_v12 = vld [vmem:[#allocation42_spill] sm:$0xff] }
 0xd8a   :  { %7955 = vrcp.f32 %v3780_v53  ;;  %v3792_v20 = vand.u32 2147483648, %v3780_v53  ;;  %vm3786_vm5 = vweird.f32 %v3780_v53  ;;  %v3790_v51 = vand.u32 2147483647, %v3780_v53 }
 0xd8c   :  { %v3793_v63 = vor.u32 1.1754944e-38, %v3792_v20  ;;  %vm3791_vm7 = vcmp.eq.f32.partialorder %v3790_v51, 8.507059e+37  ;;  %v10354_v20 = vld [vmem:[#allocation24_spill] sm:$0xff] }
 0xd8d   :  { %v10355_v51 = vld [vmem:[#allocation16_spill] sm:$0xff] }
 0xd90   :  { %v7956_v28 = vpop.eup %7955 }
 0xd91   :  { %v3782_v22 = vmul.f32 %v7956_v28, %v3780_v53  ;;  %vm3787_vm1 = vweird.f32 %v7956_v28  ;;  %v10348_v53 = vld [vmem:[#allocation32_spill] sm:$0xff] }
 0xd92   :  { %vm3788_vm6 = vmor %vm3786_vm5, %vm3787_vm1 }
 0xd93   :  { %v3783_v35 = vsub.f32 1.0, %v3782_v22  ;;  %v10350_v22 = vld [vmem:[#allocation43_spill] sm:$0xff] }
 0xd95   :  { %v3784_v15 = vmul.f32 %v7956_v28, %v3783_v35  ;;  %v10351_v35 = vld [vmem:[#allocation34_spill] sm:$0xff] }
 0xd97   :  { %v3785_v16 = vadd.f32 %v7956_v28, %v3784_v15  ;;  %v10352_v15 = vld [vmem:[#allocation22_spill] sm:$0xff] }
 0xd99   :  { %v3789_v62 = vsel %vm3788_vm6, %v7956_v28, %v3785_v16  ;;  %v10349_v28 = vld [vmem:[#allocation17_spill] sm:$0xff]  ;;  %v10353_v16 = vld [vmem:[#allocation18_spill] sm:$0xff] }
 0xd9a   :  { %v3794_v32 = vsel %vm3791_vm7, %v3793_v63, %v3789_v62  ;;  %v10356_v62 = vld [vmem:[#allocation23_spill] sm:$0xff]  ;;  %v10357_v63 = vld [vmem:[#allocation20_spill] sm:$0xff] }
 0xd9b   :  { %v3797_v0 = vmul.f32 %v3794_v32, %v9185_v44 }
 0xdf8   :  { %v3800_v61 = vpop.permute.xlu0 %3799 }
 0xdf9   :  { %v3802_v27 = vmul.f32 %v3800_v61, %v3794_v32  ;;  %v10358_v61 = vld [vmem:[#allocation28_spill] sm:$0xff] }
 0xdfb   :  { %3804 = vrot.lane.b32.xlu0 %v3802_v27, %s8083_s29  ;;  %v10360_v27 = vld [vmem:[#allocation29_spill] sm:$0xff] }
 0xe6d   :  { %v3805_v54 = vpop.permute.xlu0 %3804 }
 0xe6e   :  { %v9314_v57 = vadd.f32 %v3805_v54, %v3797_v0  ;;  %v10361_v0 = vld [vmem:[#allocation26_spill] sm:$0xff]  ;;  %v10362_v54 = vld [vmem:[#allocation33_spill] sm:$0xff] }
 0xe70   :  { %7957 = vtanh.f32 %v9314_v57 }
 0xe76   :  { %v7958_v31 = vpop.eup %7957 }
 0xe77   :  { %3810 = vrot.lane.b32.xlu0 %v7958_v31, %s8082_s28  ;;  %v10363_v31 = vld [vmem:[#allocation30_spill] sm:$0xff] }
 0xee9   :  { %v3811_v56 = vpop.permute.xlu0 %3810 }
 0xeea   :  { %v3813_v55 = vmul.f32 %v3811_v56, %v3794_v32  ;;  %v10359_v32 = vld [vmem:[#allocation25_spill] sm:$0xff] }
 0xeeb   :  { %v10364_v56 = vld [vmem:[#allocation5_spill] sm:$0xff] }
 0xeec   :  { %3815 = vrot.lane.b32.xlu0 %v3813_v55, %s8083_s29  ;;  %v10365_v55 = vld [vmem:[#allocation35_spill] sm:$0xff] }
 0xf5e   :  { %v3816_v17 = vpop.permute.xlu0 %3815 }
 0xf5f   :  { %3818 = vst.msk [vmem:[#allocation3 + $0x6] sm:$0x3] %vm1558_vm4, %v3816_v17  ;;  %v3819_v39 = vsel %vm803_vm3, %v3816_v17, 0  ;;  %v10366_v17 = vld [vmem:[#allocation31_spill] sm:$0xff] }
 0xf60   :  { %v9321_v26 = vand.u32 4294901760, %v3819_v39 }
 0xf62   :  { %v3842_v44 = vsub.f32 %v3819_v39, %v9321_v26  ;;  %3887 = vmatmul.f32.vlgmr.msrb.gmra.mxu1 %v9321_v26  ;;  %3977 = vmatmul.f32.vlgmr.msrb.gmra.mxu2 %v9321_v26  ;;  %v10367_v39 = vld [vmem:[#allocation6_spill] sm:$0xff] }
 0xf63   :  { %4002 = vmatmul.f32.vlgmr.msrb.gmra.mxu3 %v9321_v26  ;;  %4146 = vmatpush.msrb.mxu1 %v8634_v7 }
 0xf64   :  { %v3843_v5 = vand.u32 4294901760, %v3842_v44  ;;  %4336 = vmatpush.msrb.mxu3 %v8671_v8  ;;  %4299 = vmatpush.msrb.mxu2 %v8585_v3 }
 0xf65   :  { %4152 = vmatpush.msrb.mxu1 %v8658_v47 }
 0xf66   :  { %v3844_v10 = vsub.f32 %v3842_v44, %v3843_v5  ;;  %4342 = vmatpush.msrb.mxu3 %v8697_v60  ;;  %4301 = vmatpush.msrb.mxu2 %v8607_v34 }
 0xf67   :  { %4158 = vmatpush.msrb.mxu1 %v8695_v24 }
 0xf68   :  { %v3845_v40 = vand.u32 4294901760, %v3844_v10  ;;  %4348 = vmatpush.msrb.mxu3 %v10262_v11  ;;  %4303 = vmatpush.msrb.mxu2 %v8663_v48  ;;  %v10371_v10 = vld [vmem:[#allocation41_spill] sm:$0xff] }
 0xf69   :  { %4164 = vmatpush.msrb.mxu1 %v10263_v49 }
 0xf6a   :  { %3846 = vmatmul.f32.vlgmr.msrb.gmra.mxu0 %v3845_v40  ;;  %3944 = vmatmul.f32.vlgmr.msra.gmra.mxu1 %v3843_v5 }
 0xf6b   :  { %4196 = vmatmul.f32.vlgmr.msra.gmra.mxu2 %v3842_v44  ;;  %4223 = vmatmul.f32.vlgmr.msra.gmra.mxu3 %v3843_v5  ;;  %v10370_v5 = vld [vmem:[#allocation7_spill] sm:$0xff] }
 0xf6c   :  { %4113 = vmatpush.msrb.mxu0 %v8567_v14  ;;  %4273 = vmatpush.msra.mxu1 %v8567_v14 }
 0xf6d   :  { %4354 = vmatpush.msrb.mxu3 %v10264_v18  ;;  %4305 = vmatpush.msrb.mxu2 %v8665_v50 }
 0xf6e   :  { %4115 = vmatpush.msrb.mxu0 %v8574_v21  ;;  %4275 = vmatpush.msra.mxu1 %v8574_v21 }
 0xf6f   :  { %4360 = vmatpush.msrb.mxu3 %v8769_v9  ;;  %4307 = vmatpush.msrb.mxu2 %v8689_v23 }
 0xf70   :  { %4117 = vmatpush.msrb.mxu0 %v8592_v19  ;;  %4277 = vmatpush.msra.mxu1 %v8592_v19 }
 0xf71   :  { %4366 = vmatpush.msrb.mxu3 %v8783_v4  ;;  %4309 = vmatpush.msrb.mxu2 %v8700_v58 }
 0xf72   :  { %3917 = vmatmul.f32.vlgmr.msra.gmra.mxu0 %v3842_v44  ;;  %4166 = vmatmul.f32.vlgmr.msrb.gmra.mxu1 %v9321_v26  ;;  %v10369_v44 = vld [vmem:[#allocation36_spill] sm:$0xff] }
 0xf73   :  { %4119 = vmatpush.msrb.mxu0 %v8618_v59  ;;  %4279 = vmatpush.msra.mxu1 %v8618_v59 }
 0xf74   :  { %4372 = vmatpush.msrb.mxu3 %v10347_v12  ;;  %4311 = vmatpush.msrb.mxu2 %v10348_v53 }
 0xf75   :  { %4242 = vmatpush.msra.mxu0 %v10265_v2  ;;  %4431 = vmatpush.msrb.mxu1 %v8585_v3 }
 0xf76   :  { %4378 = vmatpush.msrb.mxu3 %v10350_v22  ;;  %4313 = vmatpush.msrb.mxu2 %v10351_v35 }
 0xf77   :  { %4246 = vmatpush.msra.mxu0 %v10349_v28  ;;  %4433 = vmatpush.msrb.mxu1 %v8607_v34 }
 0xf78   :  { %4507 = vmatpush.msra.mxu3 %v8585_v3  ;;  %4464 = vmatpush.msra.mxu2 %v10353_v16 }
 0xf79   :  { %4250 = vmatpush.msra.mxu0 %v10352_v15  ;;  %4435 = vmatpush.msrb.mxu1 %v8663_v48 }
 0xf7a   :  { %4125 = vmatmul.f32.vlgmr.msrb.gmra.mxu0 %v3845_v40  ;;  %4281 = vmatmul.f32.vlgmr.msra.gmra.mxu1 %v9321_v26  ;;  %v10372_v40 = vld [vmem:[#allocation39_spill] sm:$0xff] }
 0xf7b   :  { %4254 = vmatpush.msra.mxu0 %v10354_v20  ;;  %4437 = vmatpush.msrb.mxu1 %v8665_v50  ;;  %v10376_v20 = vld [vmem:[#allocation11_spill] sm:$0xff] }
 0xf7c   :  { %4509 = vmatpush.msra.mxu3 %v8607_v34  ;;  %4468 = vmatpush.msra.mxu2 %v10356_v62  ;;  %v10375_v62 = vld [vmem:[#allocation10_spill] sm:$0xff] }
 0xf7d   :  { %4394 = vmatpush.msrb.mxu0 %v10355_v51  ;;  %4439 = vmatpush.msrb.mxu1 %v8689_v23 }
 0xf7e   :  { %4511 = vmatpush.msra.mxu3 %v8663_v48  ;;  %4472 = vmatpush.msra.mxu2 %v10358_v61 }
 0xf7f   :  { %4397 = vmatpush.msrb.mxu0 %v10357_v63  ;;  %4441 = vmatpush.msrb.mxu1 %v8700_v58 }
 0xf80   :  { %4513 = vmatpush.msra.mxu3 %v8665_v50  ;;  %4476 = vmatpush.msra.mxu2 %v10360_v27 }
 0xf81   :  { %4400 = vmatpush.msrb.mxu0 %v10359_v32  ;;  %4443 = vmatpush.msrb.mxu1 %v10348_v53 }
 0xf82   :  { %4256 = vmatmul.f32.vlgmr.msra.gmra.mxu0 %v9321_v26  ;;  %4515 = vmatpush.msra.mxu3 %v8689_v23  ;;  %v10368_v26 = vld [vmem:[#allocation40_spill] sm:$0xff] }
 0xf83   :  { %4403 = vmatpush.msrb.mxu0 %v10361_v0  ;;  %4445 = vmatpush.msrb.mxu1 %v10351_v35 }
 0xf84   :  { %4517 = vmatpush.msra.mxu3 %v8700_v58  ;;  %4480 = vmatpush.msra.mxu2 %v10362_v54 }
 0xf85   :  { %4406 = vmatpush.msrb.mxu0 %v10363_v31  ;;  %4620 = vmatpush.msra.mxu1 %v10364_v56  ;;  %v10373_v56 = vld [vmem:[#allocation8_spill] sm:$0xff] }
 0xf86   :  { %4519 = vmatpush.msra.mxu3 %v10348_v53  ;;  %4484 = vmatpush.msra.mxu2 %v10365_v55 }
 0xf87   :  { %4409 = vmatpush.msrb.mxu0 %v10366_v17  ;;  %4626 = vmatpush.msra.mxu1 %v10367_v39 }
 0xf88   :  { %4521 = vmatpush.msra.mxu3 %v10351_v35  ;;  %4488 = vmatpush.msra.mxu2 %v10368_v26 }
 0xf89   :  { %4412 = vmatpush.msrb.mxu0 %v10369_v44  ;;  %4632 = vmatpush.msra.mxu1 %v10370_v5  ;;  %v9405_v5 = vld [vmem:[%s10106_s4] ss:$0 sm:$0xff] }
 0xf8a   :  { %4492 = vmatpush.msra.mxu2 %v10371_v10  ;;  %10374 = vst [vmem:[#allocation38_spill] sm:$0xff] %v9405_v5 }
 0xf8b   :  { %4415 = vmatpush.msrb.mxu0 %v10372_v40  ;;  %4638 = vmatpush.msra.mxu1 %v10373_v56 }
 0xf8d   :  { %4587 = vmatpush.msra.mxu0 %v8376_v25 }
 0xf8f   :  { %4589 = vmatpush.msra.mxu0 %v8390_v29 }
 0xf91   :  { %4591 = vmatpush.msra.mxu0 %v8406_v33 }
 0xf93   :  { %4593 = vmatpush.msra.mxu0 %v8445_v41 }
 0xfdf   :  { %v3888_v39 = vpop.f32.mrf.mxu1 }
 0xfe5   :  { %v3978_v31 = vpop.f32.mrf.mxu2 }
 0xfe6   :  { %v4003_v0 = vpop.f32.mrf.mxu3 }
 0xfe7   :  { %v3847_v26 = vpop.f32.mrf.mxu0  ;;  %v3945_v17 = vpop.f32.mrf.mxu1 }
 0xfe8   :  { %v3848_v10 = vadd.f32 %v9405_v5, %v3847_v26 }
 0xfea   :  { %v3889_v40 = vadd.f32 %v3888_v39, %v3848_v10  ;;  %v9413_v39 = vld [vmem:[%s10107_s5] ss:$0 sm:$0xff] }
 0xfeb   :  { %10377 = vst [vmem:[#allocation9_spill] sm:$0xff] %v9413_v39 }
 0xfef   :  { %v3918_v44 = vpop.f32.mrf.mxu0 }
 0xff0   :  { %v3919_v56 = vadd.f32 %v3918_v44, %v3889_v40 }
 0xff2   :  { %v3946_v55 = vadd.f32 %v3945_v17, %v3919_v56 }
 0xff4   :  { %v3979_v54 = vadd.f32 %v3978_v31, %v3946_v55 }
 0xff6   :  { %v4004_v27 = vadd.f32 %v4003_v0, %v3979_v54 }
 0xff8   :  { %v4007_v32 = vrot.slane %v4004_v27, 1  ;;  %v4008_v61 = vperm.slane %v4004_v27, 0 }
 0xffa   :  { %v4009_v63 = vperm.slane %v4007_v32, 0  ;;  %v4012_v51 = vadd.f32 %v4008_v61, %v10375_v62 }
 0xffc   :  { %7959 = vtanh.f32 %v4012_v51  ;;  %v4013_v16 = vadd.f32 %v4009_v63, %v10376_v20 }
 0xffe   :  { %7961 = vtanh.f32 %v4013_v16 }
0x1002   :  { %v7960_v15 = vpop.eup %7959 }
0x1003   :  { %v4016_v56 = vmul.f32 %v9413_v39, %v7960_v15 }
0x1004   :  { %v7962_v31 = vpop.eup %7961 }
0x1005   :  { %v4018_v0 = vsel %vm803_vm3, %v4016_v56, 0.0  ;;  %v4017_v27 = vmul.f32 %v9413_v39, %v7962_v31 }
0x1006   :  { %4019 = vadd.xlane.f32.xlu1 %v4018_v0 }
0x1007   :  { %v4021_v61 = vsel %vm803_vm3, %v4017_v27, 0.0 }
0x1008   :  { %4022 = vadd.xlane.f32.xlu0 %v4021_v61 }
0x1079   :  { %v4020_v51 = vpop.xlane.xlu1 %4019 }
0x107a   :  { %v4024_v63 = vrot.slane %v4020_v51, 4 }
0x107b   :  { %v4023_v16 = vpop.xlane.xlu0 %4022 }
0x107c   :  { %v4025_v32 = vmax.f32 %v4020_v51, %v4024_v63  ;;  %v4030_v54 = vrot.slane %v4023_v16, 4 }
0x107e   :  { %v4026_v55 = vrot.slane %v4025_v32, 2  ;;  %v4031_v17 = vmax.f32 %v4023_v16, %v4030_v54 }
0x1080   :  { %v4027_v26 = vmax.f32 %v4025_v32, %v4026_v55  ;;  %v4032_v44 = vrot.slane %v4031_v17, 2 }
0x1082   :  { %v4028_v10 = vrot.slane %v4027_v26, 1  ;;  %v4033_v15 = vmax.f32 %v4031_v17, %v4032_v44 }
0x1084   :  { %v4029_v40 = vmax.f32 %v4027_v26, %v4028_v10  ;;  %v4034_v20 = vrot.slane %v4033_v15, 1 }
0x1086   :  { %v4036_v56 = vsub.f32 %v4020_v51, %v4029_v40  ;;  %v4035_v62 = vmax.f32 %v4033_v15, %v4034_v20 }
0x1088   :  { %v4038_v31 = vmul.f32 1.442695, %v4036_v56  ;;  %v4037_v0 = vsub.f32 %v4023_v16, %v4035_v62 }
0x108a   :  { %7963 = vpow2.f32 %v4038_v31  ;;  %v4040_v27 = vmul.f32 1.442695, %v4037_v0 }
0x108c   :  { %7965 = vpow2.f32 %v4040_v27 }
0x1090   :  { %v7964_v61 = vpop.eup %7963 }
0x1091   :  { %v4042_v39 = vrot.slane %v7964_v61, 4 }
0x1092   :  { %v7966_v5 = vpop.eup %7965 }
0x1093   :  { %v4043_v63 = vadd.f32 %v7964_v61, %v4042_v39  ;;  %v4048_v35 = vrot.slane %v7966_v5, 4 }
0x1095   :  { %v4044_v22 = vrot.slane %v4043_v63, 2  ;;  %v4049_v54 = vadd.f32 %v7966_v5, %v4048_v35 }
0x1097   :  { %v4045_v32 = vadd.f32 %v4044_v22, %v4043_v63  ;;  %v4050_v55 = vrot.slane %v4049_v54, 2 }
0x1099   :  { %v4046_v28 = vrot.slane %v4045_v32, 1  ;;  %v4051_v17 = vadd.f32 %v4050_v55, %v4049_v54 }
0x109b   :  { %v4047_v26 = vadd.f32 %v4046_v28, %v4045_v32  ;;  %v4052_v44 = vrot.slane %v4051_v17, 1 }
0x109d   :  { %7967 = vrcp.f32 %v4047_v26  ;;  %v4053_v20 = vadd.f32 %v4052_v44, %v4051_v17  ;;  %v4065_v15 = vand.u32 2147483648, %v4047_v26  ;;  %v4063_v39 = vand.u32 2147483647, %v4047_v26 }
0x109e   :  { %vm4059_vm9 = vweird.f32 %v4047_v26 }
0x109f   :  { %7969 = vrcp.f32 %v4053_v20  ;;  %v4080_v22 = vand.u32 2147483648, %v4053_v20  ;;  %v4066_v0 = vor.u32 1.1754944e-38, %v4065_v15  ;;  %v4078_v27 = vand.u32 2147483647, %v4053_v20 }
0x10a0   :  { %vm4064_vm13 = vcmp.eq.f32.partialorder %v4063_v39, 8.507059e+37  ;;  %vm4074_vm14 = vweird.f32 %v4053_v20 }
0x10a1   :  { %v4081_v17 = vor.u32 1.1754944e-38, %v4080_v22  ;;  %vm4079_vm1 = vcmp.eq.f32.partialorder %v4078_v27, 8.507059e+37 }
0x10a3   :  { %v7968_v62 = vpop.eup %7967 }
0x10a4   :  { %v4055_v51 = vmul.f32 %v7968_v62, %v4047_v26  ;;  %vm4060_vm8 = vweird.f32 %v7968_v62  ;;  %v9422_v26 = vld [vmem:[%s10102_s0] sm:$0xff] }
0x10a5   :  { %v7970_v16 = vpop.eup %7969  ;;  %vm4061_vm10 = vmor %vm4059_vm9, %vm4060_vm8 }
0x10a6   :  { %v4056_v10 = vsub.f32 1.0, %v4055_v51  ;;  %v4070_v40 = vmul.f32 %v7970_v16, %v4053_v20  ;;  %vm4075_vm11 = vweird.f32 %v7970_v16  ;;  %v9429_v20 = vld [vmem:[%s10102_s0 + $0x8] sm:$0xff] }
0x10a7   :  { %vm4076_vm15 = vmor %vm4074_vm14, %vm4075_vm11 }
0x10a8   :  { %v4057_v56 = vmul.f32 %v7968_v62, %v4056_v10  ;;  %v4071_v31 = vsub.f32 1.0, %v4070_v40 }
0x10aa   :  { %v4058_v35 = vadd.f32 %v7968_v62, %v4057_v56  ;;  %v4072_v28 = vmul.f32 %v7970_v16, %v4071_v31 }
0x10ac   :  { %v4062_v63 = vsel %vm4061_vm10, %v7968_v62, %v4058_v35  ;;  %v4073_v32 = vadd.f32 %v7970_v16, %v4072_v28 }
0x10ad   :  { %v4067_v54 = vsel %vm4064_vm13, %v4066_v0, %v4062_v63 }
0x10ae   :  { %v4068_v55 = vmul.f32 %v7964_v61, %v4067_v54  ;;  %v4077_v44 = vsel %vm4076_vm15, %v7970_v16, %v4073_v32 }
0x10af   :  { %v4082_v10 = vsel %vm4079_vm1, %v4081_v17, %v4077_v44 }
0x10b0   :  { %v4084_v51 = vmul.f32 %v9422_v26, %v4068_v55  ;;  %v4083_v15 = vmul.f32 %v7966_v5, %v4082_v10 }
0x10b2   :  { %v4086_v62 = vsel %vm51_vm0, %v4084_v51, 0.0  ;;  %v4085_v61 = vmul.f32 %v9429_v20, %v4083_v15 }
0x10b3   :  { %v4087_v16 = vrot.slane %v4086_v62, 4 }
0x10b4   :  { %v4093_v56 = vsel %vm51_vm0, %v4085_v61, 0.0  ;;  %v4167_v61 = vpop.f32.mrf.mxu1 }
0x10b5   :  { %v4088_v40 = vadd.f32 %v4087_v16, %v4086_v62  ;;  %v4094_v39 = vrot.slane %v4093_v56, 4  ;;  %v4126_v62 = vpop.f32.mrf.mxu0 }
0x10b6   :  { %v4168_v16 = vadd.f32 %v4167_v61, %v4126_v62  ;;  %v4527_v61 = vld [vmem:[#allocation2 + $0x8] sm:$0x3] }
0x10b7   :  { %v4089_v31 = vrot.slane %v4088_v40, 2  ;;  %v4095_v35 = vadd.f32 %v4094_v39, %v4093_v56  ;;  %v4224_v39 = vpop.f32.mrf.mxu3 }
0x10b9   :  { %v4090_v22 = vadd.f32 %v4089_v31, %v4088_v40  ;;  %v4096_v0 = vrot.slane %v4095_v35, 2  ;;  %v4197_v40 = vpop.f32.mrf.mxu2 }
0x10ba   :  { %v4198_v56 = vadd.f32 %v4197_v40, %v4168_v16  ;;  %v9462_v40 = vld [vmem:[%s10110_s9] ss:$0 sm:$0xff] }
0x10bb   :  { %v4091_v28 = vrot.slane %v4090_v22, 1  ;;  %v4097_v5 = vadd.f32 %v4096_v0, %v4095_v35 }
0x10bc   :  { %v4225_v35 = vadd.f32 %v4224_v39, %v4198_v56  ;;  %v4282_v0 = vpop.f32.mrf.mxu1 }
0x10bd   :  { %v4098_v27 = vrot.slane %v4097_v5, 1  ;;  %v4092_v63 = vadd.f32 %v4091_v28, %v4090_v22  ;;  %v4257_v31 = vpop.f32.mrf.mxu0 }
0x10be   :  { %v4258_v22 = vadd.f32 %v4257_v31, %v4225_v35 }
0x10bf   :  { %v4099_v54 = vadd.f32 %v4098_v27, %v4097_v5 }
0x10c0   :  { %v4283_v28 = vadd.f32 %v4282_v0, %v4258_v22 }
0x10c1   :  { %v4287_v32 = vsel %vm1273_vm12, %v4099_v54, %v4092_v63 }
0x10c2   :  { %v4288_v55 = vsel %vm51_vm0, %v4287_v32, 0 }
0x10c3   :  { %v4314_v17 = vand.u32 4294901760, %v4288_v55 }
0x10c5   :  { %4380 = vmatmul.f32.vlgmr.msrb.gmra.mxu3 %v4314_v17  ;;  %v4315_v44 = vsub.f32 %v4288_v55, %v4314_v17 }
0x10c6   :  { %4747 = vmatpush.msrb.mxu3 %v8376_v25 }
0x10c7   :  { %4418 = vmatmul.f32.vlgmr.msrb.gmra.mxu0 %v4315_v44  ;;  %v4316_v51 = vand.u32 4294901760, %v4315_v44 }
0x10c8   :  { %4749 = vmatpush.msrb.mxu3 %v8390_v29  ;;  %4658 = vmatpush.msrb.mxu0 %v8404_v30 }
0x10c9   :  { %4449 = vmatmul.f32.vlgmr.msrb.gmra.mxu1 %v4316_v51  ;;  %v4317_v10 = vsub.f32 %v4315_v44, %v4316_v51 }
0x10ca   :  { %4751 = vmatpush.msrb.mxu3 %v8406_v33  ;;  %4687 = vmatpush.msrb.mxu1 %v8376_v25 }
0x10cb   :  { %v4318_v15 = vand.u32 4294901760, %v4317_v10  ;;  %4661 = vmatpush.msrb.mxu0 %v8419_v36 }
0x10cc   :  { %4753 = vmatpush.msrb.mxu3 %v8445_v41  ;;  %4689 = vmatpush.msrb.mxu1 %v8390_v29 }
0x10cd   :  { %4319 = vmatmul.f32.vlgmr.msrb.gmra.mxu2 %v4318_v15  ;;  %4523 = vmatmul.f32.vlgmr.msra.gmra.mxu3 %v4314_v17 }
0x10ce   :  { %4716 = vmatpush.msrb.mxu2 %v8429_v37  ;;  %4966 = vmatpush.msra.mxu3 %v8567_v14 }
0x10cf   :  { %4691 = vmatpush.msrb.mxu1 %v8406_v33  ;;  %4664 = vmatpush.msrb.mxu0 %v8432_v38 }
0x10d0   :  { %4720 = vmatpush.msrb.mxu2 %v8450_v42  ;;  %4968 = vmatpush.msra.mxu3 %v8574_v21 }
0x10d1   :  { %4693 = vmatpush.msrb.mxu1 %v8445_v41  ;;  %4667 = vmatpush.msrb.mxu0 %v8454_v43 }
0x10d2   :  { %4724 = vmatpush.msrb.mxu2 %v8461_v45  ;;  %4970 = vmatpush.msra.mxu3 %v8592_v19 }
0x10d4   :  { %4728 = vmatpush.msrb.mxu2 %v10285_v1  ;;  %4972 = vmatpush.msra.mxu3 %v8618_v59 }
0x10d5   :  { %4494 = vmatmul.f32.vlgmr.msra.gmra.mxu2 %v4314_v17 }
0x10d6   :  { %4937 = vmatpush.msra.mxu2 %v10286_v6 }
0x10d8   :  { %4940 = vmatpush.msra.mxu2 %v10287_v46 }
0x10da   :  { %4943 = vmatpush.msra.mxu2 %v10288_v52 }
0x10dc   :  { %4946 = vmatpush.msra.mxu2 %v10346_v13 }
0x1144   :  { %v4419_v32 = vpop.f32.mrf.mxu0 }
0x1146   :  { %v4450_v17 = vpop.f32.mrf.mxu1 }
0x1148   :  { %v4381_v5 = vpop.f32.mrf.mxu3 }
0x1150   :  { %v4320_v27 = vpop.f32.mrf.mxu2  ;;  %v4524_v15 = vpop.f32.mrf.mxu3 }
0x1151   :  { %v4321_v63 = vadd.f32 %v4320_v27, %v4283_v28 }
0x1153   :  { %v4382_v54 = vadd.f32 %v4381_v5, %v4321_v63 }
0x1155   :  { %v4420_v55 = vadd.f32 %v4419_v32, %v4382_v54 }
0x1157   :  { %v4451_v44 = vadd.f32 %v4450_v17, %v4420_v55 }
0x1158   :  { %v4495_v51 = vpop.f32.mrf.mxu2 }
0x1159   :  { %v4496_v10 = vadd.f32 %v4495_v51, %v4451_v44 }
0x115b   :  { %v4525_v62 = vadd.f32 %v4524_v15, %v4496_v10 }
0x115d   :  { %v4528_v16 = vadd.f32 %v4527_v61, %v4525_v62 }
0x115f   :  { %v4529_v56 = vadd.f32 %v9462_v40, %v4528_v16 }
0x1161   :  { %7971 = vtanh.f32 %v4529_v56  ;;  %v7863_v31 = vmul.f32 -1.442695, %v4529_v56 }
0x1163   :  { %7973 = vpow2.f32 %v7863_v31 }
0x1167   :  { %v7972_v39 = vpop.eup %7971 }
0x1168   :  { %4552 = vrot.lane.b32.xlu1 %v7972_v39, %s8082_s28 }
0x1169   :  { %v7974_v35 = vpop.eup %7973 }
0x116a   :  { %v4533_v22 = vadd.f32 1.0, %v7974_v35 }
0x116c   :  { %7975 = vrcp.f32 %v4533_v22  ;;  %v4545_v54 = vand.u32 2147483648, %v4533_v22  ;;  %vm4539_vm6 = vweird.f32 %v4533_v22  ;;  %v4543_v32 = vand.u32 2147483647, %v4533_v22 }
0x116e   :  { %v4546_v17 = vor.u32 1.1754944e-38, %v4545_v54  ;;  %vm4544_vm8 = vcmp.eq.f32.partialorder %v4543_v32, 8.507059e+37  ;;  %v10380_v54 = vld [vmem:[#allocation34_spill] sm:$0xff] }
0x116f   :  { %v10381_v32 = vld [vmem:[#allocation22_spill] sm:$0xff] }
0x1172   :  { %v7976_v0 = vpop.eup %7975 }
0x1173   :  { %v4535_v28 = vmul.f32 %v7976_v0, %v4533_v22  ;;  %vm4540_vm5 = vweird.f32 %v7976_v0 }
0x1174   :  { %vm4541_vm7 = vmor %vm4539_vm6, %vm4540_vm5 }
0x1175   :  { %v4536_v5 = vsub.f32 1.0, %v4535_v28 }
0x1177   :  { %v4537_v27 = vmul.f32 %v7976_v0, %v4536_v5 }
0x1179   :  { %v4538_v63 = vadd.f32 %v7976_v0, %v4537_v27  ;;  %v10378_v27 = vld [vmem:[#allocation17_spill] sm:$0xff] }
0x117b   :  { %v4542_v55 = vsel %vm4541_vm7, %v7976_v0, %v4538_v63  ;;  %v10379_v63 = vld [vmem:[#allocation43_spill] sm:$0xff] }
0x117c   :  { %v4547_v51 = vsel %vm4544_vm8, %v4546_v17, %v4542_v55  ;;  %v10382_v55 = vld [vmem:[#allocation18_spill] sm:$0xff]  ;;  %v10383_v17 = vld [vmem:[#allocation24_spill] sm:$0xff] }
0x117d   :  { %v4550_v15 = vmul.f32 %v4547_v51, %v9314_v57 }
0x11da   :  { %v4553_v44 = vpop.permute.xlu1 %4552 }
0x11db   :  { %v4555_v10 = vmul.f32 %v4553_v44, %v4547_v51  ;;  %v10384_v44 = vld [vmem:[#allocation16_spill] sm:$0xff] }
0x11dd   :  { %4557 = vrot.lane.b32.xlu2 %v4555_v10, %s8083_s29  ;;  %v10386_v10 = vld [vmem:[#allocation20_spill] sm:$0xff] }
0x1237   :  { %v4558_v62 = vpop.permute.xlu2 %4557 }
0x1238   :  { %v9468_v61 = vadd.f32 %v4558_v62, %v4550_v15  ;;  %v10387_v15 = vld [vmem:[#allocation28_spill] sm:$0xff]  ;;  %v10388_v62 = vld [vmem:[#allocation25_spill] sm:$0xff] }
0x123a   :  { %7977 = vtanh.f32 %v9468_v61 }
0x1240   :  { %v7978_v16 = vpop.eup %7977 }
0x1241   :  { %4563 = vrot.lane.b32.xlu1 %v7978_v16, %s8082_s28  ;;  %v10389_v16 = vld [vmem:[#allocation29_spill] sm:$0xff] }
0x12b3   :  { %v4564_v56 = vpop.permute.xlu1 %4563 }
0x12b4   :  { %v4566_v39 = vmul.f32 %v4564_v56, %v4547_v51  ;;  %v10385_v51 = vld [vmem:[#allocation23_spill] sm:$0xff]  ;;  %v10390_v56 = vld [vmem:[#allocation26_spill] sm:$0xff] }
0x12b6   :  { %4568 = vrot.lane.b32.xlu2 %v4566_v39, %s8083_s29  ;;  %v10391_v39 = vld [vmem:[#allocation33_spill] sm:$0xff] }
0x1310   :  { %v4569_v31 = vpop.permute.xlu2 %4568 }
0x1311   :  { %4571 = vst.msk [vmem:[#allocation3 + $0x8] sm:$0x3] %vm1558_vm4, %v4569_v31  ;;  %v4572_v35 = vsel %vm803_vm3, %v4569_v31, 0  ;;  %v10392_v31 = vld [vmem:[#allocation30_spill] sm:$0xff] }
0x1312   :  { %v9475_v22 = vand.u32 4294901760, %v4572_v35 }
0x1314   :  { %v4595_v57 = vsub.f32 %v4572_v35, %v9475_v22  ;;  %4640 = vmatmul.f32.vlgmr.msra.gmra.mxu1 %v9475_v22  ;;  %4730 = vmatmul.f32.vlgmr.msrb.gmra.mxu2 %v9475_v22  ;;  %v10393_v35 = vld [vmem:[#allocation5_spill] sm:$0xff] }
0x1315   :  { %4755 = vmatmul.f32.vlgmr.msrb.gmra.mxu3 %v9475_v22  ;;  %4899 = vmatpush.msra.mxu1 %v8634_v7 }
0x1316   :  { %v4596_v0 = vand.u32 4294901760, %v4595_v57  ;;  %5089 = vmatpush.msrb.mxu3 %v8671_v8  ;;  %5052 = vmatpush.msrb.mxu2 %v8585_v3 }
0x1317   :  { %4905 = vmatpush.msra.mxu1 %v8658_v47 }
0x1318   :  { %v4597_v28 = vsub.f32 %v4595_v57, %v4596_v0  ;;  %5095 = vmatpush.msrb.mxu3 %v8697_v60  ;;  %5054 = vmatpush.msrb.mxu2 %v8607_v34 }
0x1319   :  { %4911 = vmatpush.msra.mxu1 %v8695_v24 }
0x131a   :  { %v4598_v5 = vand.u32 4294901760, %v4597_v28  ;;  %5101 = vmatpush.msrb.mxu3 %v10262_v11  ;;  %5056 = vmatpush.msrb.mxu2 %v8663_v48  ;;  %v10397_v28 = vld [vmem:[#allocation40_spill] sm:$0xff] }
0x131b   :  { %4917 = vmatpush.msra.mxu1 %v10263_v49 }
0x131c   :  { %4599 = vmatmul.f32.vlgmr.msra.gmra.mxu0 %v4598_v5  ;;  %4697 = vmatmul.f32.vlgmr.msrb.gmra.mxu1 %v4596_v0 }
0x131d   :  { %4949 = vmatmul.f32.vlgmr.msra.gmra.mxu2 %v4595_v57  ;;  %4976 = vmatmul.f32.vlgmr.msra.gmra.mxu3 %v4596_v0  ;;  %v10395_v0 = vld [vmem:[#allocation31_spill] sm:$0xff] }
0x131e   :  { %4866 = vmatpush.msra.mxu0 %v8567_v14  ;;  %5026 = vmatpush.msrb.mxu1 %v8567_v14 }
0x131f   :  { %5107 = vmatpush.msrb.mxu3 %v10264_v18  ;;  %5058 = vmatpush.msrb.mxu2 %v8665_v50 }
0x1320   :  { %4868 = vmatpush.msra.mxu0 %v8574_v21  ;;  %5028 = vmatpush.msrb.mxu1 %v8574_v21 }
0x1321   :  { %5113 = vmatpush.msrb.mxu3 %v8769_v9  ;;  %5060 = vmatpush.msrb.mxu2 %v8689_v23 }
0x1322   :  { %4870 = vmatpush.msra.mxu0 %v8592_v19  ;;  %5030 = vmatpush.msrb.mxu1 %v8592_v19 }
0x1323   :  { %5119 = vmatpush.msrb.mxu3 %v8783_v4  ;;  %5062 = vmatpush.msrb.mxu2 %v8700_v58 }
0x1324   :  { %4670 = vmatmul.f32.vlgmr.msrb.gmra.mxu0 %v4595_v57  ;;  %4919 = vmatmul.f32.vlgmr.msra.gmra.mxu1 %v9475_v22  ;;  %v10394_v57 = vld [vmem:[#allocation35_spill] sm:$0xff] }
0x1325   :  { %4872 = vmatpush.msra.mxu0 %v8618_v59  ;;  %5032 = vmatpush.msrb.mxu1 %v8618_v59 }
0x1326   :  { %5125 = vmatpush.msrb.mxu3 %v10347_v12  ;;  %5064 = vmatpush.msrb.mxu2 %v10348_v53 }
0x1327   :  { %4995 = vmatpush.msrb.mxu0 %v10265_v2  ;;  %5184 = vmatpush.msra.mxu1 %v8585_v3 }
0x1328   :  { %5131 = vmatpush.msrb.mxu3 %v10379_v63  ;;  %5066 = vmatpush.msrb.mxu2 %v10380_v54 }
0x1329   :  { %4999 = vmatpush.msrb.mxu0 %v10378_v27  ;;  %5186 = vmatpush.msra.mxu1 %v8607_v34 }
0x132a   :  { %5260 = vmatpush.msra.mxu3 %v8585_v3  ;;  %5217 = vmatpush.msra.mxu2 %v10382_v55  ;;  %v10404_v55 = vld [vmem:[#allocation10_spill] sm:$0xff] }
0x132b   :  { %5003 = vmatpush.msrb.mxu0 %v10381_v32  ;;  %5188 = vmatpush.msra.mxu1 %v8663_v48 }
0x132c   :  { %4878 = vmatmul.f32.vlgmr.msra.gmra.mxu0 %v4598_v5  ;;  %5034 = vmatmul.f32.vlgmr.msrb.gmra.mxu1 %v9475_v22  ;;  %v10398_v5 = vld [vmem:[#allocation36_spill] sm:$0xff] }
0x132d   :  { %5007 = vmatpush.msrb.mxu0 %v10383_v17  ;;  %5190 = vmatpush.msra.mxu1 %v8665_v50 }
0x132e   :  { %5262 = vmatpush.msra.mxu3 %v8607_v34  ;;  %5221 = vmatpush.msra.mxu2 %v10385_v51 }
0x132f   :  { %5147 = vmatpush.msra.mxu0 %v10384_v44  ;;  %5192 = vmatpush.msra.mxu1 %v8689_v23 }
0x1330   :  { %5264 = vmatpush.msra.mxu3 %v8663_v48  ;;  %5225 = vmatpush.msra.mxu2 %v10387_v15 }
0x1331   :  { %5150 = vmatpush.msra.mxu0 %v10386_v10  ;;  %5194 = vmatpush.msra.mxu1 %v8700_v58 }
0x1332   :  { %5266 = vmatpush.msra.mxu3 %v8665_v50  ;;  %5229 = vmatpush.msra.mxu2 %v10389_v16 }
0x1333   :  { %5153 = vmatpush.msra.mxu0 %v10388_v62  ;;  %5196 = vmatpush.msra.mxu1 %v10348_v53 }
0x1334   :  { %5009 = vmatmul.f32.vlgmr.msrb.gmra.mxu0 %v9475_v22  ;;  %5268 = vmatpush.msra.mxu3 %v8689_v23  ;;  %v10396_v22 = vld [vmem:[#allocation6_spill] sm:$0xff] }
0x1335   :  { %5156 = vmatpush.msra.mxu0 %v10390_v56  ;;  %5198 = vmatpush.msra.mxu1 %v10380_v54  ;;  %v10399_v56 = vld [vmem:[#allocation7_spill] sm:$0xff] }
0x1336   :  { %5270 = vmatpush.msra.mxu3 %v8700_v58  ;;  %5233 = vmatpush.msra.mxu2 %v10391_v39  ;;  %v10400_v39 = vld [vmem:[#allocation41_spill] sm:$0xff] }
0x1337   :  { %5159 = vmatpush.msra.mxu0 %v10392_v31  ;;  %5373 = vmatpush.msrb.mxu1 %v10393_v35  ;;  %v10401_v31 = vld [vmem:[#allocation39_spill] sm:$0xff]  ;;  %v10402_v35 = vld [vmem:[#allocation8_spill] sm:$0xff] }
0x1338   :  { %5272 = vmatpush.msra.mxu3 %v10348_v53  ;;  %5237 = vmatpush.msra.mxu2 %v10394_v57 }
0x1339   :  { %5162 = vmatpush.msra.mxu0 %v10395_v0  ;;  %5379 = vmatpush.msrb.mxu1 %v10396_v22  ;;  %v10403_v0 = vld [vmem:[#allocation38_spill] sm:$0xff] }
0x133a   :  { %5274 = vmatpush.msra.mxu3 %v10380_v54  ;;  %5241 = vmatpush.msra.mxu2 %v10397_v28  ;;  %v10405_v54 = vld [vmem:[#allocation11_spill] sm:$0xff] }
0x133b   :  { %5165 = vmatpush.msra.mxu0 %v10398_v5  ;;  %5385 = vmatpush.msrb.mxu1 %v10399_v56 }
0x133c   :  { %5245 = vmatpush.msra.mxu2 %v10400_v39 }
0x133d   :  { %5168 = vmatpush.msra.mxu0 %v10401_v31  ;;  %5391 = vmatpush.msrb.mxu1 %v10402_v35 }
0x133f   :  { %5340 = vmatpush.msrb.mxu0 %v8376_v25 }
0x1341   :  { %5342 = vmatpush.msrb.mxu0 %v8390_v29 }
0x1343   :  { %5344 = vmatpush.msrb.mxu0 %v8406_v33 }
0x1345   :  { %5346 = vmatpush.msrb.mxu0 %v8445_v41 }
0x1391   :  { %v4641_v22 = vpop.f32.mrf.mxu1 }
0x1397   :  { %v4731_v31 = vpop.f32.mrf.mxu2 }
0x1398   :  { %v4756_v35 = vpop.f32.mrf.mxu3 }
0x1399   :  { %v4600_v28 = vpop.f32.mrf.mxu0  ;;  %v4698_v39 = vpop.f32.mrf.mxu1 }
0x139a   :  { %v4601_v5 = vadd.f32 %v10403_v0, %v4600_v28  ;;  %v10406_v0 = vld [vmem:[#allocation9_spill] sm:$0xff] }
0x139c   :  { %v4642_v57 = vadd.f32 %v4641_v22, %v4601_v5 }
0x13a1   :  { %v4671_v56 = vpop.f32.mrf.mxu0 }
0x13a2   :  { %v4672_v16 = vadd.f32 %v4671_v56, %v4642_v57 }
0x13a4   :  { %v4699_v62 = vadd.f32 %v4698_v39, %v4672_v16 }
0x13a6   :  { %v4732_v15 = vadd.f32 %v4731_v31, %v4699_v62 }
0x13a8   :  { %v4757_v10 = vadd.f32 %v4756_v35, %v4732_v15 }
0x13aa   :  { %v4760_v51 = vrot.slane %v4757_v10, 1  ;;  %v4761_v44 = vperm.slane %v4757_v10, 0 }
0x13ac   :  { %v4762_v17 = vperm.slane %v4760_v51, 0  ;;  %v4765_v32 = vadd.f32 %v4761_v44, %v10404_v55 }
0x13ae   :  { %7979 = vtanh.f32 %v4765_v32  ;;  %v4766_v63 = vadd.f32 %v4762_v17, %v10405_v54 }
0x13b0   :  { %7981 = vtanh.f32 %v4766_v63 }
0x13b4   :  { %v7980_v27 = vpop.eup %7979 }
0x13b5   :  { %v4769_v22 = vmul.f32 %v10406_v0, %v7980_v27 }
0x13b6   :  { %v7982_v28 = vpop.eup %7981 }
0x13b7   :  { %v4771_v56 = vsel %vm803_vm3, %v4769_v22, 0.0  ;;  %v4770_v16 = vmul.f32 %v10406_v0, %v7982_v28 }
0x13b8   :  { %4772 = vadd.xlane.f32.xlu1 %v4771_v56 }
0x13b9   :  { %v4774_v15 = vsel %vm803_vm3, %v4770_v16, 0.0 }
0x13ba   :  { %4775 = vadd.xlane.f32.xlu2 %v4774_v15 }
0x142b   :  { %v4773_v10 = vpop.xlane.xlu1 %4772 }
0x142c   :  { %v4777_v51 = vrot.slane %v4773_v10, 4 }
0x142d   :  { %v4776_v62 = vpop.xlane.xlu2 %4775 }
0x142e   :  { %v4778_v44 = vmax.f32 %v4773_v10, %v4777_v51  ;;  %v4783_v32 = vrot.slane %v4776_v62, 4 }
0x1430   :  { %v4779_v39 = vrot.slane %v4778_v44, 2  ;;  %v4784_v17 = vmax.f32 %v4776_v62, %v4783_v32 }
0x1432   :  { %v4780_v63 = vmax.f32 %v4778_v44, %v4779_v39  ;;  %v4785_v31 = vrot.slane %v4784_v17, 2 }
0x1434   :  { %v4781_v35 = vrot.slane %v4780_v63, 1  ;;  %v4786_v27 = vmax.f32 %v4784_v17, %v4785_v31 }
0x1436   :  { %v4782_v57 = vmax.f32 %v4780_v63, %v4781_v35  ;;  %v4787_v5 = vrot.slane %v4786_v27, 1 }
0x1438   :  { %v4789_v22 = vsub.f32 %v4773_v10, %v4782_v57  ;;  %v4788_v54 = vmax.f32 %v4786_v27, %v4787_v5 }
0x143a   :  { %v4791_v0 = vmul.f32 1.442695, %v4789_v22  ;;  %v4790_v28 = vsub.f32 %v4776_v62, %v4788_v54 }
0x143c   :  { %7983 = vpow2.f32 %v4791_v0  ;;  %v4793_v56 = vmul.f32 1.442695, %v4790_v28 }
0x143e   :  { %7985 = vpow2.f32 %v4793_v56 }
0x1442   :  { %v7984_v16 = vpop.eup %7983 }
0x1443   :  { %v4795_v15 = vrot.slane %v7984_v16, 4 }
0x1444   :  { %v7986_v55 = vpop.eup %7985 }
0x1445   :  { %v4796_v51 = vadd.f32 %v7984_v16, %v4795_v15  ;;  %v4801_v53 = vrot.slane %v7986_v55, 4 }
0x1447   :  { %v4797_v12 = vrot.slane %v4796_v51, 2  ;;  %v4802_v32 = vadd.f32 %v7986_v55, %v4801_v53 }
0x1449   :  { %v4798_v44 = vadd.f32 %v4797_v12, %v4796_v51  ;;  %v4803_v39 = vrot.slane %v4802_v32, 2 }
0x144b   :  { %v4799_v2 = vrot.slane %v4798_v44, 1  ;;  %v4804_v17 = vadd.f32 %v4803_v39, %v4802_v32 }
0x144d   :  { %v4800_v63 = vadd.f32 %v4799_v2, %v4798_v44  ;;  %v4805_v31 = vrot.slane %v4804_v17, 1 }
0x144f   :  { %7987 = vrcp.f32 %v4800_v63  ;;  %v4806_v10 = vadd.f32 %v4805_v31, %v4804_v17  ;;  %v4818_v57 = vand.u32 2147483648, %v4800_v63  ;;  %v4816_v0 = vand.u32 2147483647, %v4800_v63 }
0x1450   :  { %vm4812_vm10 = vweird.f32 %v4800_v63 }
0x1451   :  { %7989 = vrcp.f32 %v4806_v10  ;;  %v4833_v12 = vand.u32 2147483648, %v4806_v10  ;;  %v4819_v56 = vor.u32 1.1754944e-38, %v4818_v57  ;;  %v4831_v15 = vand.u32 2147483647, %v4806_v10 }
0x1452   :  { %vm4817_vm14 = vcmp.eq.f32.partialorder %v4816_v0, 8.507059e+37  ;;  %vm4827_vm15 = vweird.f32 %v4806_v10 }
0x1453   :  { %v4834_v17 = vor.u32 1.1754944e-38, %v4833_v12  ;;  %vm4832_vm5 = vcmp.eq.f32.partialorder %v4831_v15, 8.507059e+37 }
0x1455   :  { %v7988_v54 = vpop.eup %7987 }
0x1456   :  { %v4808_v62 = vmul.f32 %v7988_v54, %v4800_v63  ;;  %vm4813_vm9 = vweird.f32 %v7988_v54 }
0x1457   :  { %v7990_v35 = vpop.eup %7989  ;;  %vm4814_vm11 = vmor %vm4812_vm10, %vm4813_vm9 }
0x1458   :  { %v4809_v27 = vsub.f32 1.0, %v4808_v62  ;;  %v4823_v5 = vmul.f32 %v7990_v35, %v4806_v10  ;;  %vm4828_vm13 = vweird.f32 %v7990_v35 }
0x1459   :  { %vm4829_vm1 = vmor %vm4827_vm15, %vm4828_vm13 }
0x145a   :  { %v4810_v22 = vmul.f32 %v7988_v54, %v4809_v27  ;;  %v4824_v28 = vsub.f32 1.0, %v4823_v5 }
0x145c   :  { %v4811_v53 = vadd.f32 %v7988_v54, %v4810_v22  ;;  %v4825_v2 = vmul.f32 %v7990_v35, %v4824_v28 }
0x145e   :  { %v4815_v51 = vsel %vm4814_vm11, %v7988_v54, %v4811_v53  ;;  %v4826_v44 = vadd.f32 %v7990_v35, %v4825_v2 }
0x145f   :  { %v4820_v32 = vsel %vm4817_vm14, %v4819_v56, %v4815_v51 }
0x1460   :  { %v4821_v39 = vmul.f32 %v7984_v16, %v4820_v32  ;;  %v4830_v31 = vsel %vm4829_vm1, %v7990_v35, %v4826_v44 }
0x1461   :  { %v4835_v27 = vsel %vm4832_vm5, %v4834_v17, %v4830_v31  ;;  %v4879_v31 = vpop.f32.mrf.mxu0 }
0x1462   :  { %v4837_v62 = vmul.f32 %v9422_v26, %v4821_v39  ;;  %v4836_v63 = vmul.f32 %v7986_v55, %v4835_v27 }
0x1464   :  { %v4839_v5 = vsel %vm51_vm0, %v4837_v62, 0.0  ;;  %v4838_v57 = vmul.f32 %v9429_v20, %v4836_v63  ;;  %v4920_v62 = vpop.f32.mrf.mxu1  ;;  %v4950_v63 = vpop.f32.mrf.mxu2 }
0x1465   :  { %v4840_v22 = vrot.slane %v4839_v5, 4  ;;  %v4921_v27 = vadd.f32 %v4920_v62, %v4879_v31 }
0x1466   :  { %v4846_v54 = vsel %vm51_vm0, %v4838_v57, 0.0  ;;  %v4977_v57 = vpop.f32.mrf.mxu3 }
0x1467   :  { %v4841_v28 = vadd.f32 %v4840_v22, %v4839_v5  ;;  %v4847_v0 = vrot.slane %v4846_v54, 4  ;;  %v4951_v5 = vadd.f32 %v4950_v63, %v4921_v27 }
0x1469   :  { %v4842_v53 = vrot.slane %v4841_v28, 2  ;;  %v4848_v10 = vadd.f32 %v4847_v0, %v4846_v54  ;;  %v5010_v22 = vpop.f32.mrf.mxu0 }
0x146b   :  { %v4843_v16 = vadd.f32 %v4842_v53, %v4841_v28  ;;  %v4849_v56 = vrot.slane %v4848_v10, 2  ;;  %v4978_v28 = vadd.f32 %v4977_v57, %v4951_v5 }
0x146c   :  { %v5035_v0 = vpop.f32.mrf.mxu1 }
0x146d   :  { %v4844_v12 = vrot.slane %v4843_v16, 1  ;;  %v4850_v35 = vadd.f32 %v4849_v56, %v4848_v10  ;;  %v5011_v54 = vadd.f32 %v5010_v22, %v4978_v28 }
0x146f   :  { %v4851_v2 = vrot.slane %v4850_v35, 1  ;;  %v4845_v15 = vadd.f32 %v4844_v12, %v4843_v16  ;;  %v5036_v53 = vadd.f32 %v5035_v0, %v5011_v54 }
0x1471   :  { %v4852_v26 = vadd.f32 %v4851_v2, %v4850_v35 }
0x1473   :  { %v5040_v55 = vsel %vm1273_vm12, %v4852_v26, %v4845_v15 }
0x1474   :  { %v5041_v51 = vsel %vm51_vm0, %v5040_v55, 0 }
0x1475   :  { %v5067_v32 = vand.u32 4294901760, %v5041_v51 }
0x1477   :  { %5133 = vmatmul.f32.vlgmr.msrb.gmra.mxu3 %v5067_v32  ;;  %v5068_v20 = vsub.f32 %v5041_v51, %v5067_v32 }
0x1478   :  { %5500 = vmatpush.msrb.mxu3 %v8376_v25 }
0x1479   :  { %5171 = vmatmul.f32.vlgmr.msra.gmra.mxu0 %v5068_v20  ;;  %v5069_v44 = vand.u32 4294901760, %v5068_v20 }
0x147a   :  { %5502 = vmatpush.msrb.mxu3 %v8390_v29  ;;  %5411 = vmatpush.msra.mxu0 %v8404_v30 }
0x147b   :  { %5202 = vmatmul.f32.vlgmr.msra.gmra.mxu1 %v5069_v44  ;;  %v5070_v39 = vsub.f32 %v5068_v20, %v5069_v44  ;;  %v5280_v44 = vld [vmem:[#allocation2 + $0xa] sm:$0x3] }
0x147c   :  { %5504 = vmatpush.msrb.mxu3 %v8406_v33  ;;  %5440 = vmatpush.msra.mxu1 %v8376_v25 }
0x147d   :  { %v5071_v17 = vand.u32 4294901760, %v5070_v39  ;;  %5414 = vmatpush.msra.mxu0 %v8419_v36 }
0x147e   :  { %5506 = vmatpush.msrb.mxu3 %v8445_v41  ;;  %5442 = vmatpush.msra.mxu1 %v8390_v29 }
0x147f   :  { %5072 = vmatmul.f32.vlgmr.msrb.gmra.mxu2 %v5071_v17  ;;  %5276 = vmatmul.f32.vlgmr.msra.gmra.mxu3 %v5067_v32 }
0x1480   :  { %5469 = vmatpush.msrb.mxu2 %v8429_v37  ;;  %5719 = vmatpush.msra.mxu3 %v8567_v14 }
0x1481   :  { %5444 = vmatpush.msra.mxu1 %v8406_v33  ;;  %5417 = vmatpush.msra.mxu0 %v8432_v38 }
0x1482   :  { %5473 = vmatpush.msrb.mxu2 %v8450_v42  ;;  %5721 = vmatpush.msra.mxu3 %v8574_v21 }
0x1483   :  { %5446 = vmatpush.msra.mxu1 %v8445_v41  ;;  %5420 = vmatpush.msra.mxu0 %v8454_v43 }
0x1484   :  { %5477 = vmatpush.msrb.mxu2 %v8461_v45  ;;  %5723 = vmatpush.msra.mxu3 %v8592_v19 }
0x1486   :  { %5481 = vmatpush.msrb.mxu2 %v10285_v1  ;;  %5725 = vmatpush.msra.mxu3 %v8618_v59 }
0x1487   :  { %5247 = vmatmul.f32.vlgmr.msra.gmra.mxu2 %v5067_v32 }
0x1488   :  { %5690 = vmatpush.msra.mxu2 %v10286_v6 }
0x148a   :  { %5693 = vmatpush.msra.mxu2 %v10287_v46 }
0x148c   :  { %5696 = vmatpush.msra.mxu2 %v10288_v52 }
0x148e   :  { %5699 = vmatpush.msra.mxu2 %v10346_v13 }
0x14f6   :  { %v5172_v35 = vpop.f32.mrf.mxu0 }
0x14f8   :  { %v5203_v15 = vpop.f32.mrf.mxu1 }
0x14fa   :  { %v5134_v10 = vpop.f32.mrf.mxu3 }
0x1502   :  { %v5073_v16 = vpop.f32.mrf.mxu2  ;;  %v5277_v32 = vpop.f32.mrf.mxu3 }
0x1503   :  { %v5074_v56 = vadd.f32 %v5073_v16, %v5036_v53 }
0x1505   :  { %v5135_v12 = vadd.f32 %v5134_v10, %v5074_v56 }
0x1507   :  { %v5173_v2 = vadd.f32 %v5172_v35, %v5135_v12 }
0x1509   :  { %v5204_v26 = vadd.f32 %v5203_v15, %v5173_v2 }
0x150a   :  { %v5248_v55 = vpop.f32.mrf.mxu2 }
0x150b   :  { %v5249_v51 = vadd.f32 %v5248_v55, %v5204_v26 }
0x150d   :  { %v5278_v20 = vadd.f32 %v5277_v32, %v5249_v51 }
0x150f   :  { %v5281_v39 = vadd.f32 %v5280_v44, %v5278_v20 }
0x1511   :  { %v5282_v17 = vadd.f32 %v9462_v40, %v5281_v39 }
0x1513   :  { %7991 = vtanh.f32 %v5282_v17  ;;  %v7864_v62 = vmul.f32 -1.442695, %v5282_v17 }
0x1515   :  { %7993 = vpow2.f32 %v7864_v62  ;;  %v10407_v62 = vld [vmem:[#allocation14_spill] sm:$0xff] }
0x1519   :  { %v7992_v31 = vpop.eup %7991 }
0x151a   :  { %5305 = vrot.lane.b32.xlu0 %v7992_v31, %s8082_s28 }
0x151b   :  { %v7994_v27 = vpop.eup %7993 }
0x151c   :  { %v5286_v63 = vadd.f32 1.0, %v7994_v27  ;;  %v10408_v27 = vld [vmem:[#allocation42_spill] sm:$0xff] }
0x151e   :  { %7995 = vrcp.f32 %v5286_v63  ;;  %v5298_v0 = vand.u32 2147483648, %v5286_v63  ;;  %vm5292_vm7 = vweird.f32 %v5286_v63  ;;  %v5296_v53 = vand.u32 2147483647, %v5286_v63 }
0x1520   :  { %v5299_v10 = vor.u32 1.1754944e-38, %v5298_v0  ;;  %vm5297_vm9 = vcmp.eq.f32.partialorder %v5296_v53, 8.507059e+37  ;;  %v10415_v0 = vld [vmem:[#allocation24_spill] sm:$0xff] }
0x1521   :  { %v10416_v53 = vld [vmem:[#allocation16_spill] sm:$0xff] }
0x1524   :  { %v7996_v5 = vpop.eup %7995 }
0x1525   :  { %v5288_v57 = vmul.f32 %v7996_v5, %v5286_v63  ;;  %vm5293_vm6 = vweird.f32 %v7996_v5  ;;  %v10409_v63 = vld [vmem:[#allocation32_spill] sm:$0xff] }
0x1526   :  { %vm5294_vm8 = vmor %vm5292_vm7, %vm5293_vm6 }
0x1527   :  { %v5289_v22 = vsub.f32 1.0, %v5288_v57  ;;  %v10411_v57 = vld [vmem:[#allocation43_spill] sm:$0xff] }
0x1529   :  { %v5290_v28 = vmul.f32 %v7996_v5, %v5289_v22  ;;  %v10412_v22 = vld [vmem:[#allocation34_spill] sm:$0xff] }
0x152b   :  { %v5291_v54 = vadd.f32 %v7996_v5, %v5290_v28  ;;  %v10413_v28 = vld [vmem:[#allocation22_spill] sm:$0xff] }
0x152d   :  { %v5295_v40 = vsel %vm5294_vm8, %v7996_v5, %v5291_v54  ;;  %v10410_v5 = vld [vmem:[#allocation17_spill] sm:$0xff]  ;;  %v10414_v54 = vld [vmem:[#allocation18_spill] sm:$0xff] }
0x152e   :  { %v5300_v56 = vsel %vm5297_vm9, %v5299_v10, %v5295_v40  ;;  %v10417_v40 = vld [vmem:[#allocation23_spill] sm:$0xff]  ;;  %v10418_v10 = vld [vmem:[#allocation20_spill] sm:$0xff] }
0x152f   :  { %v5303_v35 = vmul.f32 %v5300_v56, %v9468_v61 }
0x158c   :  { %v5306_v16 = vpop.permute.xlu0 %5305 }
0x158d   :  { %v5308_v12 = vmul.f32 %v5306_v16, %v5300_v56  ;;  %v10419_v16 = vld [vmem:[#allocation28_spill] sm:$0xff] }
0x158f   :  { %5310 = vrot.lane.b32.xlu0 %v5308_v12, %s8083_s29  ;;  %v10421_v12 = vld [vmem:[#allocation29_spill] sm:$0xff] }
0x1601   :  { %v5311_v2 = vpop.permute.xlu0 %5310 }
0x1602   :  { %v9597_v15 = vadd.f32 %v5311_v2, %v5303_v35  ;;  %v10422_v35 = vld [vmem:[#allocation26_spill] sm:$0xff]  ;;  %v10423_v2 = vld [vmem:[#allocation33_spill] sm:$0xff] }
0x1604   :  { %7997 = vtanh.f32 %v9597_v15 }
0x160a   :  { %v7998_v26 = vpop.eup %7997 }
0x160b   :  { %5316 = vrot.lane.b32.xlu0 %v7998_v26, %s8082_s28  ;;  %v10424_v26 = vld [vmem:[#allocation30_spill] sm:$0xff] }
0x167d   :  { %v5317_v55 = vpop.permute.xlu0 %5316 }
0x167e   :  { %v5319_v51 = vmul.f32 %v5317_v55, %v5300_v56  ;;  %v10420_v56 = vld [vmem:[#allocation25_spill] sm:$0xff] }
0x167f   :  { %v10425_v55 = vld [vmem:[#allocation5_spill] sm:$0xff] }
0x1680   :  { %5321 = vrot.lane.b32.xlu0 %v5319_v51, %s8083_s29  ;;  %v10426_v51 = vld [vmem:[#allocation35_spill] sm:$0xff] }
0x16f2   :  { %v5322_v32 = vpop.permute.xlu0 %5321 }
0x16f3   :  { %5324 = vst.msk [vmem:[#allocation3 + $0xa] sm:$0x3] %vm1558_vm4, %v5322_v32  ;;  %v5325_v20 = vsel %vm803_vm3, %v5322_v32, 0  ;;  %v10427_v32 = vld [vmem:[#allocation31_spill] sm:$0xff] }
0x16f4   :  { %v9604_v44 = vand.u32 4294901760, %v5325_v20 }
0x16f6   :  { %v5348_v61 = vsub.f32 %v5325_v20, %v9604_v44  ;;  %5393 = vmatmul.f32.vlgmr.msrb.gmra.mxu1 %v9604_v44  ;;  %5483 = vmatmul.f32.vlgmr.msrb.gmra.mxu2 %v9604_v44  ;;  %v10428_v20 = vld [vmem:[#allocation6_spill] sm:$0xff] }
0x16f7   :  { %5508 = vmatmul.f32.vlgmr.msrb.gmra.mxu3 %v9604_v44  ;;  %5652 = vmatpush.msrb.mxu1 %v8634_v7 }
0x16f8   :  { %v5349_v39 = vand.u32 4294901760, %v5348_v61  ;;  %5842 = vmatpush.msrb.mxu3 %v8671_v8  ;;  %5805 = vmatpush.msrb.mxu2 %v8585_v3 }
0x16f9   :  { %5658 = vmatpush.msrb.mxu1 %v8658_v47 }
0x16fa   :  { %v5350_v17 = vsub.f32 %v5348_v61, %v5349_v39  ;;  %5848 = vmatpush.msrb.mxu3 %v8697_v60  ;;  %5807 = vmatpush.msrb.mxu2 %v8607_v34 }
0x16fb   :  { %5664 = vmatpush.msrb.mxu1 %v8695_v24 }
0x16fc   :  { %v5351_v31 = vand.u32 4294901760, %v5350_v17  ;;  %5854 = vmatpush.msrb.mxu3 %v10262_v11  ;;  %5809 = vmatpush.msrb.mxu2 %v8663_v48  ;;  %v10432_v17 = vld [vmem:[#allocation41_spill] sm:$0xff] }
0x16fd   :  { %5670 = vmatpush.msrb.mxu1 %v10263_v49 }
0x16fe   :  { %5352 = vmatmul.f32.vlgmr.msrb.gmra.mxu0 %v5351_v31  ;;  %5450 = vmatmul.f32.vlgmr.msra.gmra.mxu1 %v5349_v39 }
0x16ff   :  { %5702 = vmatmul.f32.vlgmr.msra.gmra.mxu2 %v5348_v61  ;;  %5729 = vmatmul.f32.vlgmr.msra.gmra.mxu3 %v5349_v39  ;;  %v10431_v39 = vld [vmem:[#allocation7_spill] sm:$0xff] }
0x1700   :  { %5619 = vmatpush.msrb.mxu0 %v8567_v14  ;;  %5779 = vmatpush.msra.mxu1 %v8567_v14 }
0x1701   :  { %5860 = vmatpush.msrb.mxu3 %v10264_v18  ;;  %5811 = vmatpush.msrb.mxu2 %v8665_v50 }
0x1702   :  { %5621 = vmatpush.msrb.mxu0 %v8574_v21  ;;  %5781 = vmatpush.msra.mxu1 %v8574_v21 }
0x1703   :  { %5866 = vmatpush.msrb.mxu3 %v8769_v9  ;;  %5813 = vmatpush.msrb.mxu2 %v8689_v23 }
0x1704   :  { %5623 = vmatpush.msrb.mxu0 %v8592_v19  ;;  %5783 = vmatpush.msra.mxu1 %v8592_v19 }
0x1705   :  { %5872 = vmatpush.msrb.mxu3 %v8783_v4  ;;  %5815 = vmatpush.msrb.mxu2 %v8700_v58 }
0x1706   :  { %5423 = vmatmul.f32.vlgmr.msra.gmra.mxu0 %v5348_v61  ;;  %5672 = vmatmul.f32.vlgmr.msrb.gmra.mxu1 %v9604_v44  ;;  %v10430_v61 = vld [vmem:[#allocation36_spill] sm:$0xff] }
0x1707   :  { %5625 = vmatpush.msrb.mxu0 %v8618_v59  ;;  %5785 = vmatpush.msra.mxu1 %v8618_v59 }
0x1708   :  { %5878 = vmatpush.msrb.mxu3 %v10408_v27  ;;  %5817 = vmatpush.msrb.mxu2 %v10409_v63 }
0x1709   :  { %5748 = vmatpush.msra.mxu0 %v10407_v62  ;;  %5937 = vmatpush.msrb.mxu1 %v8585_v3 }
0x170a   :  { %5884 = vmatpush.msrb.mxu3 %v10411_v57  ;;  %5819 = vmatpush.msrb.mxu2 %v10412_v22 }
0x170b   :  { %5752 = vmatpush.msra.mxu0 %v10410_v5  ;;  %5939 = vmatpush.msrb.mxu1 %v8607_v34 }
0x170c   :  { %6013 = vmatpush.msra.mxu3 %v8585_v3  ;;  %5970 = vmatpush.msra.mxu2 %v10414_v54 }
0x170d   :  { %5756 = vmatpush.msra.mxu0 %v10413_v28  ;;  %5941 = vmatpush.msrb.mxu1 %v8663_v48 }
0x170e   :  { %5631 = vmatmul.f32.vlgmr.msrb.gmra.mxu0 %v5351_v31  ;;  %5787 = vmatmul.f32.vlgmr.msra.gmra.mxu1 %v9604_v44  ;;  %v10433_v31 = vld [vmem:[#allocation39_spill] sm:$0xff] }
0x170f   :  { %5760 = vmatpush.msra.mxu0 %v10415_v0  ;;  %5943 = vmatpush.msrb.mxu1 %v8665_v50  ;;  %v10437_v0 = vld [vmem:[#allocation11_spill] sm:$0xff] }
0x1710   :  { %6015 = vmatpush.msra.mxu3 %v8607_v34  ;;  %5974 = vmatpush.msra.mxu2 %v10417_v40  ;;  %v10436_v40 = vld [vmem:[#allocation10_spill] sm:$0xff] }
0x1711   :  { %5900 = vmatpush.msrb.mxu0 %v10416_v53  ;;  %5945 = vmatpush.msrb.mxu1 %v8689_v23 }
0x1712   :  { %6017 = vmatpush.msra.mxu3 %v8663_v48  ;;  %5978 = vmatpush.msra.mxu2 %v10419_v16 }
0x1713   :  { %5903 = vmatpush.msrb.mxu0 %v10418_v10  ;;  %5947 = vmatpush.msrb.mxu1 %v8700_v58 }
0x1714   :  { %6019 = vmatpush.msra.mxu3 %v8665_v50  ;;  %5982 = vmatpush.msra.mxu2 %v10421_v12 }
0x1715   :  { %5906 = vmatpush.msrb.mxu0 %v10420_v56  ;;  %5949 = vmatpush.msrb.mxu1 %v10409_v63 }
0x1716   :  { %5762 = vmatmul.f32.vlgmr.msra.gmra.mxu0 %v9604_v44  ;;  %6021 = vmatpush.msra.mxu3 %v8689_v23  ;;  %v10429_v44 = vld [vmem:[#allocation40_spill] sm:$0xff] }
0x1717   :  { %5909 = vmatpush.msrb.mxu0 %v10422_v35  ;;  %5951 = vmatpush.msrb.mxu1 %v10412_v22 }
0x1718   :  { %6023 = vmatpush.msra.mxu3 %v8700_v58  ;;  %5986 = vmatpush.msra.mxu2 %v10423_v2 }
0x1719   :  { %5912 = vmatpush.msrb.mxu0 %v10424_v26  ;;  %6126 = vmatpush.msra.mxu1 %v10425_v55  ;;  %v10434_v55 = vld [vmem:[#allocation8_spill] sm:$0xff] }
0x171a   :  { %6025 = vmatpush.msra.mxu3 %v10409_v63  ;;  %5990 = vmatpush.msra.mxu2 %v10426_v51 }
0x171b   :  { %5915 = vmatpush.msrb.mxu0 %v10427_v32  ;;  %6132 = vmatpush.msra.mxu1 %v10428_v20 }
0x171c   :  { %6027 = vmatpush.msra.mxu3 %v10412_v22  ;;  %5994 = vmatpush.msra.mxu2 %v10429_v44 }
0x171d   :  { %5918 = vmatpush.msrb.mxu0 %v10430_v61  ;;  %6138 = vmatpush.msra.mxu1 %v10431_v39  ;;  %v9688_v39 = vld [vmem:[%s10106_s4] ss:$0 sm:$0xff] }
0x171e   :  { %5998 = vmatpush.msra.mxu2 %v10432_v17  ;;  %10435 = vst [vmem:[#allocation12_spill] sm:$0xff] %v9688_v39 }
0x171f   :  { %5921 = vmatpush.msrb.mxu0 %v10433_v31  ;;  %6144 = vmatpush.msra.mxu1 %v10434_v55 }
0x1721   :  { %6093 = vmatpush.msra.mxu0 %v8376_v25 }
0x1723   :  { %6095 = vmatpush.msra.mxu0 %v8390_v29 }
0x1725   :  { %6097 = vmatpush.msra.mxu0 %v8406_v33 }
0x1727   :  { %6099 = vmatpush.msra.mxu0 %v8445_v41 }
0x1773   :  { %v5394_v20 = vpop.f32.mrf.mxu1 }
0x1779   :  { %v5484_v26 = vpop.f32.mrf.mxu2 }
0x177a   :  { %v5509_v35 = vpop.f32.mrf.mxu3 }
0x177b   :  { %v5353_v44 = vpop.f32.mrf.mxu0  ;;  %v5451_v32 = vpop.f32.mrf.mxu1 }
0x177c   :  { %v5354_v17 = vadd.f32 %v9688_v39, %v5353_v44 }
0x177e   :  { %v5395_v31 = vadd.f32 %v5394_v20, %v5354_v17  ;;  %v9696_v20 = vld [vmem:[%s10107_s5] ss:$0 sm:$0xff] }
0x177f   :  { %10438 = vst [vmem:[#allocation44_spill] sm:$0xff] %v9696_v20 }
0x1783   :  { %v5424_v61 = vpop.f32.mrf.mxu0 }
0x1784   :  { %v5425_v55 = vadd.f32 %v5424_v61, %v5395_v31 }
0x1786   :  { %v5452_v51 = vadd.f32 %v5451_v32, %v5425_v55 }
0x1788   :  { %v5485_v2 = vadd.f32 %v5484_v26, %v5452_v51 }
0x178a   :  { %v5510_v12 = vadd.f32 %v5509_v35, %v5485_v2 }
0x178c   :  { %v5513_v56 = vrot.slane %v5510_v12, 1  ;;  %v5514_v16 = vperm.slane %v5510_v12, 0 }
0x178e   :  { %v5515_v10 = vperm.slane %v5513_v56, 0  ;;  %v5518_v53 = vadd.f32 %v5514_v16, %v10436_v40 }
0x1790   :  { %7999 = vtanh.f32 %v5518_v53  ;;  %v5519_v54 = vadd.f32 %v5515_v10, %v10437_v0 }
0x1792   :  { %8001 = vtanh.f32 %v5519_v54 }
0x1796   :  { %v8000_v28 = vpop.eup %7999 }
0x1797   :  { %v5522_v55 = vmul.f32 %v9696_v20, %v8000_v28 }
0x1798   :  { %v8002_v26 = vpop.eup %8001 }
0x1799   :  { %v5524_v35 = vsel %vm803_vm3, %v5522_v55, 0.0  ;;  %v5523_v12 = vmul.f32 %v9696_v20, %v8002_v26 }
0x179a   :  { %5525 = vadd.xlane.f32.xlu1 %v5524_v35 }
0x179b   :  { %v5527_v16 = vsel %vm803_vm3, %v5523_v12, 0.0 }
0x179c   :  { %5528 = vadd.xlane.f32.xlu2 %v5527_v16 }
0x180d   :  { %v5526_v53 = vpop.xlane.xlu1 %5525 }
0x180e   :  { %v5530_v10 = vrot.slane %v5526_v53, 4 }
0x180f   :  { %v5529_v54 = vpop.xlane.xlu2 %5528 }
0x1810   :  { %v5531_v56 = vmax.f32 %v5526_v53, %v5530_v10  ;;  %v5536_v2 = vrot.slane %v5529_v54, 4 }
0x1812   :  { %v5532_v51 = vrot.slane %v5531_v56, 2  ;;  %v5537_v32 = vmax.f32 %v5529_v54, %v5536_v2 }
0x1814   :  { %v5533_v44 = vmax.f32 %v5531_v56, %v5532_v51  ;;  %v5538_v61 = vrot.slane %v5537_v32, 2 }
0x1816   :  { %v5534_v17 = vrot.slane %v5533_v44, 1  ;;  %v5539_v28 = vmax.f32 %v5537_v32, %v5538_v61 }
0x1818   :  { %v5535_v31 = vmax.f32 %v5533_v44, %v5534_v17  ;;  %v5540_v0 = vrot.slane %v5539_v28, 1 }
0x181a   :  { %v5542_v55 = vsub.f32 %v5526_v53, %v5535_v31  ;;  %v5541_v40 = vmax.f32 %v5539_v28, %v5540_v0 }
0x181c   :  { %v5544_v26 = vmul.f32 1.442695, %v5542_v55  ;;  %v5543_v35 = vsub.f32 %v5529_v54, %v5541_v40 }
0x181e   :  { %8003 = vpow2.f32 %v5544_v26  ;;  %v5546_v12 = vmul.f32 1.442695, %v5543_v35 }
0x1820   :  { %8005 = vpow2.f32 %v5546_v12 }
0x1824   :  { %v8004_v16 = vpop.eup %8003 }
0x1825   :  { %v5548_v20 = vrot.slane %v8004_v16, 4 }
0x1826   :  { %v8006_v39 = vpop.eup %8005 }
0x1827   :  { %v5549_v10 = vadd.f32 %v8004_v16, %v5548_v20  ;;  %v5554_v22 = vrot.slane %v8006_v39, 4 }
0x1829   :  { %v5550_v57 = vrot.slane %v5549_v10, 2  ;;  %v5555_v2 = vadd.f32 %v8006_v39, %v5554_v22 }
0x182b   :  { %v5551_v56 = vadd.f32 %v5550_v57, %v5549_v10  ;;  %v5556_v51 = vrot.slane %v5555_v2, 2 }
0x182d   :  { %v5552_v5 = vrot.slane %v5551_v56, 1  ;;  %v5557_v32 = vadd.f32 %v5556_v51, %v5555_v2 }
0x182f   :  { %v5553_v44 = vadd.f32 %v5552_v5, %v5551_v56  ;;  %v5558_v61 = vrot.slane %v5557_v32, 1 }
0x1831   :  { %8007 = vrcp.f32 %v5553_v44  ;;  %v5559_v0 = vadd.f32 %v5558_v61, %v5557_v32  ;;  %v5571_v28 = vand.u32 2147483648, %v5553_v44  ;;  %v5569_v20 = vand.u32 2147483647, %v5553_v44 }
0x1832   :  { %vm5565_vm11 = vweird.f32 %v5553_v44 }
0x1833   :  { %8009 = vrcp.f32 %v5559_v0  ;;  %v5586_v57 = vand.u32 2147483648, %v5559_v0  ;;  %v5572_v35 = vor.u32 1.1754944e-38, %v5571_v28  ;;  %v5584_v12 = vand.u32 2147483647, %v5559_v0 }
0x1834   :  { %vm5570_vm15 = vcmp.eq.f32.partialorder %v5569_v20, 8.507059e+37  ;;  %vm5580_vm1 = vweird.f32 %v5559_v0 }
0x1835   :  { %v5587_v32 = vor.u32 1.1754944e-38, %v5586_v57  ;;  %vm5585_vm6 = vcmp.eq.f32.partialorder %v5584_v12, 8.507059e+37 }
0x1837   :  { %v8008_v40 = vpop.eup %8007 }
0x1838   :  { %v5561_v53 = vmul.f32 %v8008_v40, %v5553_v44  ;;  %vm5566_vm10 = vweird.f32 %v8008_v40  ;;  %v9705_v44 = vld [vmem:[%s10102_s0] sm:$0xff] }
0x1839   :  { %v8010_v54 = vpop.eup %8009  ;;  %vm5567_vm13 = vmor %vm5565_vm11, %vm5566_vm10 }
0x183a   :  { %v5562_v17 = vsub.f32 1.0, %v5561_v53  ;;  %v5576_v31 = vmul.f32 %v8010_v54, %v5559_v0  ;;  %vm5581_vm14 = vweird.f32 %v8010_v54  ;;  %v9712_v0 = vld [vmem:[%s10102_s0 + $0x8] sm:$0xff] }
0x183b   :  { %vm5582_vm5 = vmor %vm5580_vm1, %vm5581_vm14 }
0x183c   :  { %v5563_v55 = vmul.f32 %v8008_v40, %v5562_v17  ;;  %v5577_v26 = vsub.f32 1.0, %v5576_v31 }
0x183e   :  { %v5564_v22 = vadd.f32 %v8008_v40, %v5563_v55  ;;  %v5578_v5 = vmul.f32 %v8010_v54, %v5577_v26 }
0x1840   :  { %v5568_v10 = vsel %vm5567_vm13, %v8008_v40, %v5564_v22  ;;  %v5579_v56 = vadd.f32 %v8010_v54, %v5578_v5 }
0x1841   :  { %v5573_v2 = vsel %vm5570_vm15, %v5572_v35, %v5568_v10 }
0x1842   :  { %v5574_v51 = vmul.f32 %v8004_v16, %v5573_v2  ;;  %v5583_v61 = vsel %vm5582_vm5, %v8010_v54, %v5579_v56 }
0x1843   :  { %v5588_v17 = vsel %vm5585_vm6, %v5587_v32, %v5583_v61 }
0x1844   :  { %v5590_v53 = vmul.f32 %v9705_v44, %v5574_v51  ;;  %v5589_v28 = vmul.f32 %v8006_v39, %v5588_v17 }
0x1846   :  { %v5592_v40 = vsel %vm51_vm0, %v5590_v53, 0.0  ;;  %v5591_v16 = vmul.f32 %v9712_v0, %v5589_v28 }
0x1847   :  { %v5593_v54 = vrot.slane %v5592_v40, 4 }
0x1848   :  { %v5599_v55 = vsel %vm51_vm0, %v5591_v16, 0.0  ;;  %v5673_v16 = vpop.f32.mrf.mxu1 }
0x1849   :  { %v5594_v31 = vadd.f32 %v5593_v54, %v5592_v40  ;;  %v5600_v20 = vrot.slane %v5599_v55, 4  ;;  %v5632_v40 = vpop.f32.mrf.mxu0 }
0x184a   :  { %v5674_v54 = vadd.f32 %v5673_v16, %v5632_v40  ;;  %v6033_v16 = vld [vmem:[#allocation2 + $0xc] sm:$0x3] }
0x184b   :  { %v5595_v26 = vrot.slane %v5594_v31, 2  ;;  %v5601_v22 = vadd.f32 %v5600_v20, %v5599_v55  ;;  %v5730_v20 = vpop.f32.mrf.mxu3 }
0x184d   :  { %v5596_v57 = vadd.f32 %v5595_v26, %v5594_v31  ;;  %v5602_v35 = vrot.slane %v5601_v22, 2  ;;  %v5703_v31 = vpop.f32.mrf.mxu2 }
0x184e   :  { %v5704_v55 = vadd.f32 %v5703_v31, %v5674_v54  ;;  %v9745_v31 = vld [vmem:[%s10110_s9] ss:$0 sm:$0xff] }
0x184f   :  { %v5597_v5 = vrot.slane %v5596_v57, 1  ;;  %v5603_v39 = vadd.f32 %v5602_v35, %v5601_v22 }
0x1850   :  { %v5731_v22 = vadd.f32 %v5730_v20, %v5704_v55  ;;  %v5788_v35 = vpop.f32.mrf.mxu1 }
0x1851   :  { %v5604_v12 = vrot.slane %v5603_v39, 1  ;;  %v5598_v10 = vadd.f32 %v5597_v5, %v5596_v57  ;;  %v5763_v26 = vpop.f32.mrf.mxu0 }
0x1852   :  { %v5764_v57 = vadd.f32 %v5763_v26, %v5731_v22 }
0x1853   :  { %v5605_v2 = vadd.f32 %v5604_v12, %v5603_v39 }
0x1854   :  { %v5789_v5 = vadd.f32 %v5788_v35, %v5764_v57 }
0x1855   :  { %v5793_v56 = vsel %vm1273_vm12, %v5605_v2, %v5598_v10 }
0x1856   :  { %v5794_v51 = vsel %vm51_vm0, %v5793_v56, 0 }
0x1857   :  { %v5820_v32 = vand.u32 4294901760, %v5794_v51 }
0x1859   :  { %5886 = vmatmul.f32.vlgmr.msrb.gmra.mxu3 %v5820_v32  ;;  %v5821_v61 = vsub.f32 %v5794_v51, %v5820_v32 }
0x185a   :  { %6253 = vmatpush.msrb.mxu3 %v8376_v25 }
0x185b   :  { %5924 = vmatmul.f32.vlgmr.msrb.gmra.mxu0 %v5821_v61  ;;  %v5822_v53 = vand.u32 4294901760, %v5821_v61 }
0x185c   :  { %6255 = vmatpush.msrb.mxu3 %v8390_v29  ;;  %6164 = vmatpush.msrb.mxu0 %v8404_v30 }
0x185d   :  { %5955 = vmatmul.f32.vlgmr.msrb.gmra.mxu1 %v5822_v53  ;;  %v5823_v17 = vsub.f32 %v5821_v61, %v5822_v53 }
0x185e   :  { %6257 = vmatpush.msrb.mxu3 %v8406_v33  ;;  %6193 = vmatpush.msrb.mxu1 %v8376_v25 }
0x185f   :  { %v5824_v28 = vand.u32 4294901760, %v5823_v17  ;;  %6167 = vmatpush.msrb.mxu0 %v8419_v36 }
0x1860   :  { %6259 = vmatpush.msrb.mxu3 %v8445_v41  ;;  %6195 = vmatpush.msrb.mxu1 %v8390_v29 }
0x1861   :  { %5825 = vmatmul.f32.vlgmr.msrb.gmra.mxu2 %v5824_v28  ;;  %6029 = vmatmul.f32.vlgmr.msra.gmra.mxu3 %v5820_v32 }
0x1862   :  { %6222 = vmatpush.msrb.mxu2 %v8429_v37  ;;  %6472 = vmatpush.msra.mxu3 %v8567_v14 }
0x1863   :  { %6197 = vmatpush.msrb.mxu1 %v8406_v33  ;;  %6170 = vmatpush.msrb.mxu0 %v8432_v38 }
0x1864   :  { %6226 = vmatpush.msrb.mxu2 %v8450_v42  ;;  %6474 = vmatpush.msra.mxu3 %v8574_v21 }
0x1865   :  { %6199 = vmatpush.msrb.mxu1 %v8445_v41  ;;  %6173 = vmatpush.msrb.mxu0 %v8454_v43 }
0x1866   :  { %6230 = vmatpush.msrb.mxu2 %v8461_v45  ;;  %6476 = vmatpush.msra.mxu3 %v8592_v19 }
0x1868   :  { %6234 = vmatpush.msrb.mxu2 %v10285_v1  ;;  %6478 = vmatpush.msra.mxu3 %v8618_v59 }
0x1869   :  { %6000 = vmatmul.f32.vlgmr.msra.gmra.mxu2 %v5820_v32 }
0x186a   :  { %6443 = vmatpush.msra.mxu2 %v10286_v6 }
0x186c   :  { %6446 = vmatpush.msra.mxu2 %v10287_v46 }
0x186e   :  { %6449 = vmatpush.msra.mxu2 %v10288_v52 }
0x1870   :  { %6452 = vmatpush.msra.mxu2 %v10346_v13 }
0x18d8   :  { %v5925_v56 = vpop.f32.mrf.mxu0 }
0x18da   :  { %v5956_v32 = vpop.f32.mrf.mxu1 }
0x18dc   :  { %v5887_v39 = vpop.f32.mrf.mxu3 }
0x18e4   :  { %v5826_v12 = vpop.f32.mrf.mxu2  ;;  %v6030_v28 = vpop.f32.mrf.mxu3 }
0x18e5   :  { %v5827_v10 = vadd.f32 %v5826_v12, %v5789_v5 }
0x18e7   :  { %v5888_v2 = vadd.f32 %v5887_v39, %v5827_v10 }
0x18e9   :  { %v5926_v51 = vadd.f32 %v5925_v56, %v5888_v2 }
0x18eb   :  { %v5957_v61 = vadd.f32 %v5956_v32, %v5926_v51 }
0x18ec   :  { %v6001_v53 = vpop.f32.mrf.mxu2 }
0x18ed   :  { %v6002_v17 = vadd.f32 %v6001_v53, %v5957_v61 }
0x18ef   :  { %v6031_v40 = vadd.f32 %v6030_v28, %v6002_v17 }
0x18f1   :  { %v6034_v54 = vadd.f32 %v6033_v16, %v6031_v40 }
0x18f3   :  { %v6035_v55 = vadd.f32 %v9745_v31, %v6034_v54 }
0x18f5   :  { %8011 = vtanh.f32 %v6035_v55  ;;  %v7865_v26 = vmul.f32 -1.442695, %v6035_v55 }
0x18f7   :  { %8013 = vpow2.f32 %v7865_v26 }
0x18fb   :  { %v8012_v20 = vpop.eup %8011 }
0x18fc   :  { %6058 = vrot.lane.b32.xlu0 %v8012_v20, %s8082_s28 }
0x18fd   :  { %v8014_v22 = vpop.eup %8013 }
0x18fe   :  { %v6039_v57 = vadd.f32 1.0, %v8014_v22 }
0x1900   :  { %8015 = vrcp.f32 %v6039_v57  ;;  %v6051_v2 = vand.u32 2147483648, %v6039_v57  ;;  %vm6045_vm8 = vweird.f32 %v6039_v57  ;;  %v6049_v56 = vand.u32 2147483647, %v6039_v57 }
0x1902   :  { %v6052_v32 = vor.u32 1.1754944e-38, %v6051_v2  ;;  %vm6050_vm10 = vcmp.eq.f32.partialorder %v6049_v56, 8.507059e+37  ;;  %v10441_v2 = vld [vmem:[#allocation34_spill] sm:$0xff] }
0x1903   :  { %v10442_v56 = vld [vmem:[#allocation22_spill] sm:$0xff] }
0x1906   :  { %v8016_v35 = vpop.eup %8015 }
0x1907   :  { %v6041_v5 = vmul.f32 %v8016_v35, %v6039_v57  ;;  %vm6046_vm7 = vweird.f32 %v8016_v35 }
0x1908   :  { %vm6047_vm9 = vmor %vm6045_vm8, %vm6046_vm7 }
0x1909   :  { %v6042_v39 = vsub.f32 1.0, %v6041_v5 }
0x190b   :  { %v6043_v12 = vmul.f32 %v8016_v35, %v6042_v39 }
0x190d   :  { %v6044_v10 = vadd.f32 %v8016_v35, %v6043_v12  ;;  %v10439_v12 = vld [vmem:[#allocation17_spill] sm:$0xff] }
0x190f   :  { %v6048_v51 = vsel %vm6047_vm9, %v8016_v35, %v6044_v10  ;;  %v10440_v10 = vld [vmem:[#allocation43_spill] sm:$0xff] }
0x1910   :  { %v6053_v53 = vsel %vm6050_vm10, %v6052_v32, %v6048_v51  ;;  %v10443_v51 = vld [vmem:[#allocation18_spill] sm:$0xff]  ;;  %v10444_v32 = vld [vmem:[#allocation24_spill] sm:$0xff] }
0x1911   :  { %v6056_v28 = vmul.f32 %v6053_v53, %v9597_v15 }
0x196e   :  { %v6059_v61 = vpop.permute.xlu0 %6058 }
0x196f   :  { %v6061_v17 = vmul.f32 %v6059_v61, %v6053_v53  ;;  %v10445_v61 = vld [vmem:[#allocation16_spill] sm:$0xff] }
0x1971   :  { %6063 = vrot.lane.b32.xlu1 %v6061_v17, %s8083_s29  ;;  %v10447_v17 = vld [vmem:[#allocation20_spill] sm:$0xff] }
0x19e3   :  { %v6064_v40 = vpop.permute.xlu1 %6063 }
0x19e4   :  { %v9751_v16 = vadd.f32 %v6064_v40, %v6056_v28  ;;  %v10448_v28 = vld [vmem:[#allocation28_spill] sm:$0xff]  ;;  %v10449_v40 = vld [vmem:[#allocation25_spill] sm:$0xff] }
0x19e6   :  { %8017 = vtanh.f32 %v9751_v16 }
0x19ec   :  { %v8018_v54 = vpop.eup %8017 }
0x19ed   :  { %6069 = vrot.lane.b32.xlu2 %v8018_v54, %s8082_s28  ;;  %v10450_v54 = vld [vmem:[#allocation29_spill] sm:$0xff] }
0x1a47   :  { %v6070_v55 = vpop.permute.xlu2 %6069 }
0x1a48   :  { %v6072_v20 = vmul.f32 %v6070_v55, %v6053_v53  ;;  %v10446_v53 = vld [vmem:[#allocation23_spill] sm:$0xff]  ;;  %v10451_v55 = vld [vmem:[#allocation26_spill] sm:$0xff] }
0x1a4a   :  { %6074 = vrot.lane.b32.xlu0 %v6072_v20, %s8083_s29  ;;  %v10452_v20 = vld [vmem:[#allocation33_spill] sm:$0xff] }
0x1abc   :  { %v6075_v26 = vpop.permute.xlu0 %6074 }
0x1abd   :  { %6077 = vst.msk [vmem:[#allocation3 + $0xc] sm:$0x3] %vm1558_vm4, %v6075_v26  ;;  %v6078_v22 = vsel %vm803_vm3, %v6075_v26, 0  ;;  %v10453_v26 = vld [vmem:[#allocation30_spill] sm:$0xff] }
0x1abe   :  { %v9758_v57 = vand.u32 4294901760, %v6078_v22 }
0x1ac0   :  { %v6101_v15 = vsub.f32 %v6078_v22, %v9758_v57  ;;  %6146 = vmatmul.f32.vlgmr.msra.gmra.mxu1 %v9758_v57  ;;  %6236 = vmatmul.f32.vlgmr.msrb.gmra.mxu2 %v9758_v57  ;;  %v10454_v22 = vld [vmem:[#allocation5_spill] sm:$0xff] }
0x1ac1   :  { %6261 = vmatmul.f32.vlgmr.msrb.gmra.mxu3 %v9758_v57  ;;  %6405 = vmatpush.msra.mxu1 %v8634_v7 }
0x1ac2   :  { %v6102_v35 = vand.u32 4294901760, %v6101_v15  ;;  %6595 = vmatpush.msrb.mxu3 %v8671_v8  ;;  %6558 = vmatpush.msrb.mxu2 %v8585_v3 }
0x1ac3   :  { %6411 = vmatpush.msra.mxu1 %v8658_v47 }
0x1ac4   :  { %v6103_v5 = vsub.f32 %v6101_v15, %v6102_v35  ;;  %6601 = vmatpush.msrb.mxu3 %v8697_v60  ;;  %6560 = vmatpush.msrb.mxu2 %v8607_v34 }
0x1ac5   :  { %6417 = vmatpush.msra.mxu1 %v8695_v24 }
0x1ac6   :  { %v6104_v39 = vand.u32 4294901760, %v6103_v5  ;;  %6607 = vmatpush.msrb.mxu3 %v10262_v11  ;;  %6562 = vmatpush.msrb.mxu2 %v8663_v48  ;;  %v10458_v5 = vld [vmem:[#allocation40_spill] sm:$0xff] }
0x1ac7   :  { %6423 = vmatpush.msra.mxu1 %v10263_v49 }
0x1ac8   :  { %6105 = vmatmul.f32.vlgmr.msra.gmra.mxu0 %v6104_v39  ;;  %6203 = vmatmul.f32.vlgmr.msrb.gmra.mxu1 %v6102_v35 }
0x1ac9   :  { %6455 = vmatmul.f32.vlgmr.msra.gmra.mxu2 %v6101_v15  ;;  %6482 = vmatmul.f32.vlgmr.msra.gmra.mxu3 %v6102_v35  ;;  %v10456_v35 = vld [vmem:[#allocation31_spill] sm:$0xff] }
0x1aca   :  { %6372 = vmatpush.msra.mxu0 %v8567_v14  ;;  %6532 = vmatpush.msrb.mxu1 %v8567_v14 }
0x1acb   :  { %6613 = vmatpush.msrb.mxu3 %v10264_v18  ;;  %6564 = vmatpush.msrb.mxu2 %v8665_v50 }
0x1acc   :  { %6374 = vmatpush.msra.mxu0 %v8574_v21  ;;  %6534 = vmatpush.msrb.mxu1 %v8574_v21 }
0x1acd   :  { %6619 = vmatpush.msrb.mxu3 %v8769_v9  ;;  %6566 = vmatpush.msrb.mxu2 %v8689_v23 }
0x1ace   :  { %6376 = vmatpush.msra.mxu0 %v8592_v19  ;;  %6536 = vmatpush.msrb.mxu1 %v8592_v19 }
0x1acf   :  { %6625 = vmatpush.msrb.mxu3 %v8783_v4  ;;  %6568 = vmatpush.msrb.mxu2 %v8700_v58 }
0x1ad0   :  { %6176 = vmatmul.f32.vlgmr.msrb.gmra.mxu0 %v6101_v15  ;;  %6425 = vmatmul.f32.vlgmr.msra.gmra.mxu1 %v9758_v57  ;;  %v10455_v15 = vld [vmem:[#allocation35_spill] sm:$0xff] }
0x1ad1   :  { %6378 = vmatpush.msra.mxu0 %v8618_v59  ;;  %6538 = vmatpush.msrb.mxu1 %v8618_v59 }
0x1ad2   :  { %6631 = vmatpush.msrb.mxu3 %v10408_v27  ;;  %6570 = vmatpush.msrb.mxu2 %v10409_v63 }
0x1ad3   :  { %6501 = vmatpush.msrb.mxu0 %v10407_v62  ;;  %6690 = vmatpush.msra.mxu1 %v8585_v3 }
0x1ad4   :  { %6637 = vmatpush.msrb.mxu3 %v10440_v10  ;;  %6572 = vmatpush.msrb.mxu2 %v10441_v2 }
0x1ad5   :  { %6505 = vmatpush.msrb.mxu0 %v10439_v12  ;;  %6692 = vmatpush.msra.mxu1 %v8607_v34 }
0x1ad6   :  { %6766 = vmatpush.msra.mxu3 %v8585_v3  ;;  %6723 = vmatpush.msra.mxu2 %v10443_v51  ;;  %v10465_v51 = vld [vmem:[#allocation10_spill] sm:$0xff] }
0x1ad7   :  { %6509 = vmatpush.msrb.mxu0 %v10442_v56  ;;  %6694 = vmatpush.msra.mxu1 %v8663_v48 }
0x1ad8   :  { %6384 = vmatmul.f32.vlgmr.msra.gmra.mxu0 %v6104_v39  ;;  %6540 = vmatmul.f32.vlgmr.msrb.gmra.mxu1 %v9758_v57  ;;  %v10459_v39 = vld [vmem:[#allocation36_spill] sm:$0xff] }
0x1ad9   :  { %6513 = vmatpush.msrb.mxu0 %v10444_v32  ;;  %6696 = vmatpush.msra.mxu1 %v8665_v50 }
0x1ada   :  { %6768 = vmatpush.msra.mxu3 %v8607_v34  ;;  %6727 = vmatpush.msra.mxu2 %v10446_v53 }
0x1adb   :  { %6653 = vmatpush.msra.mxu0 %v10445_v61  ;;  %6698 = vmatpush.msra.mxu1 %v8689_v23 }
0x1adc   :  { %6770 = vmatpush.msra.mxu3 %v8663_v48  ;;  %6731 = vmatpush.msra.mxu2 %v10448_v28 }
0x1add   :  { %6656 = vmatpush.msra.mxu0 %v10447_v17  ;;  %6700 = vmatpush.msra.mxu1 %v8700_v58 }
0x1ade   :  { %6772 = vmatpush.msra.mxu3 %v8665_v50  ;;  %6735 = vmatpush.msra.mxu2 %v10450_v54 }
0x1adf   :  { %6659 = vmatpush.msra.mxu0 %v10449_v40  ;;  %6702 = vmatpush.msra.mxu1 %v10409_v63 }
0x1ae0   :  { %6515 = vmatmul.f32.vlgmr.msrb.gmra.mxu0 %v9758_v57  ;;  %6774 = vmatpush.msra.mxu3 %v8689_v23  ;;  %v10457_v57 = vld [vmem:[#allocation6_spill] sm:$0xff] }
0x1ae1   :  { %6662 = vmatpush.msra.mxu0 %v10451_v55  ;;  %6704 = vmatpush.msra.mxu1 %v10441_v2  ;;  %v10460_v55 = vld [vmem:[#allocation7_spill] sm:$0xff] }
0x1ae2   :  { %6776 = vmatpush.msra.mxu3 %v8700_v58  ;;  %6739 = vmatpush.msra.mxu2 %v10452_v20  ;;  %v10461_v20 = vld [vmem:[#allocation41_spill] sm:$0xff] }
0x1ae3   :  { %6665 = vmatpush.msra.mxu0 %v10453_v26  ;;  %6879 = vmatpush.msrb.mxu1 %v10454_v22  ;;  %v10462_v26 = vld [vmem:[#allocation39_spill] sm:$0xff]  ;;  %v10463_v22 = vld [vmem:[#allocation8_spill] sm:$0xff] }
0x1ae4   :  { %6778 = vmatpush.msra.mxu3 %v10409_v63  ;;  %6743 = vmatpush.msra.mxu2 %v10455_v15 }
0x1ae5   :  { %6668 = vmatpush.msra.mxu0 %v10456_v35  ;;  %6885 = vmatpush.msrb.mxu1 %v10457_v57  ;;  %v10464_v35 = vld [vmem:[#allocation12_spill] sm:$0xff] }
0x1ae6   :  { %6780 = vmatpush.msra.mxu3 %v10441_v2  ;;  %6747 = vmatpush.msra.mxu2 %v10458_v5  ;;  %v10466_v2 = vld [vmem:[#allocation11_spill] sm:$0xff] }
0x1ae7   :  { %6671 = vmatpush.msra.mxu0 %v10459_v39  ;;  %6891 = vmatpush.msrb.mxu1 %v10460_v55 }
0x1ae8   :  { %6751 = vmatpush.msra.mxu2 %v10461_v20 }
0x1ae9   :  { %6674 = vmatpush.msra.mxu0 %v10462_v26  ;;  %6897 = vmatpush.msrb.mxu1 %v10463_v22 }
0x1aeb   :  { %6846 = vmatpush.msrb.mxu0 %v8376_v25 }
0x1aed   :  { %6848 = vmatpush.msrb.mxu0 %v8390_v29 }
0x1aef   :  { %6850 = vmatpush.msrb.mxu0 %v8406_v33 }
0x1af1   :  { %6852 = vmatpush.msrb.mxu0 %v8445_v41 }
0x1b3d   :  { %v6147_v57 = vpop.f32.mrf.mxu1 }
0x1b43   :  { %v6237_v26 = vpop.f32.mrf.mxu2 }
0x1b44   :  { %v6262_v22 = vpop.f32.mrf.mxu3 }
0x1b45   :  { %v6106_v5 = vpop.f32.mrf.mxu0  ;;  %v6204_v20 = vpop.f32.mrf.mxu1 }
0x1b46   :  { %v6107_v39 = vadd.f32 %v10464_v35, %v6106_v5  ;;  %v10467_v35 = vld [vmem:[#allocation44_spill] sm:$0xff] }
0x1b48   :  { %v6148_v15 = vadd.f32 %v6147_v57, %v6107_v39 }
0x1b4d   :  { %v6177_v55 = vpop.f32.mrf.mxu0 }
0x1b4e   :  { %v6178_v54 = vadd.f32 %v6177_v55, %v6148_v15 }
0x1b50   :  { %v6205_v40 = vadd.f32 %v6204_v20, %v6178_v54 }
0x1b52   :  { %v6238_v28 = vadd.f32 %v6237_v26, %v6205_v40 }
0x1b54   :  { %v6263_v17 = vadd.f32 %v6262_v22, %v6238_v28 }
0x1b56   :  { %v6266_v53 = vrot.slane %v6263_v17, 1  ;;  %v6267_v61 = vperm.slane %v6263_v17, 0 }
0x1b58   :  { %v6268_v32 = vperm.slane %v6266_v53, 0  ;;  %v6271_v56 = vadd.f32 %v6267_v61, %v10465_v51 }
0x1b5a   :  { %8019 = vtanh.f32 %v6271_v56  ;;  %v6272_v10 = vadd.f32 %v6268_v32, %v10466_v2 }
0x1b5c   :  { %8021 = vtanh.f32 %v6272_v10 }
0x1b60   :  { %v8020_v12 = vpop.eup %8019 }
0x1b61   :  { %v6275_v5 = vmul.f32 %v10467_v35, %v8020_v12 }
0x1b62   :  { %v8022_v39 = vpop.eup %8021 }
0x1b63   :  { %v6277_v15 = vsel %vm803_vm3, %v6275_v5, 0.0  ;;  %v6276_v54 = vmul.f32 %v10467_v35, %v8022_v39 }
0x1b64   :  { %6278 = vadd.xlane.f32.xlu0 %v6277_v15 }
0x1b65   :  { %v6280_v28 = vsel %vm803_vm3, %v6276_v54, 0.0 }
0x1b66   :  { %6281 = vadd.xlane.f32.xlu1 %v6280_v28 }
0x1bd7   :  { %v6279_v17 = vpop.xlane.xlu0 %6278 }
0x1bd8   :  { %v6283_v53 = vrot.slane %v6279_v17, 4 }
0x1bd9   :  { %v6282_v40 = vpop.xlane.xlu1 %6281 }
0x1bda   :  { %v6284_v61 = vmax.f32 %v6279_v17, %v6283_v53  ;;  %v6289_v56 = vrot.slane %v6282_v40, 4 }
0x1bdc   :  { %v6285_v20 = vrot.slane %v6284_v61, 2  ;;  %v6290_v32 = vmax.f32 %v6282_v40, %v6289_v56 }
0x1bde   :  { %v6286_v10 = vmax.f32 %v6284_v61, %v6285_v20  ;;  %v6291_v26 = vrot.slane %v6290_v32, 2 }
0x1be0   :  { %v6287_v57 = vrot.slane %v6286_v10, 1  ;;  %v6292_v12 = vmax.f32 %v6290_v32, %v6291_v26 }
0x1be2   :  { %v6288_v55 = vmax.f32 %v6286_v10, %v6287_v57  ;;  %v6293_v22 = vrot.slane %v6292_v12, 1 }
0x1be4   :  { %v6295_v5 = vsub.f32 %v6279_v17, %v6288_v55  ;;  %v6294_v2 = vmax.f32 %v6292_v12, %v6293_v22 }
0x1be6   :  { %v6297_v35 = vmul.f32 1.442695, %v6295_v5  ;;  %v6296_v39 = vsub.f32 %v6282_v40, %v6294_v2 }
0x1be8   :  { %8023 = vpow2.f32 %v6297_v35  ;;  %v6299_v15 = vmul.f32 1.442695, %v6296_v39 }
0x1bea   :  { %8025 = vpow2.f32 %v6299_v15 }
0x1bee   :  { %v8024_v54 = vpop.eup %8023 }
0x1bef   :  { %v6301_v28 = vrot.slane %v8024_v54, 4 }
0x1bf0   :  { %v8026_v51 = vpop.eup %8025 }
0x1bf1   :  { %v6302_v53 = vadd.f32 %v8024_v54, %v6301_v28  ;;  %v6307_v63 = vrot.slane %v8026_v51, 4 }
0x1bf3   :  { %v6303_v27 = vrot.slane %v6302_v53, 2  ;;  %v6308_v56 = vadd.f32 %v8026_v51, %v6307_v63 }
0x1bf5   :  { %v6304_v61 = vadd.f32 %v6303_v27, %v6302_v53  ;;  %v6309_v20 = vrot.slane %v6308_v56, 2 }
0x1bf7   :  { %v6305_v62 = vrot.slane %v6304_v61, 1  ;;  %v6310_v32 = vadd.f32 %v6309_v20, %v6308_v56 }
0x1bf9   :  { %v6306_v10 = vadd.f32 %v6305_v62, %v6304_v61  ;;  %v6311_v26 = vrot.slane %v6310_v32, 1 }
0x1bfb   :  { %8027 = vrcp.f32 %v6306_v10  ;;  %v6312_v17 = vadd.f32 %v6311_v26, %v6310_v32  ;;  %v6324_v55 = vand.u32 2147483648, %v6306_v10  ;;  %v6322_v35 = vand.u32 2147483647, %v6306_v10 }
0x1bfc   :  { %vm6318_vm13 = vweird.f32 %v6306_v10 }
0x1bfd   :  { %8029 = vrcp.f32 %v6312_v17  ;;  %v6339_v27 = vand.u32 2147483648, %v6312_v17  ;;  %v6325_v15 = vor.u32 1.1754944e-38, %v6324_v55  ;;  %v6337_v28 = vand.u32 2147483647, %v6312_v17 }
0x1bfe   :  { %vm6323_vm1 = vcmp.eq.f32.partialorder %v6322_v35, 8.507059e+37  ;;  %vm6333_vm5 = vweird.f32 %v6312_v17 }
0x1bff   :  { %v6340_v32 = vor.u32 1.1754944e-38, %v6339_v27  ;;  %vm6338_vm7 = vcmp.eq.f32.partialorder %v6337_v28, 8.507059e+37 }
0x1c01   :  { %v8028_v2 = vpop.eup %8027 }
0x1c02   :  { %v6314_v40 = vmul.f32 %v8028_v2, %v6306_v10  ;;  %vm6319_vm11 = vweird.f32 %v8028_v2 }
0x1c03   :  { %v8030_v57 = vpop.eup %8029  ;;  %vm6320_vm14 = vmor %vm6318_vm13, %vm6319_vm11 }
0x1c04   :  { %v6315_v12 = vsub.f32 1.0, %v6314_v40  ;;  %v6329_v22 = vmul.f32 %v8030_v57, %v6312_v17  ;;  %vm6334_vm15 = vweird.f32 %v8030_v57 }
0x1c05   :  { %vm6335_vm6 = vmor %vm6333_vm5, %vm6334_vm15 }
0x1c06   :  { %v6316_v5 = vmul.f32 %v8028_v2, %v6315_v12  ;;  %v6330_v39 = vsub.f32 1.0, %v6329_v22 }
0x1c08   :  { %v6317_v63 = vadd.f32 %v8028_v2, %v6316_v5  ;;  %v6331_v62 = vmul.f32 %v8030_v57, %v6330_v39 }
0x1c0a   :  { %v6321_v53 = vsel %vm6320_vm14, %v8028_v2, %v6317_v63  ;;  %v6332_v61 = vadd.f32 %v8030_v57, %v6331_v62 }
0x1c0b   :  { %v6326_v56 = vsel %vm6323_vm1, %v6325_v15, %v6321_v53 }
0x1c0c   :  { %v6327_v20 = vmul.f32 %v8024_v54, %v6326_v56  ;;  %v6336_v26 = vsel %vm6335_vm6, %v8030_v57, %v6332_v61 }
0x1c0d   :  { %v6341_v12 = vsel %vm6338_vm7, %v6340_v32, %v6336_v26 }
0x1c0e   :  { %v6343_v40 = vmul.f32 %v9705_v44, %v6327_v20  ;;  %v6342_v10 = vmul.f32 %v8026_v51, %v6341_v12 }
0x1c10   :  { %v6345_v22 = vsel %vm51_vm0, %v6343_v40, 0.0  ;;  %v6344_v55 = vmul.f32 %v9712_v0, %v6342_v10 }
0x1c11   :  { %v6346_v5 = vrot.slane %v6345_v22, 4 }
0x1c12   :  { %v6352_v2 = vsel %vm51_vm0, %v6344_v55, 0.0 }
0x1c13   :  { %v6347_v39 = vadd.f32 %v6346_v5, %v6345_v22  ;;  %v6353_v35 = vrot.slane %v6352_v2, 4 }
0x1c15   :  { %v6348_v63 = vrot.slane %v6347_v39, 2  ;;  %v6354_v17 = vadd.f32 %v6353_v35, %v6352_v2 }
0x1c17   :  { %v6349_v54 = vadd.f32 %v6348_v63, %v6347_v39  ;;  %v6355_v15 = vrot.slane %v6354_v17, 2  ;;  %v6786_v39 = vld [vmem:[#allocation2 + $0xe] sm:$0x3] }
0x1c19   :  { %v6350_v27 = vrot.slane %v6349_v54, 1  ;;  %v6356_v57 = vadd.f32 %v6355_v15, %v6354_v17 }
0x1c1b   :  { %v6357_v62 = vrot.slane %v6356_v57, 1  ;;  %v6351_v28 = vadd.f32 %v6350_v27, %v6349_v54 }
0x1c1d   :  { %v6358_v44 = vadd.f32 %v6357_v62, %v6356_v57 }
0x1c1f   :  { %v6546_v51 = vsel %vm1273_vm12, %v6358_v44, %v6351_v28 }
0x1c20   :  { %v6547_v53 = vsel %vm51_vm0, %v6546_v51, 0 }
0x1c21   :  { %v6573_v56 = vand.u32 4294901760, %v6547_v53 }
0x1c23   :  { %6639 = vmatmul.f32.vlgmr.msrb.gmra.mxu3 %v6573_v56  ;;  %v6574_v0 = vsub.f32 %v6547_v53, %v6573_v56 }
0x1c24   :  { %7006 = vmatpush.msrb.mxu3 %v8376_v25 }
0x1c25   :  { %6677 = vmatmul.f32.vlgmr.msra.gmra.mxu0 %v6574_v0  ;;  %v6575_v61 = vand.u32 4294901760, %v6574_v0 }
0x1c26   :  { %7008 = vmatpush.msrb.mxu3 %v8390_v29  ;;  %6917 = vmatpush.msra.mxu0 %v8404_v30 }
0x1c27   :  { %6708 = vmatmul.f32.vlgmr.msra.gmra.mxu1 %v6575_v61  ;;  %v6576_v20 = vsub.f32 %v6574_v0, %v6575_v61 }
0x1c28   :  { %7010 = vmatpush.msrb.mxu3 %v8406_v33  ;;  %6946 = vmatpush.msra.mxu1 %v8376_v25  ;;  %v6385_v25 = vpop.f32.mrf.mxu0 }
0x1c29   :  { %v6577_v32 = vand.u32 4294901760, %v6576_v20  ;;  %6920 = vmatpush.msra.mxu0 %v8419_v36 }
0x1c2a   :  { %7012 = vmatpush.msrb.mxu3 %v8445_v41  ;;  %6948 = vmatpush.msra.mxu1 %v8390_v29  ;;  %v6426_v29 = vpop.f32.mrf.mxu1 }
0x1c2b   :  { %6578 = vmatmul.f32.vlgmr.msrb.gmra.mxu2 %v6577_v32  ;;  %6782 = vmatmul.f32.vlgmr.msra.gmra.mxu3 %v6573_v56  ;;  %v6427_v30 = vadd.f32 %v6426_v29, %v6385_v25 }
0x1c2c   :  { %6975 = vmatpush.msrb.mxu2 %v8429_v37  ;;  %7225 = vmatpush.msra.mxu3 %v8567_v14  ;;  %v6483_v37 = vpop.f32.mrf.mxu3 }
0x1c2d   :  { %6950 = vmatpush.msra.mxu1 %v8406_v33  ;;  %6923 = vmatpush.msra.mxu0 %v8432_v38  ;;  %v6456_v33 = vpop.f32.mrf.mxu2 }
0x1c2e   :  { %6979 = vmatpush.msrb.mxu2 %v8450_v42  ;;  %7227 = vmatpush.msra.mxu3 %v8574_v21  ;;  %v6457_v36 = vadd.f32 %v6456_v33, %v6427_v30 }
0x1c2f   :  { %6952 = vmatpush.msra.mxu1 %v8445_v41  ;;  %6926 = vmatpush.msra.mxu0 %v8454_v43 }
0x1c30   :  { %6983 = vmatpush.msrb.mxu2 %v8461_v45  ;;  %7229 = vmatpush.msra.mxu3 %v8592_v19  ;;  %v6516_v38 = vpop.f32.mrf.mxu0  ;;  %v6484_v41 = vadd.f32 %v6483_v37, %v6457_v36 }
0x1c32   :  { %6987 = vmatpush.msrb.mxu2 %v10285_v1  ;;  %7231 = vmatpush.msra.mxu3 %v8618_v59  ;;  %v6517_v42 = vadd.f32 %v6516_v38, %v6484_v41  ;;  %v6541_v43 = vpop.f32.mrf.mxu1 }
0x1c33   :  { %6753 = vmatmul.f32.vlgmr.msra.gmra.mxu2 %v6573_v56 }
0x1c34   :  { %7196 = vmatpush.msra.mxu2 %v10286_v6  ;;  %v6542_v45 = vadd.f32 %v6541_v43, %v6517_v42 }
0x1c36   :  { %7199 = vmatpush.msra.mxu2 %v10287_v46 }
0x1c38   :  { %7202 = vmatpush.msra.mxu2 %v10288_v52 }
0x1c3a   :  { %7205 = vmatpush.msra.mxu2 %v10346_v13 }
0x1ca2   :  { %v6678_v46 = vpop.f32.mrf.mxu0 }
0x1ca4   :  { %v6709_v52 = vpop.f32.mrf.mxu1 }
0x1ca6   :  { %v6640_v1 = vpop.f32.mrf.mxu3 }
0x1cae   :  { %v6579_v26 = vpop.f32.mrf.mxu2  ;;  %v6783_v55 = vpop.f32.mrf.mxu3 }
0x1caf   :  { %v6580_v6 = vadd.f32 %v6579_v26, %v6542_v45  ;;  %v10487_v26 = vld [vmem:[#allocation31_spill] sm:$0xff] }
0x1cb1   :  { %v6641_v40 = vadd.f32 %v6640_v1, %v6580_v6  ;;  %v10485_v1 = vld [vmem:[#allocation30_spill] sm:$0xff]  ;;  %v10488_v6 = vld [vmem:[#allocation40_spill] sm:$0xff] }
0x1cb3   :  { %v6679_v12 = vadd.f32 %v6678_v46, %v6641_v40  ;;  %v10490_v40 = vld [vmem:[#allocation41_spill] sm:$0xff]  ;;  %v10491_v46 = vld [vmem:[#allocation39_spill] sm:$0xff] }
0x1cb5   :  { %v6710_v10 = vadd.f32 %v6709_v52, %v6679_v12  ;;  %v8076_v52 = vld [vmem:[%s10106_s4] ss:$0 sm:$0xff] }
0x1cb6   :  { %v6754_v13 = vpop.f32.mrf.mxu2 }
0x1cb7   :  { %v6755_v22 = vadd.f32 %v6754_v13, %v6710_v10 }
0x1cb9   :  { %v6784_v5 = vadd.f32 %v6783_v55, %v6755_v22 }
0x1cbb   :  { %v6787_v2 = vadd.f32 %v6786_v39, %v6784_v5 }
0x1cbd   :  { %v6788_v35 = vadd.f32 %v9745_v31, %v6787_v2 }
0x1cbf   :  { %8031 = vtanh.f32 %v6788_v35  ;;  %v7866_v17 = vmul.f32 -1.442695, %v6788_v35 }
0x1cc1   :  { %8033 = vpow2.f32 %v7866_v17 }
0x1cc5   :  { %v8032_v63 = vpop.eup %8031 }
0x1cc6   :  { %6811 = vrot.lane.b32.xlu2 %v8032_v63, %s8082_s28 }
0x1cc7   :  { %v8034_v54 = vpop.eup %8033 }
0x1cc8   :  { %v6792_v15 = vadd.f32 1.0, %v8034_v54 }
0x1cca   :  { %8035 = vrcp.f32 %v6792_v15  ;;  %v6804_v51 = vand.u32 2147483648, %v6792_v15  ;;  %vm6798_vm9 = vweird.f32 %v6792_v15  ;;  %v6802_v53 = vand.u32 2147483647, %v6792_v15 }
0x1ccc   :  { %v6805_v56 = vor.u32 1.1754944e-38, %v6804_v51  ;;  %vm6803_vm11 = vcmp.eq.f32.partialorder %v6802_v53, 8.507059e+37  ;;  %v8077_v53 = vld [vmem:[%s10107_s5] ss:$0 sm:$0xff] }
0x1cd0   :  { %v8036_v27 = vpop.eup %8035 }
0x1cd1   :  { %v6794_v57 = vmul.f32 %v8036_v27, %v6792_v15  ;;  %vm6799_vm8 = vweird.f32 %v8036_v27 }
0x1cd2   :  { %vm6800_vm10 = vmor %vm6798_vm9, %vm6799_vm8 }
0x1cd3   :  { %v6795_v62 = vsub.f32 1.0, %v6794_v57  ;;  %v10492_v57 = vld [vmem:[#allocation10_spill] sm:$0xff] }
0x1cd5   :  { %v6796_v28 = vmul.f32 %v8036_v27, %v6795_v62 }
0x1cd7   :  { %v6797_v44 = vadd.f32 %v8036_v27, %v6796_v28  ;;  %v10493_v28 = vld [vmem:[#allocation11_spill] sm:$0xff] }
0x1cd9   :  { %v6801_v31 = vsel %vm6800_vm10, %v8036_v27, %v6797_v44 }
0x1cda   :  { %v6806_v61 = vsel %vm6803_vm11, %v6805_v56, %v6801_v31 }
0x1cdb   :  { %v6809_v32 = vmul.f32 %v6806_v61, %v9751_v16 }
0x1d20   :  { %v6812_v0 = vpop.permute.xlu2 %6811 }
0x1d21   :  { %v6814_v20 = vmul.f32 %v6812_v0, %v6806_v61 }
0x1d23   :  { %6816 = vrot.lane.b32.xlu2 %v6814_v20, %s8083_s29 }
0x1d7d   :  { %v6817_v25 = vpop.permute.xlu2 %6816 }
0x1d7e   :  { %v9880_v29 = vadd.f32 %v6817_v25, %v6809_v32 }
0x1d80   :  { %8037 = vtanh.f32 %v9880_v29 }
0x1d86   :  { %v8038_v30 = vpop.eup %8037 }
0x1d87   :  { %6822 = vrot.lane.b32.xlu2 %v8038_v30, %s8082_s28 }
0x1de1   :  { %v6823_v33 = vpop.permute.xlu2 %6822 }
0x1de2   :  { %v6825_v36 = vmul.f32 %v6823_v33, %v6806_v61 }
0x1de4   :  { %6827 = vrot.lane.b32.xlu2 %v6825_v36, %s8083_s29 }
0x1e3e   :  { %v6828_v37 = vpop.permute.xlu2 %6827 }
0x1e3f   :  { %6830 = vst.msk [vmem:[#allocation3 + $0xe] sm:$0x3] %vm1558_vm4, %v6828_v37  ;;  %v6831_v38 = vsel %vm803_vm3, %v6828_v37, 0 }
0x1e40   :  { %v9887_v41 = vand.u32 4294901760, %v6831_v38 }
0x1e42   :  { %v6854_v16 = vsub.f32 %v6831_v38, %v9887_v41  ;;  %6899 = vmatmul.f32.vlgmr.msrb.gmra.mxu1 %v9887_v41  ;;  %6989 = vmatmul.f32.vlgmr.msrb.gmra.mxu2 %v9887_v41 }
0x1e43   :  { %7014 = vmatmul.f32.vlgmr.msrb.gmra.mxu3 %v9887_v41  ;;  %7158 = vmatpush.msrb.mxu1 %v8634_v7  ;;  %v10470_v7 = vld [vmem:[#allocation32_spill] sm:$0xff] }
0x1e44   :  { %v6855_v42 = vand.u32 4294901760, %v6854_v16  ;;  %7348 = vmatpush.msrb.mxu3 %v8671_v8  ;;  %7311 = vmatpush.msrb.mxu2 %v8585_v3  ;;  %v10473_v8 = vld [vmem:[#allocation34_spill] sm:$0xff] }
0x1e45   :  { %7164 = vmatpush.msrb.mxu1 %v8658_v47  ;;  %v10472_v47 = vld [vmem:[#allocation43_spill] sm:$0xff] }
0x1e46   :  { %v6856_v43 = vsub.f32 %v6854_v16, %v6855_v42  ;;  %7354 = vmatpush.msrb.mxu3 %v8697_v60  ;;  %7313 = vmatpush.msrb.mxu2 %v8607_v34  ;;  %v10476_v60 = vld [vmem:[#allocation24_spill] sm:$0xff] }
0x1e47   :  { %7170 = vmatpush.msrb.mxu1 %v8695_v24  ;;  %v10474_v24 = vld [vmem:[#allocation22_spill] sm:$0xff] }
0x1e48   :  { %v6857_v45 = vand.u32 4294901760, %v6856_v43  ;;  %7360 = vmatpush.msrb.mxu3 %v10262_v11  ;;  %7315 = vmatpush.msrb.mxu2 %v8663_v48  ;;  %v10479_v11 = vld [vmem:[#allocation20_spill] sm:$0xff] }
0x1e49   :  { %7176 = vmatpush.msrb.mxu1 %v10263_v49  ;;  %v10481_v49 = vld [vmem:[#allocation25_spill] sm:$0xff] }
0x1e4a   :  { %6858 = vmatmul.f32.vlgmr.msrb.gmra.mxu0 %v6857_v45  ;;  %6956 = vmatmul.f32.vlgmr.msra.gmra.mxu1 %v6855_v42 }
0x1e4b   :  { %7208 = vmatmul.f32.vlgmr.msra.gmra.mxu2 %v6854_v16  ;;  %7235 = vmatmul.f32.vlgmr.msra.gmra.mxu3 %v6855_v42 }
0x1e4c   :  { %7125 = vmatpush.msrb.mxu0 %v8567_v14  ;;  %7285 = vmatpush.msra.mxu1 %v8567_v14  ;;  %v10468_v14 = vld [vmem:[#allocation14_spill] sm:$0xff] }
0x1e4d   :  { %7366 = vmatpush.msrb.mxu3 %v10264_v18  ;;  %7317 = vmatpush.msrb.mxu2 %v8665_v50  ;;  %v10482_v18 = vld [vmem:[#allocation29_spill] sm:$0xff] }
0x1e4e   :  { %7127 = vmatpush.msrb.mxu0 %v8574_v21  ;;  %7287 = vmatpush.msra.mxu1 %v8574_v21  ;;  %v10469_v21 = vld [vmem:[#allocation42_spill] sm:$0xff] }
0x1e4f   :  { %7372 = vmatpush.msrb.mxu3 %v8769_v9  ;;  %7319 = vmatpush.msrb.mxu2 %v8689_v23  ;;  %v10477_v9 = vld [vmem:[#allocation16_spill] sm:$0xff] }
0x1e50   :  { %7129 = vmatpush.msrb.mxu0 %v8592_v19  ;;  %7289 = vmatpush.msra.mxu1 %v8592_v19  ;;  %v10471_v19 = vld [vmem:[#allocation17_spill] sm:$0xff] }
0x1e51   :  { %7378 = vmatpush.msrb.mxu3 %v8783_v4  ;;  %7321 = vmatpush.msrb.mxu2 %v8700_v58  ;;  %v10478_v4 = vld [vmem:[#allocation23_spill] sm:$0xff] }
0x1e52   :  { %6929 = vmatmul.f32.vlgmr.msra.gmra.mxu0 %v6854_v16  ;;  %7178 = vmatmul.f32.vlgmr.msrb.gmra.mxu1 %v9887_v41 }
0x1e53   :  { %7131 = vmatpush.msrb.mxu0 %v8618_v59  ;;  %7291 = vmatpush.msra.mxu1 %v8618_v59  ;;  %v10475_v59 = vld [vmem:[#allocation18_spill] sm:$0xff] }
0x1e54   :  { %7384 = vmatpush.msrb.mxu3 %v10469_v21  ;;  %7323 = vmatpush.msrb.mxu2 %v10470_v7 }
0x1e55   :  { %7254 = vmatpush.msra.mxu0 %v10468_v14  ;;  %7443 = vmatpush.msrb.mxu1 %v8585_v3 }
0x1e56   :  { %7390 = vmatpush.msrb.mxu3 %v10472_v47  ;;  %7325 = vmatpush.msrb.mxu2 %v10473_v8 }
0x1e57   :  { %7258 = vmatpush.msra.mxu0 %v10471_v19  ;;  %7445 = vmatpush.msrb.mxu1 %v8607_v34 }
0x1e58   :  { %7519 = vmatpush.msra.mxu3 %v8585_v3  ;;  %7476 = vmatpush.msra.mxu2 %v10475_v59  ;;  %v10480_v3 = vld [vmem:[#allocation28_spill] sm:$0xff] }
0x1e59   :  { %7262 = vmatpush.msra.mxu0 %v10474_v24  ;;  %7447 = vmatpush.msrb.mxu1 %v8663_v48 }
0x1e5a   :  { %7137 = vmatmul.f32.vlgmr.msrb.gmra.mxu0 %v6857_v45  ;;  %7293 = vmatmul.f32.vlgmr.msra.gmra.mxu1 %v9887_v41 }
0x1e5b   :  { %7266 = vmatpush.msra.mxu0 %v10476_v60  ;;  %7449 = vmatpush.msrb.mxu1 %v8665_v50 }
0x1e5c   :  { %7521 = vmatpush.msra.mxu3 %v8607_v34  ;;  %7480 = vmatpush.msra.mxu2 %v10478_v4  ;;  %v10483_v34 = vld [vmem:[#allocation26_spill] sm:$0xff] }
0x1e5d   :  { %7406 = vmatpush.msrb.mxu0 %v10477_v9  ;;  %7451 = vmatpush.msrb.mxu1 %v8689_v23 }
0x1e5e   :  { %7523 = vmatpush.msra.mxu3 %v8663_v48  ;;  %7484 = vmatpush.msra.mxu2 %v10480_v3  ;;  %v10484_v48 = vld [vmem:[#allocation33_spill] sm:$0xff] }
0x1e5f   :  { %7409 = vmatpush.msrb.mxu0 %v10479_v11  ;;  %7453 = vmatpush.msrb.mxu1 %v8700_v58 }
0x1e60   :  { %7525 = vmatpush.msra.mxu3 %v8665_v50  ;;  %7488 = vmatpush.msra.mxu2 %v10482_v18  ;;  %v10486_v50 = vld [vmem:[#allocation35_spill] sm:$0xff] }
0x1e61   :  { %7412 = vmatpush.msrb.mxu0 %v10481_v49  ;;  %7455 = vmatpush.msrb.mxu1 %v10470_v7 }
0x1e62   :  { %7268 = vmatmul.f32.vlgmr.msra.gmra.mxu0 %v9887_v41  ;;  %7527 = vmatpush.msra.mxu3 %v8689_v23  ;;  %v10489_v23 = vld [vmem:[#allocation36_spill] sm:$0xff] }
0x1e63   :  { %7415 = vmatpush.msrb.mxu0 %v10483_v34  ;;  %7457 = vmatpush.msrb.mxu1 %v10473_v8 }
0x1e64   :  { %7529 = vmatpush.msra.mxu3 %v8700_v58  ;;  %7492 = vmatpush.msra.mxu2 %v10484_v48 }
0x1e65   :  { %7418 = vmatpush.msrb.mxu0 %v10485_v1 }
0x1e66   :  { %7531 = vmatpush.msra.mxu3 %v10470_v7  ;;  %7496 = vmatpush.msra.mxu2 %v10486_v50 }
0x1e67   :  { %7421 = vmatpush.msrb.mxu0 %v10487_v26 }
0x1e68   :  { %7533 = vmatpush.msra.mxu3 %v10473_v8  ;;  %7500 = vmatpush.msra.mxu2 %v10488_v6  ;;  %v7590_v6 = vld [vmem:[%s10111_s10 + $0x18] sm:$0xff] }
0x1e69   :  { %7424 = vmatpush.msrb.mxu0 %v10489_v23  ;;  %v9981_v23 = vand.u32 4294901760, %v7590_v6 }
0x1e6a   :  { %7504 = vmatpush.msra.mxu2 %v10490_v40  ;;  %v7589_v40 = vld [vmem:[%s10111_s10 + $0x10] sm:$0xff] }
0x1e6b   :  { %7427 = vmatpush.msrb.mxu0 %v10491_v46 }
0x1e6d   :  { %7617 = vmatpush.msra.mxu0 %v9981_v23 }
0x1ebf   :  { %v6900_v58 = vpop.f32.mrf.mxu1 }
0x1ec5   :  { %v6990_v2 = vpop.f32.mrf.mxu2 }
0x1ec6   :  { %v7015_v63 = vpop.f32.mrf.mxu3 }
0x1ec7   :  { %v6859_v12 = vpop.f32.mrf.mxu0  ;;  %v6957_v5 = vpop.f32.mrf.mxu1 }
0x1ec8   :  { %v6860_v10 = vadd.f32 %v8076_v52, %v6859_v12  ;;  %v9990_v12 = vand.u32 4294901760, %v7589_v40 }
0x1eca   :  { %v6901_v13 = vadd.f32 %v6900_v58, %v6860_v10  ;;  %v9988_v58 = vsub.f32 %v7590_v6, %v9981_v23  ;;  %v7588_v10 = vld [vmem:[%s10111_s10 + $0x8] sm:$0xff]  ;;  %7619 = vmatpush.msra.mxu0 %v9990_v12 }
0x1ecf   :  { %v6930_v22 = vpop.f32.mrf.mxu0 }
0x1ed0   :  { %v6931_v55 = vadd.f32 %v6930_v22, %v6901_v13  ;;  %v7663_v22 = vand.u32 4294901760, %v9988_v58 }
0x1ed2   :  { %v6958_v39 = vadd.f32 %v6957_v5, %v6931_v55  ;;  %v9997_v55 = vand.u32 4294901760, %v7588_v10  ;;  %v10000_v5 = vsub.f32 %v7589_v40, %v9990_v12 }
0x1ed4   :  { %v6991_v35 = vadd.f32 %v6990_v2, %v6958_v39  ;;  %7621 = vmatpush.msra.mxu0 %v9997_v55 }
0x1ed6   :  { %v7016_v17 = vadd.f32 %v7015_v63, %v6991_v35  ;;  %v7587_v35 = vld [vmem:[%s10111_s10] sm:$0xff] }
0x1ed8   :  { %v7019_v54 = vrot.slane %v7016_v17, 1  ;;  %v7020_v15 = vperm.slane %v7016_v17, 0 }
0x1eda   :  { %v7021_v27 = vperm.slane %v7019_v54, 0  ;;  %v7024_v62 = vadd.f32 %v7020_v15, %v10492_v57  ;;  %v7664_v54 = vsub.f32 %v9988_v58, %v7663_v22  ;;  %v7669_v15 = vand.u32 4294901760, %v10000_v5 }
0x1edb   :  { %v10010_v57 = vand.u32 4294901760, %v7587_v35 }
0x1edc   :  { %8039 = vtanh.f32 %v7024_v62  ;;  %v7025_v44 = vadd.f32 %v7021_v27, %v10493_v28  ;;  %v10013_v62 = vsub.f32 %v7588_v10, %v9997_v55  ;;  %v7585_v10 = vld [vmem:[#allocation3 + $0x8] sm:$0xff] }
0x1edd   :  { %7623 = vmatpush.msra.mxu0 %v10010_v57 }
0x1ede   :  { %8041 = vtanh.f32 %v7025_v44 }
0x1ee2   :  { %v8040_v51 = vpop.eup %8039 }
0x1ee3   :  { %v7028_v31 = vmul.f32 %v8077_v53, %v8040_v51  ;;  %v7665_v51 = vand.u32 4294901760, %v7664_v54 }
0x1ee4   :  { %v8042_v56 = vpop.eup %8041 }
0x1ee5   :  { %v7030_v0 = vsel %vm803_vm3, %v7028_v31, 0.0  ;;  %v7029_v61 = vmul.f32 %v8077_v53, %v8042_v56  ;;  %v7670_v53 = vsub.f32 %v10000_v5, %v7669_v15  ;;  %7666 = vmatpush.msra.mxu1 %v7665_v51 }
0x1ee6   :  { %7031 = vadd.xlane.f32.xlu0 %v7030_v0  ;;  %v7675_v0 = vand.u32 4294901760, %v10013_v62 }
0x1ee7   :  { %v7033_v20 = vsel %vm803_vm3, %v7029_v61, 0.0  ;;  %v10021_v61 = vsub.f32 %v7587_v35, %v10010_v57  ;;  %v7599_v35 = vsel %vm803_vm3, %v7585_v10, 0 }
0x1ee8   :  { %7034 = vadd.xlane.f32.xlu2 %v7033_v20 }
0x1f59   :  { %v7032_v32 = vpop.xlane.xlu0 %7031 }
0x1f5a   :  { %v7036_v25 = vrot.slane %v7032_v32, 4 }
0x1f5b   :  { %v7035_v30 = vpop.xlane.xlu2 %7034 }
0x1f5c   :  { %v7037_v33 = vmax.f32 %v7032_v32, %v7036_v25  ;;  %v7042_v36 = vrot.slane %v7035_v30, 4  ;;  %v7671_v25 = vand.u32 4294901760, %v7670_v53 }
0x1f5e   :  { %v7038_v37 = vrot.slane %v7037_v33, 2  ;;  %v7043_v38 = vmax.f32 %v7035_v30, %v7042_v36  ;;  %v7681_v36 = vand.u32 4294901760, %v10021_v61  ;;  %7672 = vmatpush.msra.mxu1 %v7671_v25 }
0x1f60   :  { %v7039_v41 = vmax.f32 %v7037_v33, %v7038_v37  ;;  %v7044_v16 = vrot.slane %v7043_v38, 2  ;;  %v7676_v33 = vsub.f32 %v10013_v62, %v7675_v0 }
0x1f62   :  { %v7040_v42 = vrot.slane %v7039_v41, 1  ;;  %v7045_v43 = vmax.f32 %v7043_v38, %v7044_v16 }
0x1f64   :  { %v7041_v45 = vmax.f32 %v7039_v41, %v7040_v42  ;;  %v7046_v14 = vrot.slane %v7045_v43, 1  ;;  %v7677_v42 = vand.u32 4294901760, %v7676_v33 }
0x1f66   :  { %v7048_v21 = vsub.f32 %v7032_v32, %v7041_v45  ;;  %v7047_v7 = vmax.f32 %v7045_v43, %v7046_v14  ;;  %v7682_v43 = vsub.f32 %v10021_v61, %v7681_v36  ;;  %v8078_v14 = vld [vmem:[%s10102_s0] sm:$0xff]  ;;  %7678 = vmatpush.msra.mxu1 %v7677_v42 }
0x1f68   :  { %v7050_v19 = vmul.f32 1.442695, %v7048_v21  ;;  %v7049_v47 = vsub.f32 %v7035_v30, %v7047_v7 }
0x1f6a   :  { %8043 = vpow2.f32 %v7050_v19  ;;  %v7052_v8 = vmul.f32 1.442695, %v7049_v47  ;;  %v7683_v19 = vand.u32 4294901760, %v7682_v43 }
0x1f6c   :  { %8045 = vpow2.f32 %v7052_v8  ;;  %7684 = vmatpush.msra.mxu1 %v7683_v19 }
0x1f70   :  { %v9970_v24 = vpop.eup %8043 }
0x1f71   :  { %v7054_v59 = vrot.slane %v9970_v24, 4 }
0x1f72   :  { %v9973_v60 = vpop.eup %8045 }
0x1f73   :  { %v7055_v9 = vadd.f32 %v9970_v24, %v7054_v59  ;;  %v7060_v4 = vrot.slane %v9973_v60, 4 }
0x1f75   :  { %v7056_v11 = vrot.slane %v7055_v9, 2  ;;  %v7061_v3 = vadd.f32 %v9973_v60, %v7060_v4 }
0x1f77   :  { %v7057_v49 = vadd.f32 %v7056_v11, %v7055_v9  ;;  %v7062_v18 = vrot.slane %v7061_v3, 2 }
0x1f79   :  { %v7058_v34 = vrot.slane %v7057_v49, 1  ;;  %v7063_v48 = vadd.f32 %v7062_v18, %v7061_v3 }
0x1f7b   :  { %v7059_v1 = vadd.f32 %v7058_v34, %v7057_v49  ;;  %v7064_v50 = vrot.slane %v7063_v48, 1  ;;  %v7584_v34 = vld [vmem:[#allocation3] sm:$0xff] }
0x1f7d   :  { %8047 = vrcp.f32 %v7059_v1  ;;  %v7065_v26 = vadd.f32 %v7064_v50, %v7063_v48  ;;  %v7077_v13 = vand.u32 2147483648, %v7059_v1  ;;  %vm7071_vm13 = vweird.f32 %v7059_v1 }
0x1f7e   :  { %v7075_v63 = vand.u32 2147483647, %v7059_v1 }
0x1f7f   :  { %8049 = vrcp.f32 %v7065_v26  ;;  %v7078_v28 = vor.u32 1.1754944e-38, %v7077_v13  ;;  %v7092_v56 = vand.u32 2147483648, %v7065_v26  ;;  %v7090_v32 = vand.u32 2147483647, %v7065_v26 }
0x1f80   :  { %vm7076_vm5 = vcmp.eq.f32.partialorder %v7075_v63, 8.507059e+37  ;;  %vm7086_vm6 = vweird.f32 %v7065_v26 }
0x1f81   :  { %v7093_v16 = vor.u32 1.1754944e-38, %v7092_v56  ;;  %vm7091_vm8 = vcmp.eq.f32.partialorder %v7090_v32, 8.507059e+37 }
0x1f83   :  { %v8048_v46 = vpop.eup %8047 }
0x1f84   :  { %v7067_v52 = vmul.f32 %v8048_v46, %v7059_v1  ;;  %vm7072_vm14 = vweird.f32 %v8048_v46 }
0x1f85   :  { %v8050_v39 = vpop.eup %8049  ;;  %vm7073_vm15 = vmor %vm7071_vm13, %vm7072_vm14 }
0x1f86   :  { %v7068_v2 = vsub.f32 1.0, %v7067_v52  ;;  %v7082_v17 = vmul.f32 %v8050_v39, %v7065_v26  ;;  %vm7087_vm1 = vweird.f32 %v8050_v39 }
0x1f87   :  { %vm7088_vm7 = vmor %vm7086_vm6, %vm7087_vm1 }
0x1f88   :  { %v7069_v27 = vmul.f32 %v8048_v46, %v7068_v2  ;;  %v7083_v44 = vsub.f32 1.0, %v7082_v17 }
0x1f8a   :  { %v7070_v31 = vadd.f32 %v8048_v46, %v7069_v27  ;;  %v7084_v20 = vmul.f32 %v8050_v39, %v7083_v44  ;;  %v10048_v27 = vand.u32 4294901760, %v7599_v35 }
0x1f8c   :  { %v7074_v30 = vsel %vm7073_vm15, %v8048_v46, %v7070_v31  ;;  %v7085_v38 = vadd.f32 %v8050_v39, %v7084_v20  ;;  %v7633_v53 = vsub.f32 %v7599_v35, %v10048_v27  ;;  %v7236_v20 = vpop.f32.mrf.mxu3 }
0x1f8d   :  { %v7079_v37 = vsel %vm7076_vm5, %v7078_v28, %v7074_v30 }
0x1f8e   :  { %v7080_v41 = vmul.f32 %v9970_v24, %v7079_v37  ;;  %v7089_v45 = vsel %vm7088_vm7, %v8050_v39, %v7085_v38  ;;  %v8079_v24 = vld [vmem:[%s10102_s0 + $0x8] sm:$0xff]  ;;  %v7634_v56 = vand.u32 4294901760, %v7633_v53 }
0x1f8f   :  { %v7094_v7 = vsel %vm7091_vm8, %v7093_v16, %v7089_v45 }
0x1f90   :  { %v7096_v21 = vmul.f32 %v8078_v14, %v7080_v41  ;;  %v7095_v47 = vmul.f32 %v9973_v60, %v7094_v7  ;;  %v7596_v60 = vsel %vm803_vm3, %v7584_v34, 0  ;;  %v7539_v7 = vld [vmem:[#allocation2 + $0x10] sm:$0x3] }
0x1f91   :  { %v10042_v40 = vand.u32 4294901760, %v7596_v60 }
0x1f92   :  { %v7098_v8 = vsel %vm51_vm0, %v7096_v21, 0.0  ;;  %v7097_v59 = vmul.f32 %v8079_v24, %v7095_v47  ;;  %v8080_v47 = vld [vmem:[%s10110_s9] ss:$0 sm:$0xff] }
0x1f93   :  { %v7099_v9 = vrot.slane %v7098_v8, 4  ;;  %v7625_v39 = vsub.f32 %v7596_v60, %v10042_v40 }
0x1f94   :  { %v7105_v4 = vsel %vm51_vm0, %v7097_v59, 0.0 }
0x1f95   :  { %v7100_v11 = vadd.f32 %v7099_v9, %v7098_v8  ;;  %v7106_v3 = vrot.slane %v7105_v4, 4  ;;  %v7626_v54 = vand.u32 4294901760, %v7625_v39 }
0x1f97   :  { %v7101_v49 = vrot.slane %v7100_v11, 2  ;;  %v7107_v18 = vadd.f32 %v7106_v3, %v7105_v4  ;;  %v7627_v51 = vsub.f32 %v7625_v39, %v7626_v54 }
0x1f99   :  { %v7102_v48 = vadd.f32 %v7101_v49, %v7100_v11  ;;  %v7108_v1 = vrot.slane %v7107_v18, 2 }
0x1f9b   :  { %v7103_v50 = vrot.slane %v7102_v48, 1  ;;  %v7109_v26 = vadd.f32 %v7108_v1, %v7107_v18 }
0x1f9d   :  { %v7110_v6 = vrot.slane %v7109_v26, 1  ;;  %v7104_v46 = vadd.f32 %v7103_v50, %v7102_v48 }
0x1f9f   :  { %v7111_v52 = vadd.f32 %v7110_v6, %v7109_v26 }
0x1fa1   :  { %v7299_v13 = vsel %vm1273_vm12, %v7111_v52, %v7104_v46 }
0x1fa2   :  { %v7300_v2 = vsel %vm51_vm0, %v7299_v13, 0 }
0x1fa3   :  { %v7326_v63 = vand.u32 4294901760, %v7300_v2 }
0x1fa5   :  { %7392 = vmatmul.f32.vlgmr.msrb.gmra.mxu3 %v7326_v63  ;;  %v7327_v17 = vsub.f32 %v7300_v2, %v7326_v63 }
0x1fa6   :  { %7751 = vmatpush.msrb.mxu3 %v9981_v23 }
0x1fa7   :  { %7430 = vmatmul.f32.vlgmr.msrb.gmra.mxu0 %v7327_v17  ;;  %v7328_v28 = vand.u32 4294901760, %v7327_v17 }
0x1fa8   :  { %7753 = vmatpush.msrb.mxu3 %v9990_v12  ;;  %7792 = vmatpush.msrb.mxu0 %v7663_v22  ;;  %v7628_v22 = vand.u32 4294901760, %v7627_v51 }
0x1fa9   :  { %7461 = vmatmul.f32.vlgmr.msrb.gmra.mxu1 %v7328_v28  ;;  %v7329_v44 = vsub.f32 %v7327_v17, %v7328_v28 }
0x1faa   :  { %7755 = vmatpush.msrb.mxu3 %v9997_v55  ;;  %7831 = vmatpush.msrb.mxu1 %v9981_v23  ;;  %v7635_v23 = vsub.f32 %v7633_v53, %v7634_v56 }
0x1fab   :  { %v7330_v31 = vand.u32 4294901760, %v7329_v44  ;;  %7796 = vmatpush.msrb.mxu0 %v7669_v15  ;;  %v7209_v15 = vpop.f32.mrf.mxu2 }
0x1fac   :  { %7757 = vmatpush.msrb.mxu3 %v10010_v57  ;;  %7833 = vmatpush.msrb.mxu1 %v9990_v12  ;;  %v7138_v12 = vpop.f32.mrf.mxu0 }
0x1fad   :  { %7331 = vmatmul.f32.vlgmr.msrb.gmra.mxu2 %v7330_v31  ;;  %7535 = vmatmul.f32.vlgmr.msra.gmra.mxu3 %v7326_v63 }
0x1fae   :  { %7712 = vmatpush.msrb.mxu2 %v9988_v58  ;;  %7800 = vmatpush.msrb.mxu0 %v7675_v0  ;;  %v7636_v58 = vand.u32 4294901760, %v7635_v23 }
0x1faf   :  { %7629 = vmatmul.f32.vlgmr.msra.gmra.mxu0 %v7628_v22  ;;  %7835 = vmatpush.msrb.mxu1 %v9997_v55  ;;  %v7179_v55 = vpop.f32.mrf.mxu1 }
0x1fb0   :  { %7715 = vmatpush.msrb.mxu2 %v10000_v5  ;;  %7804 = vmatpush.msrb.mxu0 %v7681_v36  ;;  %v7180_v5 = vadd.f32 %v7179_v55, %v7138_v12 }
0x1fb1   :  { %7686 = vmatmul.f32.vlgmr.msra.gmra.mxu1 %v10042_v40 }
0x1fb2   :  { %7718 = vmatpush.msrb.mxu2 %v10013_v62  ;;  %7837 = vmatpush.msrb.mxu1 %v10010_v57  ;;  %v7210_v0 = vadd.f32 %v7209_v15, %v7180_v5 }
0x1fb4   :  { %7721 = vmatpush.msrb.mxu2 %v10021_v61  ;;  %v7269_v62 = vpop.f32.mrf.mxu0  ;;  %v7237_v32 = vadd.f32 %v7236_v20, %v7210_v0 }
0x1fb5   :  { %7506 = vmatmul.f32.vlgmr.msra.gmra.mxu2 %v7326_v63  ;;  %7761 = vmatmul.f32.vlgmr.msrb.gmra.mxu3 %v7626_v54 }
0x1fb6   :  { %v7270_v57 = vadd.f32 %v7269_v62, %v7237_v32 }
0x1fb7   :  { %7637 = vmatmul.f32.gmra.mxu0 %v7636_v58  ;;  %v7294_v25 = vpop.f32.mrf.mxu1  ;;  %v7878_v58 = vld [vmem:[%s10112_s11] ss:$0 sm:$0xff] }
0x1fb8   :  { %v7295_v61 = vadd.f32 %v7294_v25, %v7270_v57 }
0x1fb9   :  { %7690 = vmatmul.f32.gmra.mxu1 %v10048_v27 }
0x1fbd   :  { %7724 = vmatmul.f32.vlgmr.msrb.gmra.mxu2 %v7625_v39  ;;  %7767 = vmatmul.f32.gmra.mxu3 %v7634_v56 }
0x1fc5   :  { %7729 = vmatmul.f32.gmra.mxu2 %v7633_v53 }
0x2024   :  { %v7431_v38 = vpop.f32.mrf.mxu0 }
0x2026   :  { %v7462_v16 = vpop.f32.mrf.mxu1 }
0x2028   :  { %v7393_v30 = vpop.f32.mrf.mxu3 }
0x202c   :  { %v7630_v22 = vpop.f32.mrf.mxu0 }
0x202d   :  { %v7631_v55 = vadd.f32 %v7878_v58, %v7630_v22 }
0x202e   :  { %v7687_v31 = vpop.f32.mrf.mxu1 }
0x202f   :  { %v7688_v0 = vadd.f32 %v7687_v31, %v7631_v55 }
0x2030   :  { %v7332_v33 = vpop.f32.mrf.mxu2  ;;  %v7536_v14 = vpop.f32.mrf.mxu3 }
0x2031   :  { %v7333_v36 = vadd.f32 %v7332_v33, %v7295_v61 }
0x2033   :  { %v7394_v37 = vadd.f32 %v7393_v30, %v7333_v36 }
0x2034   :  { %v7638_v23 = vpop.f32.mrf.mxu0 }
0x2035   :  { %v7432_v41 = vadd.f32 %v7431_v38, %v7394_v37  ;;  %v7639_v62 = vadd.f32 %v7878_v58, %v7638_v23 }
0x2036   :  { %v7691_v56 = vpop.f32.mrf.mxu1 }
0x2037   :  { %v7463_v42 = vadd.f32 %v7462_v16, %v7432_v41  ;;  %v7692_v61 = vadd.f32 %v7691_v56, %v7639_v62 }
0x2038   :  { %v7507_v43 = vpop.f32.mrf.mxu2  ;;  %v7762_v20 = vpop.f32.mrf.mxu3 }
0x2039   :  { %v7508_v45 = vadd.f32 %v7507_v43, %v7463_v42 }
0x203b   :  { %v7537_v21 = vadd.f32 %v7536_v14, %v7508_v45 }
0x203d   :  { %v7540_v19 = vadd.f32 %v7539_v7, %v7537_v21 }
0x203f   :  { %v7541_v8 = vadd.f32 %v8080_v47, %v7540_v19 }
0x2040   :  { %v7725_v5 = vpop.f32.mrf.mxu2  ;;  %v7768_v38 = vpop.f32.mrf.mxu3 }
0x2041   :  { %8051 = vtanh.f32 %v7541_v8  ;;  %v7867_v59 = vmul.f32 -1.442695, %v7541_v8 }
0x2043   :  { %8053 = vpow2.f32 %v7867_v59 }
0x2047   :  { %v8052_v24 = vpop.eup %8051 }
0x2048   :  { %7564 = vrot.lane.b32.xlu0 %v8052_v24, %s8082_s28  ;;  %v7730_v57 = vpop.f32.mrf.mxu2 }
0x2049   :  { %v8054_v9 = vpop.eup %8053  ;;  %v7731_v33 = vadd.f32 %v7730_v57, %v7692_v61 }
0x204a   :  { %v7545_v4 = vadd.f32 1.0, %v8054_v9 }
0x204b   :  { %v7769_v16 = vadd.f32 %v7768_v38, %v7731_v33 }
0x204c   :  { %8055 = vrcp.f32 %v7545_v4  ;;  %v7557_v48 = vand.u32 2147483648, %v7545_v4  ;;  %vm7551_vm12 = vweird.f32 %v7545_v4  ;;  %v7555_v1 = vand.u32 2147483647, %v7545_v4 }
0x204e   :  { %v7558_v50 = vor.u32 1.1754944e-38, %v7557_v48  ;;  %vm7556_vm10 = vcmp.eq.f32.partialorder %v7555_v1, 8.507059e+37 }
0x2052   :  { %v8056_v11 = vpop.eup %8055 }
0x2053   :  { %v7547_v3 = vmul.f32 %v8056_v11, %v7545_v4  ;;  %vm7552_vm0 = vweird.f32 %v8056_v11 }
0x2054   :  { %vm7553_vm9 = vmor %vm7551_vm12, %vm7552_vm0 }
0x2055   :  { %v7548_v49 = vsub.f32 1.0, %v7547_v3 }
0x2057   :  { %v7549_v18 = vmul.f32 %v8056_v11, %v7548_v49 }
0x2059   :  { %v7550_v34 = vadd.f32 %v8056_v11, %v7549_v18 }
0x205b   :  { %v7554_v60 = vsel %vm7553_vm9, %v8056_v11, %v7550_v34 }
0x205c   :  { %v7559_v6 = vsel %vm7556_vm10, %v7558_v50, %v7554_v60 }
0x205d   :  { %v7562_v52 = vmul.f32 %v7559_v6, %v9880_v29 }
0x20ba   :  { %v7565_v26 = vpop.permute.xlu0 %7564 }
0x20bb   :  { %v7567_v46 = vmul.f32 %v7565_v26, %v7559_v6 }
0x20bd   :  { %7569 = vrot.lane.b32.xlu1 %v7567_v46, %s8083_s29 }
0x212f   :  { %v7570_v10 = vpop.permute.xlu1 %7569 }
0x2130   :  { %v7572_v13 = vadd.f32 %v7570_v10, %v7562_v52 }
0x2132   :  { %8057 = vtanh.f32 %v7572_v13 }
0x2138   :  { %v8058_v39 = vpop.eup %8057 }
0x2139   :  { %7575 = vrot.lane.b32.xlu0 %v8058_v39, %s8082_s28 }
0x21ab   :  { %v7576_v2 = vpop.permute.xlu0 %7575 }
0x21ac   :  { %v7578_v35 = vmul.f32 %v7576_v2, %v7559_v6 }
0x21ae   :  { %7580 = vrot.lane.b32.xlu1 %v7578_v35, %s8083_s29 }
0x2220   :  { %v7581_v63 = vpop.permute.xlu1 %7580 }
0x2221   :  { %7583 = vst.msk [vmem:[#allocation3 + $0x10] sm:$0x3] %vm1558_vm4, %v7581_v63 }
0x2228   :  { %v7586_v17 = vld [vmem:[#allocation3 + $0x10] sm:$0x3] }
0x2229   :  { %v7602_v54 = vsel %vm803_vm3, %v7586_v17, 0  ;;  %vm7853_vm3 = vcmask 91136  }
0x222a   :  { %v7640_v28 = vand.u32 4294901760, %v7602_v54 }
0x222c   :  { %7694 = vmatmul.f32.gmra.mxu1 %v7640_v28  ;;  %v7641_v44 = vsub.f32 %v7602_v54, %v7640_v28 }
0x222e   :  { %7734 = vmatmul.f32.gmra.mxu2 %v7641_v44  ;;  %v7642_v29 = vand.u32 4294901760, %v7641_v44 }
0x2230   :  { %7773 = vmatmul.f32.gmra.mxu3 %v7642_v29  ;;  %v7643_v51 = vsub.f32 %v7641_v44, %v7642_v29 }
0x2232   :  { %v7644_v53 = vand.u32 4294901760, %v7643_v51 }
0x2234   :  { %7645 = vmatmul.f32.gmra.mxu0 %v7644_v53  ;;  %7839 = vmatmul.f32.vlgmr.msrb.gmra.mxu1 %v10042_v40 }
0x223c   :  { %7806 = vmatmul.f32.vlgmr.msrb.gmra.mxu0 %v10042_v40  ;;  %7843 = vmatmul.f32.gmra.mxu1 %v10048_v27  ;;  %v7726_v40 = vadd.f32 %v7725_v5, %v7688_v0 }
0x2244   :  { %7810 = vmatmul.f32.gmra.mxu0 %v10048_v27  ;;  %7847 = vmatmul.f32.gmra.mxu1 %v7640_v28  ;;  %v7763_v27 = vadd.f32 %v7762_v20, %v7726_v40 }
0x224c   :  { %7814 = vmatmul.f32.gmra.mxu0 %v7640_v28 }
0x22a9   :  { %v7695_v12 = vpop.f32.mrf.mxu1 }
0x22b1   :  { %v7646_v15 = vpop.f32.mrf.mxu0  ;;  %v7840_v32 = vpop.f32.mrf.mxu1 }
0x22b2   :  { %v7647_v36 = vadd.f32 %v7878_v58, %v7646_v15  ;;  %v7735_v14 = vpop.f32.mrf.mxu2 }
0x22b3   :  { %v7774_v19 = vpop.f32.mrf.mxu3 }
0x22b4   :  { %v7696_v41 = vadd.f32 %v7695_v12, %v7647_v36 }
0x22b6   :  { %v7736_v21 = vadd.f32 %v7735_v14, %v7696_v41 }
0x22b8   :  { %v7775_v47 = vadd.f32 %v7774_v19, %v7736_v21 }
0x22b9   :  { %v7807_v25 = vpop.f32.mrf.mxu0  ;;  %v7844_v42 = vpop.f32.mrf.mxu1 }
0x22ba   :  { %v7808_v30 = vadd.f32 %v7807_v25, %v7763_v27 }
0x22bc   :  { %v7841_v37 = vadd.f32 %v7840_v32, %v7808_v30 }
0x22be   :  { %7851 = vst.msk [vmem:[%s10113_s12] sm:$0xff] %vm537_vm2, %v7841_v37 }
0x22c1   :  { %v7811_v43 = vpop.f32.mrf.mxu0  ;;  %v7848_v59 = vpop.f32.mrf.mxu1 }
0x22c2   :  { %v7812_v45 = vadd.f32 %v7811_v43, %v7769_v16 }
0x22c4   :  { %v7845_v7 = vadd.f32 %v7844_v42, %v7812_v45 }
0x22c6   :  { %7852 = vst.msk [vmem:[%s10113_s12 + $0x8] sm:$0xff] %vm537_vm2, %v7845_v7 }
0x22c9   :  { %v7815_v8 = vpop.f32.mrf.mxu0 }
0x22ca   :  { %v7816_v24 = vadd.f32 %v7815_v8, %v7775_v47 }
0x22cc   :  { %v7849_v9 = vadd.f32 %v7848_v59, %v7816_v24 }
0x22ce   :  { %7854 = vst.msk [vmem:[%s10113_s12 + $0x10] sm:$0x3] %vm7853_vm3, %v7849_v9 }

</bundles_post_ra>
